<compile_context>
chip_gen: v7x
topology: tpu7x:2x2x1
jax: 0.10.0
libtpu: 0.0.40
codegen_flags: <defaults>
</compile_context>

<pallas_src>
import jax
import jax.numpy as jnp
import numpy as np
from jax.experimental import pallas as pl
from jax.experimental.pallas import tpu as pltpu

# ----------------------------- model dims -----------------------------------
B = 2            # batch
S = 8            # target sequence length
SE = 8           # source (encoder) sequence length
H = 32           # hid_dim
NH = 4           # n_heads
HD = H // NH     # head_dim
PF = 64          # pf_dim
V = 64           # output_dim (vocab size)
MAXLEN = 100     # max_length (positional embedding table)
NL = 2           # n_layers
EPS = 1e-5       # LayerNorm eps (PyTorch default)
INV_SCALE = float(1.0 / np.sqrt(HD))   # attention 1/sqrt(head_dim)
EMB_SCALE = float(np.sqrt(H))          # embedding scale sqrt(hid_dim)
BS = B * S
BSE = B * SE


# ----------------------------- kernel helpers --------------------------------
def _layer_norm(x, gamma, beta):
    mu = jnp.mean(x, axis=-1, keepdims=True)
    var = jnp.mean((x - mu) ** 2, axis=-1, keepdims=True)
    return (x - mu) * jax.lax.rsqrt(var + EPS) * gamma + beta


def _softmax_rows(e):
    e = e - jnp.max(e, axis=-1, keepdims=True)
    p = jnp.exp(e)
    d = jnp.sum(p, axis=-1, keepdims=True)
    inv = pl.reciprocal(d, approx=True)      # EUP slot (otherwise idle)
    inv = inv * (2.0 - d * inv)              # one Newton step -> ~f32 accuracy
    return p * inv


def _mha(xq, xkv, sq, sk, w_qkv, b_qkv, w_o, b_o, neg_masks, fused,
         attn_out_ref):
    """Multi-head attention over batch-stacked row slabs.

    xq:  (B*sq, H) query rows;  xkv: (B*sk, H) key/value rows (batch-major).
    w_qkv: (H, 3H) fused [Wq | Wk | Wv];  b_qkv: (1, 3H).
    w_o: (H, H);  b_o: (1, H).
    neg_masks: list (len B) of boolean (sq, sk) arrays, True => masked.
    fused: True when xq is xkv (self-attention) -> single QKV matmul.
    attn_out_ref: optional (B*sq, NH*sk) output ref (lane-packed attention).
    """
    if fused:
        qkv = jnp.dot(xq, w_qkv, preferred_element_type=jnp.float32) + b_qkv
        q = qkv[:, 0:H]
        k = qkv[:, H:2 * H]
        v = qkv[:, 2 * H:3 * H]
    else:
        q = jnp.dot(xq, w_qkv[:, 0:H],
                    preferred_element_type=jnp.float32) + b_qkv[:, 0:H]
        kv = jnp.dot(xkv, w_qkv[:, H:],
                     preferred_element_type=jnp.float32) + b_qkv[:, H:]
        k = kv[:, 0:H]
        v = kv[:, H:2 * H]

    outs = []
    for b in range(B):                               # sublane-boundary slices
        qb = q[b * sq:(b + 1) * sq, :]
        kb = k[b * sk:(b + 1) * sk, :]
        vb = v[b * sk:(b + 1) * sk, :]
        neg = neg_masks[b]                           # hoisted, reused per head
        acc = None
        for h in range(NH):
            lo, hi = h * HD, (h + 1) * HD
            e = jax.lax.dot_general(
                qb[:, lo:hi], kb[:, lo:hi],
                dimension_numbers=(((1,), (1,)), ((), ())),
                preferred_element_type=jnp.float32) * INV_SCALE
            e = jnp.where(neg, -1e10, e)
            p = _softmax_rows(e)                     # (sq, sk)
            ctx = jnp.dot(p, vb[:, lo:hi], preferred_element_type=jnp.float32)
            contrib = jnp.dot(ctx, w_o[lo:hi, :],
                              preferred_element_type=jnp.float32)
            acc = contrib if acc is None else acc + contrib
            if attn_out_ref is not None:
                attn_out_ref[b * sq:(b + 1) * sq, h * sk:(h + 1) * sk] = p
        outs.append(acc + b_o)
    return jnp.concatenate(outs, axis=0)             # (B*sq, H)


# ----------------------------- kernel ----------------------------------------
def decoder_kernel(ids_ref, enc_ref, tmask_ref, smask_ref,
                   tok_emb_ref, pos_emb_ref,
                   sa_w_ref, sa_b_ref, sa_wo_ref, sa_bo_ref,
                   ea_w_ref, ea_b_ref, ea_wo_ref, ea_bo_ref,
                   w1_ref, b1_ref, w2_ref, b2_ref,
                   ln_g_ref, ln_b_ref,
                   wout_ref, bout_ref,
                   out_ref, attn_ref):
    # ---- embedding: one-hot @ table (MXU gather), scale, + positions --------
    ids = ids_ref[...]                                         # (B*S, 1) int32
    onehot = (ids == jax.lax.broadcasted_iota(jnp.int32, (BS, V), 1)
              ).astype(jnp.float32)                            # (B*S, V)
    tok = jnp.dot(onehot, tok_emb_ref[...], preferred_element_type=jnp.float32)
    pos = pos_emb_ref[0:S, :]                                  # rows 0..S-1
    x = tok * EMB_SCALE + jnp.concatenate([pos] * B, axis=0)   # (B*S, H)

    enc = enc_ref[...]                                         # (B*SE, H)

    # ---- mask predicates hoisted once (reused across layers & heads) --------
    neg_t = [tmask_ref[b] == 0.0 for b in range(B)]                       # (S,S)
    neg_s = [jnp.broadcast_to(smask_ref[b], (S, SE)) == 0.0
             for b in range(B)]                                            # (S,SE)

    # ---- decoder layers (Python-unrolled) ------------------------------------
    for l in range(NL):
        ln_g = ln_g_ref[l]                                     # (3, H)
        ln_b = ln_b_ref[l]

        sa = _mha(x, x, S, S, sa_w_ref[l], sa_b_ref[l], sa_wo_ref[l],
                  sa_bo_ref[l], neg_t, fused=True, attn_out_ref=None)
        x = _layer_norm(x + sa, ln_g[0:1, :], ln_b[0:1, :])

        is_last = (l == NL - 1)
        ea = _mha(x, enc, S, SE, ea_w_ref[l], ea_b_ref[l], ea_wo_ref[l],
                  ea_bo_ref[l], neg_s, fused=False,
                  attn_out_ref=attn_ref if is_last else None)
        x = _layer_norm(x + ea, ln_g[1:2, :], ln_b[1:2, :])

        h1 = jnp.maximum(
            jnp.dot(x, w1_ref[l], preferred_element_type=jnp.float32) + b1_ref[l],
            0.0)
        ff = jnp.dot(h1, w2_ref[l], preferred_element_type=jnp.float32) + b2_ref[l]
        x = _layer_norm(x + ff, ln_g[2:3, :], ln_b[2:3, :])

    # ---- output projection ----------------------------------------------------
    out_ref[...] = jnp.dot(x, wout_ref[...],
                           preferred_element_type=jnp.float32) + bout_ref[...]


# ----------------------------- wrapper ----------------------------------------
def decoder(trg_ids, enc_src, trg_mask, src_mask, params):
    (tok_emb, pos_emb, sa_w, sa_b, sa_wo, sa_bo, ea_w, ea_b, ea_wo, ea_bo,
     w1, b1, w2, b2, ln_g, ln_b, wout, bout) = params

    ids2d = trg_ids.reshape(BS, 1).astype(jnp.int32)   # batch-major rows
    enc2d = enc_src.reshape(BSE, H)

    full = lambda shape: pl.BlockSpec(shape, lambda i: (0,) * len(shape))

    in_specs = [
        full((BS, 1)), full((BSE, H)),
        full((B, S, S)), full((B, 1, SE)),
        full((V, H)), full((MAXLEN, H)),
        full((NL, H, 3 * H)), full((NL, 1, 3 * H)),
        full((NL, H, H)), full((NL, 1, H)),
        full((NL, H, 3 * H)), full((NL, 1, 3 * H)),
        full((NL, H, H)), full((NL, 1, H)),
        full((NL, H, PF)), full((NL, 1, PF)),
        full((NL, PF, H)), full((NL, 1, H)),
        full((NL, 3, H)), full((NL, 3, H)),
        full((H, V)), full((1, V)),
    ]
    out_specs = (full((BS, V)), full((BS, NH * SE)))
    out_shape = (jax.ShapeDtypeStruct((BS, V), jnp.float32),
                 jax.ShapeDtypeStruct((BS, NH * SE), jnp.float32))

    out2d, attn2d = pl.pallas_call(
        decoder_kernel,
        grid=(1,),                       # batch collapsed into sublane axis
        in_specs=in_specs,
        out_specs=out_specs,
        out_shape=out_shape,
        compiler_params=pltpu.CompilerParams(
            dimension_semantics=("arbitrary",)),
    )(ids2d, enc2d, trg_mask, src_mask,
      tok_emb, pos_emb, sa_w, sa_b, sa_wo, sa_bo, ea_w, ea_b, ea_wo, ea_bo,
      w1, b1, w2, b2, ln_g, ln_b, wout, bout)

    out = out2d.reshape(B, S, V)
    attn = attn2d.reshape(B, S, NH, SE).transpose(0, 2, 1, 3)
    return out, attn


# ----------------------------- pure-JAX reference ----------------------------
def _ref_mha(xq, xkv, w_qkv, b_qkv, w_o, b_o, mask):
    q = xq @ w_qkv[:, 0:H] + b_qkv[0, 0:H]
    k = xkv @ w_qkv[:, H:2 * H] + b_qkv[0, H:2 * H]
    v = xkv @ w_qkv[:, 2 * H:] + b_qkv[0, 2 * H:]
    bq, sq, _ = q.shape
    sk = k.shape[1]
    qh = q.reshape(bq, sq, NH, HD).transpose(0, 2, 1, 3)
    kh = k.reshape(bq, sk, NH, HD).transpose(0, 2, 1, 3)
    vh = v.reshape(bq, sk, NH, HD).transpose(0, 2, 1, 3)
    e = jnp.einsum("bhqd,bhkd->bhqk", qh, kh) / np.sqrt(HD)
    e = jnp.where(mask[:, None] == 0.0, -1e10, e)
    p = jax.nn.softmax(e, axis=-1)
    ctx = jnp.einsum("bhqk,bhkd->bhqd", p, vh)
    ctx = ctx.transpose(0, 2, 1, 3).reshape(bq, sq, H)
    return ctx @ w_o + b_o[0], p


def _ref_ln(x, g, b):
    mu = jnp.mean(x, axis=-1, keepdims=True)
    var = jnp.mean((x - mu) ** 2, axis=-1, keepdims=True)
    return (x - mu) / jnp.sqrt(var + EPS) * g + b


def decoder_ref(trg_ids, enc_src, trg_mask, src_mask, params):
    (tok_emb, pos_emb, sa_w, sa_b, sa_wo, sa_bo, ea_w, ea_b, ea_wo, ea_bo,
     w1, b1, w2, b2, ln_g, ln_b, wout, bout) = params
    x = tok_emb[trg_ids] * EMB_SCALE + pos_emb[jnp.arange(S)][None]
    attn = None
    for l in range(NL):
        sa, _ = _ref_mha(x, x, sa_w[l], sa_b[l], sa_wo[l], sa_bo[l], trg_mask)
        x = _ref_ln(x + sa, ln_g[l, 0], ln_b[l, 0])
        ea, attn = _ref_mha(x, enc_src, ea_w[l], ea_b[l], ea_wo[l], ea_bo[l],
                            src_mask)
        x = _ref_ln(x + ea, ln_g[l, 1], ln_b[l, 1])
        ff = jax.nn.relu(x @ w1[l] + b1[l, 0]) @ w2[l] + b2[l, 0]
        x = _ref_ln(x + ff, ln_g[l, 2], ln_b[l, 2])
    out = x @ wout + bout[0]
    return out, attn


# ----------------------------- main ------------------------------------------
if __name__ == "__main__":
    key = jax.random.PRNGKey(0)
    ks = jax.random.split(key, 24)

    trg_ids = jax.random.randint(ks[0], (B, S), 0, V, dtype=jnp.int32)
    enc_src = jax.random.normal(ks[1], (B, SE, H), jnp.float32)

    # causal target mask (B, S, S); full source mask (B, 1, SE)
    trg_mask = jnp.broadcast_to(
        jnp.tril(jnp.ones((S, S), jnp.float32))[None], (B, S, S))
    src_mask = jnp.ones((B, 1, SE), jnp.float32)

    ws = 0.08
    tok_emb = jax.random.normal(ks[2], (V, H), jnp.float32) * 0.5
    pos_emb = jax.random.normal(ks[3], (MAXLEN, H), jnp.float32) * 0.5
    sa_w = jax.random.normal(ks[4], (NL, H, 3 * H), jnp.float32) * ws
    sa_b = jax.random.normal(ks[5], (NL, 1, 3 * H), jnp.float32) * ws
    sa_wo = jax.random.normal(ks[6], (NL, H, H), jnp.float32) * ws
    sa_bo = jax.random.normal(ks[7], (NL, 1, H), jnp.float32) * ws
    ea_w = jax.random.normal(ks[8], (NL, H, 3 * H), jnp.float32) * ws
    ea_b = jax.random.normal(ks[9], (NL, 1, 3 * H), jnp.float32) * ws
    ea_wo = jax.random.normal(ks[10], (NL, H, H), jnp.float32) * ws
    ea_bo = jax.random.normal(ks[11], (NL, 1, H), jnp.float32) * ws
    w1 = jax.random.normal(ks[12], (NL, H, PF), jnp.float32) * ws
    b1 = jax.random.normal(ks[13], (NL, 1, PF), jnp.float32) * ws
    w2 = jax.random.normal(ks[14], (NL, PF, H), jnp.float32) * ws
    b2 = jax.random.normal(ks[15], (NL, 1, H), jnp.float32) * ws
    ln_g = 1.0 + jax.random.normal(ks[16], (NL, 3, H), jnp.float32) * 0.02
    ln_b = jax.random.normal(ks[17], (NL, 3, H), jnp.float32) * 0.02
    wout = jax.random.normal(ks[18], (H, V), jnp.float32) * ws
    bout = jax.random.normal(ks[19], (1, V), jnp.float32) * ws

    params = (tok_emb, pos_emb, sa_w, sa_b, sa_wo, sa_bo, ea_w, ea_b, ea_wo,
              ea_bo, w1, b1, w2, b2, ln_g, ln_b, wout, bout)

    out, attn = jax.block_until_ready(
        decoder(trg_ids, enc_src, trg_mask, src_mask, params))

    out_ref, attn_ref = decoder_ref(trg_ids, enc_src, trg_mask, src_mask, params)
    np.testing.assert_allclose(np.asarray(out), np.asarray(out_ref),
                               rtol=1e-4, atol=1e-4)
    np.testing.assert_allclose(np.asarray(attn), np.asarray(attn_ref),
                               rtol=1e-4, atol=1e-4)

    print("KERNEL_OK")
</pallas_src>

<mosaic_0001>
module attributes {stable_mosaic.version = 11 : i64} {
  func.func @decoder_kernel(%arg0: i32, %arg1: memref<16x1xi32, #tpu.memory_space<vmem>>, %arg2: memref<16x32xf32, #tpu.memory_space<vmem>>, %arg3: memref<2x8x8xf32, #tpu.memory_space<vmem>>, %arg4: memref<2x1x8xf32, #tpu.memory_space<vmem>>, %arg5: memref<64x32xf32, #tpu.memory_space<vmem>>, %arg6: memref<100x32xf32, #tpu.memory_space<vmem>>, %arg7: memref<2x32x96xf32, #tpu.memory_space<vmem>>, %arg8: memref<2x1x96xf32, #tpu.memory_space<vmem>>, %arg9: memref<2x32x32xf32, #tpu.memory_space<vmem>>, %arg10: memref<2x1x32xf32, #tpu.memory_space<vmem>>, %arg11: memref<2x32x96xf32, #tpu.memory_space<vmem>>, %arg12: memref<2x1x96xf32, #tpu.memory_space<vmem>>, %arg13: memref<2x32x32xf32, #tpu.memory_space<vmem>>, %arg14: memref<2x1x32xf32, #tpu.memory_space<vmem>>, %arg15: memref<2x32x64xf32, #tpu.memory_space<vmem>>, %arg16: memref<2x1x64xf32, #tpu.memory_space<vmem>>, %arg17: memref<2x64x32xf32, #tpu.memory_space<vmem>>, %arg18: memref<2x1x32xf32, #tpu.memory_space<vmem>>, %arg19: memref<2x3x32xf32, #tpu.memory_space<vmem>>, %arg20: memref<2x3x32xf32, #tpu.memory_space<vmem>>, %arg21: memref<32x64xf32, #tpu.memory_space<vmem>>, %arg22: memref<1x64xf32, #tpu.memory_space<vmem>>, %arg23: memref<16x64xf32, #tpu.memory_space<vmem>>, %arg24: memref<16x32xf32, #tpu.memory_space<vmem>>) attributes {dimension_semantics = [#tpu.dimension_semantics<arbitrary>], iteration_bounds = array<i64: 1>, scalar_prefetch = 0 : i64, scratch_operands = 0 : i64, tpu.core_type = #tpu.core_type<tc>, window_params = [{pipeline_mode = #tpu.pipeline_mode<synchronous>, transform_indices = @transform_0, window_bounds = array<i64: 16, 1>}, {pipeline_mode = #tpu.pipeline_mode<synchronous>, transform_indices = @transform_1, window_bounds = array<i64: 16, 32>}, {pipeline_mode = #tpu.pipeline_mode<synchronous>, transform_indices = @transform_2, window_bounds = array<i64: 2, 8, 8>}, {pipeline_mode = #tpu.pipeline_mode<synchronous>, transform_indices = @transform_3, window_bounds = array<i64: 2, 1, 8>}, {pipeline_mode = #tpu.pipeline_mode<synchronous>, transform_indices = @transform_4, window_bounds = array<i64: 64, 32>}, {pipeline_mode = #tpu.pipeline_mode<synchronous>, transform_indices = @transform_5, window_bounds = array<i64: 100, 32>}, {pipeline_mode = #tpu.pipeline_mode<synchronous>, transform_indices = @transform_6, window_bounds = array<i64: 2, 32, 96>}, {pipeline_mode = #tpu.pipeline_mode<synchronous>, transform_indices = @transform_7, window_bounds = array<i64: 2, 1, 96>}, {pipeline_mode = #tpu.pipeline_mode<synchronous>, transform_indices = @transform_8, window_bounds = array<i64: 2, 32, 32>}, {pipeline_mode = #tpu.pipeline_mode<synchronous>, transform_indices = @transform_9, window_bounds = array<i64: 2, 1, 32>}, {pipeline_mode = #tpu.pipeline_mode<synchronous>, transform_indices = @transform_10, window_bounds = array<i64: 2, 32, 96>}, {pipeline_mode = #tpu.pipeline_mode<synchronous>, transform_indices = @transform_11, window_bounds = array<i64: 2, 1, 96>}, {pipeline_mode = #tpu.pipeline_mode<synchronous>, transform_indices = @transform_12, window_bounds = array<i64: 2, 32, 32>}, {pipeline_mode = #tpu.pipeline_mode<synchronous>, transform_indices = @transform_13, window_bounds = array<i64: 2, 1, 32>}, {pipeline_mode = #tpu.pipeline_mode<synchronous>, transform_indices = @transform_14, window_bounds = array<i64: 2, 32, 64>}, {pipeline_mode = #tpu.pipeline_mode<synchronous>, transform_indices = @transform_15, window_bounds = array<i64: 2, 1, 64>}, {pipeline_mode = #tpu.pipeline_mode<synchronous>, transform_indices = @transform_16, window_bounds = array<i64: 2, 64, 32>}, {pipeline_mode = #tpu.pipeline_mode<synchronous>, transform_indices = @transform_17, window_bounds = array<i64: 2, 1, 32>}, {pipeline_mode = #tpu.pipeline_mode<synchronous>, transform_indices = @transform_18, window_bounds = array<i64: 2, 3, 32>}, {pipeline_mode = #tpu.pipeline_mode<synchronous>, transform_indices = @transform_19, window_bounds = array<i64: 2, 3, 32>}, {pipeline_mode = #tpu.pipeline_mode<synchronous>, transform_indices = @transform_20, window_bounds = array<i64: 32, 64>}, {pipeline_mode = #tpu.pipeline_mode<synchronous>, transform_indices = @transform_21, window_bounds = array<i64: 1, 64>}, {pipeline_mode = #tpu.pipeline_mode<synchronous>, transform_indices = @transform_22, window_bounds = array<i64: 16, 64>}, {pipeline_mode = #tpu.pipeline_mode<synchronous>, transform_indices = @transform_23, window_bounds = array<i64: 16, 32>}]} {
    %c0 = arith.constant 0 : index
    %c0_0 = arith.constant 0 : index
    %0 = vector.load %arg1[%c0, %c0_0] : memref<16x1xi32, #tpu.memory_space<vmem>>, vector<16x1xi32>
    %1 = tpu.iota {dimensions = array<i32: 1>} : vector<16x64xi32>
    %2 = vector.broadcast %0 : vector<16x1xi32> to vector<16x64xi32>
    %3 = arith.cmpi eq, %2, %1 : vector<16x64xi32>
    %4 = arith.extui %3 : vector<16x64xi1> to vector<16x64xi32>
    %5 = arith.sitofp %4 : vector<16x64xi32> to vector<16x64xf32>
    %c0_1 = arith.constant 0 : index
    %c0_2 = arith.constant 0 : index
    %6 = vector.load %arg5[%c0_1, %c0_2] : memref<64x32xf32, #tpu.memory_space<vmem>>, vector<64x32xf32>
    %cst = arith.constant dense<0.000000e+00> : vector<16x32xf32>
    %7 = tpu.matmul %5, %6, %cst {dimension_numbers = #tpu.dot_dimension_numbers<[1], [0], [0], [1], [0, 0, 1, 1], [], []>} : vector<16x64xf32>, vector<64x32xf32>, vector<16x32xf32> -> vector<16x32xf32>
    %c0_3 = arith.constant 0 : index
    %c0_4 = arith.constant 0 : index
    %8 = vector.load %arg6[%c0_3, %c0_4] : memref<100x32xf32, #tpu.memory_space<vmem>>, vector<8x32xf32>
    %cst_5 = arith.constant 5.65685415 : f32
    %9 = vector.broadcast %cst_5 : f32 to vector<16x32xf32>
    %10 = arith.mulf %7, %9 : vector<16x32xf32>
    %11 = tpu.concatenate %8, %8 in 0 : vector<8x32xf32>, vector<8x32xf32> -> vector<16x32xf32>
    %12 = arith.addf %10, %11 : vector<16x32xf32>
    %c0_6 = arith.constant 0 : index
    %c0_7 = arith.constant 0 : index
    %13 = vector.load %arg2[%c0_6, %c0_7] : memref<16x32xf32, #tpu.memory_space<vmem>>, vector<16x32xf32>
    %c0_8 = arith.constant 0 : index
    %c0_9 = arith.constant 0 : index
    %c0_10 = arith.constant 0 : index
    %14 = vector.load %arg3[%c0_8, %c0_9, %c0_10] : memref<2x8x8xf32, #tpu.memory_space<vmem>>, vector<1x8x8xf32>
    %15 = vector.shape_cast %14 : vector<1x8x8xf32> to vector<8x8xf32>
    %cst_11 = arith.constant 0.000000e+00 : f32
    %16 = vector.broadcast %cst_11 : f32 to vector<8x8xf32>
    %17 = arith.cmpf oeq, %15, %16 : vector<8x8xf32>
    %c1 = arith.constant 1 : index
    %c0_12 = arith.constant 0 : index
    %c0_13 = arith.constant 0 : index
    %18 = vector.load %arg3[%c1, %c0_12, %c0_13] : memref<2x8x8xf32, #tpu.memory_space<vmem>>, vector<1x8x8xf32>
    %19 = vector.shape_cast %18 : vector<1x8x8xf32> to vector<8x8xf32>
    %cst_14 = arith.constant 0.000000e+00 : f32
    %20 = vector.broadcast %cst_14 : f32 to vector<8x8xf32>
    %21 = arith.cmpf oeq, %19, %20 : vector<8x8xf32>
    %c0_15 = arith.constant 0 : index
    %c0_16 = arith.constant 0 : index
    %c0_17 = arith.constant 0 : index
    %22 = vector.load %arg4[%c0_15, %c0_16, %c0_17] : memref<2x1x8xf32, #tpu.memory_space<vmem>>, vector<1x1x8xf32>
    %23 = vector.shape_cast %22 : vector<1x1x8xf32> to vector<1x8xf32>
    %24 = vector.shape_cast %23 : vector<1x8xf32> to vector<1x8xf32>
    %25 = vector.broadcast %24 : vector<1x8xf32> to vector<8x8xf32>
    %cst_18 = arith.constant 0.000000e+00 : f32
    %26 = vector.broadcast %cst_18 : f32 to vector<8x8xf32>
    %27 = arith.cmpf oeq, %25, %26 : vector<8x8xf32>
    %c1_19 = arith.constant 1 : index
    %c0_20 = arith.constant 0 : index
    %c0_21 = arith.constant 0 : index
    %28 = vector.load %arg4[%c1_19, %c0_20, %c0_21] : memref<2x1x8xf32, #tpu.memory_space<vmem>>, vector<1x1x8xf32>
    %29 = vector.shape_cast %28 : vector<1x1x8xf32> to vector<1x8xf32>
    %30 = vector.shape_cast %29 : vector<1x8xf32> to vector<1x8xf32>
    %31 = vector.broadcast %30 : vector<1x8xf32> to vector<8x8xf32>
    %cst_22 = arith.constant 0.000000e+00 : f32
    %32 = vector.broadcast %cst_22 : f32 to vector<8x8xf32>
    %33 = arith.cmpf oeq, %31, %32 : vector<8x8xf32>
    %c0_23 = arith.constant 0 : index
    %c0_24 = arith.constant 0 : index
    %c0_25 = arith.constant 0 : index
    %34 = vector.load %arg19[%c0_23, %c0_24, %c0_25] : memref<2x3x32xf32, #tpu.memory_space<vmem>>, vector<1x3x32xf32>
    %35 = vector.shape_cast %34 : vector<1x3x32xf32> to vector<3x32xf32>
    %c0_26 = arith.constant 0 : index
    %c0_27 = arith.constant 0 : index
    %c0_28 = arith.constant 0 : index
    %36 = vector.load %arg20[%c0_26, %c0_27, %c0_28] : memref<2x3x32xf32, #tpu.memory_space<vmem>>, vector<1x3x32xf32>
    %37 = vector.shape_cast %36 : vector<1x3x32xf32> to vector<3x32xf32>
    %c0_29 = arith.constant 0 : index
    %c0_30 = arith.constant 0 : index
    %c0_31 = arith.constant 0 : index
    %38 = vector.load %arg7[%c0_29, %c0_30, %c0_31] : memref<2x32x96xf32, #tpu.memory_space<vmem>>, vector<1x32x96xf32>
    %39 = vector.shape_cast %38 : vector<1x32x96xf32> to vector<32x96xf32>
    %c0_32 = arith.constant 0 : index
    %c0_33 = arith.constant 0 : index
    %c0_34 = arith.constant 0 : index
    %40 = vector.load %arg8[%c0_32, %c0_33, %c0_34] : memref<2x1x96xf32, #tpu.memory_space<vmem>>, vector<1x1x96xf32>
    %41 = vector.shape_cast %40 : vector<1x1x96xf32> to vector<1x96xf32>
    %c0_35 = arith.constant 0 : index
    %c0_36 = arith.constant 0 : index
    %c0_37 = arith.constant 0 : index
    %42 = vector.load %arg9[%c0_35, %c0_36, %c0_37] : memref<2x32x32xf32, #tpu.memory_space<vmem>>, vector<1x32x32xf32>
    %43 = vector.shape_cast %42 : vector<1x32x32xf32> to vector<32x32xf32>
    %c0_38 = arith.constant 0 : index
    %c0_39 = arith.constant 0 : index
    %c0_40 = arith.constant 0 : index
    %44 = vector.load %arg10[%c0_38, %c0_39, %c0_40] : memref<2x1x32xf32, #tpu.memory_space<vmem>>, vector<1x1x32xf32>
    %45 = vector.shape_cast %44 : vector<1x1x32xf32> to vector<1x32xf32>
    %cst_41 = arith.constant dense<0.000000e+00> : vector<16x96xf32>
    %46 = tpu.matmul %12, %39, %cst_41 {dimension_numbers = #tpu.dot_dimension_numbers<[1], [0], [0], [1], [0, 0, 1, 1], [], []>} : vector<16x32xf32>, vector<32x96xf32>, vector<16x96xf32> -> vector<16x96xf32>
    %47 = vector.broadcast %41 : vector<1x96xf32> to vector<16x96xf32>
    %48 = arith.addf %46, %47 : vector<16x96xf32>
    %49 = vector.extract_strided_slice %48 {offsets = [0, 0], sizes = [16, 32], strides = [1, 1]} : vector<16x96xf32> to vector<16x32xf32>
    %50 = vector.extract_strided_slice %48 {offsets = [0, 32], sizes = [16, 32], strides = [1, 1]} : vector<16x96xf32> to vector<16x32xf32>
    %51 = vector.extract_strided_slice %48 {offsets = [0, 64], sizes = [16, 32], strides = [1, 1]} : vector<16x96xf32> to vector<16x32xf32>
    %52 = vector.extract_strided_slice %49 {offsets = [0, 0], sizes = [8, 32], strides = [1, 1]} : vector<16x32xf32> to vector<8x32xf32>
    %53 = vector.extract_strided_slice %50 {offsets = [0, 0], sizes = [8, 32], strides = [1, 1]} : vector<16x32xf32> to vector<8x32xf32>
    %54 = vector.extract_strided_slice %51 {offsets = [0, 0], sizes = [8, 32], strides = [1, 1]} : vector<16x32xf32> to vector<8x32xf32>
    %55 = vector.extract_strided_slice %52 {offsets = [0, 0], sizes = [8, 8], strides = [1, 1]} : vector<8x32xf32> to vector<8x8xf32>
    %56 = vector.extract_strided_slice %53 {offsets = [0, 0], sizes = [8, 8], strides = [1, 1]} : vector<8x32xf32> to vector<8x8xf32>
    %cst_42 = arith.constant dense<0.000000e+00> : vector<8x8xf32>
    %57 = tpu.matmul %55, %56, %cst_42 {dimension_numbers = #tpu.dot_dimension_numbers<[1], [1], [0], [0], [0, 0, 1, 0], [], []>} : vector<8x8xf32>, vector<8x8xf32>, vector<8x8xf32> -> vector<8x8xf32>
    %cst_43 = arith.constant 0.353553385 : f32
    %58 = vector.broadcast %cst_43 : f32 to vector<8x8xf32>
    %59 = arith.mulf %57, %58 : vector<8x8xf32>
    %cst_44 = arith.constant -1.000000e+10 : f32
    %60 = vector.broadcast %cst_44 : f32 to vector<8x8xf32>
    %61 = arith.select %17, %60, %59 : vector<8x8xi1>, vector<8x8xf32>
    %cst_45 = arith.constant dense<0xFF800000> : vector<8xf32>
    %62 = vector.multi_reduction <maximumf>, %61, %cst_45 [1] : vector<8x8xf32> to vector<8xf32>
    %63 = vector.shape_cast %62 : vector<8xf32> to vector<8x1xf32>
    %64 = vector.broadcast %63 : vector<8x1xf32> to vector<8x8xf32>
    %65 = arith.subf %61, %64 : vector<8x8xf32>
    %66 = math.exp %65 : vector<8x8xf32>
    %cst_46 = arith.constant dense<0.000000e+00> : vector<8xf32>
    %67 = vector.multi_reduction <add>, %66, %cst_46 [1] : vector<8x8xf32> to vector<8xf32>
    %68 = vector.shape_cast %67 : vector<8xf32> to vector<8x1xf32>
    %69 = tpu.reciprocal %68 {approx = true} : vector<8x1xf32> -> vector<8x1xf32>
    %70 = arith.mulf %68, %69 : vector<8x1xf32>
    %cst_47 = arith.constant 2.000000e+00 : f32
    %71 = vector.broadcast %cst_47 : f32 to vector<8x1xf32>
    %72 = arith.subf %71, %70 : vector<8x1xf32>
    %73 = arith.mulf %69, %72 : vector<8x1xf32>
    %74 = vector.broadcast %73 : vector<8x1xf32> to vector<8x8xf32>
    %75 = arith.mulf %66, %74 : vector<8x8xf32>
    %76 = vector.extract_strided_slice %54 {offsets = [0, 0], sizes = [8, 8], strides = [1, 1]} : vector<8x32xf32> to vector<8x8xf32>
    %cst_48 = arith.constant dense<0.000000e+00> : vector<8x8xf32>
    %77 = tpu.matmul %75, %76, %cst_48 {dimension_numbers = #tpu.dot_dimension_numbers<[1], [0], [0], [1], [0, 0, 1, 1], [], []>} : vector<8x8xf32>, vector<8x8xf32>, vector<8x8xf32> -> vector<8x8xf32>
    %78 = vector.extract_strided_slice %43 {offsets = [0, 0], sizes = [8, 32], strides = [1, 1]} : vector<32x32xf32> to vector<8x32xf32>
    %cst_49 = arith.constant dense<0.000000e+00> : vector<8x32xf32>
    %79 = tpu.matmul %77, %78, %cst_49 {dimension_numbers = #tpu.dot_dimension_numbers<[1], [0], [0], [1], [0, 0, 1, 1], [], []>} : vector<8x8xf32>, vector<8x32xf32>, vector<8x32xf32> -> vector<8x32xf32>
    %80 = vector.extract_strided_slice %52 {offsets = [0, 8], sizes = [8, 8], strides = [1, 1]} : vector<8x32xf32> to vector<8x8xf32>
    %81 = vector.extract_strided_slice %53 {offsets = [0, 8], sizes = [8, 8], strides = [1, 1]} : vector<8x32xf32> to vector<8x8xf32>
    %cst_50 = arith.constant dense<0.000000e+00> : vector<8x8xf32>
    %82 = tpu.matmul %80, %81, %cst_50 {dimension_numbers = #tpu.dot_dimension_numbers<[1], [1], [0], [0], [0, 0, 1, 0], [], []>} : vector<8x8xf32>, vector<8x8xf32>, vector<8x8xf32> -> vector<8x8xf32>
    %cst_51 = arith.constant 0.353553385 : f32
    %83 = vector.broadcast %cst_51 : f32 to vector<8x8xf32>
    %84 = arith.mulf %82, %83 : vector<8x8xf32>
    %cst_52 = arith.constant -1.000000e+10 : f32
    %85 = vector.broadcast %cst_52 : f32 to vector<8x8xf32>
    %86 = arith.select %17, %85, %84 : vector<8x8xi1>, vector<8x8xf32>
    %cst_53 = arith.constant dense<0xFF800000> : vector<8xf32>
    %87 = vector.multi_reduction <maximumf>, %86, %cst_53 [1] : vector<8x8xf32> to vector<8xf32>
    %88 = vector.shape_cast %87 : vector<8xf32> to vector<8x1xf32>
    %89 = vector.broadcast %88 : vector<8x1xf32> to vector<8x8xf32>
    %90 = arith.subf %86, %89 : vector<8x8xf32>
    %91 = math.exp %90 : vector<8x8xf32>
    %cst_54 = arith.constant dense<0.000000e+00> : vector<8xf32>
    %92 = vector.multi_reduction <add>, %91, %cst_54 [1] : vector<8x8xf32> to vector<8xf32>
    %93 = vector.shape_cast %92 : vector<8xf32> to vector<8x1xf32>
    %94 = tpu.reciprocal %93 {approx = true} : vector<8x1xf32> -> vector<8x1xf32>
    %95 = arith.mulf %93, %94 : vector<8x1xf32>
    %cst_55 = arith.constant 2.000000e+00 : f32
    %96 = vector.broadcast %cst_55 : f32 to vector<8x1xf32>
    %97 = arith.subf %96, %95 : vector<8x1xf32>
    %98 = arith.mulf %94, %97 : vector<8x1xf32>
    %99 = vector.broadcast %98 : vector<8x1xf32> to vector<8x8xf32>
    %100 = arith.mulf %91, %99 : vector<8x8xf32>
    %101 = vector.extract_strided_slice %54 {offsets = [0, 8], sizes = [8, 8], strides = [1, 1]} : vector<8x32xf32> to vector<8x8xf32>
    %cst_56 = arith.constant dense<0.000000e+00> : vector<8x8xf32>
    %102 = tpu.matmul %100, %101, %cst_56 {dimension_numbers = #tpu.dot_dimension_numbers<[1], [0], [0], [1], [0, 0, 1, 1], [], []>} : vector<8x8xf32>, vector<8x8xf32>, vector<8x8xf32> -> vector<8x8xf32>
    %103 = vector.extract_strided_slice %43 {offsets = [8, 0], sizes = [8, 32], strides = [1, 1]} : vector<32x32xf32> to vector<8x32xf32>
    %cst_57 = arith.constant dense<0.000000e+00> : vector<8x32xf32>
    %104 = tpu.matmul %102, %103, %cst_57 {dimension_numbers = #tpu.dot_dimension_numbers<[1], [0], [0], [1], [0, 0, 1, 1], [], []>} : vector<8x8xf32>, vector<8x32xf32>, vector<8x32xf32> -> vector<8x32xf32>
    %105 = arith.addf %79, %104 : vector<8x32xf32>
    %106 = vector.extract_strided_slice %52 {offsets = [0, 16], sizes = [8, 8], strides = [1, 1]} : vector<8x32xf32> to vector<8x8xf32>
    %107 = vector.extract_strided_slice %53 {offsets = [0, 16], sizes = [8, 8], strides = [1, 1]} : vector<8x32xf32> to vector<8x8xf32>
    %cst_58 = arith.constant dense<0.000000e+00> : vector<8x8xf32>
    %108 = tpu.matmul %106, %107, %cst_58 {dimension_numbers = #tpu.dot_dimension_numbers<[1], [1], [0], [0], [0, 0, 1, 0], [], []>} : vector<8x8xf32>, vector<8x8xf32>, vector<8x8xf32> -> vector<8x8xf32>
    %cst_59 = arith.constant 0.353553385 : f32
    %109 = vector.broadcast %cst_59 : f32 to vector<8x8xf32>
    %110 = arith.mulf %108, %109 : vector<8x8xf32>
    %cst_60 = arith.constant -1.000000e+10 : f32
    %111 = vector.broadcast %cst_60 : f32 to vector<8x8xf32>
    %112 = arith.select %17, %111, %110 : vector<8x8xi1>, vector<8x8xf32>
    %cst_61 = arith.constant dense<0xFF800000> : vector<8xf32>
    %113 = vector.multi_reduction <maximumf>, %112, %cst_61 [1] : vector<8x8xf32> to vector<8xf32>
    %114 = vector.shape_cast %113 : vector<8xf32> to vector<8x1xf32>
    %115 = vector.broadcast %114 : vector<8x1xf32> to vector<8x8xf32>
    %116 = arith.subf %112, %115 : vector<8x8xf32>
    %117 = math.exp %116 : vector<8x8xf32>
    %cst_62 = arith.constant dense<0.000000e+00> : vector<8xf32>
    %118 = vector.multi_reduction <add>, %117, %cst_62 [1] : vector<8x8xf32> to vector<8xf32>
    %119 = vector.shape_cast %118 : vector<8xf32> to vector<8x1xf32>
    %120 = tpu.reciprocal %119 {approx = true} : vector<8x1xf32> -> vector<8x1xf32>
    %121 = arith.mulf %119, %120 : vector<8x1xf32>
    %cst_63 = arith.constant 2.000000e+00 : f32
    %122 = vector.broadcast %cst_63 : f32 to vector<8x1xf32>
    %123 = arith.subf %122, %121 : vector<8x1xf32>
    %124 = arith.mulf %120, %123 : vector<8x1xf32>
    %125 = vector.broadcast %124 : vector<8x1xf32> to vector<8x8xf32>
    %126 = arith.mulf %117, %125 : vector<8x8xf32>
    %127 = vector.extract_strided_slice %54 {offsets = [0, 16], sizes = [8, 8], strides = [1, 1]} : vector<8x32xf32> to vector<8x8xf32>
    %cst_64 = arith.constant dense<0.000000e+00> : vector<8x8xf32>
    %128 = tpu.matmul %126, %127, %cst_64 {dimension_numbers = #tpu.dot_dimension_numbers<[1], [0], [0], [1], [0, 0, 1, 1], [], []>} : vector<8x8xf32>, vector<8x8xf32>, vector<8x8xf32> -> vector<8x8xf32>
    %129 = vector.extract_strided_slice %43 {offsets = [16, 0], sizes = [8, 32], strides = [1, 1]} : vector<32x32xf32> to vector<8x32xf32>
    %cst_65 = arith.constant dense<0.000000e+00> : vector<8x32xf32>
    %130 = tpu.matmul %128, %129, %cst_65 {dimension_numbers = #tpu.dot_dimension_numbers<[1], [0], [0], [1], [0, 0, 1, 1], [], []>} : vector<8x8xf32>, vector<8x32xf32>, vector<8x32xf32> -> vector<8x32xf32>
    %131 = arith.addf %105, %130 : vector<8x32xf32>
    %132 = vector.extract_strided_slice %52 {offsets = [0, 24], sizes = [8, 8], strides = [1, 1]} : vector<8x32xf32> to vector<8x8xf32>
    %133 = vector.extract_strided_slice %53 {offsets = [0, 24], sizes = [8, 8], strides = [1, 1]} : vector<8x32xf32> to vector<8x8xf32>
    %cst_66 = arith.constant dense<0.000000e+00> : vector<8x8xf32>
    %134 = tpu.matmul %132, %133, %cst_66 {dimension_numbers = #tpu.dot_dimension_numbers<[1], [1], [0], [0], [0, 0, 1, 0], [], []>} : vector<8x8xf32>, vector<8x8xf32>, vector<8x8xf32> -> vector<8x8xf32>
    %cst_67 = arith.constant 0.353553385 : f32
    %135 = vector.broadcast %cst_67 : f32 to vector<8x8xf32>
    %136 = arith.mulf %134, %135 : vector<8x8xf32>
    %cst_68 = arith.constant -1.000000e+10 : f32
    %137 = vector.broadcast %cst_68 : f32 to vector<8x8xf32>
    %138 = arith.select %17, %137, %136 : vector<8x8xi1>, vector<8x8xf32>
    %cst_69 = arith.constant dense<0xFF800000> : vector<8xf32>
    %139 = vector.multi_reduction <maximumf>, %138, %cst_69 [1] : vector<8x8xf32> to vector<8xf32>
    %140 = vector.shape_cast %139 : vector<8xf32> to vector<8x1xf32>
    %141 = vector.broadcast %140 : vector<8x1xf32> to vector<8x8xf32>
    %142 = arith.subf %138, %141 : vector<8x8xf32>
    %143 = math.exp %142 : vector<8x8xf32>
    %cst_70 = arith.constant dense<0.000000e+00> : vector<8xf32>
    %144 = vector.multi_reduction <add>, %143, %cst_70 [1] : vector<8x8xf32> to vector<8xf32>
    %145 = vector.shape_cast %144 : vector<8xf32> to vector<8x1xf32>
    %146 = tpu.reciprocal %145 {approx = true} : vector<8x1xf32> -> vector<8x1xf32>
    %147 = arith.mulf %145, %146 : vector<8x1xf32>
    %cst_71 = arith.constant 2.000000e+00 : f32
    %148 = vector.broadcast %cst_71 : f32 to vector<8x1xf32>
    %149 = arith.subf %148, %147 : vector<8x1xf32>
    %150 = arith.mulf %146, %149 : vector<8x1xf32>
    %151 = vector.broadcast %150 : vector<8x1xf32> to vector<8x8xf32>
    %152 = arith.mulf %143, %151 : vector<8x8xf32>
    %153 = vector.extract_strided_slice %54 {offsets = [0, 24], sizes = [8, 8], strides = [1, 1]} : vector<8x32xf32> to vector<8x8xf32>
    %cst_72 = arith.constant dense<0.000000e+00> : vector<8x8xf32>
    %154 = tpu.matmul %152, %153, %cst_72 {dimension_numbers = #tpu.dot_dimension_numbers<[1], [0], [0], [1], [0, 0, 1, 1], [], []>} : vector<8x8xf32>, vector<8x8xf32>, vector<8x8xf32> -> vector<8x8xf32>
    %155 = vector.extract_strided_slice %43 {offsets = [24, 0], sizes = [8, 32], strides = [1, 1]} : vector<32x32xf32> to vector<8x32xf32>
    %cst_73 = arith.constant dense<0.000000e+00> : vector<8x32xf32>
    %156 = tpu.matmul %154, %155, %cst_73 {dimension_numbers = #tpu.dot_dimension_numbers<[1], [0], [0], [1], [0, 0, 1, 1], [], []>} : vector<8x8xf32>, vector<8x32xf32>, vector<8x32xf32> -> vector<8x32xf32>
    %157 = arith.addf %131, %156 : vector<8x32xf32>
    %158 = vector.broadcast %45 : vector<1x32xf32> to vector<8x32xf32>
    %159 = arith.addf %157, %158 : vector<8x32xf32>
    %160 = vector.extract_strided_slice %49 {offsets = [8, 0], sizes = [8, 32], strides = [1, 1]} : vector<16x32xf32> to vector<8x32xf32>
    %161 = vector.extract_strided_slice %50 {offsets = [8, 0], sizes = [8, 32], strides = [1, 1]} : vector<16x32xf32> to vector<8x32xf32>
    %162 = vector.extract_strided_slice %51 {offsets = [8, 0], sizes = [8, 32], strides = [1, 1]} : vector<16x32xf32> to vector<8x32xf32>
    %163 = vector.extract_strided_slice %160 {offsets = [0, 0], sizes = [8, 8], strides = [1, 1]} : vector<8x32xf32> to vector<8x8xf32>
    %164 = vector.extract_strided_slice %161 {offsets = [0, 0], sizes = [8, 8], strides = [1, 1]} : vector<8x32xf32> to vector<8x8xf32>
    %cst_74 = arith.constant dense<0.000000e+00> : vector<8x8xf32>
    %165 = tpu.matmul %163, %164, %cst_74 {dimension_numbers = #tpu.dot_dimension_numbers<[1], [1], [0], [0], [0, 0, 1, 0], [], []>} : vector<8x8xf32>, vector<8x8xf32>, vector<8x8xf32> -> vector<8x8xf32>
    %cst_75 = arith.constant 0.353553385 : f32
    %166 = vector.broadcast %cst_75 : f32 to vector<8x8xf32>
    %167 = arith.mulf %165, %166 : vector<8x8xf32>
    %cst_76 = arith.constant -1.000000e+10 : f32
    %168 = vector.broadcast %cst_76 : f32 to vector<8x8xf32>
    %169 = arith.select %21, %168, %167 : vector<8x8xi1>, vector<8x8xf32>
    %cst_77 = arith.constant dense<0xFF800000> : vector<8xf32>
    %170 = vector.multi_reduction <maximumf>, %169, %cst_77 [1] : vector<8x8xf32> to vector<8xf32>
    %171 = vector.shape_cast %170 : vector<8xf32> to vector<8x1xf32>
    %172 = vector.broadcast %171 : vector<8x1xf32> to vector<8x8xf32>
    %173 = arith.subf %169, %172 : vector<8x8xf32>
    %174 = math.exp %173 : vector<8x8xf32>
    %cst_78 = arith.constant dense<0.000000e+00> : vector<8xf32>
    %175 = vector.multi_reduction <add>, %174, %cst_78 [1] : vector<8x8xf32> to vector<8xf32>
    %176 = vector.shape_cast %175 : vector<8xf32> to vector<8x1xf32>
    %177 = tpu.reciprocal %176 {approx = true} : vector<8x1xf32> -> vector<8x1xf32>
    %178 = arith.mulf %176, %177 : vector<8x1xf32>
    %cst_79 = arith.constant 2.000000e+00 : f32
    %179 = vector.broadcast %cst_79 : f32 to vector<8x1xf32>
    %180 = arith.subf %179, %178 : vector<8x1xf32>
    %181 = arith.mulf %177, %180 : vector<8x1xf32>
    %182 = vector.broadcast %181 : vector<8x1xf32> to vector<8x8xf32>
    %183 = arith.mulf %174, %182 : vector<8x8xf32>
    %184 = vector.extract_strided_slice %162 {offsets = [0, 0], sizes = [8, 8], strides = [1, 1]} : vector<8x32xf32> to vector<8x8xf32>
    %cst_80 = arith.constant dense<0.000000e+00> : vector<8x8xf32>
    %185 = tpu.matmul %183, %184, %cst_80 {dimension_numbers = #tpu.dot_dimension_numbers<[1], [0], [0], [1], [0, 0, 1, 1], [], []>} : vector<8x8xf32>, vector<8x8xf32>, vector<8x8xf32> -> vector<8x8xf32>
    %186 = vector.extract_strided_slice %43 {offsets = [0, 0], sizes = [8, 32], strides = [1, 1]} : vector<32x32xf32> to vector<8x32xf32>
    %cst_81 = arith.constant dense<0.000000e+00> : vector<8x32xf32>
    %187 = tpu.matmul %185, %186, %cst_81 {dimension_numbers = #tpu.dot_dimension_numbers<[1], [0], [0], [1], [0, 0, 1, 1], [], []>} : vector<8x8xf32>, vector<8x32xf32>, vector<8x32xf32> -> vector<8x32xf32>
    %188 = vector.extract_strided_slice %160 {offsets = [0, 8], sizes = [8, 8], strides = [1, 1]} : vector<8x32xf32> to vector<8x8xf32>
    %189 = vector.extract_strided_slice %161 {offsets = [0, 8], sizes = [8, 8], strides = [1, 1]} : vector<8x32xf32> to vector<8x8xf32>
    %cst_82 = arith.constant dense<0.000000e+00> : vector<8x8xf32>
    %190 = tpu.matmul %188, %189, %cst_82 {dimension_numbers = #tpu.dot_dimension_numbers<[1], [1], [0], [0], [0, 0, 1, 0], [], []>} : vector<8x8xf32>, vector<8x8xf32>, vector<8x8xf32> -> vector<8x8xf32>
    %cst_83 = arith.constant 0.353553385 : f32
    %191 = vector.broadcast %cst_83 : f32 to vector<8x8xf32>
    %192 = arith.mulf %190, %191 : vector<8x8xf32>
    %cst_84 = arith.constant -1.000000e+10 : f32
    %193 = vector.broadcast %cst_84 : f32 to vector<8x8xf32>
    %194 = arith.select %21, %193, %192 : vector<8x8xi1>, vector<8x8xf32>
    %cst_85 = arith.constant dense<0xFF800000> : vector<8xf32>
    %195 = vector.multi_reduction <maximumf>, %194, %cst_85 [1] : vector<8x8xf32> to vector<8xf32>
    %196 = vector.shape_cast %195 : vector<8xf32> to vector<8x1xf32>
    %197 = vector.broadcast %196 : vector<8x1xf32> to vector<8x8xf32>
    %198 = arith.subf %194, %197 : vector<8x8xf32>
    %199 = math.exp %198 : vector<8x8xf32>
    %cst_86 = arith.constant dense<0.000000e+00> : vector<8xf32>
    %200 = vector.multi_reduction <add>, %199, %cst_86 [1] : vector<8x8xf32> to vector<8xf32>
    %201 = vector.shape_cast %200 : vector<8xf32> to vector<8x1xf32>
    %202 = tpu.reciprocal %201 {approx = true} : vector<8x1xf32> -> vector<8x1xf32>
    %203 = arith.mulf %201, %202 : vector<8x1xf32>
    %cst_87 = arith.constant 2.000000e+00 : f32
    %204 = vector.broadcast %cst_87 : f32 to vector<8x1xf32>
    %205 = arith.subf %204, %203 : vector<8x1xf32>
    %206 = arith.mulf %202, %205 : vector<8x1xf32>
    %207 = vector.broadcast %206 : vector<8x1xf32> to vector<8x8xf32>
    %208 = arith.mulf %199, %207 : vector<8x8xf32>
    %209 = vector.extract_strided_slice %162 {offsets = [0, 8], sizes = [8, 8], strides = [1, 1]} : vector<8x32xf32> to vector<8x8xf32>
    %cst_88 = arith.constant dense<0.000000e+00> : vector<8x8xf32>
    %210 = tpu.matmul %208, %209, %cst_88 {dimension_numbers = #tpu.dot_dimension_numbers<[1], [0], [0], [1], [0, 0, 1, 1], [], []>} : vector<8x8xf32>, vector<8x8xf32>, vector<8x8xf32> -> vector<8x8xf32>
    %211 = vector.extract_strided_slice %43 {offsets = [8, 0], sizes = [8, 32], strides = [1, 1]} : vector<32x32xf32> to vector<8x32xf32>
    %cst_89 = arith.constant dense<0.000000e+00> : vector<8x32xf32>
    %212 = tpu.matmul %210, %211, %cst_89 {dimension_numbers = #tpu.dot_dimension_numbers<[1], [0], [0], [1], [0, 0, 1, 1], [], []>} : vector<8x8xf32>, vector<8x32xf32>, vector<8x32xf32> -> vector<8x32xf32>
    %213 = arith.addf %187, %212 : vector<8x32xf32>
    %214 = vector.extract_strided_slice %160 {offsets = [0, 16], sizes = [8, 8], strides = [1, 1]} : vector<8x32xf32> to vector<8x8xf32>
    %215 = vector.extract_strided_slice %161 {offsets = [0, 16], sizes = [8, 8], strides = [1, 1]} : vector<8x32xf32> to vector<8x8xf32>
    %cst_90 = arith.constant dense<0.000000e+00> : vector<8x8xf32>
    %216 = tpu.matmul %214, %215, %cst_90 {dimension_numbers = #tpu.dot_dimension_numbers<[1], [1], [0], [0], [0, 0, 1, 0], [], []>} : vector<8x8xf32>, vector<8x8xf32>, vector<8x8xf32> -> vector<8x8xf32>
    %cst_91 = arith.constant 0.353553385 : f32
    %217 = vector.broadcast %cst_91 : f32 to vector<8x8xf32>
    %218 = arith.mulf %216, %217 : vector<8x8xf32>
    %cst_92 = arith.constant -1.000000e+10 : f32
    %219 = vector.broadcast %cst_92 : f32 to vector<8x8xf32>
    %220 = arith.select %21, %219, %218 : vector<8x8xi1>, vector<8x8xf32>
    %cst_93 = arith.constant dense<0xFF800000> : vector<8xf32>
    %221 = vector.multi_reduction <maximumf>, %220, %cst_93 [1] : vector<8x8xf32> to vector<8xf32>
    %222 = vector.shape_cast %221 : vector<8xf32> to vector<8x1xf32>
    %223 = vector.broadcast %222 : vector<8x1xf32> to vector<8x8xf32>
    %224 = arith.subf %220, %223 : vector<8x8xf32>
    %225 = math.exp %224 : vector<8x8xf32>
    %cst_94 = arith.constant dense<0.000000e+00> : vector<8xf32>
    %226 = vector.multi_reduction <add>, %225, %cst_94 [1] : vector<8x8xf32> to vector<8xf32>
    %227 = vector.shape_cast %226 : vector<8xf32> to vector<8x1xf32>
    %228 = tpu.reciprocal %227 {approx = true} : vector<8x1xf32> -> vector<8x1xf32>
    %229 = arith.mulf %227, %228 : vector<8x1xf32>
    %cst_95 = arith.constant 2.000000e+00 : f32
    %230 = vector.broadcast %cst_95 : f32 to vector<8x1xf32>
    %231 = arith.subf %230, %229 : vector<8x1xf32>
    %232 = arith.mulf %228, %231 : vector<8x1xf32>
    %233 = vector.broadcast %232 : vector<8x1xf32> to vector<8x8xf32>
    %234 = arith.mulf %225, %233 : vector<8x8xf32>
    %235 = vector.extract_strided_slice %162 {offsets = [0, 16], sizes = [8, 8], strides = [1, 1]} : vector<8x32xf32> to vector<8x8xf32>
    %cst_96 = arith.constant dense<0.000000e+00> : vector<8x8xf32>
    %236 = tpu.matmul %234, %235, %cst_96 {dimension_numbers = #tpu.dot_dimension_numbers<[1], [0], [0], [1], [0, 0, 1, 1], [], []>} : vector<8x8xf32>, vector<8x8xf32>, vector<8x8xf32> -> vector<8x8xf32>
    %237 = vector.extract_strided_slice %43 {offsets = [16, 0], sizes = [8, 32], strides = [1, 1]} : vector<32x32xf32> to vector<8x32xf32>
    %cst_97 = arith.constant dense<0.000000e+00> : vector<8x32xf32>
    %238 = tpu.matmul %236, %237, %cst_97 {dimension_numbers = #tpu.dot_dimension_numbers<[1], [0], [0], [1], [0, 0, 1, 1], [], []>} : vector<8x8xf32>, vector<8x32xf32>, vector<8x32xf32> -> vector<8x32xf32>
    %239 = arith.addf %213, %238 : vector<8x32xf32>
    %240 = vector.extract_strided_slice %160 {offsets = [0, 24], sizes = [8, 8], strides = [1, 1]} : vector<8x32xf32> to vector<8x8xf32>
    %241 = vector.extract_strided_slice %161 {offsets = [0, 24], sizes = [8, 8], strides = [1, 1]} : vector<8x32xf32> to vector<8x8xf32>
    %cst_98 = arith.constant dense<0.000000e+00> : vector<8x8xf32>
    %242 = tpu.matmul %240, %241, %cst_98 {dimension_numbers = #tpu.dot_dimension_numbers<[1], [1], [0], [0], [0, 0, 1, 0], [], []>} : vector<8x8xf32>, vector<8x8xf32>, vector<8x8xf32> -> vector<8x8xf32>
    %cst_99 = arith.constant 0.353553385 : f32
    %243 = vector.broadcast %cst_99 : f32 to vector<8x8xf32>
    %244 = arith.mulf %242, %243 : vector<8x8xf32>
    %cst_100 = arith.constant -1.000000e+10 : f32
    %245 = vector.broadcast %cst_100 : f32 to vector<8x8xf32>
    %246 = arith.select %21, %245, %244 : vector<8x8xi1>, vector<8x8xf32>
    %cst_101 = arith.constant dense<0xFF800000> : vector<8xf32>
    %247 = vector.multi_reduction <maximumf>, %246, %cst_101 [1] : vector<8x8xf32> to vector<8xf32>
    %248 = vector.shape_cast %247 : vector<8xf32> to vector<8x1xf32>
    %249 = vector.broadcast %248 : vector<8x1xf32> to vector<8x8xf32>
    %250 = arith.subf %246, %249 : vector<8x8xf32>
    %251 = math.exp %250 : vector<8x8xf32>
    %cst_102 = arith.constant dense<0.000000e+00> : vector<8xf32>
    %252 = vector.multi_reduction <add>, %251, %cst_102 [1] : vector<8x8xf32> to vector<8xf32>
    %253 = vector.shape_cast %252 : vector<8xf32> to vector<8x1xf32>
    %254 = tpu.reciprocal %253 {approx = true} : vector<8x1xf32> -> vector<8x1xf32>
    %255 = arith.mulf %253, %254 : vector<8x1xf32>
    %cst_103 = arith.constant 2.000000e+00 : f32
    %256 = vector.broadcast %cst_103 : f32 to vector<8x1xf32>
    %257 = arith.subf %256, %255 : vector<8x1xf32>
    %258 = arith.mulf %254, %257 : vector<8x1xf32>
    %259 = vector.broadcast %258 : vector<8x1xf32> to vector<8x8xf32>
    %260 = arith.mulf %251, %259 : vector<8x8xf32>
    %261 = vector.extract_strided_slice %162 {offsets = [0, 24], sizes = [8, 8], strides = [1, 1]} : vector<8x32xf32> to vector<8x8xf32>
    %cst_104 = arith.constant dense<0.000000e+00> : vector<8x8xf32>
    %262 = tpu.matmul %260, %261, %cst_104 {dimension_numbers = #tpu.dot_dimension_numbers<[1], [0], [0], [1], [0, 0, 1, 1], [], []>} : vector<8x8xf32>, vector<8x8xf32>, vector<8x8xf32> -> vector<8x8xf32>
    %263 = vector.extract_strided_slice %43 {offsets = [24, 0], sizes = [8, 32], strides = [1, 1]} : vector<32x32xf32> to vector<8x32xf32>
    %cst_105 = arith.constant dense<0.000000e+00> : vector<8x32xf32>
    %264 = tpu.matmul %262, %263, %cst_105 {dimension_numbers = #tpu.dot_dimension_numbers<[1], [0], [0], [1], [0, 0, 1, 1], [], []>} : vector<8x8xf32>, vector<8x32xf32>, vector<8x32xf32> -> vector<8x32xf32>
    %265 = arith.addf %239, %264 : vector<8x32xf32>
    %266 = vector.broadcast %45 : vector<1x32xf32> to vector<8x32xf32>
    %267 = arith.addf %265, %266 : vector<8x32xf32>
    %268 = tpu.concatenate %159, %267 in 0 : vector<8x32xf32>, vector<8x32xf32> -> vector<16x32xf32>
    %269 = arith.addf %12, %268 : vector<16x32xf32>
    %270 = vector.extract_strided_slice %35 {offsets = [0, 0], sizes = [1, 32], strides = [1, 1]} : vector<3x32xf32> to vector<1x32xf32>
    %271 = vector.extract_strided_slice %37 {offsets = [0, 0], sizes = [1, 32], strides = [1, 1]} : vector<3x32xf32> to vector<1x32xf32>
    %cst_106 = arith.constant dense<0.000000e+00> : vector<16xf32>
    %272 = vector.multi_reduction <add>, %269, %cst_106 [1] : vector<16x32xf32> to vector<16xf32>
    %273 = vector.shape_cast %272 : vector<16xf32> to vector<16x1xf32>
    %cst_107 = arith.constant 3.200000e+01 : f32
    %274 = vector.broadcast %cst_107 : f32 to vector<16x1xf32>
    %275 = arith.divf %273, %274 : vector<16x1xf32>
    %276 = vector.broadcast %275 : vector<16x1xf32> to vector<16x32xf32>
    %277 = arith.subf %269, %276 : vector<16x32xf32>
    %278 = arith.mulf %277, %277 : vector<16x32xf32>
    %cst_108 = arith.constant dense<0.000000e+00> : vector<16xf32>
    %279 = vector.multi_reduction <add>, %278, %cst_108 [1] : vector<16x32xf32> to vector<16xf32>
    %280 = vector.shape_cast %279 : vector<16xf32> to vector<16x1xf32>
    %cst_109 = arith.constant 3.200000e+01 : f32
    %281 = vector.broadcast %cst_109 : f32 to vector<16x1xf32>
    %282 = arith.divf %280, %281 : vector<16x1xf32>
    %283 = vector.broadcast %275 : vector<16x1xf32> to vector<16x32xf32>
    %284 = arith.subf %269, %283 : vector<16x32xf32>
    %cst_110 = arith.constant 9.99999974E-6 : f32
    %285 = vector.broadcast %cst_110 : f32 to vector<16x1xf32>
    %286 = arith.addf %282, %285 : vector<16x1xf32>
    %287 = math.rsqrt %286 : vector<16x1xf32>
    %288 = vector.broadcast %287 : vector<16x1xf32> to vector<16x32xf32>
    %289 = arith.mulf %284, %288 : vector<16x32xf32>
    %290 = vector.broadcast %270 : vector<1x32xf32> to vector<16x32xf32>
    %291 = arith.mulf %289, %290 : vector<16x32xf32>
    %292 = vector.broadcast %271 : vector<1x32xf32> to vector<16x32xf32>
    %293 = arith.addf %291, %292 : vector<16x32xf32>
    %c0_111 = arith.constant 0 : index
    %c0_112 = arith.constant 0 : index
    %c0_113 = arith.constant 0 : index
    %294 = vector.load %arg11[%c0_111, %c0_112, %c0_113] : memref<2x32x96xf32, #tpu.memory_space<vmem>>, vector<1x32x96xf32>
    %295 = vector.shape_cast %294 : vector<1x32x96xf32> to vector<32x96xf32>
    %c0_114 = arith.constant 0 : index
    %c0_115 = arith.constant 0 : index
    %c0_116 = arith.constant 0 : index
    %296 = vector.load %arg12[%c0_114, %c0_115, %c0_116] : memref<2x1x96xf32, #tpu.memory_space<vmem>>, vector<1x1x96xf32>
    %297 = vector.shape_cast %296 : vector<1x1x96xf32> to vector<1x96xf32>
    %c0_117 = arith.constant 0 : index
    %c0_118 = arith.constant 0 : index
    %c0_119 = arith.constant 0 : index
    %298 = vector.load %arg13[%c0_117, %c0_118, %c0_119] : memref<2x32x32xf32, #tpu.memory_space<vmem>>, vector<1x32x32xf32>
    %299 = vector.shape_cast %298 : vector<1x32x32xf32> to vector<32x32xf32>
    %c0_120 = arith.constant 0 : index
    %c0_121 = arith.constant 0 : index
    %c0_122 = arith.constant 0 : index
    %300 = vector.load %arg14[%c0_120, %c0_121, %c0_122] : memref<2x1x32xf32, #tpu.memory_space<vmem>>, vector<1x1x32xf32>
    %301 = vector.shape_cast %300 : vector<1x1x32xf32> to vector<1x32xf32>
    %302 = vector.extract_strided_slice %295 {offsets = [0, 0], sizes = [32, 32], strides = [1, 1]} : vector<32x96xf32> to vector<32x32xf32>
    %cst_123 = arith.constant dense<0.000000e+00> : vector<16x32xf32>
    %303 = tpu.matmul %293, %302, %cst_123 {dimension_numbers = #tpu.dot_dimension_numbers<[1], [0], [0], [1], [0, 0, 1, 1], [], []>} : vector<16x32xf32>, vector<32x32xf32>, vector<16x32xf32> -> vector<16x32xf32>
    %304 = vector.extract_strided_slice %297 {offsets = [0, 0], sizes = [1, 32], strides = [1, 1]} : vector<1x96xf32> to vector<1x32xf32>
    %305 = vector.broadcast %304 : vector<1x32xf32> to vector<16x32xf32>
    %306 = arith.addf %303, %305 : vector<16x32xf32>
    %307 = vector.extract_strided_slice %295 {offsets = [0, 32], sizes = [32, 64], strides = [1, 1]} : vector<32x96xf32> to vector<32x64xf32>
    %cst_124 = arith.constant dense<0.000000e+00> : vector<16x64xf32>
    %308 = tpu.matmul %13, %307, %cst_124 {dimension_numbers = #tpu.dot_dimension_numbers<[1], [0], [0], [1], [0, 0, 1, 1], [], []>} : vector<16x32xf32>, vector<32x64xf32>, vector<16x64xf32> -> vector<16x64xf32>
    %309 = vector.extract_strided_slice %297 {offsets = [0, 32], sizes = [1, 64], strides = [1, 1]} : vector<1x96xf32> to vector<1x64xf32>
    %310 = vector.broadcast %309 : vector<1x64xf32> to vector<16x64xf32>
    %311 = arith.addf %308, %310 : vector<16x64xf32>
    %312 = vector.extract_strided_slice %311 {offsets = [0, 0], sizes = [16, 32], strides = [1, 1]} : vector<16x64xf32> to vector<16x32xf32>
    %313 = vector.extract_strided_slice %311 {offsets = [0, 32], sizes = [16, 32], strides = [1, 1]} : vector<16x64xf32> to vector<16x32xf32>
    %314 = vector.extract_strided_slice %306 {offsets = [0, 0], sizes = [8, 32], strides = [1, 1]} : vector<16x32xf32> to vector<8x32xf32>
    %315 = vector.extract_strided_slice %312 {offsets = [0, 0], sizes = [8, 32], strides = [1, 1]} : vector<16x32xf32> to vector<8x32xf32>
    %316 = vector.extract_strided_slice %313 {offsets = [0, 0], sizes = [8, 32], strides = [1, 1]} : vector<16x32xf32> to vector<8x32xf32>
    %317 = vector.extract_strided_slice %314 {offsets = [0, 0], sizes = [8, 8], strides = [1, 1]} : vector<8x32xf32> to vector<8x8xf32>
    %318 = vector.extract_strided_slice %315 {offsets = [0, 0], sizes = [8, 8], strides = [1, 1]} : vector<8x32xf32> to vector<8x8xf32>
    %cst_125 = arith.constant dense<0.000000e+00> : vector<8x8xf32>
    %319 = tpu.matmul %317, %318, %cst_125 {dimension_numbers = #tpu.dot_dimension_numbers<[1], [1], [0], [0], [0, 0, 1, 0], [], []>} : vector<8x8xf32>, vector<8x8xf32>, vector<8x8xf32> -> vector<8x8xf32>
    %cst_126 = arith.constant 0.353553385 : f32
    %320 = vector.broadcast %cst_126 : f32 to vector<8x8xf32>
    %321 = arith.mulf %319, %320 : vector<8x8xf32>
    %cst_127 = arith.constant -1.000000e+10 : f32
    %322 = vector.broadcast %cst_127 : f32 to vector<8x8xf32>
    %323 = arith.select %27, %322, %321 : vector<8x8xi1>, vector<8x8xf32>
    %cst_128 = arith.constant dense<0xFF800000> : vector<8xf32>
    %324 = vector.multi_reduction <maximumf>, %323, %cst_128 [1] : vector<8x8xf32> to vector<8xf32>
    %325 = vector.shape_cast %324 : vector<8xf32> to vector<8x1xf32>
    %326 = vector.broadcast %325 : vector<8x1xf32> to vector<8x8xf32>
    %327 = arith.subf %323, %326 : vector<8x8xf32>
    %328 = math.exp %327 : vector<8x8xf32>
    %cst_129 = arith.constant dense<0.000000e+00> : vector<8xf32>
    %329 = vector.multi_reduction <add>, %328, %cst_129 [1] : vector<8x8xf32> to vector<8xf32>
    %330 = vector.shape_cast %329 : vector<8xf32> to vector<8x1xf32>
    %331 = tpu.reciprocal %330 {approx = true} : vector<8x1xf32> -> vector<8x1xf32>
    %332 = arith.mulf %330, %331 : vector<8x1xf32>
    %cst_130 = arith.constant 2.000000e+00 : f32
    %333 = vector.broadcast %cst_130 : f32 to vector<8x1xf32>
    %334 = arith.subf %333, %332 : vector<8x1xf32>
    %335 = arith.mulf %331, %334 : vector<8x1xf32>
    %336 = vector.broadcast %335 : vector<8x1xf32> to vector<8x8xf32>
    %337 = arith.mulf %328, %336 : vector<8x8xf32>
    %338 = vector.extract_strided_slice %316 {offsets = [0, 0], sizes = [8, 8], strides = [1, 1]} : vector<8x32xf32> to vector<8x8xf32>
    %cst_131 = arith.constant dense<0.000000e+00> : vector<8x8xf32>
    %339 = tpu.matmul %337, %338, %cst_131 {dimension_numbers = #tpu.dot_dimension_numbers<[1], [0], [0], [1], [0, 0, 1, 1], [], []>} : vector<8x8xf32>, vector<8x8xf32>, vector<8x8xf32> -> vector<8x8xf32>
    %340 = vector.extract_strided_slice %299 {offsets = [0, 0], sizes = [8, 32], strides = [1, 1]} : vector<32x32xf32> to vector<8x32xf32>
    %cst_132 = arith.constant dense<0.000000e+00> : vector<8x32xf32>
    %341 = tpu.matmul %339, %340, %cst_132 {dimension_numbers = #tpu.dot_dimension_numbers<[1], [0], [0], [1], [0, 0, 1, 1], [], []>} : vector<8x8xf32>, vector<8x32xf32>, vector<8x32xf32> -> vector<8x32xf32>
    %342 = vector.extract_strided_slice %314 {offsets = [0, 8], sizes = [8, 8], strides = [1, 1]} : vector<8x32xf32> to vector<8x8xf32>
    %343 = vector.extract_strided_slice %315 {offsets = [0, 8], sizes = [8, 8], strides = [1, 1]} : vector<8x32xf32> to vector<8x8xf32>
    %cst_133 = arith.constant dense<0.000000e+00> : vector<8x8xf32>
    %344 = tpu.matmul %342, %343, %cst_133 {dimension_numbers = #tpu.dot_dimension_numbers<[1], [1], [0], [0], [0, 0, 1, 0], [], []>} : vector<8x8xf32>, vector<8x8xf32>, vector<8x8xf32> -> vector<8x8xf32>
    %cst_134 = arith.constant 0.353553385 : f32
    %345 = vector.broadcast %cst_134 : f32 to vector<8x8xf32>
    %346 = arith.mulf %344, %345 : vector<8x8xf32>
    %cst_135 = arith.constant -1.000000e+10 : f32
    %347 = vector.broadcast %cst_135 : f32 to vector<8x8xf32>
    %348 = arith.select %27, %347, %346 : vector<8x8xi1>, vector<8x8xf32>
    %cst_136 = arith.constant dense<0xFF800000> : vector<8xf32>
    %349 = vector.multi_reduction <maximumf>, %348, %cst_136 [1] : vector<8x8xf32> to vector<8xf32>
    %350 = vector.shape_cast %349 : vector<8xf32> to vector<8x1xf32>
    %351 = vector.broadcast %350 : vector<8x1xf32> to vector<8x8xf32>
    %352 = arith.subf %348, %351 : vector<8x8xf32>
    %353 = math.exp %352 : vector<8x8xf32>
    %cst_137 = arith.constant dense<0.000000e+00> : vector<8xf32>
    %354 = vector.multi_reduction <add>, %353, %cst_137 [1] : vector<8x8xf32> to vector<8xf32>
    %355 = vector.shape_cast %354 : vector<8xf32> to vector<8x1xf32>
    %356 = tpu.reciprocal %355 {approx = true} : vector<8x1xf32> -> vector<8x1xf32>
    %357 = arith.mulf %355, %356 : vector<8x1xf32>
    %cst_138 = arith.constant 2.000000e+00 : f32
    %358 = vector.broadcast %cst_138 : f32 to vector<8x1xf32>
    %359 = arith.subf %358, %357 : vector<8x1xf32>
    %360 = arith.mulf %356, %359 : vector<8x1xf32>
    %361 = vector.broadcast %360 : vector<8x1xf32> to vector<8x8xf32>
    %362 = arith.mulf %353, %361 : vector<8x8xf32>
    %363 = vector.extract_strided_slice %316 {offsets = [0, 8], sizes = [8, 8], strides = [1, 1]} : vector<8x32xf32> to vector<8x8xf32>
    %cst_139 = arith.constant dense<0.000000e+00> : vector<8x8xf32>
    %364 = tpu.matmul %362, %363, %cst_139 {dimension_numbers = #tpu.dot_dimension_numbers<[1], [0], [0], [1], [0, 0, 1, 1], [], []>} : vector<8x8xf32>, vector<8x8xf32>, vector<8x8xf32> -> vector<8x8xf32>
    %365 = vector.extract_strided_slice %299 {offsets = [8, 0], sizes = [8, 32], strides = [1, 1]} : vector<32x32xf32> to vector<8x32xf32>
    %cst_140 = arith.constant dense<0.000000e+00> : vector<8x32xf32>
    %366 = tpu.matmul %364, %365, %cst_140 {dimension_numbers = #tpu.dot_dimension_numbers<[1], [0], [0], [1], [0, 0, 1, 1], [], []>} : vector<8x8xf32>, vector<8x32xf32>, vector<8x32xf32> -> vector<8x32xf32>
    %367 = arith.addf %341, %366 : vector<8x32xf32>
    %368 = vector.extract_strided_slice %314 {offsets = [0, 16], sizes = [8, 8], strides = [1, 1]} : vector<8x32xf32> to vector<8x8xf32>
    %369 = vector.extract_strided_slice %315 {offsets = [0, 16], sizes = [8, 8], strides = [1, 1]} : vector<8x32xf32> to vector<8x8xf32>
    %cst_141 = arith.constant dense<0.000000e+00> : vector<8x8xf32>
    %370 = tpu.matmul %368, %369, %cst_141 {dimension_numbers = #tpu.dot_dimension_numbers<[1], [1], [0], [0], [0, 0, 1, 0], [], []>} : vector<8x8xf32>, vector<8x8xf32>, vector<8x8xf32> -> vector<8x8xf32>
    %cst_142 = arith.constant 0.353553385 : f32
    %371 = vector.broadcast %cst_142 : f32 to vector<8x8xf32>
    %372 = arith.mulf %370, %371 : vector<8x8xf32>
    %cst_143 = arith.constant -1.000000e+10 : f32
    %373 = vector.broadcast %cst_143 : f32 to vector<8x8xf32>
    %374 = arith.select %27, %373, %372 : vector<8x8xi1>, vector<8x8xf32>
    %cst_144 = arith.constant dense<0xFF800000> : vector<8xf32>
    %375 = vector.multi_reduction <maximumf>, %374, %cst_144 [1] : vector<8x8xf32> to vector<8xf32>
    %376 = vector.shape_cast %375 : vector<8xf32> to vector<8x1xf32>
    %377 = vector.broadcast %376 : vector<8x1xf32> to vector<8x8xf32>
    %378 = arith.subf %374, %377 : vector<8x8xf32>
    %379 = math.exp %378 : vector<8x8xf32>
    %cst_145 = arith.constant dense<0.000000e+00> : vector<8xf32>
    %380 = vector.multi_reduction <add>, %379, %cst_145 [1] : vector<8x8xf32> to vector<8xf32>
    %381 = vector.shape_cast %380 : vector<8xf32> to vector<8x1xf32>
    %382 = tpu.reciprocal %381 {approx = true} : vector<8x1xf32> -> vector<8x1xf32>
    %383 = arith.mulf %381, %382 : vector<8x1xf32>
    %cst_146 = arith.constant 2.000000e+00 : f32
    %384 = vector.broadcast %cst_146 : f32 to vector<8x1xf32>
    %385 = arith.subf %384, %383 : vector<8x1xf32>
    %386 = arith.mulf %382, %385 : vector<8x1xf32>
    %387 = vector.broadcast %386 : vector<8x1xf32> to vector<8x8xf32>
    %388 = arith.mulf %379, %387 : vector<8x8xf32>
    %389 = vector.extract_strided_slice %316 {offsets = [0, 16], sizes = [8, 8], strides = [1, 1]} : vector<8x32xf32> to vector<8x8xf32>
    %cst_147 = arith.constant dense<0.000000e+00> : vector<8x8xf32>
    %390 = tpu.matmul %388, %389, %cst_147 {dimension_numbers = #tpu.dot_dimension_numbers<[1], [0], [0], [1], [0, 0, 1, 1], [], []>} : vector<8x8xf32>, vector<8x8xf32>, vector<8x8xf32> -> vector<8x8xf32>
    %391 = vector.extract_strided_slice %299 {offsets = [16, 0], sizes = [8, 32], strides = [1, 1]} : vector<32x32xf32> to vector<8x32xf32>
    %cst_148 = arith.constant dense<0.000000e+00> : vector<8x32xf32>
    %392 = tpu.matmul %390, %391, %cst_148 {dimension_numbers = #tpu.dot_dimension_numbers<[1], [0], [0], [1], [0, 0, 1, 1], [], []>} : vector<8x8xf32>, vector<8x32xf32>, vector<8x32xf32> -> vector<8x32xf32>
    %393 = arith.addf %367, %392 : vector<8x32xf32>
    %394 = vector.extract_strided_slice %314 {offsets = [0, 24], sizes = [8, 8], strides = [1, 1]} : vector<8x32xf32> to vector<8x8xf32>
    %395 = vector.extract_strided_slice %315 {offsets = [0, 24], sizes = [8, 8], strides = [1, 1]} : vector<8x32xf32> to vector<8x8xf32>
    %cst_149 = arith.constant dense<0.000000e+00> : vector<8x8xf32>
    %396 = tpu.matmul %394, %395, %cst_149 {dimension_numbers = #tpu.dot_dimension_numbers<[1], [1], [0], [0], [0, 0, 1, 0], [], []>} : vector<8x8xf32>, vector<8x8xf32>, vector<8x8xf32> -> vector<8x8xf32>
    %cst_150 = arith.constant 0.353553385 : f32
    %397 = vector.broadcast %cst_150 : f32 to vector<8x8xf32>
    %398 = arith.mulf %396, %397 : vector<8x8xf32>
    %cst_151 = arith.constant -1.000000e+10 : f32
    %399 = vector.broadcast %cst_151 : f32 to vector<8x8xf32>
    %400 = arith.select %27, %399, %398 : vector<8x8xi1>, vector<8x8xf32>
    %cst_152 = arith.constant dense<0xFF800000> : vector<8xf32>
    %401 = vector.multi_reduction <maximumf>, %400, %cst_152 [1] : vector<8x8xf32> to vector<8xf32>
    %402 = vector.shape_cast %401 : vector<8xf32> to vector<8x1xf32>
    %403 = vector.broadcast %402 : vector<8x1xf32> to vector<8x8xf32>
    %404 = arith.subf %400, %403 : vector<8x8xf32>
    %405 = math.exp %404 : vector<8x8xf32>
    %cst_153 = arith.constant dense<0.000000e+00> : vector<8xf32>
    %406 = vector.multi_reduction <add>, %405, %cst_153 [1] : vector<8x8xf32> to vector<8xf32>
    %407 = vector.shape_cast %406 : vector<8xf32> to vector<8x1xf32>
    %408 = tpu.reciprocal %407 {approx = true} : vector<8x1xf32> -> vector<8x1xf32>
    %409 = arith.mulf %407, %408 : vector<8x1xf32>
    %cst_154 = arith.constant 2.000000e+00 : f32
    %410 = vector.broadcast %cst_154 : f32 to vector<8x1xf32>
    %411 = arith.subf %410, %409 : vector<8x1xf32>
    %412 = arith.mulf %408, %411 : vector<8x1xf32>
    %413 = vector.broadcast %412 : vector<8x1xf32> to vector<8x8xf32>
    %414 = arith.mulf %405, %413 : vector<8x8xf32>
    %415 = vector.extract_strided_slice %316 {offsets = [0, 24], sizes = [8, 8], strides = [1, 1]} : vector<8x32xf32> to vector<8x8xf32>
    %cst_155 = arith.constant dense<0.000000e+00> : vector<8x8xf32>
    %416 = tpu.matmul %414, %415, %cst_155 {dimension_numbers = #tpu.dot_dimension_numbers<[1], [0], [0], [1], [0, 0, 1, 1], [], []>} : vector<8x8xf32>, vector<8x8xf32>, vector<8x8xf32> -> vector<8x8xf32>
    %417 = vector.extract_strided_slice %299 {offsets = [24, 0], sizes = [8, 32], strides = [1, 1]} : vector<32x32xf32> to vector<8x32xf32>
    %cst_156 = arith.constant dense<0.000000e+00> : vector<8x32xf32>
    %418 = tpu.matmul %416, %417, %cst_156 {dimension_numbers = #tpu.dot_dimension_numbers<[1], [0], [0], [1], [0, 0, 1, 1], [], []>} : vector<8x8xf32>, vector<8x32xf32>, vector<8x32xf32> -> vector<8x32xf32>
    %419 = arith.addf %393, %418 : vector<8x32xf32>
    %420 = vector.broadcast %301 : vector<1x32xf32> to vector<8x32xf32>
    %421 = arith.addf %419, %420 : vector<8x32xf32>
    %422 = vector.extract_strided_slice %306 {offsets = [8, 0], sizes = [8, 32], strides = [1, 1]} : vector<16x32xf32> to vector<8x32xf32>
    %423 = vector.extract_strided_slice %312 {offsets = [8, 0], sizes = [8, 32], strides = [1, 1]} : vector<16x32xf32> to vector<8x32xf32>
    %424 = vector.extract_strided_slice %313 {offsets = [8, 0], sizes = [8, 32], strides = [1, 1]} : vector<16x32xf32> to vector<8x32xf32>
    %425 = vector.extract_strided_slice %422 {offsets = [0, 0], sizes = [8, 8], strides = [1, 1]} : vector<8x32xf32> to vector<8x8xf32>
    %426 = vector.extract_strided_slice %423 {offsets = [0, 0], sizes = [8, 8], strides = [1, 1]} : vector<8x32xf32> to vector<8x8xf32>
    %cst_157 = arith.constant dense<0.000000e+00> : vector<8x8xf32>
    %427 = tpu.matmul %425, %426, %cst_157 {dimension_numbers = #tpu.dot_dimension_numbers<[1], [1], [0], [0], [0, 0, 1, 0], [], []>} : vector<8x8xf32>, vector<8x8xf32>, vector<8x8xf32> -> vector<8x8xf32>
    %cst_158 = arith.constant 0.353553385 : f32
    %428 = vector.broadcast %cst_158 : f32 to vector<8x8xf32>
    %429 = arith.mulf %427, %428 : vector<8x8xf32>
    %cst_159 = arith.constant -1.000000e+10 : f32
    %430 = vector.broadcast %cst_159 : f32 to vector<8x8xf32>
    %431 = arith.select %33, %430, %429 : vector<8x8xi1>, vector<8x8xf32>
    %cst_160 = arith.constant dense<0xFF800000> : vector<8xf32>
    %432 = vector.multi_reduction <maximumf>, %431, %cst_160 [1] : vector<8x8xf32> to vector<8xf32>
    %433 = vector.shape_cast %432 : vector<8xf32> to vector<8x1xf32>
    %434 = vector.broadcast %433 : vector<8x1xf32> to vector<8x8xf32>
    %435 = arith.subf %431, %434 : vector<8x8xf32>
    %436 = math.exp %435 : vector<8x8xf32>
    %cst_161 = arith.constant dense<0.000000e+00> : vector<8xf32>
    %437 = vector.multi_reduction <add>, %436, %cst_161 [1] : vector<8x8xf32> to vector<8xf32>
    %438 = vector.shape_cast %437 : vector<8xf32> to vector<8x1xf32>
    %439 = tpu.reciprocal %438 {approx = true} : vector<8x1xf32> -> vector<8x1xf32>
    %440 = arith.mulf %438, %439 : vector<8x1xf32>
    %cst_162 = arith.constant 2.000000e+00 : f32
    %441 = vector.broadcast %cst_162 : f32 to vector<8x1xf32>
    %442 = arith.subf %441, %440 : vector<8x1xf32>
    %443 = arith.mulf %439, %442 : vector<8x1xf32>
    %444 = vector.broadcast %443 : vector<8x1xf32> to vector<8x8xf32>
    %445 = arith.mulf %436, %444 : vector<8x8xf32>
    %446 = vector.extract_strided_slice %424 {offsets = [0, 0], sizes = [8, 8], strides = [1, 1]} : vector<8x32xf32> to vector<8x8xf32>
    %cst_163 = arith.constant dense<0.000000e+00> : vector<8x8xf32>
    %447 = tpu.matmul %445, %446, %cst_163 {dimension_numbers = #tpu.dot_dimension_numbers<[1], [0], [0], [1], [0, 0, 1, 1], [], []>} : vector<8x8xf32>, vector<8x8xf32>, vector<8x8xf32> -> vector<8x8xf32>
    %448 = vector.extract_strided_slice %299 {offsets = [0, 0], sizes = [8, 32], strides = [1, 1]} : vector<32x32xf32> to vector<8x32xf32>
    %cst_164 = arith.constant dense<0.000000e+00> : vector<8x32xf32>
    %449 = tpu.matmul %447, %448, %cst_164 {dimension_numbers = #tpu.dot_dimension_numbers<[1], [0], [0], [1], [0, 0, 1, 1], [], []>} : vector<8x8xf32>, vector<8x32xf32>, vector<8x32xf32> -> vector<8x32xf32>
    %450 = vector.extract_strided_slice %422 {offsets = [0, 8], sizes = [8, 8], strides = [1, 1]} : vector<8x32xf32> to vector<8x8xf32>
    %451 = vector.extract_strided_slice %423 {offsets = [0, 8], sizes = [8, 8], strides = [1, 1]} : vector<8x32xf32> to vector<8x8xf32>
    %cst_165 = arith.constant dense<0.000000e+00> : vector<8x8xf32>
    %452 = tpu.matmul %450, %451, %cst_165 {dimension_numbers = #tpu.dot_dimension_numbers<[1], [1], [0], [0], [0, 0, 1, 0], [], []>} : vector<8x8xf32>, vector<8x8xf32>, vector<8x8xf32> -> vector<8x8xf32>
    %cst_166 = arith.constant 0.353553385 : f32
    %453 = vector.broadcast %cst_166 : f32 to vector<8x8xf32>
    %454 = arith.mulf %452, %453 : vector<8x8xf32>
    %cst_167 = arith.constant -1.000000e+10 : f32
    %455 = vector.broadcast %cst_167 : f32 to vector<8x8xf32>
    %456 = arith.select %33, %455, %454 : vector<8x8xi1>, vector<8x8xf32>
    %cst_168 = arith.constant dense<0xFF800000> : vector<8xf32>
    %457 = vector.multi_reduction <maximumf>, %456, %cst_168 [1] : vector<8x8xf32> to vector<8xf32>
    %458 = vector.shape_cast %457 : vector<8xf32> to vector<8x1xf32>
    %459 = vector.broadcast %458 : vector<8x1xf32> to vector<8x8xf32>
    %460 = arith.subf %456, %459 : vector<8x8xf32>
    %461 = math.exp %460 : vector<8x8xf32>
    %cst_169 = arith.constant dense<0.000000e+00> : vector<8xf32>
    %462 = vector.multi_reduction <add>, %461, %cst_169 [1] : vector<8x8xf32> to vector<8xf32>
    %463 = vector.shape_cast %462 : vector<8xf32> to vector<8x1xf32>
    %464 = tpu.reciprocal %463 {approx = true} : vector<8x1xf32> -> vector<8x1xf32>
    %465 = arith.mulf %463, %464 : vector<8x1xf32>
    %cst_170 = arith.constant 2.000000e+00 : f32
    %466 = vector.broadcast %cst_170 : f32 to vector<8x1xf32>
    %467 = arith.subf %466, %465 : vector<8x1xf32>
    %468 = arith.mulf %464, %467 : vector<8x1xf32>
    %469 = vector.broadcast %468 : vector<8x1xf32> to vector<8x8xf32>
    %470 = arith.mulf %461, %469 : vector<8x8xf32>
    %471 = vector.extract_strided_slice %424 {offsets = [0, 8], sizes = [8, 8], strides = [1, 1]} : vector<8x32xf32> to vector<8x8xf32>
    %cst_171 = arith.constant dense<0.000000e+00> : vector<8x8xf32>
    %472 = tpu.matmul %470, %471, %cst_171 {dimension_numbers = #tpu.dot_dimension_numbers<[1], [0], [0], [1], [0, 0, 1, 1], [], []>} : vector<8x8xf32>, vector<8x8xf32>, vector<8x8xf32> -> vector<8x8xf32>
    %473 = vector.extract_strided_slice %299 {offsets = [8, 0], sizes = [8, 32], strides = [1, 1]} : vector<32x32xf32> to vector<8x32xf32>
    %cst_172 = arith.constant dense<0.000000e+00> : vector<8x32xf32>
    %474 = tpu.matmul %472, %473, %cst_172 {dimension_numbers = #tpu.dot_dimension_numbers<[1], [0], [0], [1], [0, 0, 1, 1], [], []>} : vector<8x8xf32>, vector<8x32xf32>, vector<8x32xf32> -> vector<8x32xf32>
    %475 = arith.addf %449, %474 : vector<8x32xf32>
    %476 = vector.extract_strided_slice %422 {offsets = [0, 16], sizes = [8, 8], strides = [1, 1]} : vector<8x32xf32> to vector<8x8xf32>
    %477 = vector.extract_strided_slice %423 {offsets = [0, 16], sizes = [8, 8], strides = [1, 1]} : vector<8x32xf32> to vector<8x8xf32>
    %cst_173 = arith.constant dense<0.000000e+00> : vector<8x8xf32>
    %478 = tpu.matmul %476, %477, %cst_173 {dimension_numbers = #tpu.dot_dimension_numbers<[1], [1], [0], [0], [0, 0, 1, 0], [], []>} : vector<8x8xf32>, vector<8x8xf32>, vector<8x8xf32> -> vector<8x8xf32>
    %cst_174 = arith.constant 0.353553385 : f32
    %479 = vector.broadcast %cst_174 : f32 to vector<8x8xf32>
    %480 = arith.mulf %478, %479 : vector<8x8xf32>
    %cst_175 = arith.constant -1.000000e+10 : f32
    %481 = vector.broadcast %cst_175 : f32 to vector<8x8xf32>
    %482 = arith.select %33, %481, %480 : vector<8x8xi1>, vector<8x8xf32>
    %cst_176 = arith.constant dense<0xFF800000> : vector<8xf32>
    %483 = vector.multi_reduction <maximumf>, %482, %cst_176 [1] : vector<8x8xf32> to vector<8xf32>
    %484 = vector.shape_cast %483 : vector<8xf32> to vector<8x1xf32>
    %485 = vector.broadcast %484 : vector<8x1xf32> to vector<8x8xf32>
    %486 = arith.subf %482, %485 : vector<8x8xf32>
    %487 = math.exp %486 : vector<8x8xf32>
    %cst_177 = arith.constant dense<0.000000e+00> : vector<8xf32>
    %488 = vector.multi_reduction <add>, %487, %cst_177 [1] : vector<8x8xf32> to vector<8xf32>
    %489 = vector.shape_cast %488 : vector<8xf32> to vector<8x1xf32>
    %490 = tpu.reciprocal %489 {approx = true} : vector<8x1xf32> -> vector<8x1xf32>
    %491 = arith.mulf %489, %490 : vector<8x1xf32>
    %cst_178 = arith.constant 2.000000e+00 : f32
    %492 = vector.broadcast %cst_178 : f32 to vector<8x1xf32>
    %493 = arith.subf %492, %491 : vector<8x1xf32>
    %494 = arith.mulf %490, %493 : vector<8x1xf32>
    %495 = vector.broadcast %494 : vector<8x1xf32> to vector<8x8xf32>
    %496 = arith.mulf %487, %495 : vector<8x8xf32>
    %497 = vector.extract_strided_slice %424 {offsets = [0, 16], sizes = [8, 8], strides = [1, 1]} : vector<8x32xf32> to vector<8x8xf32>
    %cst_179 = arith.constant dense<0.000000e+00> : vector<8x8xf32>
    %498 = tpu.matmul %496, %497, %cst_179 {dimension_numbers = #tpu.dot_dimension_numbers<[1], [0], [0], [1], [0, 0, 1, 1], [], []>} : vector<8x8xf32>, vector<8x8xf32>, vector<8x8xf32> -> vector<8x8xf32>
    %499 = vector.extract_strided_slice %299 {offsets = [16, 0], sizes = [8, 32], strides = [1, 1]} : vector<32x32xf32> to vector<8x32xf32>
    %cst_180 = arith.constant dense<0.000000e+00> : vector<8x32xf32>
    %500 = tpu.matmul %498, %499, %cst_180 {dimension_numbers = #tpu.dot_dimension_numbers<[1], [0], [0], [1], [0, 0, 1, 1], [], []>} : vector<8x8xf32>, vector<8x32xf32>, vector<8x32xf32> -> vector<8x32xf32>
    %501 = arith.addf %475, %500 : vector<8x32xf32>
    %502 = vector.extract_strided_slice %422 {offsets = [0, 24], sizes = [8, 8], strides = [1, 1]} : vector<8x32xf32> to vector<8x8xf32>
    %503 = vector.extract_strided_slice %423 {offsets = [0, 24], sizes = [8, 8], strides = [1, 1]} : vector<8x32xf32> to vector<8x8xf32>
    %cst_181 = arith.constant dense<0.000000e+00> : vector<8x8xf32>
    %504 = tpu.matmul %502, %503, %cst_181 {dimension_numbers = #tpu.dot_dimension_numbers<[1], [1], [0], [0], [0, 0, 1, 0], [], []>} : vector<8x8xf32>, vector<8x8xf32>, vector<8x8xf32> -> vector<8x8xf32>
    %cst_182 = arith.constant 0.353553385 : f32
    %505 = vector.broadcast %cst_182 : f32 to vector<8x8xf32>
    %506 = arith.mulf %504, %505 : vector<8x8xf32>
    %cst_183 = arith.constant -1.000000e+10 : f32
    %507 = vector.broadcast %cst_183 : f32 to vector<8x8xf32>
    %508 = arith.select %33, %507, %506 : vector<8x8xi1>, vector<8x8xf32>
    %cst_184 = arith.constant dense<0xFF800000> : vector<8xf32>
    %509 = vector.multi_reduction <maximumf>, %508, %cst_184 [1] : vector<8x8xf32> to vector<8xf32>
    %510 = vector.shape_cast %509 : vector<8xf32> to vector<8x1xf32>
    %511 = vector.broadcast %510 : vector<8x1xf32> to vector<8x8xf32>
    %512 = arith.subf %508, %511 : vector<8x8xf32>
    %513 = math.exp %512 : vector<8x8xf32>
    %cst_185 = arith.constant dense<0.000000e+00> : vector<8xf32>
    %514 = vector.multi_reduction <add>, %513, %cst_185 [1] : vector<8x8xf32> to vector<8xf32>
    %515 = vector.shape_cast %514 : vector<8xf32> to vector<8x1xf32>
    %516 = tpu.reciprocal %515 {approx = true} : vector<8x1xf32> -> vector<8x1xf32>
    %517 = arith.mulf %515, %516 : vector<8x1xf32>
    %cst_186 = arith.constant 2.000000e+00 : f32
    %518 = vector.broadcast %cst_186 : f32 to vector<8x1xf32>
    %519 = arith.subf %518, %517 : vector<8x1xf32>
    %520 = arith.mulf %516, %519 : vector<8x1xf32>
    %521 = vector.broadcast %520 : vector<8x1xf32> to vector<8x8xf32>
    %522 = arith.mulf %513, %521 : vector<8x8xf32>
    %523 = vector.extract_strided_slice %424 {offsets = [0, 24], sizes = [8, 8], strides = [1, 1]} : vector<8x32xf32> to vector<8x8xf32>
    %cst_187 = arith.constant dense<0.000000e+00> : vector<8x8xf32>
    %524 = tpu.matmul %522, %523, %cst_187 {dimension_numbers = #tpu.dot_dimension_numbers<[1], [0], [0], [1], [0, 0, 1, 1], [], []>} : vector<8x8xf32>, vector<8x8xf32>, vector<8x8xf32> -> vector<8x8xf32>
    %525 = vector.extract_strided_slice %299 {offsets = [24, 0], sizes = [8, 32], strides = [1, 1]} : vector<32x32xf32> to vector<8x32xf32>
    %cst_188 = arith.constant dense<0.000000e+00> : vector<8x32xf32>
    %526 = tpu.matmul %524, %525, %cst_188 {dimension_numbers = #tpu.dot_dimension_numbers<[1], [0], [0], [1], [0, 0, 1, 1], [], []>} : vector<8x8xf32>, vector<8x32xf32>, vector<8x32xf32> -> vector<8x32xf32>
    %527 = arith.addf %501, %526 : vector<8x32xf32>
    %528 = vector.broadcast %301 : vector<1x32xf32> to vector<8x32xf32>
    %529 = arith.addf %527, %528 : vector<8x32xf32>
    %530 = tpu.concatenate %421, %529 in 0 : vector<8x32xf32>, vector<8x32xf32> -> vector<16x32xf32>
    %531 = arith.addf %293, %530 : vector<16x32xf32>
    %532 = vector.extract_strided_slice %35 {offsets = [1, 0], sizes = [1, 32], strides = [1, 1]} : vector<3x32xf32> to vector<1x32xf32>
    %533 = vector.extract_strided_slice %37 {offsets = [1, 0], sizes = [1, 32], strides = [1, 1]} : vector<3x32xf32> to vector<1x32xf32>
    %cst_189 = arith.constant dense<0.000000e+00> : vector<16xf32>
    %534 = vector.multi_reduction <add>, %531, %cst_189 [1] : vector<16x32xf32> to vector<16xf32>
    %535 = vector.shape_cast %534 : vector<16xf32> to vector<16x1xf32>
    %cst_190 = arith.constant 3.200000e+01 : f32
    %536 = vector.broadcast %cst_190 : f32 to vector<16x1xf32>
    %537 = arith.divf %535, %536 : vector<16x1xf32>
    %538 = vector.broadcast %537 : vector<16x1xf32> to vector<16x32xf32>
    %539 = arith.subf %531, %538 : vector<16x32xf32>
    %540 = arith.mulf %539, %539 : vector<16x32xf32>
    %cst_191 = arith.constant dense<0.000000e+00> : vector<16xf32>
    %541 = vector.multi_reduction <add>, %540, %cst_191 [1] : vector<16x32xf32> to vector<16xf32>
    %542 = vector.shape_cast %541 : vector<16xf32> to vector<16x1xf32>
    %cst_192 = arith.constant 3.200000e+01 : f32
    %543 = vector.broadcast %cst_192 : f32 to vector<16x1xf32>
    %544 = arith.divf %542, %543 : vector<16x1xf32>
    %545 = vector.broadcast %537 : vector<16x1xf32> to vector<16x32xf32>
    %546 = arith.subf %531, %545 : vector<16x32xf32>
    %cst_193 = arith.constant 9.99999974E-6 : f32
    %547 = vector.broadcast %cst_193 : f32 to vector<16x1xf32>
    %548 = arith.addf %544, %547 : vector<16x1xf32>
    %549 = math.rsqrt %548 : vector<16x1xf32>
    %550 = vector.broadcast %549 : vector<16x1xf32> to vector<16x32xf32>
    %551 = arith.mulf %546, %550 : vector<16x32xf32>
    %552 = vector.broadcast %532 : vector<1x32xf32> to vector<16x32xf32>
    %553 = arith.mulf %551, %552 : vector<16x32xf32>
    %554 = vector.broadcast %533 : vector<1x32xf32> to vector<16x32xf32>
    %555 = arith.addf %553, %554 : vector<16x32xf32>
    %c0_194 = arith.constant 0 : index
    %c0_195 = arith.constant 0 : index
    %c0_196 = arith.constant 0 : index
    %556 = vector.load %arg15[%c0_194, %c0_195, %c0_196] : memref<2x32x64xf32, #tpu.memory_space<vmem>>, vector<1x32x64xf32>
    %557 = vector.shape_cast %556 : vector<1x32x64xf32> to vector<32x64xf32>
    %cst_197 = arith.constant dense<0.000000e+00> : vector<16x64xf32>
    %558 = tpu.matmul %555, %557, %cst_197 {dimension_numbers = #tpu.dot_dimension_numbers<[1], [0], [0], [1], [0, 0, 1, 1], [], []>} : vector<16x32xf32>, vector<32x64xf32>, vector<16x64xf32> -> vector<16x64xf32>
    %c0_198 = arith.constant 0 : index
    %c0_199 = arith.constant 0 : index
    %c0_200 = arith.constant 0 : index
    %559 = vector.load %arg16[%c0_198, %c0_199, %c0_200] : memref<2x1x64xf32, #tpu.memory_space<vmem>>, vector<1x1x64xf32>
    %560 = vector.shape_cast %559 : vector<1x1x64xf32> to vector<1x64xf32>
    %561 = vector.broadcast %560 : vector<1x64xf32> to vector<16x64xf32>
    %562 = arith.addf %558, %561 : vector<16x64xf32>
    %cst_201 = arith.constant 0.000000e+00 : f32
    %563 = vector.broadcast %cst_201 : f32 to vector<16x64xf32>
    %564 = arith.maximumf %562, %563 : vector<16x64xf32>
    %c0_202 = arith.constant 0 : index
    %c0_203 = arith.constant 0 : index
    %c0_204 = arith.constant 0 : index
    %565 = vector.load %arg17[%c0_202, %c0_203, %c0_204] : memref<2x64x32xf32, #tpu.memory_space<vmem>>, vector<1x64x32xf32>
    %566 = vector.shape_cast %565 : vector<1x64x32xf32> to vector<64x32xf32>
    %cst_205 = arith.constant dense<0.000000e+00> : vector<16x32xf32>
    %567 = tpu.matmul %564, %566, %cst_205 {dimension_numbers = #tpu.dot_dimension_numbers<[1], [0], [0], [1], [0, 0, 1, 1], [], []>} : vector<16x64xf32>, vector<64x32xf32>, vector<16x32xf32> -> vector<16x32xf32>
    %c0_206 = arith.constant 0 : index
    %c0_207 = arith.constant 0 : index
    %c0_208 = arith.constant 0 : index
    %568 = vector.load %arg18[%c0_206, %c0_207, %c0_208] : memref<2x1x32xf32, #tpu.memory_space<vmem>>, vector<1x1x32xf32>
    %569 = vector.shape_cast %568 : vector<1x1x32xf32> to vector<1x32xf32>
    %570 = vector.broadcast %569 : vector<1x32xf32> to vector<16x32xf32>
    %571 = arith.addf %567, %570 : vector<16x32xf32>
    %572 = arith.addf %555, %571 : vector<16x32xf32>
    %573 = vector.extract_strided_slice %35 {offsets = [2, 0], sizes = [1, 32], strides = [1, 1]} : vector<3x32xf32> to vector<1x32xf32>
    %574 = vector.extract_strided_slice %37 {offsets = [2, 0], sizes = [1, 32], strides = [1, 1]} : vector<3x32xf32> to vector<1x32xf32>
    %cst_209 = arith.constant dense<0.000000e+00> : vector<16xf32>
    %575 = vector.multi_reduction <add>, %572, %cst_209 [1] : vector<16x32xf32> to vector<16xf32>
    %576 = vector.shape_cast %575 : vector<16xf32> to vector<16x1xf32>
    %cst_210 = arith.constant 3.200000e+01 : f32
    %577 = vector.broadcast %cst_210 : f32 to vector<16x1xf32>
    %578 = arith.divf %576, %577 : vector<16x1xf32>
    %579 = vector.broadcast %578 : vector<16x1xf32> to vector<16x32xf32>
    %580 = arith.subf %572, %579 : vector<16x32xf32>
    %581 = arith.mulf %580, %580 : vector<16x32xf32>
    %cst_211 = arith.constant dense<0.000000e+00> : vector<16xf32>
    %582 = vector.multi_reduction <add>, %581, %cst_211 [1] : vector<16x32xf32> to vector<16xf32>
    %583 = vector.shape_cast %582 : vector<16xf32> to vector<16x1xf32>
    %cst_212 = arith.constant 3.200000e+01 : f32
    %584 = vector.broadcast %cst_212 : f32 to vector<16x1xf32>
    %585 = arith.divf %583, %584 : vector<16x1xf32>
    %586 = vector.broadcast %578 : vector<16x1xf32> to vector<16x32xf32>
    %587 = arith.subf %572, %586 : vector<16x32xf32>
    %cst_213 = arith.constant 9.99999974E-6 : f32
    %588 = vector.broadcast %cst_213 : f32 to vector<16x1xf32>
    %589 = arith.addf %585, %588 : vector<16x1xf32>
    %590 = math.rsqrt %589 : vector<16x1xf32>
    %591 = vector.broadcast %590 : vector<16x1xf32> to vector<16x32xf32>
    %592 = arith.mulf %587, %591 : vector<16x32xf32>
    %593 = vector.broadcast %573 : vector<1x32xf32> to vector<16x32xf32>
    %594 = arith.mulf %592, %593 : vector<16x32xf32>
    %595 = vector.broadcast %574 : vector<1x32xf32> to vector<16x32xf32>
    %596 = arith.addf %594, %595 : vector<16x32xf32>
    %c1_214 = arith.constant 1 : index
    %c0_215 = arith.constant 0 : index
    %c0_216 = arith.constant 0 : index
    %597 = vector.load %arg19[%c1_214, %c0_215, %c0_216] : memref<2x3x32xf32, #tpu.memory_space<vmem>>, vector<1x3x32xf32>
    %598 = vector.shape_cast %597 : vector<1x3x32xf32> to vector<3x32xf32>
    %c1_217 = arith.constant 1 : index
    %c0_218 = arith.constant 0 : index
    %c0_219 = arith.constant 0 : index
    %599 = vector.load %arg20[%c1_217, %c0_218, %c0_219] : memref<2x3x32xf32, #tpu.memory_space<vmem>>, vector<1x3x32xf32>
    %600 = vector.shape_cast %599 : vector<1x3x32xf32> to vector<3x32xf32>
    %c1_220 = arith.constant 1 : index
    %c0_221 = arith.constant 0 : index
    %c0_222 = arith.constant 0 : index
    %601 = vector.load %arg7[%c1_220, %c0_221, %c0_222] : memref<2x32x96xf32, #tpu.memory_space<vmem>>, vector<1x32x96xf32>
    %602 = vector.shape_cast %601 : vector<1x32x96xf32> to vector<32x96xf32>
    %c1_223 = arith.constant 1 : index
    %c0_224 = arith.constant 0 : index
    %c0_225 = arith.constant 0 : index
    %603 = vector.load %arg8[%c1_223, %c0_224, %c0_225] : memref<2x1x96xf32, #tpu.memory_space<vmem>>, vector<1x1x96xf32>
    %604 = vector.shape_cast %603 : vector<1x1x96xf32> to vector<1x96xf32>
    %c1_226 = arith.constant 1 : index
    %c0_227 = arith.constant 0 : index
    %c0_228 = arith.constant 0 : index
    %605 = vector.load %arg9[%c1_226, %c0_227, %c0_228] : memref<2x32x32xf32, #tpu.memory_space<vmem>>, vector<1x32x32xf32>
    %606 = vector.shape_cast %605 : vector<1x32x32xf32> to vector<32x32xf32>
    %c1_229 = arith.constant 1 : index
    %c0_230 = arith.constant 0 : index
    %c0_231 = arith.constant 0 : index
    %607 = vector.load %arg10[%c1_229, %c0_230, %c0_231] : memref<2x1x32xf32, #tpu.memory_space<vmem>>, vector<1x1x32xf32>
    %608 = vector.shape_cast %607 : vector<1x1x32xf32> to vector<1x32xf32>
    %cst_232 = arith.constant dense<0.000000e+00> : vector<16x96xf32>
    %609 = tpu.matmul %596, %602, %cst_232 {dimension_numbers = #tpu.dot_dimension_numbers<[1], [0], [0], [1], [0, 0, 1, 1], [], []>} : vector<16x32xf32>, vector<32x96xf32>, vector<16x96xf32> -> vector<16x96xf32>
    %610 = vector.broadcast %604 : vector<1x96xf32> to vector<16x96xf32>
    %611 = arith.addf %609, %610 : vector<16x96xf32>
    %612 = vector.extract_strided_slice %611 {offsets = [0, 0], sizes = [16, 32], strides = [1, 1]} : vector<16x96xf32> to vector<16x32xf32>
    %613 = vector.extract_strided_slice %611 {offsets = [0, 32], sizes = [16, 32], strides = [1, 1]} : vector<16x96xf32> to vector<16x32xf32>
    %614 = vector.extract_strided_slice %611 {offsets = [0, 64], sizes = [16, 32], strides = [1, 1]} : vector<16x96xf32> to vector<16x32xf32>
    %615 = vector.extract_strided_slice %612 {offsets = [0, 0], sizes = [8, 32], strides = [1, 1]} : vector<16x32xf32> to vector<8x32xf32>
    %616 = vector.extract_strided_slice %613 {offsets = [0, 0], sizes = [8, 32], strides = [1, 1]} : vector<16x32xf32> to vector<8x32xf32>
    %617 = vector.extract_strided_slice %614 {offsets = [0, 0], sizes = [8, 32], strides = [1, 1]} : vector<16x32xf32> to vector<8x32xf32>
    %618 = vector.extract_strided_slice %615 {offsets = [0, 0], sizes = [8, 8], strides = [1, 1]} : vector<8x32xf32> to vector<8x8xf32>
    %619 = vector.extract_strided_slice %616 {offsets = [0, 0], sizes = [8, 8], strides = [1, 1]} : vector<8x32xf32> to vector<8x8xf32>
    %cst_233 = arith.constant dense<0.000000e+00> : vector<8x8xf32>
    %620 = tpu.matmul %618, %619, %cst_233 {dimension_numbers = #tpu.dot_dimension_numbers<[1], [1], [0], [0], [0, 0, 1, 0], [], []>} : vector<8x8xf32>, vector<8x8xf32>, vector<8x8xf32> -> vector<8x8xf32>
    %cst_234 = arith.constant 0.353553385 : f32
    %621 = vector.broadcast %cst_234 : f32 to vector<8x8xf32>
    %622 = arith.mulf %620, %621 : vector<8x8xf32>
    %cst_235 = arith.constant -1.000000e+10 : f32
    %623 = vector.broadcast %cst_235 : f32 to vector<8x8xf32>
    %624 = arith.select %17, %623, %622 : vector<8x8xi1>, vector<8x8xf32>
    %cst_236 = arith.constant dense<0xFF800000> : vector<8xf32>
    %625 = vector.multi_reduction <maximumf>, %624, %cst_236 [1] : vector<8x8xf32> to vector<8xf32>
    %626 = vector.shape_cast %625 : vector<8xf32> to vector<8x1xf32>
    %627 = vector.broadcast %626 : vector<8x1xf32> to vector<8x8xf32>
    %628 = arith.subf %624, %627 : vector<8x8xf32>
    %629 = math.exp %628 : vector<8x8xf32>
    %cst_237 = arith.constant dense<0.000000e+00> : vector<8xf32>
    %630 = vector.multi_reduction <add>, %629, %cst_237 [1] : vector<8x8xf32> to vector<8xf32>
    %631 = vector.shape_cast %630 : vector<8xf32> to vector<8x1xf32>
    %632 = tpu.reciprocal %631 {approx = true} : vector<8x1xf32> -> vector<8x1xf32>
    %633 = arith.mulf %631, %632 : vector<8x1xf32>
    %cst_238 = arith.constant 2.000000e+00 : f32
    %634 = vector.broadcast %cst_238 : f32 to vector<8x1xf32>
    %635 = arith.subf %634, %633 : vector<8x1xf32>
    %636 = arith.mulf %632, %635 : vector<8x1xf32>
    %637 = vector.broadcast %636 : vector<8x1xf32> to vector<8x8xf32>
    %638 = arith.mulf %629, %637 : vector<8x8xf32>
    %639 = vector.extract_strided_slice %617 {offsets = [0, 0], sizes = [8, 8], strides = [1, 1]} : vector<8x32xf32> to vector<8x8xf32>
    %cst_239 = arith.constant dense<0.000000e+00> : vector<8x8xf32>
    %640 = tpu.matmul %638, %639, %cst_239 {dimension_numbers = #tpu.dot_dimension_numbers<[1], [0], [0], [1], [0, 0, 1, 1], [], []>} : vector<8x8xf32>, vector<8x8xf32>, vector<8x8xf32> -> vector<8x8xf32>
    %641 = vector.extract_strided_slice %606 {offsets = [0, 0], sizes = [8, 32], strides = [1, 1]} : vector<32x32xf32> to vector<8x32xf32>
    %cst_240 = arith.constant dense<0.000000e+00> : vector<8x32xf32>
    %642 = tpu.matmul %640, %641, %cst_240 {dimension_numbers = #tpu.dot_dimension_numbers<[1], [0], [0], [1], [0, 0, 1, 1], [], []>} : vector<8x8xf32>, vector<8x32xf32>, vector<8x32xf32> -> vector<8x32xf32>
    %643 = vector.extract_strided_slice %615 {offsets = [0, 8], sizes = [8, 8], strides = [1, 1]} : vector<8x32xf32> to vector<8x8xf32>
    %644 = vector.extract_strided_slice %616 {offsets = [0, 8], sizes = [8, 8], strides = [1, 1]} : vector<8x32xf32> to vector<8x8xf32>
    %cst_241 = arith.constant dense<0.000000e+00> : vector<8x8xf32>
    %645 = tpu.matmul %643, %644, %cst_241 {dimension_numbers = #tpu.dot_dimension_numbers<[1], [1], [0], [0], [0, 0, 1, 0], [], []>} : vector<8x8xf32>, vector<8x8xf32>, vector<8x8xf32> -> vector<8x8xf32>
    %cst_242 = arith.constant 0.353553385 : f32
    %646 = vector.broadcast %cst_242 : f32 to vector<8x8xf32>
    %647 = arith.mulf %645, %646 : vector<8x8xf32>
    %cst_243 = arith.constant -1.000000e+10 : f32
    %648 = vector.broadcast %cst_243 : f32 to vector<8x8xf32>
    %649 = arith.select %17, %648, %647 : vector<8x8xi1>, vector<8x8xf32>
    %cst_244 = arith.constant dense<0xFF800000> : vector<8xf32>
    %650 = vector.multi_reduction <maximumf>, %649, %cst_244 [1] : vector<8x8xf32> to vector<8xf32>
    %651 = vector.shape_cast %650 : vector<8xf32> to vector<8x1xf32>
    %652 = vector.broadcast %651 : vector<8x1xf32> to vector<8x8xf32>
    %653 = arith.subf %649, %652 : vector<8x8xf32>
    %654 = math.exp %653 : vector<8x8xf32>
    %cst_245 = arith.constant dense<0.000000e+00> : vector<8xf32>
    %655 = vector.multi_reduction <add>, %654, %cst_245 [1] : vector<8x8xf32> to vector<8xf32>
    %656 = vector.shape_cast %655 : vector<8xf32> to vector<8x1xf32>
    %657 = tpu.reciprocal %656 {approx = true} : vector<8x1xf32> -> vector<8x1xf32>
    %658 = arith.mulf %656, %657 : vector<8x1xf32>
    %cst_246 = arith.constant 2.000000e+00 : f32
    %659 = vector.broadcast %cst_246 : f32 to vector<8x1xf32>
    %660 = arith.subf %659, %658 : vector<8x1xf32>
    %661 = arith.mulf %657, %660 : vector<8x1xf32>
    %662 = vector.broadcast %661 : vector<8x1xf32> to vector<8x8xf32>
    %663 = arith.mulf %654, %662 : vector<8x8xf32>
    %664 = vector.extract_strided_slice %617 {offsets = [0, 8], sizes = [8, 8], strides = [1, 1]} : vector<8x32xf32> to vector<8x8xf32>
    %cst_247 = arith.constant dense<0.000000e+00> : vector<8x8xf32>
    %665 = tpu.matmul %663, %664, %cst_247 {dimension_numbers = #tpu.dot_dimension_numbers<[1], [0], [0], [1], [0, 0, 1, 1], [], []>} : vector<8x8xf32>, vector<8x8xf32>, vector<8x8xf32> -> vector<8x8xf32>
    %666 = vector.extract_strided_slice %606 {offsets = [8, 0], sizes = [8, 32], strides = [1, 1]} : vector<32x32xf32> to vector<8x32xf32>
    %cst_248 = arith.constant dense<0.000000e+00> : vector<8x32xf32>
    %667 = tpu.matmul %665, %666, %cst_248 {dimension_numbers = #tpu.dot_dimension_numbers<[1], [0], [0], [1], [0, 0, 1, 1], [], []>} : vector<8x8xf32>, vector<8x32xf32>, vector<8x32xf32> -> vector<8x32xf32>
    %668 = arith.addf %642, %667 : vector<8x32xf32>
    %669 = vector.extract_strided_slice %615 {offsets = [0, 16], sizes = [8, 8], strides = [1, 1]} : vector<8x32xf32> to vector<8x8xf32>
    %670 = vector.extract_strided_slice %616 {offsets = [0, 16], sizes = [8, 8], strides = [1, 1]} : vector<8x32xf32> to vector<8x8xf32>
    %cst_249 = arith.constant dense<0.000000e+00> : vector<8x8xf32>
    %671 = tpu.matmul %669, %670, %cst_249 {dimension_numbers = #tpu.dot_dimension_numbers<[1], [1], [0], [0], [0, 0, 1, 0], [], []>} : vector<8x8xf32>, vector<8x8xf32>, vector<8x8xf32> -> vector<8x8xf32>
    %cst_250 = arith.constant 0.353553385 : f32
    %672 = vector.broadcast %cst_250 : f32 to vector<8x8xf32>
    %673 = arith.mulf %671, %672 : vector<8x8xf32>
    %cst_251 = arith.constant -1.000000e+10 : f32
    %674 = vector.broadcast %cst_251 : f32 to vector<8x8xf32>
    %675 = arith.select %17, %674, %673 : vector<8x8xi1>, vector<8x8xf32>
    %cst_252 = arith.constant dense<0xFF800000> : vector<8xf32>
    %676 = vector.multi_reduction <maximumf>, %675, %cst_252 [1] : vector<8x8xf32> to vector<8xf32>
    %677 = vector.shape_cast %676 : vector<8xf32> to vector<8x1xf32>
    %678 = vector.broadcast %677 : vector<8x1xf32> to vector<8x8xf32>
    %679 = arith.subf %675, %678 : vector<8x8xf32>
    %680 = math.exp %679 : vector<8x8xf32>
    %cst_253 = arith.constant dense<0.000000e+00> : vector<8xf32>
    %681 = vector.multi_reduction <add>, %680, %cst_253 [1] : vector<8x8xf32> to vector<8xf32>
    %682 = vector.shape_cast %681 : vector<8xf32> to vector<8x1xf32>
    %683 = tpu.reciprocal %682 {approx = true} : vector<8x1xf32> -> vector<8x1xf32>
    %684 = arith.mulf %682, %683 : vector<8x1xf32>
    %cst_254 = arith.constant 2.000000e+00 : f32
    %685 = vector.broadcast %cst_254 : f32 to vector<8x1xf32>
    %686 = arith.subf %685, %684 : vector<8x1xf32>
    %687 = arith.mulf %683, %686 : vector<8x1xf32>
    %688 = vector.broadcast %687 : vector<8x1xf32> to vector<8x8xf32>
    %689 = arith.mulf %680, %688 : vector<8x8xf32>
    %690 = vector.extract_strided_slice %617 {offsets = [0, 16], sizes = [8, 8], strides = [1, 1]} : vector<8x32xf32> to vector<8x8xf32>
    %cst_255 = arith.constant dense<0.000000e+00> : vector<8x8xf32>
    %691 = tpu.matmul %689, %690, %cst_255 {dimension_numbers = #tpu.dot_dimension_numbers<[1], [0], [0], [1], [0, 0, 1, 1], [], []>} : vector<8x8xf32>, vector<8x8xf32>, vector<8x8xf32> -> vector<8x8xf32>
    %692 = vector.extract_strided_slice %606 {offsets = [16, 0], sizes = [8, 32], strides = [1, 1]} : vector<32x32xf32> to vector<8x32xf32>
    %cst_256 = arith.constant dense<0.000000e+00> : vector<8x32xf32>
    %693 = tpu.matmul %691, %692, %cst_256 {dimension_numbers = #tpu.dot_dimension_numbers<[1], [0], [0], [1], [0, 0, 1, 1], [], []>} : vector<8x8xf32>, vector<8x32xf32>, vector<8x32xf32> -> vector<8x32xf32>
    %694 = arith.addf %668, %693 : vector<8x32xf32>
    %695 = vector.extract_strided_slice %615 {offsets = [0, 24], sizes = [8, 8], strides = [1, 1]} : vector<8x32xf32> to vector<8x8xf32>
    %696 = vector.extract_strided_slice %616 {offsets = [0, 24], sizes = [8, 8], strides = [1, 1]} : vector<8x32xf32> to vector<8x8xf32>
    %cst_257 = arith.constant dense<0.000000e+00> : vector<8x8xf32>
    %697 = tpu.matmul %695, %696, %cst_257 {dimension_numbers = #tpu.dot_dimension_numbers<[1], [1], [0], [0], [0, 0, 1, 0], [], []>} : vector<8x8xf32>, vector<8x8xf32>, vector<8x8xf32> -> vector<8x8xf32>
    %cst_258 = arith.constant 0.353553385 : f32
    %698 = vector.broadcast %cst_258 : f32 to vector<8x8xf32>
    %699 = arith.mulf %697, %698 : vector<8x8xf32>
    %cst_259 = arith.constant -1.000000e+10 : f32
    %700 = vector.broadcast %cst_259 : f32 to vector<8x8xf32>
    %701 = arith.select %17, %700, %699 : vector<8x8xi1>, vector<8x8xf32>
    %cst_260 = arith.constant dense<0xFF800000> : vector<8xf32>
    %702 = vector.multi_reduction <maximumf>, %701, %cst_260 [1] : vector<8x8xf32> to vector<8xf32>
    %703 = vector.shape_cast %702 : vector<8xf32> to vector<8x1xf32>
    %704 = vector.broadcast %703 : vector<8x1xf32> to vector<8x8xf32>
    %705 = arith.subf %701, %704 : vector<8x8xf32>
    %706 = math.exp %705 : vector<8x8xf32>
    %cst_261 = arith.constant dense<0.000000e+00> : vector<8xf32>
    %707 = vector.multi_reduction <add>, %706, %cst_261 [1] : vector<8x8xf32> to vector<8xf32>
    %708 = vector.shape_cast %707 : vector<8xf32> to vector<8x1xf32>
    %709 = tpu.reciprocal %708 {approx = true} : vector<8x1xf32> -> vector<8x1xf32>
    %710 = arith.mulf %708, %709 : vector<8x1xf32>
    %cst_262 = arith.constant 2.000000e+00 : f32
    %711 = vector.broadcast %cst_262 : f32 to vector<8x1xf32>
    %712 = arith.subf %711, %710 : vector<8x1xf32>
    %713 = arith.mulf %709, %712 : vector<8x1xf32>
    %714 = vector.broadcast %713 : vector<8x1xf32> to vector<8x8xf32>
    %715 = arith.mulf %706, %714 : vector<8x8xf32>
    %716 = vector.extract_strided_slice %617 {offsets = [0, 24], sizes = [8, 8], strides = [1, 1]} : vector<8x32xf32> to vector<8x8xf32>
    %cst_263 = arith.constant dense<0.000000e+00> : vector<8x8xf32>
    %717 = tpu.matmul %715, %716, %cst_263 {dimension_numbers = #tpu.dot_dimension_numbers<[1], [0], [0], [1], [0, 0, 1, 1], [], []>} : vector<8x8xf32>, vector<8x8xf32>, vector<8x8xf32> -> vector<8x8xf32>
    %718 = vector.extract_strided_slice %606 {offsets = [24, 0], sizes = [8, 32], strides = [1, 1]} : vector<32x32xf32> to vector<8x32xf32>
    %cst_264 = arith.constant dense<0.000000e+00> : vector<8x32xf32>
    %719 = tpu.matmul %717, %718, %cst_264 {dimension_numbers = #tpu.dot_dimension_numbers<[1], [0], [0], [1], [0, 0, 1, 1], [], []>} : vector<8x8xf32>, vector<8x32xf32>, vector<8x32xf32> -> vector<8x32xf32>
    %720 = arith.addf %694, %719 : vector<8x32xf32>
    %721 = vector.broadcast %608 : vector<1x32xf32> to vector<8x32xf32>
    %722 = arith.addf %720, %721 : vector<8x32xf32>
    %723 = vector.extract_strided_slice %612 {offsets = [8, 0], sizes = [8, 32], strides = [1, 1]} : vector<16x32xf32> to vector<8x32xf32>
    %724 = vector.extract_strided_slice %613 {offsets = [8, 0], sizes = [8, 32], strides = [1, 1]} : vector<16x32xf32> to vector<8x32xf32>
    %725 = vector.extract_strided_slice %614 {offsets = [8, 0], sizes = [8, 32], strides = [1, 1]} : vector<16x32xf32> to vector<8x32xf32>
    %726 = vector.extract_strided_slice %723 {offsets = [0, 0], sizes = [8, 8], strides = [1, 1]} : vector<8x32xf32> to vector<8x8xf32>
    %727 = vector.extract_strided_slice %724 {offsets = [0, 0], sizes = [8, 8], strides = [1, 1]} : vector<8x32xf32> to vector<8x8xf32>
    %cst_265 = arith.constant dense<0.000000e+00> : vector<8x8xf32>
    %728 = tpu.matmul %726, %727, %cst_265 {dimension_numbers = #tpu.dot_dimension_numbers<[1], [1], [0], [0], [0, 0, 1, 0], [], []>} : vector<8x8xf32>, vector<8x8xf32>, vector<8x8xf32> -> vector<8x8xf32>
    %cst_266 = arith.constant 0.353553385 : f32
    %729 = vector.broadcast %cst_266 : f32 to vector<8x8xf32>
    %730 = arith.mulf %728, %729 : vector<8x8xf32>
    %cst_267 = arith.constant -1.000000e+10 : f32
    %731 = vector.broadcast %cst_267 : f32 to vector<8x8xf32>
    %732 = arith.select %21, %731, %730 : vector<8x8xi1>, vector<8x8xf32>
    %cst_268 = arith.constant dense<0xFF800000> : vector<8xf32>
    %733 = vector.multi_reduction <maximumf>, %732, %cst_268 [1] : vector<8x8xf32> to vector<8xf32>
    %734 = vector.shape_cast %733 : vector<8xf32> to vector<8x1xf32>
    %735 = vector.broadcast %734 : vector<8x1xf32> to vector<8x8xf32>
    %736 = arith.subf %732, %735 : vector<8x8xf32>
    %737 = math.exp %736 : vector<8x8xf32>
    %cst_269 = arith.constant dense<0.000000e+00> : vector<8xf32>
    %738 = vector.multi_reduction <add>, %737, %cst_269 [1] : vector<8x8xf32> to vector<8xf32>
    %739 = vector.shape_cast %738 : vector<8xf32> to vector<8x1xf32>
    %740 = tpu.reciprocal %739 {approx = true} : vector<8x1xf32> -> vector<8x1xf32>
    %741 = arith.mulf %739, %740 : vector<8x1xf32>
    %cst_270 = arith.constant 2.000000e+00 : f32
    %742 = vector.broadcast %cst_270 : f32 to vector<8x1xf32>
    %743 = arith.subf %742, %741 : vector<8x1xf32>
    %744 = arith.mulf %740, %743 : vector<8x1xf32>
    %745 = vector.broadcast %744 : vector<8x1xf32> to vector<8x8xf32>
    %746 = arith.mulf %737, %745 : vector<8x8xf32>
    %747 = vector.extract_strided_slice %725 {offsets = [0, 0], sizes = [8, 8], strides = [1, 1]} : vector<8x32xf32> to vector<8x8xf32>
    %cst_271 = arith.constant dense<0.000000e+00> : vector<8x8xf32>
    %748 = tpu.matmul %746, %747, %cst_271 {dimension_numbers = #tpu.dot_dimension_numbers<[1], [0], [0], [1], [0, 0, 1, 1], [], []>} : vector<8x8xf32>, vector<8x8xf32>, vector<8x8xf32> -> vector<8x8xf32>
    %749 = vector.extract_strided_slice %606 {offsets = [0, 0], sizes = [8, 32], strides = [1, 1]} : vector<32x32xf32> to vector<8x32xf32>
    %cst_272 = arith.constant dense<0.000000e+00> : vector<8x32xf32>
    %750 = tpu.matmul %748, %749, %cst_272 {dimension_numbers = #tpu.dot_dimension_numbers<[1], [0], [0], [1], [0, 0, 1, 1], [], []>} : vector<8x8xf32>, vector<8x32xf32>, vector<8x32xf32> -> vector<8x32xf32>
    %751 = vector.extract_strided_slice %723 {offsets = [0, 8], sizes = [8, 8], strides = [1, 1]} : vector<8x32xf32> to vector<8x8xf32>
    %752 = vector.extract_strided_slice %724 {offsets = [0, 8], sizes = [8, 8], strides = [1, 1]} : vector<8x32xf32> to vector<8x8xf32>
    %cst_273 = arith.constant dense<0.000000e+00> : vector<8x8xf32>
    %753 = tpu.matmul %751, %752, %cst_273 {dimension_numbers = #tpu.dot_dimension_numbers<[1], [1], [0], [0], [0, 0, 1, 0], [], []>} : vector<8x8xf32>, vector<8x8xf32>, vector<8x8xf32> -> vector<8x8xf32>
    %cst_274 = arith.constant 0.353553385 : f32
    %754 = vector.broadcast %cst_274 : f32 to vector<8x8xf32>
    %755 = arith.mulf %753, %754 : vector<8x8xf32>
    %cst_275 = arith.constant -1.000000e+10 : f32
    %756 = vector.broadcast %cst_275 : f32 to vector<8x8xf32>
    %757 = arith.select %21, %756, %755 : vector<8x8xi1>, vector<8x8xf32>
    %cst_276 = arith.constant dense<0xFF800000> : vector<8xf32>
    %758 = vector.multi_reduction <maximumf>, %757, %cst_276 [1] : vector<8x8xf32> to vector<8xf32>
    %759 = vector.shape_cast %758 : vector<8xf32> to vector<8x1xf32>
    %760 = vector.broadcast %759 : vector<8x1xf32> to vector<8x8xf32>
    %761 = arith.subf %757, %760 : vector<8x8xf32>
    %762 = math.exp %761 : vector<8x8xf32>
    %cst_277 = arith.constant dense<0.000000e+00> : vector<8xf32>
    %763 = vector.multi_reduction <add>, %762, %cst_277 [1] : vector<8x8xf32> to vector<8xf32>
    %764 = vector.shape_cast %763 : vector<8xf32> to vector<8x1xf32>
    %765 = tpu.reciprocal %764 {approx = true} : vector<8x1xf32> -> vector<8x1xf32>
    %766 = arith.mulf %764, %765 : vector<8x1xf32>
    %cst_278 = arith.constant 2.000000e+00 : f32
    %767 = vector.broadcast %cst_278 : f32 to vector<8x1xf32>
    %768 = arith.subf %767, %766 : vector<8x1xf32>
    %769 = arith.mulf %765, %768 : vector<8x1xf32>
    %770 = vector.broadcast %769 : vector<8x1xf32> to vector<8x8xf32>
    %771 = arith.mulf %762, %770 : vector<8x8xf32>
    %772 = vector.extract_strided_slice %725 {offsets = [0, 8], sizes = [8, 8], strides = [1, 1]} : vector<8x32xf32> to vector<8x8xf32>
    %cst_279 = arith.constant dense<0.000000e+00> : vector<8x8xf32>
    %773 = tpu.matmul %771, %772, %cst_279 {dimension_numbers = #tpu.dot_dimension_numbers<[1], [0], [0], [1], [0, 0, 1, 1], [], []>} : vector<8x8xf32>, vector<8x8xf32>, vector<8x8xf32> -> vector<8x8xf32>
    %774 = vector.extract_strided_slice %606 {offsets = [8, 0], sizes = [8, 32], strides = [1, 1]} : vector<32x32xf32> to vector<8x32xf32>
    %cst_280 = arith.constant dense<0.000000e+00> : vector<8x32xf32>
    %775 = tpu.matmul %773, %774, %cst_280 {dimension_numbers = #tpu.dot_dimension_numbers<[1], [0], [0], [1], [0, 0, 1, 1], [], []>} : vector<8x8xf32>, vector<8x32xf32>, vector<8x32xf32> -> vector<8x32xf32>
    %776 = arith.addf %750, %775 : vector<8x32xf32>
    %777 = vector.extract_strided_slice %723 {offsets = [0, 16], sizes = [8, 8], strides = [1, 1]} : vector<8x32xf32> to vector<8x8xf32>
    %778 = vector.extract_strided_slice %724 {offsets = [0, 16], sizes = [8, 8], strides = [1, 1]} : vector<8x32xf32> to vector<8x8xf32>
    %cst_281 = arith.constant dense<0.000000e+00> : vector<8x8xf32>
    %779 = tpu.matmul %777, %778, %cst_281 {dimension_numbers = #tpu.dot_dimension_numbers<[1], [1], [0], [0], [0, 0, 1, 0], [], []>} : vector<8x8xf32>, vector<8x8xf32>, vector<8x8xf32> -> vector<8x8xf32>
    %cst_282 = arith.constant 0.353553385 : f32
    %780 = vector.broadcast %cst_282 : f32 to vector<8x8xf32>
    %781 = arith.mulf %779, %780 : vector<8x8xf32>
    %cst_283 = arith.constant -1.000000e+10 : f32
    %782 = vector.broadcast %cst_283 : f32 to vector<8x8xf32>
    %783 = arith.select %21, %782, %781 : vector<8x8xi1>, vector<8x8xf32>
    %cst_284 = arith.constant dense<0xFF800000> : vector<8xf32>
    %784 = vector.multi_reduction <maximumf>, %783, %cst_284 [1] : vector<8x8xf32> to vector<8xf32>
    %785 = vector.shape_cast %784 : vector<8xf32> to vector<8x1xf32>
    %786 = vector.broadcast %785 : vector<8x1xf32> to vector<8x8xf32>
    %787 = arith.subf %783, %786 : vector<8x8xf32>
    %788 = math.exp %787 : vector<8x8xf32>
    %cst_285 = arith.constant dense<0.000000e+00> : vector<8xf32>
    %789 = vector.multi_reduction <add>, %788, %cst_285 [1] : vector<8x8xf32> to vector<8xf32>
    %790 = vector.shape_cast %789 : vector<8xf32> to vector<8x1xf32>
    %791 = tpu.reciprocal %790 {approx = true} : vector<8x1xf32> -> vector<8x1xf32>
    %792 = arith.mulf %790, %791 : vector<8x1xf32>
    %cst_286 = arith.constant 2.000000e+00 : f32
    %793 = vector.broadcast %cst_286 : f32 to vector<8x1xf32>
    %794 = arith.subf %793, %792 : vector<8x1xf32>
    %795 = arith.mulf %791, %794 : vector<8x1xf32>
    %796 = vector.broadcast %795 : vector<8x1xf32> to vector<8x8xf32>
    %797 = arith.mulf %788, %796 : vector<8x8xf32>
    %798 = vector.extract_strided_slice %725 {offsets = [0, 16], sizes = [8, 8], strides = [1, 1]} : vector<8x32xf32> to vector<8x8xf32>
    %cst_287 = arith.constant dense<0.000000e+00> : vector<8x8xf32>
    %799 = tpu.matmul %797, %798, %cst_287 {dimension_numbers = #tpu.dot_dimension_numbers<[1], [0], [0], [1], [0, 0, 1, 1], [], []>} : vector<8x8xf32>, vector<8x8xf32>, vector<8x8xf32> -> vector<8x8xf32>
    %800 = vector.extract_strided_slice %606 {offsets = [16, 0], sizes = [8, 32], strides = [1, 1]} : vector<32x32xf32> to vector<8x32xf32>
    %cst_288 = arith.constant dense<0.000000e+00> : vector<8x32xf32>
    %801 = tpu.matmul %799, %800, %cst_288 {dimension_numbers = #tpu.dot_dimension_numbers<[1], [0], [0], [1], [0, 0, 1, 1], [], []>} : vector<8x8xf32>, vector<8x32xf32>, vector<8x32xf32> -> vector<8x32xf32>
    %802 = arith.addf %776, %801 : vector<8x32xf32>
    %803 = vector.extract_strided_slice %723 {offsets = [0, 24], sizes = [8, 8], strides = [1, 1]} : vector<8x32xf32> to vector<8x8xf32>
    %804 = vector.extract_strided_slice %724 {offsets = [0, 24], sizes = [8, 8], strides = [1, 1]} : vector<8x32xf32> to vector<8x8xf32>
    %cst_289 = arith.constant dense<0.000000e+00> : vector<8x8xf32>
    %805 = tpu.matmul %803, %804, %cst_289 {dimension_numbers = #tpu.dot_dimension_numbers<[1], [1], [0], [0], [0, 0, 1, 0], [], []>} : vector<8x8xf32>, vector<8x8xf32>, vector<8x8xf32> -> vector<8x8xf32>
    %cst_290 = arith.constant 0.353553385 : f32
    %806 = vector.broadcast %cst_290 : f32 to vector<8x8xf32>
    %807 = arith.mulf %805, %806 : vector<8x8xf32>
    %cst_291 = arith.constant -1.000000e+10 : f32
    %808 = vector.broadcast %cst_291 : f32 to vector<8x8xf32>
    %809 = arith.select %21, %808, %807 : vector<8x8xi1>, vector<8x8xf32>
    %cst_292 = arith.constant dense<0xFF800000> : vector<8xf32>
    %810 = vector.multi_reduction <maximumf>, %809, %cst_292 [1] : vector<8x8xf32> to vector<8xf32>
    %811 = vector.shape_cast %810 : vector<8xf32> to vector<8x1xf32>
    %812 = vector.broadcast %811 : vector<8x1xf32> to vector<8x8xf32>
    %813 = arith.subf %809, %812 : vector<8x8xf32>
    %814 = math.exp %813 : vector<8x8xf32>
    %cst_293 = arith.constant dense<0.000000e+00> : vector<8xf32>
    %815 = vector.multi_reduction <add>, %814, %cst_293 [1] : vector<8x8xf32> to vector<8xf32>
    %816 = vector.shape_cast %815 : vector<8xf32> to vector<8x1xf32>
    %817 = tpu.reciprocal %816 {approx = true} : vector<8x1xf32> -> vector<8x1xf32>
    %818 = arith.mulf %816, %817 : vector<8x1xf32>
    %cst_294 = arith.constant 2.000000e+00 : f32
    %819 = vector.broadcast %cst_294 : f32 to vector<8x1xf32>
    %820 = arith.subf %819, %818 : vector<8x1xf32>
    %821 = arith.mulf %817, %820 : vector<8x1xf32>
    %822 = vector.broadcast %821 : vector<8x1xf32> to vector<8x8xf32>
    %823 = arith.mulf %814, %822 : vector<8x8xf32>
    %824 = vector.extract_strided_slice %725 {offsets = [0, 24], sizes = [8, 8], strides = [1, 1]} : vector<8x32xf32> to vector<8x8xf32>
    %cst_295 = arith.constant dense<0.000000e+00> : vector<8x8xf32>
    %825 = tpu.matmul %823, %824, %cst_295 {dimension_numbers = #tpu.dot_dimension_numbers<[1], [0], [0], [1], [0, 0, 1, 1], [], []>} : vector<8x8xf32>, vector<8x8xf32>, vector<8x8xf32> -> vector<8x8xf32>
    %826 = vector.extract_strided_slice %606 {offsets = [24, 0], sizes = [8, 32], strides = [1, 1]} : vector<32x32xf32> to vector<8x32xf32>
    %cst_296 = arith.constant dense<0.000000e+00> : vector<8x32xf32>
    %827 = tpu.matmul %825, %826, %cst_296 {dimension_numbers = #tpu.dot_dimension_numbers<[1], [0], [0], [1], [0, 0, 1, 1], [], []>} : vector<8x8xf32>, vector<8x32xf32>, vector<8x32xf32> -> vector<8x32xf32>
    %828 = arith.addf %802, %827 : vector<8x32xf32>
    %829 = vector.broadcast %608 : vector<1x32xf32> to vector<8x32xf32>
    %830 = arith.addf %828, %829 : vector<8x32xf32>
    %831 = tpu.concatenate %722, %830 in 0 : vector<8x32xf32>, vector<8x32xf32> -> vector<16x32xf32>
    %832 = arith.addf %596, %831 : vector<16x32xf32>
    %833 = vector.extract_strided_slice %598 {offsets = [0, 0], sizes = [1, 32], strides = [1, 1]} : vector<3x32xf32> to vector<1x32xf32>
    %834 = vector.extract_strided_slice %600 {offsets = [0, 0], sizes = [1, 32], strides = [1, 1]} : vector<3x32xf32> to vector<1x32xf32>
    %cst_297 = arith.constant dense<0.000000e+00> : vector<16xf32>
    %835 = vector.multi_reduction <add>, %832, %cst_297 [1] : vector<16x32xf32> to vector<16xf32>
    %836 = vector.shape_cast %835 : vector<16xf32> to vector<16x1xf32>
    %cst_298 = arith.constant 3.200000e+01 : f32
    %837 = vector.broadcast %cst_298 : f32 to vector<16x1xf32>
    %838 = arith.divf %836, %837 : vector<16x1xf32>
    %839 = vector.broadcast %838 : vector<16x1xf32> to vector<16x32xf32>
    %840 = arith.subf %832, %839 : vector<16x32xf32>
    %841 = arith.mulf %840, %840 : vector<16x32xf32>
    %cst_299 = arith.constant dense<0.000000e+00> : vector<16xf32>
    %842 = vector.multi_reduction <add>, %841, %cst_299 [1] : vector<16x32xf32> to vector<16xf32>
    %843 = vector.shape_cast %842 : vector<16xf32> to vector<16x1xf32>
    %cst_300 = arith.constant 3.200000e+01 : f32
    %844 = vector.broadcast %cst_300 : f32 to vector<16x1xf32>
    %845 = arith.divf %843, %844 : vector<16x1xf32>
    %846 = vector.broadcast %838 : vector<16x1xf32> to vector<16x32xf32>
    %847 = arith.subf %832, %846 : vector<16x32xf32>
    %cst_301 = arith.constant 9.99999974E-6 : f32
    %848 = vector.broadcast %cst_301 : f32 to vector<16x1xf32>
    %849 = arith.addf %845, %848 : vector<16x1xf32>
    %850 = math.rsqrt %849 : vector<16x1xf32>
    %851 = vector.broadcast %850 : vector<16x1xf32> to vector<16x32xf32>
    %852 = arith.mulf %847, %851 : vector<16x32xf32>
    %853 = vector.broadcast %833 : vector<1x32xf32> to vector<16x32xf32>
    %854 = arith.mulf %852, %853 : vector<16x32xf32>
    %855 = vector.broadcast %834 : vector<1x32xf32> to vector<16x32xf32>
    %856 = arith.addf %854, %855 : vector<16x32xf32>
    %c1_302 = arith.constant 1 : index
    %c0_303 = arith.constant 0 : index
    %c0_304 = arith.constant 0 : index
    %857 = vector.load %arg11[%c1_302, %c0_303, %c0_304] : memref<2x32x96xf32, #tpu.memory_space<vmem>>, vector<1x32x96xf32>
    %858 = vector.shape_cast %857 : vector<1x32x96xf32> to vector<32x96xf32>
    %c1_305 = arith.constant 1 : index
    %c0_306 = arith.constant 0 : index
    %c0_307 = arith.constant 0 : index
    %859 = vector.load %arg12[%c1_305, %c0_306, %c0_307] : memref<2x1x96xf32, #tpu.memory_space<vmem>>, vector<1x1x96xf32>
    %860 = vector.shape_cast %859 : vector<1x1x96xf32> to vector<1x96xf32>
    %c1_308 = arith.constant 1 : index
    %c0_309 = arith.constant 0 : index
    %c0_310 = arith.constant 0 : index
    %861 = vector.load %arg13[%c1_308, %c0_309, %c0_310] : memref<2x32x32xf32, #tpu.memory_space<vmem>>, vector<1x32x32xf32>
    %862 = vector.shape_cast %861 : vector<1x32x32xf32> to vector<32x32xf32>
    %c1_311 = arith.constant 1 : index
    %c0_312 = arith.constant 0 : index
    %c0_313 = arith.constant 0 : index
    %863 = vector.load %arg14[%c1_311, %c0_312, %c0_313] : memref<2x1x32xf32, #tpu.memory_space<vmem>>, vector<1x1x32xf32>
    %864 = vector.shape_cast %863 : vector<1x1x32xf32> to vector<1x32xf32>
    %865 = vector.extract_strided_slice %858 {offsets = [0, 0], sizes = [32, 32], strides = [1, 1]} : vector<32x96xf32> to vector<32x32xf32>
    %cst_314 = arith.constant dense<0.000000e+00> : vector<16x32xf32>
    %866 = tpu.matmul %856, %865, %cst_314 {dimension_numbers = #tpu.dot_dimension_numbers<[1], [0], [0], [1], [0, 0, 1, 1], [], []>} : vector<16x32xf32>, vector<32x32xf32>, vector<16x32xf32> -> vector<16x32xf32>
    %867 = vector.extract_strided_slice %860 {offsets = [0, 0], sizes = [1, 32], strides = [1, 1]} : vector<1x96xf32> to vector<1x32xf32>
    %868 = vector.broadcast %867 : vector<1x32xf32> to vector<16x32xf32>
    %869 = arith.addf %866, %868 : vector<16x32xf32>
    %870 = vector.extract_strided_slice %858 {offsets = [0, 32], sizes = [32, 64], strides = [1, 1]} : vector<32x96xf32> to vector<32x64xf32>
    %cst_315 = arith.constant dense<0.000000e+00> : vector<16x64xf32>
    %871 = tpu.matmul %13, %870, %cst_315 {dimension_numbers = #tpu.dot_dimension_numbers<[1], [0], [0], [1], [0, 0, 1, 1], [], []>} : vector<16x32xf32>, vector<32x64xf32>, vector<16x64xf32> -> vector<16x64xf32>
    %872 = vector.extract_strided_slice %860 {offsets = [0, 32], sizes = [1, 64], strides = [1, 1]} : vector<1x96xf32> to vector<1x64xf32>
    %873 = vector.broadcast %872 : vector<1x64xf32> to vector<16x64xf32>
    %874 = arith.addf %871, %873 : vector<16x64xf32>
    %875 = vector.extract_strided_slice %874 {offsets = [0, 0], sizes = [16, 32], strides = [1, 1]} : vector<16x64xf32> to vector<16x32xf32>
    %876 = vector.extract_strided_slice %874 {offsets = [0, 32], sizes = [16, 32], strides = [1, 1]} : vector<16x64xf32> to vector<16x32xf32>
    %877 = vector.extract_strided_slice %869 {offsets = [0, 0], sizes = [8, 32], strides = [1, 1]} : vector<16x32xf32> to vector<8x32xf32>
    %878 = vector.extract_strided_slice %875 {offsets = [0, 0], sizes = [8, 32], strides = [1, 1]} : vector<16x32xf32> to vector<8x32xf32>
    %879 = vector.extract_strided_slice %876 {offsets = [0, 0], sizes = [8, 32], strides = [1, 1]} : vector<16x32xf32> to vector<8x32xf32>
    %880 = vector.extract_strided_slice %877 {offsets = [0, 0], sizes = [8, 8], strides = [1, 1]} : vector<8x32xf32> to vector<8x8xf32>
    %881 = vector.extract_strided_slice %878 {offsets = [0, 0], sizes = [8, 8], strides = [1, 1]} : vector<8x32xf32> to vector<8x8xf32>
    %cst_316 = arith.constant dense<0.000000e+00> : vector<8x8xf32>
    %882 = tpu.matmul %880, %881, %cst_316 {dimension_numbers = #tpu.dot_dimension_numbers<[1], [1], [0], [0], [0, 0, 1, 0], [], []>} : vector<8x8xf32>, vector<8x8xf32>, vector<8x8xf32> -> vector<8x8xf32>
    %cst_317 = arith.constant 0.353553385 : f32
    %883 = vector.broadcast %cst_317 : f32 to vector<8x8xf32>
    %884 = arith.mulf %882, %883 : vector<8x8xf32>
    %cst_318 = arith.constant -1.000000e+10 : f32
    %885 = vector.broadcast %cst_318 : f32 to vector<8x8xf32>
    %886 = arith.select %27, %885, %884 : vector<8x8xi1>, vector<8x8xf32>
    %cst_319 = arith.constant dense<0xFF800000> : vector<8xf32>
    %887 = vector.multi_reduction <maximumf>, %886, %cst_319 [1] : vector<8x8xf32> to vector<8xf32>
    %888 = vector.shape_cast %887 : vector<8xf32> to vector<8x1xf32>
    %889 = vector.broadcast %888 : vector<8x1xf32> to vector<8x8xf32>
    %890 = arith.subf %886, %889 : vector<8x8xf32>
    %891 = math.exp %890 : vector<8x8xf32>
    %cst_320 = arith.constant dense<0.000000e+00> : vector<8xf32>
    %892 = vector.multi_reduction <add>, %891, %cst_320 [1] : vector<8x8xf32> to vector<8xf32>
    %893 = vector.shape_cast %892 : vector<8xf32> to vector<8x1xf32>
    %894 = tpu.reciprocal %893 {approx = true} : vector<8x1xf32> -> vector<8x1xf32>
    %895 = arith.mulf %893, %894 : vector<8x1xf32>
    %cst_321 = arith.constant 2.000000e+00 : f32
    %896 = vector.broadcast %cst_321 : f32 to vector<8x1xf32>
    %897 = arith.subf %896, %895 : vector<8x1xf32>
    %898 = arith.mulf %894, %897 : vector<8x1xf32>
    %899 = vector.broadcast %898 : vector<8x1xf32> to vector<8x8xf32>
    %900 = arith.mulf %891, %899 : vector<8x8xf32>
    %901 = vector.extract_strided_slice %879 {offsets = [0, 0], sizes = [8, 8], strides = [1, 1]} : vector<8x32xf32> to vector<8x8xf32>
    %cst_322 = arith.constant dense<0.000000e+00> : vector<8x8xf32>
    %902 = tpu.matmul %900, %901, %cst_322 {dimension_numbers = #tpu.dot_dimension_numbers<[1], [0], [0], [1], [0, 0, 1, 1], [], []>} : vector<8x8xf32>, vector<8x8xf32>, vector<8x8xf32> -> vector<8x8xf32>
    %903 = vector.extract_strided_slice %862 {offsets = [0, 0], sizes = [8, 32], strides = [1, 1]} : vector<32x32xf32> to vector<8x32xf32>
    %cst_323 = arith.constant dense<0.000000e+00> : vector<8x32xf32>
    %904 = tpu.matmul %902, %903, %cst_323 {dimension_numbers = #tpu.dot_dimension_numbers<[1], [0], [0], [1], [0, 0, 1, 1], [], []>} : vector<8x8xf32>, vector<8x32xf32>, vector<8x32xf32> -> vector<8x32xf32>
    %c0_324 = arith.constant 0 : index
    %c0_325 = arith.constant 0 : index
    %905 = vector.load %arg24[%c0_324, %c0_325] : memref<16x32xf32, #tpu.memory_space<vmem>>, vector<8x8xf32>
    tpu.vector_store %arg24[%c0_324, %c0_325], %900 {strides = array<i32>} : memref<16x32xf32, #tpu.memory_space<vmem>>, vector<8x8xf32>,
    %906 = vector.extract_strided_slice %877 {offsets = [0, 8], sizes = [8, 8], strides = [1, 1]} : vector<8x32xf32> to vector<8x8xf32>
    %907 = vector.extract_strided_slice %878 {offsets = [0, 8], sizes = [8, 8], strides = [1, 1]} : vector<8x32xf32> to vector<8x8xf32>
    %cst_326 = arith.constant dense<0.000000e+00> : vector<8x8xf32>
    %908 = tpu.matmul %906, %907, %cst_326 {dimension_numbers = #tpu.dot_dimension_numbers<[1], [1], [0], [0], [0, 0, 1, 0], [], []>} : vector<8x8xf32>, vector<8x8xf32>, vector<8x8xf32> -> vector<8x8xf32>
    %cst_327 = arith.constant 0.353553385 : f32
    %909 = vector.broadcast %cst_327 : f32 to vector<8x8xf32>
    %910 = arith.mulf %908, %909 : vector<8x8xf32>
    %cst_328 = arith.constant -1.000000e+10 : f32
    %911 = vector.broadcast %cst_328 : f32 to vector<8x8xf32>
    %912 = arith.select %27, %911, %910 : vector<8x8xi1>, vector<8x8xf32>
    %cst_329 = arith.constant dense<0xFF800000> : vector<8xf32>
    %913 = vector.multi_reduction <maximumf>, %912, %cst_329 [1] : vector<8x8xf32> to vector<8xf32>
    %914 = vector.shape_cast %913 : vector<8xf32> to vector<8x1xf32>
    %915 = vector.broadcast %914 : vector<8x1xf32> to vector<8x8xf32>
    %916 = arith.subf %912, %915 : vector<8x8xf32>
    %917 = math.exp %916 : vector<8x8xf32>
    %cst_330 = arith.constant dense<0.000000e+00> : vector<8xf32>
    %918 = vector.multi_reduction <add>, %917, %cst_330 [1] : vector<8x8xf32> to vector<8xf32>
    %919 = vector.shape_cast %918 : vector<8xf32> to vector<8x1xf32>
    %920 = tpu.reciprocal %919 {approx = true} : vector<8x1xf32> -> vector<8x1xf32>
    %921 = arith.mulf %919, %920 : vector<8x1xf32>
    %cst_331 = arith.constant 2.000000e+00 : f32
    %922 = vector.broadcast %cst_331 : f32 to vector<8x1xf32>
    %923 = arith.subf %922, %921 : vector<8x1xf32>
    %924 = arith.mulf %920, %923 : vector<8x1xf32>
    %925 = vector.broadcast %924 : vector<8x1xf32> to vector<8x8xf32>
    %926 = arith.mulf %917, %925 : vector<8x8xf32>
    %927 = vector.extract_strided_slice %879 {offsets = [0, 8], sizes = [8, 8], strides = [1, 1]} : vector<8x32xf32> to vector<8x8xf32>
    %cst_332 = arith.constant dense<0.000000e+00> : vector<8x8xf32>
    %928 = tpu.matmul %926, %927, %cst_332 {dimension_numbers = #tpu.dot_dimension_numbers<[1], [0], [0], [1], [0, 0, 1, 1], [], []>} : vector<8x8xf32>, vector<8x8xf32>, vector<8x8xf32> -> vector<8x8xf32>
    %929 = vector.extract_strided_slice %862 {offsets = [8, 0], sizes = [8, 32], strides = [1, 1]} : vector<32x32xf32> to vector<8x32xf32>
    %cst_333 = arith.constant dense<0.000000e+00> : vector<8x32xf32>
    %930 = tpu.matmul %928, %929, %cst_333 {dimension_numbers = #tpu.dot_dimension_numbers<[1], [0], [0], [1], [0, 0, 1, 1], [], []>} : vector<8x8xf32>, vector<8x32xf32>, vector<8x32xf32> -> vector<8x32xf32>
    %931 = arith.addf %904, %930 : vector<8x32xf32>
    %c0_334 = arith.constant 0 : index
    %c8 = arith.constant 8 : index
    %932 = vector.load %arg24[%c0_334, %c8] : memref<16x32xf32, #tpu.memory_space<vmem>>, vector<8x8xf32>
    tpu.vector_store %arg24[%c0_334, %c8], %926 {strides = array<i32>} : memref<16x32xf32, #tpu.memory_space<vmem>>, vector<8x8xf32>,
    %933 = vector.extract_strided_slice %877 {offsets = [0, 16], sizes = [8, 8], strides = [1, 1]} : vector<8x32xf32> to vector<8x8xf32>
    %934 = vector.extract_strided_slice %878 {offsets = [0, 16], sizes = [8, 8], strides = [1, 1]} : vector<8x32xf32> to vector<8x8xf32>
    %cst_335 = arith.constant dense<0.000000e+00> : vector<8x8xf32>
    %935 = tpu.matmul %933, %934, %cst_335 {dimension_numbers = #tpu.dot_dimension_numbers<[1], [1], [0], [0], [0, 0, 1, 0], [], []>} : vector<8x8xf32>, vector<8x8xf32>, vector<8x8xf32> -> vector<8x8xf32>
    %cst_336 = arith.constant 0.353553385 : f32
    %936 = vector.broadcast %cst_336 : f32 to vector<8x8xf32>
    %937 = arith.mulf %935, %936 : vector<8x8xf32>
    %cst_337 = arith.constant -1.000000e+10 : f32
    %938 = vector.broadcast %cst_337 : f32 to vector<8x8xf32>
    %939 = arith.select %27, %938, %937 : vector<8x8xi1>, vector<8x8xf32>
    %cst_338 = arith.constant dense<0xFF800000> : vector<8xf32>
    %940 = vector.multi_reduction <maximumf>, %939, %cst_338 [1] : vector<8x8xf32> to vector<8xf32>
    %941 = vector.shape_cast %940 : vector<8xf32> to vector<8x1xf32>
    %942 = vector.broadcast %941 : vector<8x1xf32> to vector<8x8xf32>
    %943 = arith.subf %939, %942 : vector<8x8xf32>
    %944 = math.exp %943 : vector<8x8xf32>
    %cst_339 = arith.constant dense<0.000000e+00> : vector<8xf32>
    %945 = vector.multi_reduction <add>, %944, %cst_339 [1] : vector<8x8xf32> to vector<8xf32>
    %946 = vector.shape_cast %945 : vector<8xf32> to vector<8x1xf32>
    %947 = tpu.reciprocal %946 {approx = true} : vector<8x1xf32> -> vector<8x1xf32>
    %948 = arith.mulf %946, %947 : vector<8x1xf32>
    %cst_340 = arith.constant 2.000000e+00 : f32
    %949 = vector.broadcast %cst_340 : f32 to vector<8x1xf32>
    %950 = arith.subf %949, %948 : vector<8x1xf32>
    %951 = arith.mulf %947, %950 : vector<8x1xf32>
    %952 = vector.broadcast %951 : vector<8x1xf32> to vector<8x8xf32>
    %953 = arith.mulf %944, %952 : vector<8x8xf32>
    %954 = vector.extract_strided_slice %879 {offsets = [0, 16], sizes = [8, 8], strides = [1, 1]} : vector<8x32xf32> to vector<8x8xf32>
    %cst_341 = arith.constant dense<0.000000e+00> : vector<8x8xf32>
    %955 = tpu.matmul %953, %954, %cst_341 {dimension_numbers = #tpu.dot_dimension_numbers<[1], [0], [0], [1], [0, 0, 1, 1], [], []>} : vector<8x8xf32>, vector<8x8xf32>, vector<8x8xf32> -> vector<8x8xf32>
    %956 = vector.extract_strided_slice %862 {offsets = [16, 0], sizes = [8, 32], strides = [1, 1]} : vector<32x32xf32> to vector<8x32xf32>
    %cst_342 = arith.constant dense<0.000000e+00> : vector<8x32xf32>
    %957 = tpu.matmul %955, %956, %cst_342 {dimension_numbers = #tpu.dot_dimension_numbers<[1], [0], [0], [1], [0, 0, 1, 1], [], []>} : vector<8x8xf32>, vector<8x32xf32>, vector<8x32xf32> -> vector<8x32xf32>
    %958 = arith.addf %931, %957 : vector<8x32xf32>
    %c0_343 = arith.constant 0 : index
    %c16 = arith.constant 16 : index
    %959 = vector.load %arg24[%c0_343, %c16] : memref<16x32xf32, #tpu.memory_space<vmem>>, vector<8x8xf32>
    tpu.vector_store %arg24[%c0_343, %c16], %953 {strides = array<i32>} : memref<16x32xf32, #tpu.memory_space<vmem>>, vector<8x8xf32>,
    %960 = vector.extract_strided_slice %877 {offsets = [0, 24], sizes = [8, 8], strides = [1, 1]} : vector<8x32xf32> to vector<8x8xf32>
    %961 = vector.extract_strided_slice %878 {offsets = [0, 24], sizes = [8, 8], strides = [1, 1]} : vector<8x32xf32> to vector<8x8xf32>
    %cst_344 = arith.constant dense<0.000000e+00> : vector<8x8xf32>
    %962 = tpu.matmul %960, %961, %cst_344 {dimension_numbers = #tpu.dot_dimension_numbers<[1], [1], [0], [0], [0, 0, 1, 0], [], []>} : vector<8x8xf32>, vector<8x8xf32>, vector<8x8xf32> -> vector<8x8xf32>
    %cst_345 = arith.constant 0.353553385 : f32
    %963 = vector.broadcast %cst_345 : f32 to vector<8x8xf32>
    %964 = arith.mulf %962, %963 : vector<8x8xf32>
    %cst_346 = arith.constant -1.000000e+10 : f32
    %965 = vector.broadcast %cst_346 : f32 to vector<8x8xf32>
    %966 = arith.select %27, %965, %964 : vector<8x8xi1>, vector<8x8xf32>
    %cst_347 = arith.constant dense<0xFF800000> : vector<8xf32>
    %967 = vector.multi_reduction <maximumf>, %966, %cst_347 [1] : vector<8x8xf32> to vector<8xf32>
    %968 = vector.shape_cast %967 : vector<8xf32> to vector<8x1xf32>
    %969 = vector.broadcast %968 : vector<8x1xf32> to vector<8x8xf32>
    %970 = arith.subf %966, %969 : vector<8x8xf32>
    %971 = math.exp %970 : vector<8x8xf32>
    %cst_348 = arith.constant dense<0.000000e+00> : vector<8xf32>
    %972 = vector.multi_reduction <add>, %971, %cst_348 [1] : vector<8x8xf32> to vector<8xf32>
    %973 = vector.shape_cast %972 : vector<8xf32> to vector<8x1xf32>
    %974 = tpu.reciprocal %973 {approx = true} : vector<8x1xf32> -> vector<8x1xf32>
    %975 = arith.mulf %973, %974 : vector<8x1xf32>
    %cst_349 = arith.constant 2.000000e+00 : f32
    %976 = vector.broadcast %cst_349 : f32 to vector<8x1xf32>
    %977 = arith.subf %976, %975 : vector<8x1xf32>
    %978 = arith.mulf %974, %977 : vector<8x1xf32>
    %979 = vector.broadcast %978 : vector<8x1xf32> to vector<8x8xf32>
    %980 = arith.mulf %971, %979 : vector<8x8xf32>
    %981 = vector.extract_strided_slice %879 {offsets = [0, 24], sizes = [8, 8], strides = [1, 1]} : vector<8x32xf32> to vector<8x8xf32>
    %cst_350 = arith.constant dense<0.000000e+00> : vector<8x8xf32>
    %982 = tpu.matmul %980, %981, %cst_350 {dimension_numbers = #tpu.dot_dimension_numbers<[1], [0], [0], [1], [0, 0, 1, 1], [], []>} : vector<8x8xf32>, vector<8x8xf32>, vector<8x8xf32> -> vector<8x8xf32>
    %983 = vector.extract_strided_slice %862 {offsets = [24, 0], sizes = [8, 32], strides = [1, 1]} : vector<32x32xf32> to vector<8x32xf32>
    %cst_351 = arith.constant dense<0.000000e+00> : vector<8x32xf32>
    %984 = tpu.matmul %982, %983, %cst_351 {dimension_numbers = #tpu.dot_dimension_numbers<[1], [0], [0], [1], [0, 0, 1, 1], [], []>} : vector<8x8xf32>, vector<8x32xf32>, vector<8x32xf32> -> vector<8x32xf32>
    %985 = arith.addf %958, %984 : vector<8x32xf32>
    %c0_352 = arith.constant 0 : index
    %c24 = arith.constant 24 : index
    %986 = vector.load %arg24[%c0_352, %c24] : memref<16x32xf32, #tpu.memory_space<vmem>>, vector<8x8xf32>
    tpu.vector_store %arg24[%c0_352, %c24], %980 {strides = array<i32>} : memref<16x32xf32, #tpu.memory_space<vmem>>, vector<8x8xf32>,
    %987 = vector.broadcast %864 : vector<1x32xf32> to vector<8x32xf32>
    %988 = arith.addf %985, %987 : vector<8x32xf32>
    %989 = vector.extract_strided_slice %869 {offsets = [8, 0], sizes = [8, 32], strides = [1, 1]} : vector<16x32xf32> to vector<8x32xf32>
    %990 = vector.extract_strided_slice %875 {offsets = [8, 0], sizes = [8, 32], strides = [1, 1]} : vector<16x32xf32> to vector<8x32xf32>
    %991 = vector.extract_strided_slice %876 {offsets = [8, 0], sizes = [8, 32], strides = [1, 1]} : vector<16x32xf32> to vector<8x32xf32>
    %992 = vector.extract_strided_slice %989 {offsets = [0, 0], sizes = [8, 8], strides = [1, 1]} : vector<8x32xf32> to vector<8x8xf32>
    %993 = vector.extract_strided_slice %990 {offsets = [0, 0], sizes = [8, 8], strides = [1, 1]} : vector<8x32xf32> to vector<8x8xf32>
    %cst_353 = arith.constant dense<0.000000e+00> : vector<8x8xf32>
    %994 = tpu.matmul %992, %993, %cst_353 {dimension_numbers = #tpu.dot_dimension_numbers<[1], [1], [0], [0], [0, 0, 1, 0], [], []>} : vector<8x8xf32>, vector<8x8xf32>, vector<8x8xf32> -> vector<8x8xf32>
    %cst_354 = arith.constant 0.353553385 : f32
    %995 = vector.broadcast %cst_354 : f32 to vector<8x8xf32>
    %996 = arith.mulf %994, %995 : vector<8x8xf32>
    %cst_355 = arith.constant -1.000000e+10 : f32
    %997 = vector.broadcast %cst_355 : f32 to vector<8x8xf32>
    %998 = arith.select %33, %997, %996 : vector<8x8xi1>, vector<8x8xf32>
    %cst_356 = arith.constant dense<0xFF800000> : vector<8xf32>
    %999 = vector.multi_reduction <maximumf>, %998, %cst_356 [1] : vector<8x8xf32> to vector<8xf32>
    %1000 = vector.shape_cast %999 : vector<8xf32> to vector<8x1xf32>
    %1001 = vector.broadcast %1000 : vector<8x1xf32> to vector<8x8xf32>
    %1002 = arith.subf %998, %1001 : vector<8x8xf32>
    %1003 = math.exp %1002 : vector<8x8xf32>
    %cst_357 = arith.constant dense<0.000000e+00> : vector<8xf32>
    %1004 = vector.multi_reduction <add>, %1003, %cst_357 [1] : vector<8x8xf32> to vector<8xf32>
    %1005 = vector.shape_cast %1004 : vector<8xf32> to vector<8x1xf32>
    %1006 = tpu.reciprocal %1005 {approx = true} : vector<8x1xf32> -> vector<8x1xf32>
    %1007 = arith.mulf %1005, %1006 : vector<8x1xf32>
    %cst_358 = arith.constant 2.000000e+00 : f32
    %1008 = vector.broadcast %cst_358 : f32 to vector<8x1xf32>
    %1009 = arith.subf %1008, %1007 : vector<8x1xf32>
    %1010 = arith.mulf %1006, %1009 : vector<8x1xf32>
    %1011 = vector.broadcast %1010 : vector<8x1xf32> to vector<8x8xf32>
    %1012 = arith.mulf %1003, %1011 : vector<8x8xf32>
    %1013 = vector.extract_strided_slice %991 {offsets = [0, 0], sizes = [8, 8], strides = [1, 1]} : vector<8x32xf32> to vector<8x8xf32>
    %cst_359 = arith.constant dense<0.000000e+00> : vector<8x8xf32>
    %1014 = tpu.matmul %1012, %1013, %cst_359 {dimension_numbers = #tpu.dot_dimension_numbers<[1], [0], [0], [1], [0, 0, 1, 1], [], []>} : vector<8x8xf32>, vector<8x8xf32>, vector<8x8xf32> -> vector<8x8xf32>
    %1015 = vector.extract_strided_slice %862 {offsets = [0, 0], sizes = [8, 32], strides = [1, 1]} : vector<32x32xf32> to vector<8x32xf32>
    %cst_360 = arith.constant dense<0.000000e+00> : vector<8x32xf32>
    %1016 = tpu.matmul %1014, %1015, %cst_360 {dimension_numbers = #tpu.dot_dimension_numbers<[1], [0], [0], [1], [0, 0, 1, 1], [], []>} : vector<8x8xf32>, vector<8x32xf32>, vector<8x32xf32> -> vector<8x32xf32>
    %c8_361 = arith.constant 8 : index
    %c0_362 = arith.constant 0 : index
    %1017 = vector.load %arg24[%c8_361, %c0_362] : memref<16x32xf32, #tpu.memory_space<vmem>>, vector<8x8xf32>
    tpu.vector_store %arg24[%c8_361, %c0_362], %1012 {strides = array<i32>} : memref<16x32xf32, #tpu.memory_space<vmem>>, vector<8x8xf32>,
    %1018 = vector.extract_strided_slice %989 {offsets = [0, 8], sizes = [8, 8], strides = [1, 1]} : vector<8x32xf32> to vector<8x8xf32>
    %1019 = vector.extract_strided_slice %990 {offsets = [0, 8], sizes = [8, 8], strides = [1, 1]} : vector<8x32xf32> to vector<8x8xf32>
    %cst_363 = arith.constant dense<0.000000e+00> : vector<8x8xf32>
    %1020 = tpu.matmul %1018, %1019, %cst_363 {dimension_numbers = #tpu.dot_dimension_numbers<[1], [1], [0], [0], [0, 0, 1, 0], [], []>} : vector<8x8xf32>, vector<8x8xf32>, vector<8x8xf32> -> vector<8x8xf32>
    %cst_364 = arith.constant 0.353553385 : f32
    %1021 = vector.broadcast %cst_364 : f32 to vector<8x8xf32>
    %1022 = arith.mulf %1020, %1021 : vector<8x8xf32>
    %cst_365 = arith.constant -1.000000e+10 : f32
    %1023 = vector.broadcast %cst_365 : f32 to vector<8x8xf32>
    %1024 = arith.select %33, %1023, %1022 : vector<8x8xi1>, vector<8x8xf32>
    %cst_366 = arith.constant dense<0xFF800000> : vector<8xf32>
    %1025 = vector.multi_reduction <maximumf>, %1024, %cst_366 [1] : vector<8x8xf32> to vector<8xf32>
    %1026 = vector.shape_cast %1025 : vector<8xf32> to vector<8x1xf32>
    %1027 = vector.broadcast %1026 : vector<8x1xf32> to vector<8x8xf32>
    %1028 = arith.subf %1024, %1027 : vector<8x8xf32>
    %1029 = math.exp %1028 : vector<8x8xf32>
    %cst_367 = arith.constant dense<0.000000e+00> : vector<8xf32>
    %1030 = vector.multi_reduction <add>, %1029, %cst_367 [1] : vector<8x8xf32> to vector<8xf32>
    %1031 = vector.shape_cast %1030 : vector<8xf32> to vector<8x1xf32>
    %1032 = tpu.reciprocal %1031 {approx = true} : vector<8x1xf32> -> vector<8x1xf32>
    %1033 = arith.mulf %1031, %1032 : vector<8x1xf32>
    %cst_368 = arith.constant 2.000000e+00 : f32
    %1034 = vector.broadcast %cst_368 : f32 to vector<8x1xf32>
    %1035 = arith.subf %1034, %1033 : vector<8x1xf32>
    %1036 = arith.mulf %1032, %1035 : vector<8x1xf32>
    %1037 = vector.broadcast %1036 : vector<8x1xf32> to vector<8x8xf32>
    %1038 = arith.mulf %1029, %1037 : vector<8x8xf32>
    %1039 = vector.extract_strided_slice %991 {offsets = [0, 8], sizes = [8, 8], strides = [1, 1]} : vector<8x32xf32> to vector<8x8xf32>
    %cst_369 = arith.constant dense<0.000000e+00> : vector<8x8xf32>
    %1040 = tpu.matmul %1038, %1039, %cst_369 {dimension_numbers = #tpu.dot_dimension_numbers<[1], [0], [0], [1], [0, 0, 1, 1], [], []>} : vector<8x8xf32>, vector<8x8xf32>, vector<8x8xf32> -> vector<8x8xf32>
    %1041 = vector.extract_strided_slice %862 {offsets = [8, 0], sizes = [8, 32], strides = [1, 1]} : vector<32x32xf32> to vector<8x32xf32>
    %cst_370 = arith.constant dense<0.000000e+00> : vector<8x32xf32>
    %1042 = tpu.matmul %1040, %1041, %cst_370 {dimension_numbers = #tpu.dot_dimension_numbers<[1], [0], [0], [1], [0, 0, 1, 1], [], []>} : vector<8x8xf32>, vector<8x32xf32>, vector<8x32xf32> -> vector<8x32xf32>
    %1043 = arith.addf %1016, %1042 : vector<8x32xf32>
    %c8_371 = arith.constant 8 : index
    %c8_372 = arith.constant 8 : index
    %1044 = vector.load %arg24[%c8_371, %c8_372] : memref<16x32xf32, #tpu.memory_space<vmem>>, vector<8x8xf32>
    tpu.vector_store %arg24[%c8_371, %c8_372], %1038 {strides = array<i32>} : memref<16x32xf32, #tpu.memory_space<vmem>>, vector<8x8xf32>,
    %1045 = vector.extract_strided_slice %989 {offsets = [0, 16], sizes = [8, 8], strides = [1, 1]} : vector<8x32xf32> to vector<8x8xf32>
    %1046 = vector.extract_strided_slice %990 {offsets = [0, 16], sizes = [8, 8], strides = [1, 1]} : vector<8x32xf32> to vector<8x8xf32>
    %cst_373 = arith.constant dense<0.000000e+00> : vector<8x8xf32>
    %1047 = tpu.matmul %1045, %1046, %cst_373 {dimension_numbers = #tpu.dot_dimension_numbers<[1], [1], [0], [0], [0, 0, 1, 0], [], []>} : vector<8x8xf32>, vector<8x8xf32>, vector<8x8xf32> -> vector<8x8xf32>
    %cst_374 = arith.constant 0.353553385 : f32
    %1048 = vector.broadcast %cst_374 : f32 to vector<8x8xf32>
    %1049 = arith.mulf %1047, %1048 : vector<8x8xf32>
    %cst_375 = arith.constant -1.000000e+10 : f32
    %1050 = vector.broadcast %cst_375 : f32 to vector<8x8xf32>
    %1051 = arith.select %33, %1050, %1049 : vector<8x8xi1>, vector<8x8xf32>
    %cst_376 = arith.constant dense<0xFF800000> : vector<8xf32>
    %1052 = vector.multi_reduction <maximumf>, %1051, %cst_376 [1] : vector<8x8xf32> to vector<8xf32>
    %1053 = vector.shape_cast %1052 : vector<8xf32> to vector<8x1xf32>
    %1054 = vector.broadcast %1053 : vector<8x1xf32> to vector<8x8xf32>
    %1055 = arith.subf %1051, %1054 : vector<8x8xf32>
    %1056 = math.exp %1055 : vector<8x8xf32>
    %cst_377 = arith.constant dense<0.000000e+00> : vector<8xf32>
    %1057 = vector.multi_reduction <add>, %1056, %cst_377 [1] : vector<8x8xf32> to vector<8xf32>
    %1058 = vector.shape_cast %1057 : vector<8xf32> to vector<8x1xf32>
    %1059 = tpu.reciprocal %1058 {approx = true} : vector<8x1xf32> -> vector<8x1xf32>
    %1060 = arith.mulf %1058, %1059 : vector<8x1xf32>
    %cst_378 = arith.constant 2.000000e+00 : f32
    %1061 = vector.broadcast %cst_378 : f32 to vector<8x1xf32>
    %1062 = arith.subf %1061, %1060 : vector<8x1xf32>
    %1063 = arith.mulf %1059, %1062 : vector<8x1xf32>
    %1064 = vector.broadcast %1063 : vector<8x1xf32> to vector<8x8xf32>
    %1065 = arith.mulf %1056, %1064 : vector<8x8xf32>
    %1066 = vector.extract_strided_slice %991 {offsets = [0, 16], sizes = [8, 8], strides = [1, 1]} : vector<8x32xf32> to vector<8x8xf32>
    %cst_379 = arith.constant dense<0.000000e+00> : vector<8x8xf32>
    %1067 = tpu.matmul %1065, %1066, %cst_379 {dimension_numbers = #tpu.dot_dimension_numbers<[1], [0], [0], [1], [0, 0, 1, 1], [], []>} : vector<8x8xf32>, vector<8x8xf32>, vector<8x8xf32> -> vector<8x8xf32>
    %1068 = vector.extract_strided_slice %862 {offsets = [16, 0], sizes = [8, 32], strides = [1, 1]} : vector<32x32xf32> to vector<8x32xf32>
    %cst_380 = arith.constant dense<0.000000e+00> : vector<8x32xf32>
    %1069 = tpu.matmul %1067, %1068, %cst_380 {dimension_numbers = #tpu.dot_dimension_numbers<[1], [0], [0], [1], [0, 0, 1, 1], [], []>} : vector<8x8xf32>, vector<8x32xf32>, vector<8x32xf32> -> vector<8x32xf32>
    %1070 = arith.addf %1043, %1069 : vector<8x32xf32>
    %c8_381 = arith.constant 8 : index
    %c16_382 = arith.constant 16 : index
    %1071 = vector.load %arg24[%c8_381, %c16_382] : memref<16x32xf32, #tpu.memory_space<vmem>>, vector<8x8xf32>
    tpu.vector_store %arg24[%c8_381, %c16_382], %1065 {strides = array<i32>} : memref<16x32xf32, #tpu.memory_space<vmem>>, vector<8x8xf32>,
    %1072 = vector.extract_strided_slice %989 {offsets = [0, 24], sizes = [8, 8], strides = [1, 1]} : vector<8x32xf32> to vector<8x8xf32>
    %1073 = vector.extract_strided_slice %990 {offsets = [0, 24], sizes = [8, 8], strides = [1, 1]} : vector<8x32xf32> to vector<8x8xf32>
    %cst_383 = arith.constant dense<0.000000e+00> : vector<8x8xf32>
    %1074 = tpu.matmul %1072, %1073, %cst_383 {dimension_numbers = #tpu.dot_dimension_numbers<[1], [1], [0], [0], [0, 0, 1, 0], [], []>} : vector<8x8xf32>, vector<8x8xf32>, vector<8x8xf32> -> vector<8x8xf32>
    %cst_384 = arith.constant 0.353553385 : f32
    %1075 = vector.broadcast %cst_384 : f32 to vector<8x8xf32>
    %1076 = arith.mulf %1074, %1075 : vector<8x8xf32>
    %cst_385 = arith.constant -1.000000e+10 : f32
    %1077 = vector.broadcast %cst_385 : f32 to vector<8x8xf32>
    %1078 = arith.select %33, %1077, %1076 : vector<8x8xi1>, vector<8x8xf32>
    %cst_386 = arith.constant dense<0xFF800000> : vector<8xf32>
    %1079 = vector.multi_reduction <maximumf>, %1078, %cst_386 [1] : vector<8x8xf32> to vector<8xf32>
    %1080 = vector.shape_cast %1079 : vector<8xf32> to vector<8x1xf32>
    %1081 = vector.broadcast %1080 : vector<8x1xf32> to vector<8x8xf32>
    %1082 = arith.subf %1078, %1081 : vector<8x8xf32>
    %1083 = math.exp %1082 : vector<8x8xf32>
    %cst_387 = arith.constant dense<0.000000e+00> : vector<8xf32>
    %1084 = vector.multi_reduction <add>, %1083, %cst_387 [1] : vector<8x8xf32> to vector<8xf32>
    %1085 = vector.shape_cast %1084 : vector<8xf32> to vector<8x1xf32>
    %1086 = tpu.reciprocal %1085 {approx = true} : vector<8x1xf32> -> vector<8x1xf32>
    %1087 = arith.mulf %1085, %1086 : vector<8x1xf32>
    %cst_388 = arith.constant 2.000000e+00 : f32
    %1088 = vector.broadcast %cst_388 : f32 to vector<8x1xf32>
    %1089 = arith.subf %1088, %1087 : vector<8x1xf32>
    %1090 = arith.mulf %1086, %1089 : vector<8x1xf32>
    %1091 = vector.broadcast %1090 : vector<8x1xf32> to vector<8x8xf32>
    %1092 = arith.mulf %1083, %1091 : vector<8x8xf32>
    %1093 = vector.extract_strided_slice %991 {offsets = [0, 24], sizes = [8, 8], strides = [1, 1]} : vector<8x32xf32> to vector<8x8xf32>
    %cst_389 = arith.constant dense<0.000000e+00> : vector<8x8xf32>
    %1094 = tpu.matmul %1092, %1093, %cst_389 {dimension_numbers = #tpu.dot_dimension_numbers<[1], [0], [0], [1], [0, 0, 1, 1], [], []>} : vector<8x8xf32>, vector<8x8xf32>, vector<8x8xf32> -> vector<8x8xf32>
    %1095 = vector.extract_strided_slice %862 {offsets = [24, 0], sizes = [8, 32], strides = [1, 1]} : vector<32x32xf32> to vector<8x32xf32>
    %cst_390 = arith.constant dense<0.000000e+00> : vector<8x32xf32>
    %1096 = tpu.matmul %1094, %1095, %cst_390 {dimension_numbers = #tpu.dot_dimension_numbers<[1], [0], [0], [1], [0, 0, 1, 1], [], []>} : vector<8x8xf32>, vector<8x32xf32>, vector<8x32xf32> -> vector<8x32xf32>
    %1097 = arith.addf %1070, %1096 : vector<8x32xf32>
    %c8_391 = arith.constant 8 : index
    %c24_392 = arith.constant 24 : index
    %1098 = vector.load %arg24[%c8_391, %c24_392] : memref<16x32xf32, #tpu.memory_space<vmem>>, vector<8x8xf32>
    tpu.vector_store %arg24[%c8_391, %c24_392], %1092 {strides = array<i32>} : memref<16x32xf32, #tpu.memory_space<vmem>>, vector<8x8xf32>,
    %1099 = vector.broadcast %864 : vector<1x32xf32> to vector<8x32xf32>
    %1100 = arith.addf %1097, %1099 : vector<8x32xf32>
    %1101 = tpu.concatenate %988, %1100 in 0 : vector<8x32xf32>, vector<8x32xf32> -> vector<16x32xf32>
    %1102 = arith.addf %856, %1101 : vector<16x32xf32>
    %1103 = vector.extract_strided_slice %598 {offsets = [1, 0], sizes = [1, 32], strides = [1, 1]} : vector<3x32xf32> to vector<1x32xf32>
    %1104 = vector.extract_strided_slice %600 {offsets = [1, 0], sizes = [1, 32], strides = [1, 1]} : vector<3x32xf32> to vector<1x32xf32>
    %cst_393 = arith.constant dense<0.000000e+00> : vector<16xf32>
    %1105 = vector.multi_reduction <add>, %1102, %cst_393 [1] : vector<16x32xf32> to vector<16xf32>
    %1106 = vector.shape_cast %1105 : vector<16xf32> to vector<16x1xf32>
    %cst_394 = arith.constant 3.200000e+01 : f32
    %1107 = vector.broadcast %cst_394 : f32 to vector<16x1xf32>
    %1108 = arith.divf %1106, %1107 : vector<16x1xf32>
    %1109 = vector.broadcast %1108 : vector<16x1xf32> to vector<16x32xf32>
    %1110 = arith.subf %1102, %1109 : vector<16x32xf32>
    %1111 = arith.mulf %1110, %1110 : vector<16x32xf32>
    %cst_395 = arith.constant dense<0.000000e+00> : vector<16xf32>
    %1112 = vector.multi_reduction <add>, %1111, %cst_395 [1] : vector<16x32xf32> to vector<16xf32>
    %1113 = vector.shape_cast %1112 : vector<16xf32> to vector<16x1xf32>
    %cst_396 = arith.constant 3.200000e+01 : f32
    %1114 = vector.broadcast %cst_396 : f32 to vector<16x1xf32>
    %1115 = arith.divf %1113, %1114 : vector<16x1xf32>
    %1116 = vector.broadcast %1108 : vector<16x1xf32> to vector<16x32xf32>
    %1117 = arith.subf %1102, %1116 : vector<16x32xf32>
    %cst_397 = arith.constant 9.99999974E-6 : f32
    %1118 = vector.broadcast %cst_397 : f32 to vector<16x1xf32>
    %1119 = arith.addf %1115, %1118 : vector<16x1xf32>
    %1120 = math.rsqrt %1119 : vector<16x1xf32>
    %1121 = vector.broadcast %1120 : vector<16x1xf32> to vector<16x32xf32>
    %1122 = arith.mulf %1117, %1121 : vector<16x32xf32>
    %1123 = vector.broadcast %1103 : vector<1x32xf32> to vector<16x32xf32>
    %1124 = arith.mulf %1122, %1123 : vector<16x32xf32>
    %1125 = vector.broadcast %1104 : vector<1x32xf32> to vector<16x32xf32>
    %1126 = arith.addf %1124, %1125 : vector<16x32xf32>
    %c1_398 = arith.constant 1 : index
    %c0_399 = arith.constant 0 : index
    %c0_400 = arith.constant 0 : index
    %1127 = vector.load %arg15[%c1_398, %c0_399, %c0_400] : memref<2x32x64xf32, #tpu.memory_space<vmem>>, vector<1x32x64xf32>
    %1128 = vector.shape_cast %1127 : vector<1x32x64xf32> to vector<32x64xf32>
    %cst_401 = arith.constant dense<0.000000e+00> : vector<16x64xf32>
    %1129 = tpu.matmul %1126, %1128, %cst_401 {dimension_numbers = #tpu.dot_dimension_numbers<[1], [0], [0], [1], [0, 0, 1, 1], [], []>} : vector<16x32xf32>, vector<32x64xf32>, vector<16x64xf32> -> vector<16x64xf32>
    %c1_402 = arith.constant 1 : index
    %c0_403 = arith.constant 0 : index
    %c0_404 = arith.constant 0 : index
    %1130 = vector.load %arg16[%c1_402, %c0_403, %c0_404] : memref<2x1x64xf32, #tpu.memory_space<vmem>>, vector<1x1x64xf32>
    %1131 = vector.shape_cast %1130 : vector<1x1x64xf32> to vector<1x64xf32>
    %1132 = vector.broadcast %1131 : vector<1x64xf32> to vector<16x64xf32>
    %1133 = arith.addf %1129, %1132 : vector<16x64xf32>
    %cst_405 = arith.constant 0.000000e+00 : f32
    %1134 = vector.broadcast %cst_405 : f32 to vector<16x64xf32>
    %1135 = arith.maximumf %1133, %1134 : vector<16x64xf32>
    %c1_406 = arith.constant 1 : index
    %c0_407 = arith.constant 0 : index
    %c0_408 = arith.constant 0 : index
    %1136 = vector.load %arg17[%c1_406, %c0_407, %c0_408] : memref<2x64x32xf32, #tpu.memory_space<vmem>>, vector<1x64x32xf32>
    %1137 = vector.shape_cast %1136 : vector<1x64x32xf32> to vector<64x32xf32>
    %cst_409 = arith.constant dense<0.000000e+00> : vector<16x32xf32>
    %1138 = tpu.matmul %1135, %1137, %cst_409 {dimension_numbers = #tpu.dot_dimension_numbers<[1], [0], [0], [1], [0, 0, 1, 1], [], []>} : vector<16x64xf32>, vector<64x32xf32>, vector<16x32xf32> -> vector<16x32xf32>
    %c1_410 = arith.constant 1 : index
    %c0_411 = arith.constant 0 : index
    %c0_412 = arith.constant 0 : index
    %1139 = vector.load %arg18[%c1_410, %c0_411, %c0_412] : memref<2x1x32xf32, #tpu.memory_space<vmem>>, vector<1x1x32xf32>
    %1140 = vector.shape_cast %1139 : vector<1x1x32xf32> to vector<1x32xf32>
    %1141 = vector.broadcast %1140 : vector<1x32xf32> to vector<16x32xf32>
    %1142 = arith.addf %1138, %1141 : vector<16x32xf32>
    %1143 = arith.addf %1126, %1142 : vector<16x32xf32>
    %1144 = vector.extract_strided_slice %598 {offsets = [2, 0], sizes = [1, 32], strides = [1, 1]} : vector<3x32xf32> to vector<1x32xf32>
    %1145 = vector.extract_strided_slice %600 {offsets = [2, 0], sizes = [1, 32], strides = [1, 1]} : vector<3x32xf32> to vector<1x32xf32>
    %cst_413 = arith.constant dense<0.000000e+00> : vector<16xf32>
    %1146 = vector.multi_reduction <add>, %1143, %cst_413 [1] : vector<16x32xf32> to vector<16xf32>
    %1147 = vector.shape_cast %1146 : vector<16xf32> to vector<16x1xf32>
    %cst_414 = arith.constant 3.200000e+01 : f32
    %1148 = vector.broadcast %cst_414 : f32 to vector<16x1xf32>
    %1149 = arith.divf %1147, %1148 : vector<16x1xf32>
    %1150 = vector.broadcast %1149 : vector<16x1xf32> to vector<16x32xf32>
    %1151 = arith.subf %1143, %1150 : vector<16x32xf32>
    %1152 = arith.mulf %1151, %1151 : vector<16x32xf32>
    %cst_415 = arith.constant dense<0.000000e+00> : vector<16xf32>
    %1153 = vector.multi_reduction <add>, %1152, %cst_415 [1] : vector<16x32xf32> to vector<16xf32>
    %1154 = vector.shape_cast %1153 : vector<16xf32> to vector<16x1xf32>
    %cst_416 = arith.constant 3.200000e+01 : f32
    %1155 = vector.broadcast %cst_416 : f32 to vector<16x1xf32>
    %1156 = arith.divf %1154, %1155 : vector<16x1xf32>
    %1157 = vector.broadcast %1149 : vector<16x1xf32> to vector<16x32xf32>
    %1158 = arith.subf %1143, %1157 : vector<16x32xf32>
    %cst_417 = arith.constant 9.99999974E-6 : f32
    %1159 = vector.broadcast %cst_417 : f32 to vector<16x1xf32>
    %1160 = arith.addf %1156, %1159 : vector<16x1xf32>
    %1161 = math.rsqrt %1160 : vector<16x1xf32>
    %1162 = vector.broadcast %1161 : vector<16x1xf32> to vector<16x32xf32>
    %1163 = arith.mulf %1158, %1162 : vector<16x32xf32>
    %1164 = vector.broadcast %1144 : vector<1x32xf32> to vector<16x32xf32>
    %1165 = arith.mulf %1163, %1164 : vector<16x32xf32>
    %1166 = vector.broadcast %1145 : vector<1x32xf32> to vector<16x32xf32>
    %1167 = arith.addf %1165, %1166 : vector<16x32xf32>
    %c0_418 = arith.constant 0 : index
    %c0_419 = arith.constant 0 : index
    %1168 = vector.load %arg21[%c0_418, %c0_419] : memref<32x64xf32, #tpu.memory_space<vmem>>, vector<32x64xf32>
    %cst_420 = arith.constant dense<0.000000e+00> : vector<16x64xf32>
    %1169 = tpu.matmul %1167, %1168, %cst_420 {dimension_numbers = #tpu.dot_dimension_numbers<[1], [0], [0], [1], [0, 0, 1, 1], [], []>} : vector<16x32xf32>, vector<32x64xf32>, vector<16x64xf32> -> vector<16x64xf32>
    %c0_421 = arith.constant 0 : index
    %c0_422 = arith.constant 0 : index
    %1170 = vector.load %arg22[%c0_421, %c0_422] : memref<1x64xf32, #tpu.memory_space<vmem>>, vector<1x64xf32>
    %1171 = vector.broadcast %1170 : vector<1x64xf32> to vector<16x64xf32>
    %1172 = arith.addf %1169, %1171 : vector<16x64xf32>
    %c0_423 = arith.constant 0 : index
    %c0_424 = arith.constant 0 : index
    %1173 = vector.load %arg23[%c0_423, %c0_424] : memref<16x64xf32, #tpu.memory_space<vmem>>, vector<16x64xf32>
    tpu.vector_store %arg23[%c0_423, %c0_424], %1172 {strides = array<i32>} : memref<16x64xf32, #tpu.memory_space<vmem>>, vector<16x64xf32>,
    return
  }
  func.func @transform_0(%arg0: i32) -> (i32, i32) {
    %c0_i32 = arith.constant 0 : i32
    %c0_i32_0 = arith.constant 0 : i32
    %c0_i32_1 = arith.constant 0 : i32
    return %c0_i32, %c0_i32_0 : i32, i32
  }
  func.func @transform_1(%arg0: i32) -> (i32, i32) {
    %c0_i32 = arith.constant 0 : i32
    %c0_i32_0 = arith.constant 0 : i32
    %c0_i32_1 = arith.constant 0 : i32
    return %c0_i32, %c0_i32_0 : i32, i32
  }
  func.func @transform_2(%arg0: i32) -> (i32, i32, i32) {
    %c0_i32 = arith.constant 0 : i32
    %c0_i32_0 = arith.constant 0 : i32
    %c0_i32_1 = arith.constant 0 : i32
    %c0_i32_2 = arith.constant 0 : i32
    return %c0_i32, %c0_i32_0, %c0_i32_1 : i32, i32, i32
  }
  func.func @transform_3(%arg0: i32) -> (i32, i32, i32) {
    %c0_i32 = arith.constant 0 : i32
    %c0_i32_0 = arith.constant 0 : i32
    %c0_i32_1 = arith.constant 0 : i32
    %c0_i32_2 = arith.constant 0 : i32
    return %c0_i32, %c0_i32_0, %c0_i32_1 : i32, i32, i32
  }
  func.func @transform_4(%arg0: i32) -> (i32, i32) {
    %c0_i32 = arith.constant 0 : i32
    %c0_i32_0 = arith.constant 0 : i32
    %c0_i32_1 = arith.constant 0 : i32
    return %c0_i32, %c0_i32_0 : i32, i32
  }
  func.func @transform_5(%arg0: i32) -> (i32, i32) {
    %c0_i32 = arith.constant 0 : i32
    %c0_i32_0 = arith.constant 0 : i32
    %c0_i32_1 = arith.constant 0 : i32
    return %c0_i32, %c0_i32_0 : i32, i32
  }
  func.func @transform_6(%arg0: i32) -> (i32, i32, i32) {
    %c0_i32 = arith.constant 0 : i32
    %c0_i32_0 = arith.constant 0 : i32
    %c0_i32_1 = arith.constant 0 : i32
    %c0_i32_2 = arith.constant 0 : i32
    return %c0_i32, %c0_i32_0, %c0_i32_1 : i32, i32, i32
  }
  func.func @transform_7(%arg0: i32) -> (i32, i32, i32) {
    %c0_i32 = arith.constant 0 : i32
    %c0_i32_0 = arith.constant 0 : i32
    %c0_i32_1 = arith.constant 0 : i32
    %c0_i32_2 = arith.constant 0 : i32
    return %c0_i32, %c0_i32_0, %c0_i32_1 : i32, i32, i32
  }
  func.func @transform_8(%arg0: i32) -> (i32, i32, i32) {
    %c0_i32 = arith.constant 0 : i32
    %c0_i32_0 = arith.constant 0 : i32
    %c0_i32_1 = arith.constant 0 : i32
    %c0_i32_2 = arith.constant 0 : i32
    return %c0_i32, %c0_i32_0, %c0_i32_1 : i32, i32, i32
  }
  func.func @transform_9(%arg0: i32) -> (i32, i32, i32) {
    %c0_i32 = arith.constant 0 : i32
    %c0_i32_0 = arith.constant 0 : i32
    %c0_i32_1 = arith.constant 0 : i32
    %c0_i32_2 = arith.constant 0 : i32
    return %c0_i32, %c0_i32_0, %c0_i32_1 : i32, i32, i32
  }
  func.func @transform_10(%arg0: i32) -> (i32, i32, i32) {
    %c0_i32 = arith.constant 0 : i32
    %c0_i32_0 = arith.constant 0 : i32
    %c0_i32_1 = arith.constant 0 : i32
    %c0_i32_2 = arith.constant 0 : i32
    return %c0_i32, %c0_i32_0, %c0_i32_1 : i32, i32, i32
  }
  func.func @transform_11(%arg0: i32) -> (i32, i32, i32) {
    %c0_i32 = arith.constant 0 : i32
    %c0_i32_0 = arith.constant 0 : i32
    %c0_i32_1 = arith.constant 0 : i32
    %c0_i32_2 = arith.constant 0 : i32
    return %c0_i32, %c0_i32_0, %c0_i32_1 : i32, i32, i32
  }
  func.func @transform_12(%arg0: i32) -> (i32, i32, i32) {
    %c0_i32 = arith.constant 0 : i32
    %c0_i32_0 = arith.constant 0 : i32
    %c0_i32_1 = arith.constant 0 : i32
    %c0_i32_2 = arith.constant 0 : i32
    return %c0_i32, %c0_i32_0, %c0_i32_1 : i32, i32, i32
  }
  func.func @transform_13(%arg0: i32) -> (i32, i32, i32) {
    %c0_i32 = arith.constant 0 : i32
    %c0_i32_0 = arith.constant 0 : i32
    %c0_i32_1 = arith.constant 0 : i32
    %c0_i32_2 = arith.constant 0 : i32
    return %c0_i32, %c0_i32_0, %c0_i32_1 : i32, i32, i32
  }
  func.func @transform_14(%arg0: i32) -> (i32, i32, i32) {
    %c0_i32 = arith.constant 0 : i32
    %c0_i32_0 = arith.constant 0 : i32
    %c0_i32_1 = arith.constant 0 : i32
    %c0_i32_2 = arith.constant 0 : i32
    return %c0_i32, %c0_i32_0, %c0_i32_1 : i32, i32, i32
  }
  func.func @transform_15(%arg0: i32) -> (i32, i32, i32) {
    %c0_i32 = arith.constant 0 : i32
    %c0_i32_0 = arith.constant 0 : i32
    %c0_i32_1 = arith.constant 0 : i32
    %c0_i32_2 = arith.constant 0 : i32
    return %c0_i32, %c0_i32_0, %c0_i32_1 : i32, i32, i32
  }
  func.func @transform_16(%arg0: i32) -> (i32, i32, i32) {
    %c0_i32 = arith.constant 0 : i32
    %c0_i32_0 = arith.constant 0 : i32
    %c0_i32_1 = arith.constant 0 : i32
    %c0_i32_2 = arith.constant 0 : i32
    return %c0_i32, %c0_i32_0, %c0_i32_1 : i32, i32, i32
  }
  func.func @transform_17(%arg0: i32) -> (i32, i32, i32) {
    %c0_i32 = arith.constant 0 : i32
    %c0_i32_0 = arith.constant 0 : i32
    %c0_i32_1 = arith.constant 0 : i32
    %c0_i32_2 = arith.constant 0 : i32
    return %c0_i32, %c0_i32_0, %c0_i32_1 : i32, i32, i32
  }
  func.func @transform_18(%arg0: i32) -> (i32, i32, i32) {
    %c0_i32 = arith.constant 0 : i32
    %c0_i32_0 = arith.constant 0 : i32
    %c0_i32_1 = arith.constant 0 : i32
    %c0_i32_2 = arith.constant 0 : i32
    return %c0_i32, %c0_i32_0, %c0_i32_1 : i32, i32, i32
  }
  func.func @transform_19(%arg0: i32) -> (i32, i32, i32) {
    %c0_i32 = arith.constant 0 : i32
    %c0_i32_0 = arith.constant 0 : i32
    %c0_i32_1 = arith.constant 0 : i32
    %c0_i32_2 = arith.constant 0 : i32
    return %c0_i32, %c0_i32_0, %c0_i32_1 : i32, i32, i32
  }
  func.func @transform_20(%arg0: i32) -> (i32, i32) {
    %c0_i32 = arith.constant 0 : i32
    %c0_i32_0 = arith.constant 0 : i32
    %c0_i32_1 = arith.constant 0 : i32
    return %c0_i32, %c0_i32_0 : i32, i32
  }
  func.func @transform_21(%arg0: i32) -> (i32, i32) {
    %c0_i32 = arith.constant 0 : i32
    %c0_i32_0 = arith.constant 0 : i32
    %c0_i32_1 = arith.constant 0 : i32
    return %c0_i32, %c0_i32_0 : i32, i32
  }
  func.func @transform_22(%arg0: i32) -> (i32, i32) {
    %c0_i32 = arith.constant 0 : i32
    %c0_i32_0 = arith.constant 0 : i32
    %c0_i32_1 = arith.constant 0 : i32
    return %c0_i32, %c0_i32_0 : i32, i32
  }
  func.func @transform_23(%arg0: i32) -> (i32, i32) {
    %c0_i32 = arith.constant 0 : i32
    %c0_i32_0 = arith.constant 0 : i32
    %c0_i32_1 = arith.constant 0 : i32
    return %c0_i32, %c0_i32_0 : i32, i32
  }
}

</mosaic_0001>

<bundles_post_ra>
// kernel: tpu_custom_call.1
= control target key start
LH: loop header
LB: loop body
LE: loop exit
PB: predicated region body
PF: predicated region fallthrough
CT: control target
= control target key end

     0   :  { %s12504_s0 = inlined_call_operand.vmem [shape: s32[16,1], index: 0, kind: input, shape index: {}]   ;;  %s12505_s1 = inlined_call_operand.hbm [shape: f32[16,32], index: 1, kind: input, shape index: {}]   ;;  %s12506_s2 = inlined_call_operand.hbm [shape: f32[2,8,8], index: 2, kind: input, shape index: {}]   ;;  %s12507_s3 = inlined_call_operand.vmem [shape: f32[2,1,8], index: 3, kind: input, shape index: {}]   ;;  %s12508_s4 = inlined_call_operand.vmem [shape: f32[64,32], index: 4, kind: input, shape index: {}]   ;;  %s12509_s5 = inlined_call_operand.vmem [shape: f32[100,32], index: 5, kind: input, shape index: {}]   ;;  %s12510_s6 = inlined_call_operand.vmem [shape: f32[2,32,96], index: 6, kind: input, shape index: {}]   ;;  %s12511_s7 = inlined_call_operand.vmem [shape: f32[2,1,96], index: 7, kind: input, shape index: {}]   ;;  %s12512_s8 = inlined_call_operand.vmem [shape: f32[2,32,32], index: 8, kind: input, shape index: {}]   ;;  %s12513_s9 = inlined_call_operand.vmem [shape: f32[2,1,32], index: 9, kind: input, shape index: {}]   ;;  %s12514_s10 = inlined_call_operand.vmem [shape: f32[2,32,96], index: 10, kind: input, shape index: {}]   ;;  %s12515_s11 = inlined_call_operand.vmem [shape: f32[2,1,96], index: 11, kind: input, shape index: {}]   ;;  %s12516_s12 = inlined_call_operand.vmem [shape: f32[2,32,32], index: 12, kind: input, shape index: {}]   ;;  %s12517_s13 = inlined_call_operand.vmem [shape: f32[2,1,32], index: 13, kind: input, shape index: {}]   ;;  %s12518_s14 = inlined_call_operand.vmem [shape: f32[2,32,64], index: 14, kind: input, shape index: {}]   ;;  %s12519_s15 = inlined_call_operand.vmem [shape: f32[2,1,64], index: 15, kind: input, shape index: {}]   ;;  %s12520_s16 = inlined_call_operand.vmem [shape: f32[2,64,32], index: 16, kind: input, shape index: {}]   ;;  %s12521_s17 = inlined_call_operand.vmem [shape: f32[2,1,32], index: 17, kind: input, shape index: {}]   ;;  %s12522_s18 = inlined_call_operand.vmem [shape: f32[2,3,32], index: 18, kind: input, shape index: {}]   ;;  %s12523_s19 = inlined_call_operand.vmem [shape: f32[2,3,32], index: 19, kind: input, shape index: {}]   ;;  %s12524_s20 = inlined_call_operand.vmem [shape: f32[32,64], index: 20, kind: input, shape index: {}]   ;;  %s12525_s21 = inlined_call_operand.vmem [shape: f32[1,64], index: 21, kind: input, shape index: {}]   ;;  %s12526_s22 = inlined_call_operand.hbm [shape: f32[16,64], index: 22, kind: output, shape index: {0}]   ;;  %s12527_s23 = inlined_call_operand.hbm [shape: f32[16,32], index: 23, kind: output, shape index: {1}]  }
   0x1   :  { %12552 = sst [smem:[#allocation14_spill]] %s12504_s0 }
   0x2   :  { %12553 = sst [smem:[#allocation15_spill]] %s12505_s1 }
   0x3   :  { %12554 = sst [smem:[#allocation16_spill]] %s12506_s2 }
   0x4   :  { %12555 = sst [smem:[#allocation17_spill]] %s12507_s3 }
   0x5   :  { %12556 = sst [smem:[#allocation18_spill]] %s12508_s4 }
   0x6   :  { %12557 = sst [smem:[#allocation19_spill]] %s12509_s5 }
   0x7   :  { %12558 = sst [smem:[#allocation20_spill]] %s12510_s6 }
   0x8   :  { %12559 = sst [smem:[#allocation21_spill]] %s12511_s7 }
   0x9   :  { %12560 = sst [smem:[#allocation22_spill]] %s12525_s21 }
   0xa   :  { %12561 = sst [smem:[#allocation23_spill]] %s12526_s22 }
   0xb   :  { %29 = vsyncpa [#allocation3], 0 }
   0xc   :  { %30 = vsyncpa [#allocation6], 0 }
   0xd   :  { %31 = vsyncpa [#allocation4], 0 }
   0xe   :  { %32 = vsyncpa [#allocation9], 0  ;;  %s10965_s4 = smov [#allocation2]   ;;  %s12562_s5 = sld [smem:[#allocation15_spill]] }
   0xf   :  { %s40_s30 = sshll.u32 %s10965_s4, 4  ;;  %s41_s30 = int_to_ptr.vmem [resolvable:$true] %s40_s30 }
  0x14   :  { %s10869_s1 = scalar_lea.hbm %s12562_s5, 256 }
  0x15   :  { %p10870_p0 = scmp.ne.s32.totalorder %s12562_s5, %s10869_s1  ;;  %p10873_p1 = scmp.lt.u32.totalorder %s10869_s1, %s12562_s5 }
  0x17   :  { %p10875_p2 = pnand %p10873_p1, %p10870_p0 }
  0x19   :  { %10878 = shalt.err (!%p10875_p2)
}
  0x1a   :  { %s10879_s7 = scalar_lea.vmem %s41_s30, 256  ;;  %p10884_p4 = scmp.lt.s32.totalorder %s41_s30, %s41_s30 }
  0x1b   :  { %p10880_p3 = scmp.ne.s32.totalorder %s41_s30, %s10879_s7  ;;  %p10885_p5 = scmp.lt.s32.totalorder %s10879_s7, %s10879_s7 }
  0x1d   :  { %p10886_p6 = por %p10885_p5, %p10884_p4 }
  0x1f   :  { %p10887_p7 = pnand %p10886_p6, %p10880_p3 }
  0x21   :  { %10890 = shalt.err (!%p10887_p7)
}
  0x22   :  { %s12536_s28 = smov 128   ;;  %s12538_s29 = smov 8  }
  0x23   :  { %46 = dma.hbm_to_vmem [thread:$0]  %s12562_s5, 256, %s41_s30, [#allocation3], %s12536_s28, %s12536_s28, %s12538_s29  }
  0x24   :  { %s10968_s4 = smov [#allocation5]   ;;  %s12563_s26 = sld [smem:[#allocation16_spill]] }
  0x25   :  { %s52_s24 = sshll.u32 %s10968_s4, 4  ;;  %s53_s24 = int_to_ptr.vmem [resolvable:$true] %s52_s24 }
  0x2a   :  { %s10891_s2 = scalar_lea.hbm %s12563_s26, 256 }
  0x2b   :  { %p10892_p8 = scmp.ne.s32.totalorder %s12563_s26, %s10891_s2  ;;  %p10895_p9 = scmp.lt.u32.totalorder %s10891_s2, %s12563_s26 }
  0x2d   :  { %p10897_p10 = pnand %p10895_p9, %p10892_p8 }
  0x2f   :  { %10900 = shalt.err (!%p10897_p10)
}
  0x30   :  { %s10901_s21 = scalar_lea.vmem %s53_s24, 256  ;;  %p10906_p12 = scmp.lt.s32.totalorder %s53_s24, %s53_s24 }
  0x31   :  { %p10902_p11 = scmp.ne.s32.totalorder %s53_s24, %s10901_s21  ;;  %p10907_p13 = scmp.lt.s32.totalorder %s10901_s21, %s10901_s21 }
  0x33   :  { %p10908_p0 = por %p10907_p13, %p10906_p12 }
  0x35   :  { %p10909_p1 = pnand %p10908_p0, %p10902_p11 }
  0x37   :  { %10912 = shalt.err (!%p10909_p1)
}
  0x38   :  { %58 = dma.hbm_to_vmem [thread:$0]  %s12563_s26, 256, %s53_s24, [#allocation6], %s12536_s28, %s12536_s28, %s12538_s29  }
  0x39   :  { %10957 = dma.done.wait [#allocation3], 256  }
  0x3a   :  { %10958 = vsyncadd [#allocation3], 4294967040 }
  0x3b   :  { %10959 = dma.done.wait [#allocation6], 256  }
  0x3c   :  { %10960 = vsyncadd [#allocation6], 4294967040  ;;  %v10969_v0 = vmov 0   ;;  %s12564_s0 = sld [smem:[#allocation14_spill]]  ;;  %s12565_s25 = sld [smem:[#allocation18_spill]]  ;;  %v10970_v18 = vmov 0.0   ;;  %v105_v19 = vlaneseq }
  0x3d   :  { %10690 = vset.pattern.permute.xlu0 %v10969_v0  ;;  %s12566_s6 = sld [smem:[#allocation20_spill]]  ;;  %vm127_vm0 = vcmask 523264   ;;  %s12567_s4 = sld [smem:[#allocation19_spill]]  ;;  %vm256_vm3 = vcmask 261120   ;;  %vm10971_vm4 = vmmov 0   ;;  %vm341_vm5 = vcmask 64512  }
  0x3e   :  { %v106_v20 = vand.u32 127, %v105_v19  ;;  %s12568_s2 = sld [smem:[#allocation21_spill]]  ;;  %s10972_s24 = smov 120   ;;  %v11225_v43 = vld [vmem:[#allocation5] sm:$0xff]  ;;  %v11247_v0 = vld [vmem:[%s12512_s8 + $0x8] sm:$0xff]  ;;  %vm7535_vm10 = vcmask 130112  }
  0x3f   :  { %s10973_s26 = smov 96   ;;  %s10974_s27 = smov 88   ;;  %vm217_vm6 = vcmp.eq.f32.partialorder %v11225_v43, 0.0  ;;  %vm7784_vm11 = vcmask 195712   ;;  %vm8033_vm12 = vcmask 261312  }
  0x40   :  { %s12546_s7 = smov 56   ;;  %s10977_s30 = smov 80  }
  0x41   :  { %s10978_s5 = smov 112   ;;  %s12550_s1 = smov 72  }
  0x42   :  { %v103_v1 = vld [vmem:[%s12564_s0] sm:$0xff]  ;;  %v120_v3 = vld [vmem:[%s12565_s25 + $0x8] sm:$0xff]  ;;  %v121_v4 = vld [vmem:[%s12565_s25 + $0x10] sm:$0xff]  ;;  %s12542_s22 = smov 48   ;;  %s12569_s28 = sld [smem:[#allocation17_spill]] }
  0x43   :  { %v119_v2 = vld [vmem:[%s12565_s25] sm:$0xff]  ;;  %108 = vperm.xlu0 %10690, %v103_v1   ;;  %v122_v5 = vld [vmem:[%s12565_s25 + $0x18] sm:$0xff]  ;;  %v104_v6 = vld [vmem:[%s12564_s0 + $0x8] sm:$0xff]  ;;  %s12548_s0 = smov 104  }
  0x44   :  { %v10548_v7 = vpack.c.bf16 %v120_v3, %v119_v2  ;;  %v10552_v8 = vpack.c.bf16 %v122_v5, %v121_v4  ;;  %v123_v9 = vld [vmem:[%s12565_s25 + $0x20] sm:$0xff]  ;;  %v124_v10 = vld [vmem:[%s12565_s25 + $0x28] sm:$0xff]  ;;  %v125_v12 = vld [vmem:[%s12565_s25 + $0x30] sm:$0xff] }
  0x45   :  { %v10556_v11 = vpack.c.bf16 %v124_v10, %v123_v9  ;;  %v126_v13 = vld [vmem:[%s12565_s25 + $0x38] sm:$0xff]  ;;  %v240_v14 = vld [vmem:[%s12566_s6] sm:$0xff]  ;;  %v241_v15 = vld [vmem:[%s12566_s6 + $0x8] sm:$0xff]  ;;  %s12544_s25 = smov 64  }
  0x46   :  { %10549 = vmatprep.subr.bf16.mxu0 %v10548_v7  ;;  %v10564_v16 = vpack.c.bf16 %v241_v15, %v240_v14  ;;  %v10560_v17 = vpack.c.bf16 %v126_v13, %v125_v12  ;;  %v242_v25 = vld [vmem:[%s12566_s6 + $0x10] sm:$0xff]  ;;  %v243_v26 = vld [vmem:[%s12566_s6 + $0x18] sm:$0xff]  ;;  %v209_v29 = vld [vmem:[%s12567_s4] sm:$0xff]  ;;  %s12540_s4 = smov 40  }
  0x47   :  { %111 = vperm.xlu0 %10690, %v104_v6   ;;  %10551 = vmatpush3.bf16.msra.mxu0 %v10548_v7  ;;  %v10568_v27 = vpack.c.bf16 %v243_v26, %v242_v25  ;;  %v9437_v35 = vld [vmem:[%s12568_s2] ss:$0 sm:$0xff] }
  0x48   :  { %10553 = vmatprep.subr.bf16.mxu0 %v10552_v8  ;;  %10565 = vmatprep.subr.bf16.mxu1 %v10564_v16  ;;  %v11262_v15 = vld [vmem:[%s12512_s8] sm:$0xff] }
  0x49   :  { %10567 = vmatpush3.bf16.msra.mxu1 %v10564_v16 }
  0x4a   :  { %10569 = vmatprep.subr.bf16.mxu1 %v10568_v27 }
  0x4b   :  { %10555 = vmatpush3.bf16.msra.mxu0 %v10552_v8 }
  0x4c   :  { %10557 = vmatprep.subr.bf16.mxu0 %v10556_v11 }
  0x4d   :  { %10571 = vmatpush3.bf16.msra.mxu1 %v10568_v27 }
  0x4e   :  { %9942 = vmatprep.subr.mxu1 %v10970_v18 }
  0x4f   :  { %10559 = vmatpush3.bf16.msra.mxu0 %v10556_v11 }
  0x50   :  { %10561 = vmatprep.subr.bf16.mxu0 %v10560_v17 }
  0x53   :  { %10563 = vmatpush3.bf16.msra.mxu0 %v10560_v17 }
  0x54   :  { %9952 = vmatprep.subr.mxu0 %v10970_v18 }
  0xc2   :  { %v109_v21 = vpop.permute.xlu0 %108 }
  0xc3   :  { %vm113_vm1 = vcmp.eq.s32.totalorder %v109_v21, %v106_v20 }
  0xc4   :  { %v9430_v22 = vsel %vm113_vm1, 1.0, %v10970_v18 }
  0xc5   :  { %9928 = vmatprep.mubr.msk.f32.mxu0 %vm127_vm0, %v9430_v22 }
  0xc6   :  { %v112_v23 = vpop.permute.xlu0 %111 }
  0xc7   :  { %vm114_vm2 = vcmp.eq.s32.totalorder %v112_v23, %v106_v20 }
  0xc8   :  { %v9431_v24 = vsel %vm114_vm2, 1.0, %v10970_v18 }
  0xc9   :  { %9929 = vmatmul.mubr.msk.f32.vlgmr.msra.gmra.mrb[0].mxu0 %vm127_vm0, %v9431_v24 }
  0xca   :  { %9954 = vmatprep.mubr.msk.f32.mxu0 %vm10971_vm4, %v10970_v18 }
 0x19c   :  { %v9930_v28 = vpop.f32.mrb[0].mxu0 }
 0x19d   :  { %v211_v30 = vmul.f32 5.656854, %v9930_v28  ;;  %v200_v31 = vpop.f32.mrb[1].mxu0 }
 0x19e   :  { %v210_v32 = vmul.f32 5.656854, %v200_v31 }
 0x19f   :  { %v11191_v34 = vadd.f32 %v211_v30, %v209_v29 }
 0x1a0   :  { %v11189_v33 = vadd.f32 %v210_v32, %v209_v29 }
 0x1a2   :  { %9939 = vmatprep.mubr.msk.f32.mxu1 %vm256_vm3, %v11189_v33 }
 0x1a3   :  { %9940 = vmatmul.mubr.msk.f32.vlgmr.msra.gmra.mrb[0].mxu1 %vm256_vm3, %v11191_v34 }
 0x1a4   :  { %9944 = vmatprep.mubr.msk.f32.mxu1 %vm10971_vm4, %v10970_v18 }
 0x276   :  { %v9941_v36 = vpop.f32.mrb[0].mxu1 }
 0x277   :  { %v11204_v37 = vadd.f32 %v9941_v36, %v9437_v35  ;;  %v329_v38 = vpop.f32.mrb[1].mxu1 }
 0x278   :  { %v11206_v39 = vadd.f32 %v9437_v35, %v329_v38 }
 0x27a   :  { %508 = vrot.lane.b32.xlu0 %v11206_v39, %s10972_s24  ;;  %339 = vrot.lane.b32.xlu1 %v11206_v39, %s10973_s26 }
 0x27e   :  { %510 = vrot.lane.b32.xlu1 %v11206_v39, %s10974_s27 }
 0x2ec   :  { %v340_v40 = vpop.permute.xlu1 %339  ;;  %v509_v42 = vpop.permute.xlu0 %508 }
 0x2ed   :  { %9943 = vmatpush3.xpose.msk.msra.mxu1 %vm341_vm5, %v340_v40 }
 0x2ee   :  { %9947 = vmatprep.subr.mxu1 %v10970_v18 }
 0x2f0   :  { %9945 = vmatmul.mubr.msk.f32.vlgmr.msra.gmra.mrb[2].mxu1 %vm341_vm5, %v11206_v39  ;;  %v511_v41 = vpop.permute.xlu1 %510 }
 0x2f1   :  { %9953 = vmatpush3.xpose.msk.msra.mxu0 %vm341_vm5, %v511_v41  ;;  %9949 = vmatprep.mubr.msk.f32.mxu1 %vm10971_vm4, %v10970_v18 }
 0x2f2   :  { %9962 = vmatprep.subr.mxu0 %v10970_v18 }
 0x2f4   :  { %9955 = vmatmul.mubr.msk.f32.vlgmr.msra.gmra.mrb[2].mxu0 %vm341_vm5, %v509_v42 }
 0x2f5   :  { %9964 = vmatprep.mubr.msk.f32.mxu0 %vm10971_vm4, %v10970_v18  ;;  %9963 = vmatpush3.msra.mxu0 %v11247_v0 }
 0x2f6   :  { %9972 = vmatprep.subr.mxu0 %v10970_v18 }
 0x3c3   :  { %v412_v44 = vpop.f32.mrb[2].mxu1 }
 0x3c4   :  { %v416_v45 = vmul.f32 0.35355338, %v412_v44  ;;  %v9946_v46 = vpop.f32.mrb[3].mxu1 }
 0x3c6   :  { %v417_v47 = vsel %vm217_vm6, -1e+10, %v416_v45 }
 0x3c7   :  { %v582_v48 = vpop.f32.mrb[2].mxu0  ;;  %v418_v49 = vsel %vm341_vm5, %v417_v47, -inf }
 0x3c8   :  { %v586_v50 = vmul.f32 0.35355338, %v582_v48  ;;  %419 = vmax.xlane.f32.xlu1 %v418_v49  ;;  %v9956_v51 = vpop.f32.mrb[3].mxu0 }
 0x3ca   :  { %v587_v52 = vsel %vm217_vm6, -1e+10, %v586_v50 }
 0x3cb   :  { %v588_v53 = vsel %vm341_vm5, %v587_v52, -inf }
 0x3cc   :  { %589 = vmax.xlane.f32.xlu0 %v588_v53  ;;  %v11301_v53 = vld [vmem:[%s12512_s8 + $0x10] sm:$0xff] }
 0x455   :  { %v420_v54 = vpop.xlane.xlu1 %419 }
 0x456   :  { %v421_v55 = vsub.f32 %v417_v47, %v420_v54 }
 0x458   :  { %v422_v56 = vmul.f32 1.442695, %v421_v55 }
 0x459   :  { %v590_v57 = vpop.xlane.xlu0 %589 }
 0x45a   :  { %10711 = vpow2.f32 %v422_v56  ;;  %v591_v58 = vsub.f32 %v587_v52, %v590_v57 }
 0x45c   :  { %v592_v59 = vmul.f32 1.442695, %v591_v58 }
 0x45e   :  { %10713 = vpow2.f32 %v592_v59 }
 0x464   :  { %v10712_v60 = vpop.eup %10711 }
 0x465   :  { %v424_v61 = vsel %vm341_vm5, %v10712_v60, 0.0 }
 0x466   :  { %425 = vadd.xlane.f32.xlu0 %v424_v61 }
 0x468   :  { %v10714_v62 = vpop.eup %10713 }
 0x469   :  { %v594_v63 = vsel %vm341_vm5, %v10714_v62, 0.0 }
 0x46a   :  { %595 = vadd.xlane.f32.xlu1 %v594_v63 }
 0x47b   :  { %602 = vrot.lane.b32.xlu1 %v11206_v39, %s12546_s7 }
 0x47c   :  { %432 = vrot.lane.b32.xlu0 %v11206_v39, %s12544_s25 }
 0x47f   :  { %826 = vrot.lane.b32.xlu1 %v11206_v39, %s10977_s30 }
 0x480   :  { %824 = vrot.lane.b32.xlu0 %v11206_v39, %s10978_s5 }
 0x4f3   :  { %v426_v1 = vpop.xlane.xlu0 %425 }
 0x4f4   :  { %10715 = vrcp.f32 %v426_v1 }
 0x4f7   :  { %v433_v2 = vpop.permute.xlu0 %432  ;;  %v596_v3 = vpop.xlane.xlu1 %595 }
 0x4f8   :  { %10717 = vrcp.f32 %v596_v3  ;;  %9948 = vmatpush3.msra.mxu1 %v433_v2 }
 0x4f9   :  { %9957 = vmatprep.subr.mxu1 %v10970_v18 }
 0x4fb   :  { %v603_v13 = vpop.permute.xlu1 %602  ;;  %v825_v23 = vpop.permute.xlu0 %824 }
 0x4fe   :  { %v10716_v4 = vpop.eup %10715 }
 0x4ff   :  { %v428_v5 = vmul.f32 %v10716_v4, %v426_v1  ;;  %v827_v21 = vpop.permute.xlu1 %826 }
 0x501   :  { %v429_v6 = vsub.f32 2.0, %v428_v5 }
 0x502   :  { %v10718_v7 = vpop.eup %10717 }
 0x503   :  { %v430_v8 = vmul.f32 %v10716_v4, %v429_v6  ;;  %v598_v9 = vmul.f32 %v10718_v7, %v596_v3 }
 0x505   :  { %v431_v10 = vmul.f32 %v10712_v60, %v430_v8  ;;  %v599_v11 = vsub.f32 2.0, %v598_v9 }
 0x507   :  { %v600_v12 = vmul.f32 %v10718_v7, %v599_v11  ;;  %9950 = vmatmul.mubr.msk.f32.vlgmr.msra.gmra.mrb[4].mxu1 %vm341_vm5, %v431_v10 }
 0x508   :  { %9958 = vmatpush3.msra.mxu1 %v603_v13  ;;  %9959 = vmatprep.mubr.msk.f32.mxu1 %vm10971_vm4, %v10970_v18 }
 0x509   :  { %v601_v14 = vmul.f32 %v10714_v62, %v600_v12  ;;  %9967 = vmatprep.subr.mxu1 %v10970_v18 }
 0x50b   :  { %9960 = vmatmul.mubr.msk.f32.vlgmr.msra.gmra.mrb[6].mxu1 %vm341_vm5, %v601_v14 }
 0x50c   :  { %9969 = vmatprep.mubr.msk.f32.mxu1 %vm10971_vm4, %v10970_v18  ;;  %9968 = vmatpush3.msra.mxu1 %v11262_v15 }
 0x50d   :  { %9977 = vmatprep.subr.mxu1 %v10970_v18 }
 0x5da   :  { %v504_v16 = vpop.f32.mrb[4].mxu1 }
 0x5db   :  { %v9951_v17 = vpop.f32.mrb[5].mxu1  ;;  %9970 = vmatmul.mubr.msk.f32.vlgmr.msra.gmra.mrb[8].mxu1 %vm341_vm5, %v504_v16  ;;  %v11343_v16 = vld [vmem:[%s12512_s8 + $0x18] sm:$0xff] }
 0x5dc   :  { %9979 = vmatprep.mubr.msk.f32.mxu1 %vm10971_vm4, %v10970_v18 }
 0x5de   :  { %v674_v20 = vpop.f32.mrb[6].mxu1 }
 0x5df   :  { %v9961_v22 = vpop.f32.mrb[7].mxu1  ;;  %9965 = vmatmul.mubr.msk.f32.vlgmr.msra.gmra.mrb[4].mxu0 %vm341_vm5, %v674_v20 }
 0x5e0   :  { %9973 = vmatpush3.xpose.msk.msra.mxu0 %vm341_vm5, %v827_v21  ;;  %9974 = vmatprep.mubr.msk.f32.mxu0 %vm10971_vm4, %v10970_v18  ;;  %v11348_v21 = vld [vmem:[#allocation5 + $0x8] sm:$0xff] }
 0x5e1   :  { %9982 = vmatprep.subr.mxu0 %v10970_v18  ;;  %vm220_vm7 = vcmp.eq.f32.partialorder %v11348_v21, 0.0 }
 0x5e3   :  { %9975 = vmatmul.mubr.msk.f32.vlgmr.msra.gmra.mrb[6].mxu0 %vm341_vm5, %v825_v23 }
 0x5e4   :  { %9984 = vmatprep.mubr.msk.f32.mxu0 %vm10971_vm4, %v10970_v18  ;;  %9983 = vmatpush3.msra.mxu0 %v11301_v53 }
 0x5e5   :  { %9992 = vmatprep.subr.mxu0 %v10970_v18 }
 0x6ae   :  { %v820_v24 = vpop.f32.mrb[8].mxu1 }
 0x6af   :  { %v9971_v25 = vpop.f32.mrb[9].mxu1 }
 0x6b2   :  { %v747_v26 = vpop.f32.mrb[4].mxu0 }
 0x6b3   :  { %v11277_v27 = vadd.f32 %v820_v24, %v747_v26  ;;  %v9966_v28 = vpop.f32.mrb[5].mxu0 }
 0x6b6   :  { %v898_v29 = vpop.f32.mrb[6].mxu0 }
 0x6b7   :  { %v902_v30 = vmul.f32 0.35355338, %v898_v29  ;;  %v9976_v31 = vpop.f32.mrb[7].mxu0 }
 0x6b9   :  { %v903_v32 = vsel %vm217_vm6, -1e+10, %v902_v30 }
 0x6ba   :  { %v904_v35 = vsel %vm341_vm5, %v903_v32, -inf }
 0x6bb   :  { %905 = vmax.xlane.f32.xlu1 %v904_v35 }
 0x6cc   :  { %1070 = vrot.lane.b32.xlu1 %v11206_v39, %s12550_s1 }
 0x6d0   :  { %1068 = vrot.lane.b32.xlu1 %v11206_v39, %s12548_s0 }
 0x748   :  { %v906_v36 = vpop.xlane.xlu1 %905 }
 0x749   :  { %v907_v38 = vsub.f32 %v903_v32, %v906_v36 }
 0x74b   :  { %v908_v40 = vmul.f32 1.442695, %v907_v38 }
 0x74c   :  { %v1071_v50 = vpop.permute.xlu1 %1070 }
 0x74d   :  { %10719 = vpow2.f32 %v908_v40 }
 0x750   :  { %v1069_v52 = vpop.permute.xlu1 %1068 }
 0x757   :  { %v10720_v41 = vpop.eup %10719 }
 0x758   :  { %v910_v42 = vsel %vm341_vm5, %v10720_v41, 0.0 }
 0x759   :  { %911 = vadd.xlane.f32.xlu0 %v910_v42 }
 0x76f   :  { %918 = vrot.lane.b32.xlu0 %v11206_v39, %s12542_s22 }
 0x7e6   :  { %v912_v44 = vpop.xlane.xlu0 %911 }
 0x7e7   :  { %10721 = vrcp.f32 %v912_v44 }
 0x7ea   :  { %v919_v45 = vpop.permute.xlu0 %918 }
 0x7eb   :  { %9978 = vmatpush3.msra.mxu1 %v919_v45 }
 0x7ec   :  { %9987 = vmatprep.subr.mxu1 %v10970_v18 }
 0x7f1   :  { %v10722_v46 = vpop.eup %10721 }
 0x7f2   :  { %v914_v47 = vmul.f32 %v10722_v46, %v912_v44 }
 0x7f4   :  { %v915_v48 = vsub.f32 2.0, %v914_v47 }
 0x7f6   :  { %v916_v49 = vmul.f32 %v10722_v46, %v915_v48 }
 0x7f8   :  { %v917_v51 = vmul.f32 %v10720_v41, %v916_v49 }
 0x7fa   :  { %9980 = vmatmul.mubr.msk.f32.vlgmr.msra.gmra.mrb[10].mxu1 %vm341_vm5, %v917_v51 }
 0x7fb   :  { %9988 = vmatpush3.xpose.msk.msra.mxu1 %vm341_vm5, %v1071_v50  ;;  %9989 = vmatprep.mubr.msk.f32.mxu1 %vm10971_vm4, %v10970_v18 }
 0x7fc   :  { %9997 = vmatprep.subr.mxu1 %v10970_v18 }
 0x7fe   :  { %9990 = vmatmul.mubr.msk.f32.vlgmr.msra.gmra.mrb[12].mxu1 %vm341_vm5, %v1069_v52 }
 0x7ff   :  { %9999 = vmatprep.mubr.msk.f32.mxu1 %vm10971_vm4, %v10970_v18  ;;  %9998 = vmatpush3.msra.mxu1 %v11343_v16 }
 0x800   :  { %10007 = vmatprep.subr.mxu1 %v10970_v18 }
 0x8cd   :  { %v990_v54 = vpop.f32.mrb[10].mxu1 }
 0x8ce   :  { %v9981_v55 = vpop.f32.mrb[11].mxu1  ;;  %9985 = vmatmul.mubr.msk.f32.vlgmr.msra.gmra.mrb[8].mxu0 %vm341_vm5, %v990_v54 }
 0x8cf   :  { %9994 = vmatprep.mubr.msk.f32.mxu0 %vm10971_vm4, %v10970_v18 }
 0x8d1   :  { %v1142_v56 = vpop.f32.mrb[12].mxu1 }
 0x8d2   :  { %v1146_v57 = vmul.f32 0.35355338, %v1142_v56  ;;  %v9991_v58 = vpop.f32.mrb[13].mxu1 }
 0x8d4   :  { %v1147_v59 = vsel %vm217_vm6, -1e+10, %v1146_v57 }
 0x8d5   :  { %v1148_v60 = vsel %vm341_vm5, %v1147_v59, -inf }
 0x8d6   :  { %1149 = vmax.xlane.f32.xlu0 %v1148_v60 }
 0x8ec   :  { %1162 = vrot.lane.b32.xlu0 %v11206_v39, %s12540_s4 }
 0x8f0   :  { %1490 = vrot.lane.b32.xlu0 %v11204_v37, %s10974_s27 }
 0x963   :  { %v1150_v61 = vpop.xlane.xlu0 %1149 }
 0x964   :  { %v1151_v62 = vsub.f32 %v1147_v59, %v1150_v61 }
 0x966   :  { %v1152_v63 = vmul.f32 1.442695, %v1151_v62 }
 0x967   :  { %v1163_v1 = vpop.permute.xlu0 %1162 }
 0x968   :  { %10723 = vpow2.f32 %v1152_v63  ;;  %9993 = vmatpush3.msra.mxu0 %v1163_v1 }
 0x969   :  { %10002 = vmatprep.subr.mxu0 %v10970_v18 }
 0x96b   :  { %v1491_v13 = vpop.permute.xlu0 %1490 }
 0x972   :  { %v10724_v2 = vpop.eup %10723 }
 0x973   :  { %v1154_v3 = vsel %vm341_vm5, %v10724_v2, 0.0 }
 0x974   :  { %1155 = vadd.xlane.f32.xlu1 %v1154_v3 }
 0x985   :  { %1320 = vrot.lane.b32.xlu1 %v11204_v37, %s10973_s26 }
 0x989   :  { %1488 = vrot.lane.b32.xlu1 %v11204_v37, %s10972_s24 }
 0x9a1   :  { %v1063_v39 = vpop.f32.mrb[8].mxu0 }
 0x9a2   :  { %v11322_v4 = vadd.f32 %v1063_v39, %v11277_v27  ;;  %v9986_v5 = vpop.f32.mrb[9].mxu0 }
 0xa01   :  { %v1156_v6 = vpop.xlane.xlu1 %1155 }
 0xa02   :  { %10725 = vrcp.f32 %v1156_v6 }
 0xa05   :  { %v1321_v12 = vpop.permute.xlu1 %1320 }
 0xa09   :  { %v1489_v14 = vpop.permute.xlu1 %1488 }
 0xa0c   :  { %v10726_v7 = vpop.eup %10725 }
 0xa0d   :  { %v1158_v8 = vmul.f32 %v10726_v7, %v1156_v6 }
 0xa0f   :  { %v1159_v9 = vsub.f32 2.0, %v1158_v8 }
 0xa11   :  { %v1160_v10 = vmul.f32 %v10726_v7, %v1159_v9 }
 0xa13   :  { %v1161_v11 = vmul.f32 %v10724_v2, %v1160_v10 }
 0xa15   :  { %9995 = vmatmul.mubr.msk.f32.vlgmr.msra.gmra.mrb[10].mxu0 %vm341_vm5, %v1161_v11 }
 0xa16   :  { %10003 = vmatpush3.xpose.msk.msra.mxu0 %vm341_vm5, %v1321_v12  ;;  %10004 = vmatprep.mubr.msk.f32.mxu0 %vm10971_vm4, %v10970_v18 }
 0xa17   :  { %10012 = vmatprep.subr.mxu0 %v10970_v18 }
 0xa19   :  { %10005 = vmatmul.mubr.msk.f32.vlgmr.msra.gmra.mrb[12].mxu0 %vm341_vm5, %v11204_v37 }
 0xa1a   :  { %10013 = vmatpush3.xpose.msk.msra.mxu0 %vm341_vm5, %v1491_v13  ;;  %10014 = vmatprep.mubr.msk.f32.mxu0 %vm10971_vm4, %v10970_v18 }
 0xa1b   :  { %10022 = vmatprep.subr.mxu0 %v10970_v18 }
 0xa1d   :  { %10015 = vmatmul.mubr.msk.f32.vlgmr.msra.gmra.mrb[14].mxu0 %vm341_vm5, %v1489_v14 }
 0xa1e   :  { %10023 = vmatpush3.msra.mxu0 %v11247_v0  ;;  %10024 = vmatprep.mubr.msk.f32.mxu0 %vm10971_vm4, %v10970_v18 }
 0xa1f   :  { %10032 = vmatprep.subr.mxu0 %v10970_v18 }
 0xae8   :  { %v1234_v17 = vpop.f32.mrb[10].mxu0 }
 0xae9   :  { %v9996_v20 = vpop.f32.mrb[11].mxu0  ;;  %10000 = vmatmul.mubr.msk.f32.vlgmr.msra.gmra.mrb[14].mxu1 %vm341_vm5, %v1234_v17 }
 0xaea   :  { %10009 = vmatprep.mubr.msk.f32.mxu1 %vm10971_vm4, %v10970_v18 }
 0xaec   :  { %v1392_v0 = vpop.f32.mrb[12].mxu0 }
 0xaed   :  { %v1396_v22 = vmul.f32 0.35355338, %v1392_v0  ;;  %v10006_v23 = vpop.f32.mrb[13].mxu0 }
 0xaef   :  { %v1397_v24 = vsel %vm220_vm7, -1e+10, %v1396_v22 }
 0xaf0   :  { %v1562_v25 = vpop.f32.mrb[14].mxu0  ;;  %v1398_v26 = vsel %vm341_vm5, %v1397_v24, -inf }
 0xaf1   :  { %v1566_v27 = vmul.f32 0.35355338, %v1562_v25  ;;  %1399 = vmax.xlane.f32.xlu0 %v1398_v26  ;;  %v10016_v28 = vpop.f32.mrb[15].mxu0 }
 0xaf3   :  { %v1567_v29 = vsel %vm220_vm7, -1e+10, %v1566_v27 }
 0xaf4   :  { %v1568_v30 = vsel %vm341_vm5, %v1567_v29, -inf }
 0xaf5   :  { %1569 = vmax.xlane.f32.xlu1 %v1568_v30 }
 0xb06   :  { %1412 = vrot.lane.b32.xlu1 %v11204_v37, %s12544_s25 }
 0xb0a   :  { %1806 = vrot.lane.b32.xlu1 %v11204_v37, %s10977_s30 }
 0xb0e   :  { %1804 = vrot.lane.b32.xlu1 %v11204_v37, %s10978_s5 }
 0xb7e   :  { %v1400_v31 = vpop.xlane.xlu0 %1399 }
 0xb7f   :  { %v1401_v32 = vsub.f32 %v1397_v24, %v1400_v31 }
 0xb81   :  { %v1402_v35 = vmul.f32 1.442695, %v1401_v32 }
 0xb82   :  { %v1570_v36 = vpop.xlane.xlu1 %1569 }
 0xb83   :  { %10727 = vpow2.f32 %v1402_v35  ;;  %v1571_v38 = vsub.f32 %v1567_v29, %v1570_v36  ;;  %v9456_v35 = vld [vmem:[%s12513_s9] ss:$0 sm:$0xff] }
 0xb85   :  { %v1572_v40 = vmul.f32 1.442695, %v1571_v38 }
 0xb86   :  { %v1413_v41 = vpop.permute.xlu1 %1412 }
 0xb87   :  { %10729 = vpow2.f32 %v1572_v40  ;;  %10008 = vmatpush3.msra.mxu1 %v1413_v41 }
 0xb88   :  { %10017 = vmatprep.subr.mxu1 %v10970_v18 }
 0xb8a   :  { %v1807_v3 = vpop.permute.xlu1 %1806 }
 0xb8d   :  { %v10728_v42 = vpop.eup %10727 }
 0xb8e   :  { %v1404_v44 = vsel %vm341_vm5, %v10728_v42, 0.0 }
 0xb8f   :  { %1405 = vadd.xlane.f32.xlu0 %v1404_v44 }
 0xb91   :  { %v10730_v45 = vpop.eup %10729 }
 0xb92   :  { %v1574_v46 = vsel %vm341_vm5, %v10730_v45, 0.0 }
 0xb93   :  { %1575 = vadd.xlane.f32.xlu0 %v1574_v46 }
 0xba9   :  { %1582 = vrot.lane.b32.xlu0 %v11204_v37, %s12546_s7  ;;  %s12573_s7 = smov 104  }
 0xbbc   :  { %v1307_v47 = vpop.f32.mrb[14].mxu1 }
 0xbbd   :  { %v11371_v48 = vadd.f32 %v1307_v47, %v11322_v4  ;;  %v10001_v49 = vpop.f32.mrb[15].mxu1 }
 0xbbf   :  { %v1318_v38 = vadd.f32 %v9456_v35, %v11371_v48 }
 0xc1c   :  { %v1406_v50 = vpop.xlane.xlu0 %1405 }
 0xc1d   :  { %10731 = vrcp.f32 %v1406_v50 }
 0xc20   :  { %v1576_v51 = vpop.xlane.xlu0 %1575 }
 0xc21   :  { %10733 = vrcp.f32 %v1576_v51 }
 0xc24   :  { %v1583_v62 = vpop.permute.xlu0 %1582 }
 0xc27   :  { %v10732_v52 = vpop.eup %10731 }
 0xc28   :  { %v1408_v54 = vmul.f32 %v10732_v52, %v1406_v50 }
 0xc2a   :  { %v1409_v55 = vsub.f32 2.0, %v1408_v54 }
 0xc2b   :  { %v10734_v56 = vpop.eup %10733 }
 0xc2c   :  { %v1410_v57 = vmul.f32 %v10732_v52, %v1409_v55  ;;  %v1578_v58 = vmul.f32 %v10734_v56, %v1576_v51 }
 0xc2e   :  { %v1411_v59 = vmul.f32 %v10728_v42, %v1410_v57  ;;  %v1579_v60 = vsub.f32 2.0, %v1578_v58 }
 0xc30   :  { %v1580_v61 = vmul.f32 %v10734_v56, %v1579_v60  ;;  %10010 = vmatmul.mubr.msk.f32.vlgmr.msra.gmra.mrb[16].mxu1 %vm341_vm5, %v1411_v59 }
 0xc31   :  { %10018 = vmatpush3.msra.mxu1 %v1583_v62  ;;  %10019 = vmatprep.mubr.msk.f32.mxu1 %vm10971_vm4, %v10970_v18 }
 0xc32   :  { %v1581_v63 = vmul.f32 %v10730_v45, %v1580_v61  ;;  %10027 = vmatprep.subr.mxu1 %v10970_v18  ;;  %v2293_v45 = vadd.f32 %v1318_v38, %v11189_v33  ;;  %v214_v38 = vld [vmem:[#allocation2] sm:$0xff] }
 0xc34   :  { %10020 = vmatmul.mubr.msk.f32.vlgmr.msra.gmra.mrb[18].mxu1 %vm341_vm5, %v1581_v63  ;;  %v2295_v46 = vsel %vm256_vm3, %v2293_v45, 0.0 }
 0xc35   :  { %10028 = vmatpush3.msra.mxu1 %v11262_v15  ;;  %10029 = vmatprep.mubr.msk.f32.mxu1 %vm10971_vm4, %v10970_v18  ;;  %v1805_v15 = vpop.permute.xlu1 %1804 }
 0xc36   :  { %10037 = vmatprep.subr.mxu1 %v10970_v18 }
 0xd03   :  { %v1484_v1 = vpop.f32.mrb[16].mxu1 }
 0xd04   :  { %v10011_v2 = vpop.f32.mrb[17].mxu1  ;;  %10030 = vmatmul.mubr.msk.f32.vlgmr.msra.gmra.mrb[20].mxu1 %vm341_vm5, %v1484_v1 }
 0xd05   :  { %10039 = vmatprep.mubr.msk.f32.mxu1 %vm10971_vm4, %v10970_v18 }
 0xd07   :  { %v1654_v39 = vpop.f32.mrb[18].mxu1 }
 0xd08   :  { %v10021_v4 = vpop.f32.mrb[19].mxu1  ;;  %10025 = vmatmul.mubr.msk.f32.vlgmr.msra.gmra.mrb[16].mxu0 %vm341_vm5, %v1654_v39 }
 0xd09   :  { %10033 = vmatpush3.xpose.msk.msra.mxu0 %vm341_vm5, %v1807_v3  ;;  %10034 = vmatprep.mubr.msk.f32.mxu0 %vm10971_vm4, %v10970_v18 }
 0xd0a   :  { %10042 = vmatprep.subr.mxu0 %v10970_v18 }
 0xd0c   :  { %10035 = vmatmul.mubr.msk.f32.vlgmr.msra.gmra.mrb[18].mxu0 %vm341_vm5, %v1805_v15 }
 0xd0d   :  { %10043 = vmatpush3.msra.mxu0 %v11301_v53  ;;  %10044 = vmatprep.mubr.msk.f32.mxu0 %vm10971_vm4, %v10970_v18 }
 0xd0e   :  { %10052 = vmatprep.subr.mxu0 %v10970_v18 }
 0xdd7   :  { %v1800_v5 = vpop.f32.mrb[20].mxu1 }
 0xdd8   :  { %v10031_v6 = vpop.f32.mrb[21].mxu1 }
 0xddb   :  { %v1727_v7 = vpop.f32.mrb[16].mxu0 }
 0xddc   :  { %v1801_v8 = vadd.f32 %v1800_v5, %v1727_v7  ;;  %v10026_v9 = vpop.f32.mrb[17].mxu0 }
 0xddd   :  { %v2336_v9 = vld [vmem:[%s12514_s10 + $0x10] sm:$0xff] }
 0xddf   :  { %v1878_v10 = vpop.f32.mrb[18].mxu0 }
 0xde0   :  { %v1882_v11 = vmul.f32 0.35355338, %v1878_v10  ;;  %v10036_v12 = vpop.f32.mrb[19].mxu0  ;;  %v2337_v10 = vld [vmem:[%s12514_s10 + $0x18] sm:$0xff] }
 0xde2   :  { %v1883_v13 = vsel %vm220_vm7, -1e+10, %v1882_v11  ;;  %v10696_v11 = vpack.i.bf16 %v2337_v10, %v2336_v9 }
 0xde3   :  { %v1884_v14 = vsel %vm341_vm5, %v1883_v13, -inf }
 0xde4   :  { %1885 = vmax.xlane.f32.xlu0 %v1884_v14 }
 0xdfa   :  { %1898 = vrot.lane.b32.xlu0 %v11204_v37, %s12542_s22 }
 0xdfe   :  { %2048 = vrot.lane.b32.xlu0 %v11204_v37, %s12548_s0 }
 0xe71   :  { %v1886_v53 = vpop.xlane.xlu0 %1885 }
 0xe72   :  { %v1887_v17 = vsub.f32 %v1883_v13, %v1886_v53 }
 0xe74   :  { %v1888_v20 = vmul.f32 1.442695, %v1887_v17 }
 0xe75   :  { %v1899_v0 = vpop.permute.xlu0 %1898 }
 0xe76   :  { %10735 = vpow2.f32 %v1888_v20  ;;  %10038 = vmatpush3.msra.mxu1 %v1899_v0 }
 0xe77   :  { %10047 = vmatprep.subr.mxu1 %v10970_v18 }
 0xe79   :  { %v2049_v31 = vpop.permute.xlu0 %2048 }
 0xe80   :  { %v10736_v22 = vpop.eup %10735 }
 0xe81   :  { %v1890_v23 = vsel %vm341_vm5, %v10736_v22, 0.0 }
 0xe82   :  { %1891 = vadd.xlane.f32.xlu1 %v1890_v23 }
 0xe93   :  { %2050 = vrot.lane.b32.xlu1 %v11204_v37, %s12550_s1 }
 0xf0f   :  { %v1892_v24 = vpop.xlane.xlu1 %1891 }
 0xf10   :  { %10737 = vrcp.f32 %v1892_v24 }
 0xf13   :  { %v2051_v30 = vpop.permute.xlu1 %2050 }
 0xf1a   :  { %v10738_v25 = vpop.eup %10737 }
 0xf1b   :  { %v1894_v26 = vmul.f32 %v10738_v25, %v1892_v24  ;;  %v11452_v24 = vld [vmem:[%s12522_s18] sm:$0x7] }
 0xf1d   :  { %v1895_v27 = vsub.f32 2.0, %v1894_v26 }
 0xf1f   :  { %v1896_v28 = vmul.f32 %v10738_v25, %v1895_v27  ;;  %v11457_v25 = vld [vmem:[%s12523_s19] sm:$0x7]  ;;  %v2335_v27 = vld [vmem:[%s12514_s10 + $0x8] sm:$0xff] }
 0xf21   :  { %v1897_v29 = vmul.f32 %v10736_v22, %v1896_v28  ;;  %v11444_v22 = vshrl.u32 %v105_v19, 7  ;;  %v2334_v19 = vld [vmem:[%s12514_s10] sm:$0xff] }
 0xf23   :  { %10040 = vmatmul.mubr.msk.f32.vlgmr.msra.gmra.mrb[22].mxu1 %vm341_vm5, %v1897_v29  ;;  %v11447_v23 = vsub.s32 0, %v11444_v22 }
 0xf24   :  { %10048 = vmatpush3.xpose.msk.msra.mxu1 %vm341_vm5, %v2051_v30  ;;  %10049 = vmatprep.mubr.msk.f32.mxu1 %vm10971_vm4, %v10970_v18 }
 0xf25   :  { %10057 = vmatprep.subr.mxu1 %v10970_v18  ;;  %v2325_v26 = vrot.slane %v11452_v24, %v11447_v23  ;;  %v2331_v30 = vrot.slane %v11457_v25, %v11447_v23 }
 0xf27   :  { %10050 = vmatmul.mubr.msk.f32.vlgmr.msra.gmra.mrb[24].mxu1 %vm341_vm5, %v2049_v31  ;;  %v10691_v31 = vpack.i.bf16 %v2335_v27, %v2334_v19 }
 0xf28   :  { %10058 = vmatpush3.msra.mxu1 %v11343_v16  ;;  %10059 = vmatprep.mubr.msk.f32.mxu1 %vm10971_vm4, %v10970_v18 }
 0xff6   :  { %v1970_v32 = vpop.f32.mrb[22].mxu1 }
 0xff7   :  { %v10041_v36 = vpop.f32.mrb[23].mxu1  ;;  %10045 = vmatmul.mubr.msk.f32.vlgmr.msra.gmra.mrb[20].mxu0 %vm341_vm5, %v1970_v32 }
 0xff8   :  { %10054 = vmatprep.mubr.msk.f32.mxu0 %vm10971_vm4, %v10970_v18  ;;  %v10572_v36 = vpack.c.bf16 %v2335_v27, %v2334_v19 }
 0xffa   :  { %v2122_v40 = vpop.f32.mrb[24].mxu1 }
 0xffb   :  { %v2126_v41 = vmul.f32 0.35355338, %v2122_v40  ;;  %v10051_v42 = vpop.f32.mrb[25].mxu1  ;;  %v10576_v40 = vpack.c.bf16 %v2337_v10, %v2336_v9 }
 0xffd   :  { %v2127_v16 = vsel %vm220_vm7, -1e+10, %v2126_v41  ;;  %v11479_v41 = vld [vmem:[%s12515_s11] ss:$0 sm:$0xff] }
 0xffe   :  { %v2128_v44 = vsel %vm341_vm5, %v2127_v16, -inf }
 0xfff   :  { %2129 = vmax.xlane.f32.xlu1 %v2128_v44 }
0x1003   :  { %2296 = vadd.xlane.f32.xlu1 %v2295_v46 }
0x108c   :  { %v2130_v47 = vpop.xlane.xlu1 %2129 }
0x108d   :  { %v2131_v49 = vsub.f32 %v2127_v16, %v2130_v47 }
0x108f   :  { %v2132_v50 = vmul.f32 1.442695, %v2131_v49 }
0x1090   :  { %v2297_v1 = vpop.xlane.xlu1 %2296 }
0x1091   :  { %10739 = vpow2.f32 %v2132_v50 }
0x109b   :  { %v10740_v51 = vpop.eup %10739 }
0x109c   :  { %v2134_v48 = vsel %vm341_vm5, %v10740_v51, 0.0 }
0x109d   :  { %2135 = vadd.xlane.f32.xlu0 %v2134_v48 }
0x10b3   :  { %2142 = vrot.lane.b32.xlu0 %v11204_v37, %s12540_s4  ;;  %v2302_v37 = vmul.f32 0.03125, %v2297_v1 }
0x10b5   :  { %v2304_v4 = vsub.f32 %v2293_v45, %v2302_v37 }
0x10b7   :  { %v2306_v7 = vmul.f32 %v2304_v4, %v2304_v4  ;;  %10697 = vrot.lane.b32.xlu0 %v10696_v11, %s10973_s26 }
0x10bb   :  { %2447 = vrot.lane.b32.xlu0 %v11479_v41, %s10973_s26 }
0x10ca   :  { %v2043_v52 = vpop.f32.mrb[20].mxu0 }
0x10cb   :  { %v2047_v54 = vadd.f32 %v2043_v52, %v1801_v8  ;;  %v10046_v55 = vpop.f32.mrb[21].mxu0  ;;  %v2308_v8 = vsel %vm256_vm3, %v2306_v7, 0.0 }
0x112a   :  { %v2136_v56 = vpop.xlane.xlu0 %2135 }
0x112b   :  { %10741 = vrcp.f32 %v2136_v56 }
0x112e   :  { %v2143_v33 = vpop.permute.xlu0 %2142 }
0x112f   :  { %10053 = vmatpush3.msra.mxu0 %v2143_v33 }
0x1130   :  { %10573 = vmatprep.subr.bf16.mxu0 %v10572_v36 }
0x1132   :  { %v10698_v16 = vpop.permute.xlu0 %10697 }
0x1133   :  { %v10700_v46 = vunpack.i.h.bf16 %v10698_v16  ;;  %v10699_v47 = vunpack.i.l.bf16 %v10698_v16 }
0x1135   :  { %v10742_v57 = vpop.eup %10741  ;;  %v10584_v52 = vpack.c.bf16 %v10700_v46, %v10699_v47 }
0x1136   :  { %v2138_v58 = vmul.f32 %v10742_v57, %v2136_v56 }
0x1138   :  { %v2139_v59 = vsub.f32 2.0, %v2138_v58  ;;  %v11493_v58 = vpop.permute.xlu0 %2447 }
0x113a   :  { %v2140_v60 = vmul.f32 %v10742_v57, %v2139_v59 }
0x113c   :  { %v2141_v61 = vmul.f32 %v10740_v51, %v2140_v60 }
0x113e   :  { %10055 = vmatmul.mubr.msk.f32.vlgmr.msra.gmra.mrb[22].mxu0 %vm341_vm5, %v2141_v61 }
0x113f   :  { %10575 = vmatpush3.bf16.msra.mxu0 %v10572_v36 }
0x1140   :  { %10577 = vmatprep.subr.bf16.mxu0 %v10576_v40 }
0x1143   :  { %10579 = vmatpush3.bf16.msra.mxu0 %v10576_v40 }
0x1144   :  { %10084 = vmatprep.subr.mxu0 %v10970_v18 }
0x1211   :  { %v2214_v62 = vpop.f32.mrb[22].mxu0 }
0x1212   :  { %v10056_v63 = vpop.f32.mrb[23].mxu0  ;;  %10060 = vmatmul.mubr.msk.f32.vlgmr.msra.gmra.mrb[26].mxu1 %vm341_vm5, %v2214_v62 }
0x1213   :  { %10081 = vmatprep.mubr.msk.f32.mxu1 %vm256_vm3, %v214_v38  ;;  %v11550_v38 = vld [vmem:[%s12516_s12 + $0x8] sm:$0xff] }
0x12e5   :  { %v2287_v2 = vpop.f32.mrb[26].mxu1 }
0x12e6   :  { %v2291_v3 = vadd.f32 %v2287_v2, %v2047_v54  ;;  %v10061_v39 = vpop.f32.mrb[27].mxu1  ;;  %v215_v54 = vld [vmem:[#allocation2 + $0x8] sm:$0xff] }
0x12e8   :  { %v2292_v15 = vadd.f32 %v9456_v35, %v2291_v3  ;;  %v11524_v3 = vld [vmem:[%s12569_s28] ss:$0 sm:$0xff] }
0x12e9   :  { %vm228_vm8 = vcmp.eq.f32.partialorder %v11524_v3, 0.0 }
0x12ea   :  { %v2294_v5 = vadd.f32 %v2292_v15, %v11191_v34 }
0x12ec   :  { %v2298_v6 = vsel %vm256_vm3, %v2294_v5, 0.0 }
0x12ed   :  { %2299 = vadd.xlane.f32.xlu1 %v2298_v6 }
0x12f1   :  { %2309 = vadd.xlane.f32.xlu1 %v2308_v8 }
0x137a   :  { %v2300_v12 = vpop.xlane.xlu1 %2299 }
0x137b   :  { %v2303_v34 = vmul.f32 0.03125, %v2300_v12 }
0x137d   :  { %v2305_v13 = vsub.f32 %v2294_v5, %v2303_v34 }
0x137e   :  { %v2310_v14 = vpop.xlane.xlu1 %2309 }
0x137f   :  { %v2314_v53 = vmul.f32 0.03125, %v2310_v14  ;;  %v2307_v17 = vmul.f32 %v2305_v13, %v2305_v13 }
0x1381   :  { %v2316_v20 = vadd.f32 1e-05, %v2314_v53  ;;  %v2311_v0 = vsel %vm256_vm3, %v2307_v17, 0.0 }
0x1382   :  { %2312 = vadd.xlane.f32.xlu1 %v2311_v0 }
0x1383   :  { %10743 = vrsqrt.f32 %v2316_v20 }
0x138d   :  { %v10744_v28 = vpop.eup %10743 }
0x138e   :  { %v2320_v29 = vmul.f32 %v10744_v28, %v2304_v4 }
0x1390   :  { %v2326_v32 = vmul.f32 %v2325_v26, %v2320_v29 }
0x1392   :  { %v11469_v35 = vadd.f32 %v2331_v30, %v2326_v32 }
0x1393   :  { %10692 = vrot.lane.b32.xlu1 %v10691_v31, %s10973_s26 }
0x1394   :  { %10070 = vmatprep.mubr.msk.f32.mxu0 %vm256_vm3, %v11469_v35 }
0x140f   :  { %v2313_v42 = vpop.xlane.xlu1 %2312 }
0x1410   :  { %v2315_v44 = vmul.f32 0.03125, %v2313_v42 }
0x1412   :  { %v2317_v45 = vadd.f32 1e-05, %v2315_v44 }
0x1413   :  { %v10693_v49 = vpop.permute.xlu1 %10692 }
0x1414   :  { %10745 = vrsqrt.f32 %v2317_v45  ;;  %v10695_v50 = vunpack.i.h.bf16 %v10693_v49  ;;  %v10694_v51 = vunpack.i.l.bf16 %v10693_v49  ;;  %v11558_v49 = vld [vmem:[%s12516_s12] sm:$0xff] }
0x1416   :  { %v10580_v48 = vpack.c.bf16 %v10695_v50, %v10694_v51 }
0x1418   :  { %10581 = vmatprep.subr.bf16.mxu1 %v10580_v48 }
0x1419   :  { %10583 = vmatpush3.bf16.msra.mxu1 %v10580_v48 }
0x141a   :  { %10585 = vmatprep.subr.bf16.mxu1 %v10584_v52 }
0x141d   :  { %10587 = vmatpush3.bf16.msra.mxu1 %v10584_v52 }
0x141e   :  { %v10746_v55 = vpop.eup %10745  ;;  %10089 = vmatprep.subr.mxu1 %v10970_v18 }
0x141f   :  { %v2321_v56 = vmul.f32 %v10746_v55, %v2305_v13 }
0x1420   :  { %10082 = vmatmul.mubr.msk.f32.vlgmr.msra.gmra.mrb[28].mxu1 %vm256_vm3, %v215_v54 }
0x1421   :  { %v2327_v33 = vmul.f32 %v2325_v26, %v2321_v56  ;;  %10091 = vmatprep.mubr.msk.f32.mxu1 %vm10971_vm4, %v10970_v18 }
0x1423   :  { %v11487_v57 = vadd.f32 %v2331_v30, %v2327_v33 }
0x1425   :  { %10071 = vmatmul.mubr.msk.f32.vlgmr.msra.gmra.mrb[24].mxu0 %vm256_vm3, %v11487_v57 }
0x1426   :  { %10086 = vmatprep.mubr.msk.f32.mxu0 %vm10971_vm4, %v10970_v18 }
0x14f3   :  { %v11495_v59 = vpop.f32.mrb[28].mxu1 }
0x14f4   :  { %v2522_v60 = vpop.f32.mrb[29].mxu1 }
0x14f5   :  { %v11498_v61 = vadd.f32 %v2522_v60, %v11493_v58 }
0x14f7   :  { %2701 = vrot.lane.b32.xlu0 %v11498_v61, %s10972_s24  ;;  %10085 = vmatpush3.xpose.msk.msra.mxu0 %vm341_vm5, %v11498_v61 }
0x14f8   :  { %v11504_v62 = vpop.f32.mrb[24].mxu0  ;;  %10094 = vmatprep.subr.mxu0 %v10970_v18 }
0x14f9   :  { %v2422_v63 = vpop.f32.mrb[25].mxu0 }
0x14fa   :  { %v11508_v1 = vadd.f32 %v11479_v41, %v2422_v63 }
0x14fc   :  { %2699 = vrot.lane.b32.xlu0 %v11508_v1, %s10972_s24  ;;  %10087 = vmatmul.mubr.msk.f32.vlgmr.msra.gmra.mrb[26].mxu0 %vm341_vm5, %v11508_v1 }
0x14fd   :  { %10096 = vmatprep.mubr.msk.f32.mxu0 %vm10971_vm4, %v10970_v18 }
0x1569   :  { %v2702_v37 = vpop.permute.xlu0 %2701 }
0x156a   :  { %10095 = vmatpush3.xpose.msk.msra.mxu0 %vm341_vm5, %v2702_v37 }
0x156b   :  { %10104 = vmatprep.subr.mxu0 %v10970_v18 }
0x156e   :  { %v2700_v2 = vpop.permute.xlu0 %2699 }
0x156f   :  { %10097 = vmatmul.mubr.msk.f32.vlgmr.msra.gmra.mrb[28].mxu0 %vm341_vm5, %v2700_v2 }
0x1570   :  { %10106 = vmatprep.mubr.msk.f32.mxu0 %vm10971_vm4, %v10970_v18  ;;  %10105 = vmatpush3.msra.mxu0 %v11550_v38 }
0x1571   :  { %10114 = vmatprep.subr.mxu0 %v10970_v18 }
0x15cf   :  { %v2603_v39 = vpop.f32.mrb[26].mxu0 }
0x15d0   :  { %v2607_v4 = vmul.f32 0.35355338, %v2603_v39  ;;  %v10088_v15 = vpop.f32.mrb[27].mxu0 }
0x15d2   :  { %v2608_v5 = vsel %vm228_vm8, -1e+10, %v2607_v4 }
0x15d3   :  { %v2609_v6 = vsel %vm341_vm5, %v2608_v5, -inf }
0x15d4   :  { %2610 = vmax.xlane.f32.xlu1 %v2609_v6 }
0x1642   :  { %v2773_v7 = vpop.f32.mrb[28].mxu0 }
0x1643   :  { %v2777_v8 = vmul.f32 0.35355338, %v2773_v7  ;;  %v10098_v9 = vpop.f32.mrb[29].mxu0 }
0x1645   :  { %v2778_v10 = vsel %vm228_vm8, -1e+10, %v2777_v8 }
0x1646   :  { %v2779_v11 = vsel %vm341_vm5, %v2778_v10, -inf }
0x1647   :  { %2780 = vmax.xlane.f32.xlu0 %v2779_v11 }
0x1661   :  { %v2611_v12 = vpop.xlane.xlu1 %2610 }
0x1662   :  { %v2612_v34 = vsub.f32 %v2608_v5, %v2611_v12 }
0x1664   :  { %v2613_v13 = vmul.f32 1.442695, %v2612_v34 }
0x1666   :  { %10747 = vpow2.f32 %v2613_v13 }
0x1670   :  { %v10748_v14 = vpop.eup %10747 }
0x1671   :  { %v2615_v53 = vsel %vm341_vm5, %v10748_v14, 0.0 }
0x1672   :  { %2616 = vadd.xlane.f32.xlu0 %v2615_v53 }
0x1688   :  { %2623 = vrot.lane.b32.xlu0 %v11498_v61, %s10973_s26 }
0x168c   :  { %3015 = vrot.lane.b32.xlu0 %v11508_v1, %s10978_s5 }
0x16d4   :  { %v2781_v17 = vpop.xlane.xlu0 %2780 }
0x16d5   :  { %v2782_v20 = vsub.f32 %v2778_v10, %v2781_v17 }
0x16d7   :  { %v2783_v0 = vmul.f32 1.442695, %v2782_v20 }
0x16d9   :  { %10749 = vpow2.f32 %v2783_v0  ;;  %v11600_v0 = vld [vmem:[%s12516_s12 + $0x10] sm:$0xff] }
0x16e3   :  { %v10750_v26 = vpop.eup %10749 }
0x16e4   :  { %v2785_v19 = vsel %vm341_vm5, %v10750_v26, 0.0 }
0x16e5   :  { %2786 = vadd.xlane.f32.xlu1 %v2785_v19 }
0x16f6   :  { %2793 = vrot.lane.b32.xlu1 %v11498_v61, %s10974_s27 }
0x16fa   :  { %3017 = vrot.lane.b32.xlu1 %v11498_v61, %s10978_s5 }
0x16ff   :  { %v2617_v27 = vpop.xlane.xlu0 %2616 }
0x1700   :  { %10751 = vrcp.f32 %v2617_v27 }
0x1703   :  { %v2624_v28 = vpop.permute.xlu0 %2623 }
0x1704   :  { %10090 = vmatpush3.msra.mxu1 %v2624_v28 }
0x1705   :  { %10099 = vmatprep.subr.mxu1 %v10970_v18 }
0x1707   :  { %v3016_v55 = vpop.permute.xlu0 %3015 }
0x170a   :  { %v10752_v29 = vpop.eup %10751 }
0x170b   :  { %v2619_v30 = vmul.f32 %v10752_v29, %v2617_v27 }
0x170d   :  { %v2620_v31 = vsub.f32 2.0, %v2619_v30 }
0x170f   :  { %v2621_v32 = vmul.f32 %v10752_v29, %v2620_v31 }
0x1711   :  { %v2622_v36 = vmul.f32 %v10748_v14, %v2621_v32  ;;  %v11614_v32 = vadd.f32 %v11504_v62, %v11479_v41 }
0x1713   :  { %10092 = vmatmul.mubr.msk.f32.vlgmr.msra.gmra.mrb[30].mxu1 %vm341_vm5, %v2622_v36 }
0x1714   :  { %10101 = vmatprep.mubr.msk.f32.mxu1 %vm10971_vm4, %v10970_v18 }
0x1772   :  { %v2787_v40 = vpop.xlane.xlu1 %2786 }
0x1773   :  { %10753 = vrcp.f32 %v2787_v40 }
0x1776   :  { %v2794_v42 = vpop.permute.xlu1 %2793 }
0x1777   :  { %10100 = vmatpush3.msra.mxu1 %v2794_v42 }
0x1778   :  { %10109 = vmatprep.subr.mxu1 %v10970_v18 }
0x177a   :  { %v3018_v52 = vpop.permute.xlu1 %3017 }
0x177d   :  { %v10754_v16 = vpop.eup %10753 }
0x177e   :  { %v2789_v44 = vmul.f32 %v10754_v16, %v2787_v40 }
0x1780   :  { %v2790_v45 = vsub.f32 2.0, %v2789_v44 }
0x1782   :  { %v2791_v46 = vmul.f32 %v10754_v16, %v2790_v45 }
0x1784   :  { %v2792_v47 = vmul.f32 %v10750_v26, %v2791_v46 }
0x1786   :  { %10102 = vmatmul.mubr.msk.f32.vlgmr.msra.gmra.mrb[32].mxu1 %vm341_vm5, %v2792_v47 }
0x1787   :  { %10110 = vmatpush3.msra.mxu1 %v11558_v49  ;;  %10111 = vmatprep.mubr.msk.f32.mxu1 %vm10971_vm4, %v10970_v18 }
0x1788   :  { %10119 = vmatprep.subr.mxu1 %v10970_v18 }
0x17e6   :  { %v2695_v50 = vpop.f32.mrb[30].mxu1 }
0x17e7   :  { %v10093_v51 = vpop.f32.mrb[31].mxu1  ;;  %10112 = vmatmul.mubr.msk.f32.vlgmr.msra.gmra.mrb[34].mxu1 %vm341_vm5, %v2695_v50 }
0x17e8   :  { %10121 = vmatprep.mubr.msk.f32.mxu1 %vm10971_vm4, %v10970_v18 }
0x1859   :  { %v2865_v48 = vpop.f32.mrb[32].mxu1 }
0x185a   :  { %v10103_v54 = vpop.f32.mrb[33].mxu1  ;;  %10107 = vmatmul.mubr.msk.f32.vlgmr.msra.gmra.mrb[30].mxu0 %vm341_vm5, %v2865_v48 }
0x185b   :  { %10115 = vmatpush3.xpose.msk.msra.mxu0 %vm341_vm5, %v3018_v52  ;;  %10116 = vmatprep.mubr.msk.f32.mxu0 %vm10971_vm4, %v10970_v18 }
0x185c   :  { %10124 = vmatprep.subr.mxu0 %v10970_v18 }
0x185e   :  { %10117 = vmatmul.mubr.msk.f32.vlgmr.msra.gmra.mrb[32].mxu0 %vm341_vm5, %v3016_v55  ;;  %v11649_v55 = vld [vmem:[%s12516_s12 + $0x18] sm:$0xff] }
0x185f   :  { %10126 = vmatprep.mubr.msk.f32.mxu0 %vm10971_vm4, %v10970_v18  ;;  %10125 = vmatpush3.msra.mxu0 %v11600_v0 }
0x1860   :  { %10134 = vmatprep.subr.mxu0 %v10970_v18 }
0x18ba   :  { %v3011_v56 = vpop.f32.mrb[34].mxu1 }
0x18bb   :  { %v10113_v33 = vpop.f32.mrb[35].mxu1 }
0x192d   :  { %v2938_v60 = vpop.f32.mrb[30].mxu0 }
0x192e   :  { %v11576_v63 = vadd.f32 %v3011_v56, %v2938_v60  ;;  %v10108_v37 = vpop.f32.mrb[31].mxu0 }
0x1931   :  { %v3089_v2 = vpop.f32.mrb[32].mxu0 }
0x1932   :  { %v3093_v39 = vmul.f32 0.35355338, %v3089_v2  ;;  %v10118_v4 = vpop.f32.mrb[33].mxu0 }
0x1934   :  { %v3094_v15 = vsel %vm228_vm8, -1e+10, %v3093_v39 }
0x1935   :  { %v3095_v5 = vsel %vm341_vm5, %v3094_v15, -inf }
0x1936   :  { %3096 = vmax.xlane.f32.xlu1 %v3095_v5 }
0x1947   :  { %3261 = vrot.lane.b32.xlu1 %v11498_v61, %s12548_s0 }
0x194b   :  { %3259 = vrot.lane.b32.xlu1 %v11508_v1, %s12548_s0 }
0x19c3   :  { %v3097_v6 = vpop.xlane.xlu1 %3096 }
0x19c4   :  { %v3098_v7 = vsub.f32 %v3094_v15, %v3097_v6 }
0x19c6   :  { %v3099_v8 = vmul.f32 1.442695, %v3098_v7 }
0x19c7   :  { %v3262_v53 = vpop.permute.xlu1 %3261 }
0x19c8   :  { %10755 = vpow2.f32 %v3099_v8 }
0x19cb   :  { %v3260_v20 = vpop.permute.xlu1 %3259 }
0x19d2   :  { %v10756_v9 = vpop.eup %10755 }
0x19d3   :  { %v3101_v10 = vsel %vm341_vm5, %v10756_v9, 0.0 }
0x19d4   :  { %3102 = vadd.xlane.f32.xlu0 %v3101_v10 }
0x19ea   :  { %3109 = vrot.lane.b32.xlu0 %v11498_v61, %s10977_s30 }
0x1a61   :  { %v3103_v11 = vpop.xlane.xlu0 %3102 }
0x1a62   :  { %10757 = vrcp.f32 %v3103_v11 }
0x1a65   :  { %v3110_v12 = vpop.permute.xlu0 %3109 }
0x1a66   :  { %10120 = vmatpush3.msra.mxu1 %v3110_v12 }
0x1a67   :  { %10129 = vmatprep.subr.mxu1 %v10970_v18 }
0x1a6c   :  { %v10758_v34 = vpop.eup %10757 }
0x1a6d   :  { %v3105_v13 = vmul.f32 %v10758_v34, %v3103_v11 }
0x1a6f   :  { %v3106_v1 = vsub.f32 2.0, %v3105_v13 }
0x1a71   :  { %v3107_v14 = vmul.f32 %v10758_v34, %v3106_v1 }
0x1a73   :  { %v3108_v17 = vmul.f32 %v10756_v9, %v3107_v14 }
0x1a75   :  { %10122 = vmatmul.mubr.msk.f32.vlgmr.msra.gmra.mrb[36].mxu1 %vm341_vm5, %v3108_v17 }
0x1a76   :  { %10130 = vmatpush3.xpose.msk.msra.mxu1 %vm341_vm5, %v3262_v53  ;;  %10131 = vmatprep.mubr.msk.f32.mxu1 %vm10971_vm4, %v10970_v18 }
0x1a77   :  { %10139 = vmatprep.subr.mxu1 %v10970_v18 }
0x1a79   :  { %10132 = vmatmul.mubr.msk.f32.vlgmr.msra.gmra.mrb[38].mxu1 %vm341_vm5, %v3260_v20 }
0x1a7a   :  { %10141 = vmatprep.mubr.msk.f32.mxu1 %vm10971_vm4, %v10970_v18  ;;  %10140 = vmatpush3.msra.mxu1 %v11649_v55 }
0x1a7b   :  { %10149 = vmatprep.subr.mxu1 %v10970_v18 }
0x1b48   :  { %v3181_v26 = vpop.f32.mrb[36].mxu1 }
0x1b49   :  { %v10123_v19 = vpop.f32.mrb[37].mxu1  ;;  %10127 = vmatmul.mubr.msk.f32.vlgmr.msra.gmra.mrb[34].mxu0 %vm341_vm5, %v3181_v26 }
0x1b4a   :  { %10136 = vmatprep.mubr.msk.f32.mxu0 %vm10971_vm4, %v10970_v18 }
0x1b4c   :  { %v3333_v27 = vpop.f32.mrb[38].mxu1 }
0x1b4d   :  { %v3337_v28 = vmul.f32 0.35355338, %v3333_v27  ;;  %v10133_v29 = vpop.f32.mrb[39].mxu1 }
0x1b4f   :  { %v3338_v30 = vsel %vm228_vm8, -1e+10, %v3337_v28 }
0x1b50   :  { %v3339_v31 = vsel %vm341_vm5, %v3338_v30, -inf }
0x1b51   :  { %3340 = vmax.xlane.f32.xlu0 %v3339_v31 }
0x1b67   :  { %3353 = vrot.lane.b32.xlu0 %v11498_v61, %s12550_s1  ;;  %v11622_v61 = vadd.f32 %v11495_v59, %v11493_v58 }
0x1b6b   :  { %3678 = vrot.lane.b32.xlu0 %v11614_v32, %s10972_s24 }
0x1bde   :  { %v3341_v36 = vpop.xlane.xlu0 %3340 }
0x1bdf   :  { %v3342_v40 = vsub.f32 %v3338_v30, %v3341_v36 }
0x1be1   :  { %v3343_v42 = vmul.f32 1.442695, %v3342_v40 }
0x1be2   :  { %v3354_v16 = vpop.permute.xlu0 %3353 }
0x1be3   :  { %10759 = vpow2.f32 %v3343_v42  ;;  %10135 = vmatpush3.msra.mxu0 %v3354_v16 }
0x1be4   :  { %10144 = vmatprep.subr.mxu0 %v10970_v18 }
0x1be6   :  { %v3679_v59 = vpop.permute.xlu0 %3678 }
0x1bed   :  { %v10760_v44 = vpop.eup %10759 }
0x1bee   :  { %v3345_v45 = vsel %vm341_vm5, %v10760_v44, 0.0 }
0x1bef   :  { %3346 = vadd.xlane.f32.xlu1 %v3345_v45 }
0x1c00   :  { %3680 = vrot.lane.b32.xlu1 %v11622_v61, %s10972_s24 }
0x1c1c   :  { %v3254_v41 = vpop.f32.mrb[34].mxu0 }
0x1c1d   :  { %v11627_v62 = vadd.f32 %v3254_v41, %v11576_v63  ;;  %v10128_v46 = vpop.f32.mrb[35].mxu0 }
0x1c7c   :  { %v3347_v47 = vpop.xlane.xlu1 %3346 }
0x1c7d   :  { %10761 = vrcp.f32 %v3347_v47 }
0x1c80   :  { %v3681_v58 = vpop.permute.xlu1 %3680 }
0x1c87   :  { %v10762_v50 = vpop.eup %10761 }
0x1c88   :  { %v3349_v51 = vmul.f32 %v10762_v50, %v3347_v47 }
0x1c8a   :  { %v3350_v48 = vsub.f32 2.0, %v3349_v51 }
0x1c8c   :  { %v3351_v52 = vmul.f32 %v10762_v50, %v3350_v48 }
0x1c8e   :  { %v3352_v54 = vmul.f32 %v10760_v44, %v3351_v52 }
0x1c90   :  { %10137 = vmatmul.mubr.msk.f32.vlgmr.msra.gmra.mrb[36].mxu0 %vm341_vm5, %v3352_v54 }
0x1c91   :  { %10145 = vmatpush3.xpose.msk.msra.mxu0 %vm341_vm5, %v11622_v61  ;;  %10146 = vmatprep.mubr.msk.f32.mxu0 %vm10971_vm4, %v10970_v18 }
0x1c92   :  { %10154 = vmatprep.subr.mxu0 %v10970_v18 }
0x1c94   :  { %10147 = vmatmul.mubr.msk.f32.vlgmr.msra.gmra.mrb[38].mxu0 %vm341_vm5, %v11614_v32 }
0x1c95   :  { %10155 = vmatpush3.xpose.msk.msra.mxu0 %vm341_vm5, %v3681_v58  ;;  %10156 = vmatprep.mubr.msk.f32.mxu0 %vm10971_vm4, %v10970_v18 }
0x1c96   :  { %10164 = vmatprep.subr.mxu0 %v10970_v18 }
0x1c98   :  { %10157 = vmatmul.mubr.msk.f32.vlgmr.msra.gmra.mrb[40].mxu0 %vm341_vm5, %v3679_v59 }
0x1c99   :  { %10165 = vmatpush3.msra.mxu0 %v11550_v38  ;;  %10166 = vmatprep.mubr.msk.f32.mxu0 %vm10971_vm4, %v10970_v18  ;;  %v11657_v38 = vld [vmem:[%s12569_s28 + $0x1] ss:$0 sm:$0xff]  ;;  %s12572_s28 = smov 72  }
0x1c9a   :  { %10174 = vmatprep.subr.mxu0 %v10970_v18  ;;  %vm237_vm9 = vcmp.eq.f32.partialorder %v11657_v38, 0.0 }
0x1d63   :  { %v3425_v56 = vpop.f32.mrb[36].mxu0 }
0x1d64   :  { %v10138_v33 = vpop.f32.mrb[37].mxu0  ;;  %10142 = vmatmul.mubr.msk.f32.vlgmr.msra.gmra.mrb[40].mxu1 %vm341_vm5, %v3425_v56 }
0x1d65   :  { %10151 = vmatprep.mubr.msk.f32.mxu1 %vm10971_vm4, %v10970_v18 }
0x1d67   :  { %v3582_v60 = vpop.f32.mrb[38].mxu0 }
0x1d68   :  { %v3586_v63 = vmul.f32 0.35355338, %v3582_v60  ;;  %v10148_v37 = vpop.f32.mrb[39].mxu0 }
0x1d6a   :  { %v3587_v2 = vsel %vm237_vm9, -1e+10, %v3586_v63 }
0x1d6b   :  { %v3752_v39 = vpop.f32.mrb[40].mxu0  ;;  %v3588_v4 = vsel %vm341_vm5, %v3587_v2, -inf }
0x1d6c   :  { %v3756_v15 = vmul.f32 0.35355338, %v3752_v39  ;;  %3589 = vmax.xlane.f32.xlu1 %v3588_v4  ;;  %v10158_v5 = vpop.f32.mrb[41].mxu0 }
0x1d6e   :  { %v3757_v6 = vsel %vm237_vm9, -1e+10, %v3756_v15 }
0x1d6f   :  { %v3758_v7 = vsel %vm341_vm5, %v3757_v6, -inf }
0x1d70   :  { %3759 = vmax.xlane.f32.xlu0 %v3758_v7 }
0x1df9   :  { %v3590_v8 = vpop.xlane.xlu1 %3589 }
0x1dfa   :  { %v3591_v9 = vsub.f32 %v3587_v2, %v3590_v8 }
0x1dfc   :  { %v3592_v10 = vmul.f32 1.442695, %v3591_v9 }
0x1dfd   :  { %v3760_v11 = vpop.xlane.xlu0 %3759 }
0x1dfe   :  { %10763 = vpow2.f32 %v3592_v10  ;;  %v3761_v12 = vsub.f32 %v3757_v6, %v3760_v11 }
0x1e00   :  { %v3762_v34 = vmul.f32 1.442695, %v3761_v12 }
0x1e02   :  { %10765 = vpow2.f32 %v3762_v34 }
0x1e08   :  { %v10764_v13 = vpop.eup %10763 }
0x1e09   :  { %v3594_v1 = vsel %vm341_vm5, %v10764_v13, 0.0 }
0x1e0a   :  { %3595 = vadd.xlane.f32.xlu0 %v3594_v1 }
0x1e0c   :  { %v10766_v14 = vpop.eup %10765 }
0x1e0d   :  { %v3764_v53 = vsel %vm341_vm5, %v10766_v14, 0.0 }
0x1e0e   :  { %3765 = vadd.xlane.f32.xlu1 %v3764_v53 }
0x1e1f   :  { %3772 = vrot.lane.b32.xlu1 %v11622_v61, %s10974_s27 }
0x1e20   :  { %3602 = vrot.lane.b32.xlu0 %v11622_v61, %s10973_s26 }
0x1e23   :  { %3996 = vrot.lane.b32.xlu1 %v11622_v61, %s10978_s5 }
0x1e24   :  { %3994 = vrot.lane.b32.xlu0 %v11614_v32, %s10978_s5 }
0x1e37   :  { %v3498_v17 = vpop.f32.mrb[40].mxu1 }
0x1e38   :  { %v11679_v20 = vadd.f32 %v3498_v17, %v11627_v62  ;;  %v10143_v26 = vpop.f32.mrb[41].mxu1 }
0x1e97   :  { %v3596_v19 = vpop.xlane.xlu0 %3595 }
0x1e98   :  { %10767 = vrcp.f32 %v3596_v19 }
0x1e9b   :  { %v3766_v27 = vpop.xlane.xlu1 %3765  ;;  %v3603_v28 = vpop.permute.xlu0 %3602 }
0x1e9c   :  { %10769 = vrcp.f32 %v3766_v27  ;;  %10150 = vmatpush3.msra.mxu1 %v3603_v28 }
0x1e9d   :  { %10159 = vmatprep.subr.mxu1 %v10970_v18 }
0x1e9f   :  { %v3773_v41 = vpop.permute.xlu1 %3772 }
0x1ea2   :  { %v10768_v29 = vpop.eup %10767 }
0x1ea3   :  { %v3598_v30 = vmul.f32 %v10768_v29, %v3596_v19  ;;  %v3997_v51 = vpop.permute.xlu1 %3996 }
0x1ea5   :  { %v3599_v31 = vsub.f32 2.0, %v3598_v30  ;;  %v9494_v30 = vld [vmem:[%s12517_s13] ss:$0 sm:$0xff] }
0x1ea6   :  { %v10770_v36 = vpop.eup %10769 }
0x1ea7   :  { %v3600_v40 = vmul.f32 %v10768_v29, %v3599_v31  ;;  %v3768_v42 = vmul.f32 %v10770_v36, %v3766_v27  ;;  %v3509_v31 = vadd.f32 %v9494_v30, %v11679_v20 }
0x1ea9   :  { %v3601_v16 = vmul.f32 %v10764_v13, %v3600_v40  ;;  %v3769_v44 = vsub.f32 2.0, %v3768_v42  ;;  %v4483_v42 = vadd.f32 %v3509_v31, %v11469_v35 }
0x1eab   :  { %v3770_v45 = vmul.f32 %v10770_v36, %v3769_v44  ;;  %10152 = vmatmul.mubr.msk.f32.vlgmr.msra.gmra.mrb[42].mxu1 %vm341_vm5, %v3601_v16 }
0x1eac   :  { %10160 = vmatpush3.msra.mxu1 %v3773_v41  ;;  %10161 = vmatprep.mubr.msk.f32.mxu1 %vm10971_vm4, %v10970_v18 }
0x1ead   :  { %v3771_v62 = vmul.f32 %v10766_v14, %v3770_v45  ;;  %10169 = vmatprep.subr.mxu1 %v10970_v18 }
0x1eaf   :  { %10162 = vmatmul.mubr.msk.f32.vlgmr.msra.gmra.mrb[44].mxu1 %vm341_vm5, %v3771_v62 }
0x1eb0   :  { %10170 = vmatpush3.msra.mxu1 %v11558_v49  ;;  %10171 = vmatprep.mubr.msk.f32.mxu1 %vm10971_vm4, %v10970_v18  ;;  %v3995_v49 = vpop.permute.xlu0 %3994 }
0x1eb1   :  { %10179 = vmatprep.subr.mxu1 %v10970_v18 }
0x1f7e   :  { %v3674_v46 = vpop.f32.mrb[42].mxu1 }
0x1f7f   :  { %v10153_v47 = vpop.f32.mrb[43].mxu1  ;;  %10172 = vmatmul.mubr.msk.f32.vlgmr.msra.gmra.mrb[46].mxu1 %vm341_vm5, %v3674_v46 }
0x1f80   :  { %10181 = vmatprep.mubr.msk.f32.mxu1 %vm10971_vm4, %v10970_v18 }
0x1f82   :  { %v3844_v50 = vpop.f32.mrb[44].mxu1 }
0x1f83   :  { %v10163_v48 = vpop.f32.mrb[45].mxu1  ;;  %10167 = vmatmul.mubr.msk.f32.vlgmr.msra.gmra.mrb[42].mxu0 %vm341_vm5, %v3844_v50 }
0x1f84   :  { %10175 = vmatpush3.xpose.msk.msra.mxu0 %vm341_vm5, %v3997_v51  ;;  %10176 = vmatprep.mubr.msk.f32.mxu0 %vm10971_vm4, %v10970_v18 }
0x1f85   :  { %10184 = vmatprep.subr.mxu0 %v10970_v18 }
0x1f87   :  { %10177 = vmatmul.mubr.msk.f32.vlgmr.msra.gmra.mrb[44].mxu0 %vm341_vm5, %v3995_v49 }
0x1f88   :  { %10185 = vmatpush3.msra.mxu0 %v11600_v0  ;;  %10186 = vmatprep.mubr.msk.f32.mxu0 %vm10971_vm4, %v10970_v18 }
0x1f89   :  { %10194 = vmatprep.subr.mxu0 %v10970_v18 }
0x2052   :  { %v3990_v52 = vpop.f32.mrb[46].mxu1 }
0x2053   :  { %v10173_v54 = vpop.f32.mrb[47].mxu1 }
0x2056   :  { %v3917_v58 = vpop.f32.mrb[42].mxu0 }
0x2057   :  { %v11704_v59 = vadd.f32 %v3990_v52, %v3917_v58  ;;  %v10168_v56 = vpop.f32.mrb[43].mxu0 }
0x205a   :  { %v4068_v33 = vpop.f32.mrb[44].mxu0 }
0x205b   :  { %v4072_v60 = vmul.f32 0.35355338, %v4068_v33  ;;  %v10178_v63 = vpop.f32.mrb[45].mxu0 }
0x205d   :  { %v4073_v37 = vsel %vm237_vm9, -1e+10, %v4072_v60 }
0x205e   :  { %v4074_v2 = vsel %vm341_vm5, %v4073_v37, -inf }
0x205f   :  { %4075 = vmax.xlane.f32.xlu1 %v4074_v2 }
0x2070   :  { %4240 = vrot.lane.b32.xlu1 %v11622_v61, %s12548_s0 }
0x2074   :  { %4238 = vrot.lane.b32.xlu1 %v11614_v32, %s12548_s0  ;;  %s12571_s0 = smov 64  }
0x20ec   :  { %v4076_v0 = vpop.xlane.xlu1 %4075 }
0x20ed   :  { %v4077_v39 = vsub.f32 %v4073_v37, %v4076_v0 }
0x20ef   :  { %v4078_v4 = vmul.f32 1.442695, %v4077_v39 }
0x20f0   :  { %v4241_v11 = vpop.permute.xlu1 %4240 }
0x20f1   :  { %10771 = vpow2.f32 %v4078_v4 }
0x20f4   :  { %v4239_v34 = vpop.permute.xlu1 %4238 }
0x20fb   :  { %v10772_v15 = vpop.eup %10771 }
0x20fc   :  { %v4080_v5 = vsel %vm341_vm5, %v10772_v15, 0.0 }
0x20fd   :  { %4081 = vadd.xlane.f32.xlu0 %v4080_v5 }
0x2113   :  { %4088 = vrot.lane.b32.xlu0 %v11622_v61, %s10977_s30 }
0x218a   :  { %v4082_v6 = vpop.xlane.xlu0 %4081 }
0x218b   :  { %10773 = vrcp.f32 %v4082_v6 }
0x218e   :  { %v4089_v7 = vpop.permute.xlu0 %4088 }
0x218f   :  { %10180 = vmatpush3.msra.mxu1 %v4089_v7 }
0x2190   :  { %10189 = vmatprep.subr.mxu1 %v10970_v18 }
0x2195   :  { %v10774_v8 = vpop.eup %10773 }
0x2196   :  { %v4084_v9 = vmul.f32 %v10774_v8, %v4082_v6 }
0x2198   :  { %v4085_v32 = vsub.f32 2.0, %v4084_v9 }
0x219a   :  { %v4086_v10 = vmul.f32 %v10774_v8, %v4085_v32 }
0x219c   :  { %v4087_v12 = vmul.f32 %v10772_v15, %v4086_v10 }
0x219e   :  { %10182 = vmatmul.mubr.msk.f32.vlgmr.msra.gmra.mrb[48].mxu1 %vm341_vm5, %v4087_v12 }
0x219f   :  { %10190 = vmatpush3.xpose.msk.msra.mxu1 %vm341_vm5, %v4241_v11  ;;  %10191 = vmatprep.mubr.msk.f32.mxu1 %vm10971_vm4, %v10970_v18 }
0x21a0   :  { %10199 = vmatprep.subr.mxu1 %v10970_v18 }
0x21a2   :  { %10192 = vmatmul.mubr.msk.f32.vlgmr.msra.gmra.mrb[50].mxu1 %vm341_vm5, %v4239_v34  ;;  %v4523_v34 = vld [vmem:[%s12518_s14] sm:$0xff] }
0x21a3   :  { %10200 = vmatpush3.msra.mxu1 %v11649_v55  ;;  %10201 = vmatprep.mubr.msk.f32.mxu1 %vm10971_vm4, %v10970_v18 }
0x2271   :  { %v4160_v13 = vpop.f32.mrb[48].mxu1 }
0x2272   :  { %v10183_v1 = vpop.f32.mrb[49].mxu1  ;;  %10187 = vmatmul.mubr.msk.f32.vlgmr.msra.gmra.mrb[46].mxu0 %vm341_vm5, %v4160_v13  ;;  %v4524_v13 = vld [vmem:[%s12518_s14 + $0x8] sm:$0xff] }
0x2273   :  { %10196 = vmatprep.mubr.msk.f32.mxu0 %vm10971_vm4, %v10970_v18  ;;  %v10588_v1 = vpack.c.bf16 %v4524_v13, %v4523_v34 }
0x2275   :  { %v4312_v14 = vpop.f32.mrb[50].mxu1 }
0x2276   :  { %v4316_v53 = vmul.f32 0.35355338, %v4312_v14  ;;  %v10193_v17 = vpop.f32.mrb[51].mxu1 }
0x2277   :  { %v4618_v17 = vld [vmem:[%s12520_s16 + $0x8] sm:$0xff] }
0x2278   :  { %v4317_v26 = vsel %vm237_vm9, -1e+10, %v4316_v53  ;;  %v4617_v53 = vld [vmem:[%s12520_s16] sm:$0xff] }
0x2279   :  { %v4318_v19 = vsel %vm341_vm5, %v4317_v26, -inf }
0x227a   :  { %4319 = vmax.xlane.f32.xlu0 %v4318_v19  ;;  %v10596_v19 = vpack.c.bf16 %v4618_v17, %v4617_v53  ;;  %v11822_v17 = vsub.s32 2, %v11444_v22 }
0x227c   :  { %10597 = vmatprep.subr.bf16.mxu1 %v10596_v19 }
0x2290   :  { %4332 = vrot.lane.b32.xlu0 %v11622_v61, %s12550_s1  ;;  %v4485_v61 = vsel %vm256_vm3, %v4483_v42, 0.0  ;;  %s12575_s1 = smov 40  }
0x2307   :  { %v4320_v55 = vpop.xlane.xlu0 %4319 }
0x2308   :  { %v4321_v27 = vsub.f32 %v4317_v26, %v4320_v55  ;;  %v4619_v26 = vld [vmem:[%s12520_s16 + $0x10] sm:$0xff]  ;;  %v4620_v55 = vld [vmem:[%s12520_s16 + $0x18] sm:$0xff] }
0x230a   :  { %v4322_v28 = vmul.f32 1.442695, %v4321_v27  ;;  %v10600_v27 = vpack.c.bf16 %v4620_v55, %v4619_v26  ;;  %v10863_v26 = vld [vmem:[%s12522_s18] sm:$0x7] }
0x230b   :  { %v4333_v29 = vpop.permute.xlu0 %4332 }
0x230c   :  { %10775 = vpow2.f32 %v4322_v28  ;;  %10195 = vmatpush3.msra.mxu0 %v4333_v29  ;;  %v4621_v28 = vld [vmem:[%s12520_s16 + $0x20] sm:$0xff]  ;;  %v4622_v29 = vld [vmem:[%s12520_s16 + $0x28] sm:$0xff] }
0x230d   :  { %10589 = vmatprep.subr.bf16.mxu0 %v10588_v1 }
0x2316   :  { %v10776_v36 = vpop.eup %10775 }
0x2317   :  { %v4324_v40 = vsel %vm341_vm5, %v10776_v36, 0.0 }
0x2318   :  { %4325 = vadd.xlane.f32.xlu1 %v4324_v40 }
0x231c   :  { %4486 = vadd.xlane.f32.xlu1 %v4485_v61 }
0x2345   :  { %v4233_v16 = vpop.f32.mrb[46].mxu0 }
0x2346   :  { %v4237_v44 = vadd.f32 %v4233_v16, %v11704_v59  ;;  %v10188_v45 = vpop.f32.mrb[47].mxu0 }
0x2347   :  { %v4623_v45 = vld [vmem:[%s12520_s16 + $0x30] sm:$0xff] }
0x23a5   :  { %v4326_v41 = vpop.xlane.xlu1 %4325 }
0x23a6   :  { %10777 = vrcp.f32 %v4326_v41 }
0x23a9   :  { %v4487_v35 = vpop.xlane.xlu1 %4486 }
0x23aa   :  { %v4491_v49 = vmul.f32 0.03125, %v4487_v35 }
0x23ac   :  { %v4493_v59 = vsub.f32 %v4483_v42, %v4491_v49  ;;  %v9514_v49 = vld [vmem:[%s12521_s17] ss:$0 sm:$0xff] }
0x23ae   :  { %v4495_v63 = vmul.f32 %v4493_v59, %v4493_v59 }
0x23b0   :  { %v10778_v62 = vpop.eup %10777  ;;  %v4497_v37 = vsel %vm256_vm3, %v4495_v63, 0.0 }
0x23b1   :  { %v4328_v46 = vmul.f32 %v10778_v62, %v4326_v41  ;;  %v4624_v41 = vld [vmem:[%s12520_s16 + $0x38] sm:$0xff] }
0x23b3   :  { %v4329_v47 = vsub.f32 2.0, %v4328_v46  ;;  %v9511_v46 = vld [vmem:[%s12519_s15] ss:$0 sm:$0xff] }
0x23b5   :  { %v4330_v50 = vmul.f32 %v10778_v62, %v4329_v47  ;;  %v10608_v62 = vpack.c.bf16 %v4624_v41, %v4623_v45 }
0x23b7   :  { %v4331_v20 = vmul.f32 %v10776_v36, %v4330_v50 }
0x23b9   :  { %10197 = vmatmul.mubr.msk.f32.vlgmr.msra.gmra.mrb[48].mxu0 %vm341_vm5, %v4331_v20 }
0x23ba   :  { %10591 = vmatpush3.bf16.msra.mxu0 %v10588_v1 }
0x248c   :  { %v4404_v51 = vpop.f32.mrb[48].mxu0 }
0x248d   :  { %v10198_v48 = vpop.f32.mrb[49].mxu0  ;;  %10202 = vmatmul.mubr.msk.f32.vlgmr.msra.gmra.mrb[52].mxu1 %vm341_vm5, %v4404_v51 }
0x248e   :  { %10599 = vmatpush3.bf16.msra.mxu1 %v10596_v19  ;;  %v4744_v19 = vrot.slane %v10863_v26, %v11822_v17 }
0x248f   :  { %10601 = vmatprep.subr.bf16.mxu1 %v10600_v27 }
0x2492   :  { %10603 = vmatpush3.bf16.msra.mxu1 %v10600_v27 }
0x2560   :  { %v4477_v52 = vpop.f32.mrb[52].mxu1 }
0x2561   :  { %v4481_v54 = vadd.f32 %v4477_v52, %v4237_v44  ;;  %v10203_v58 = vpop.f32.mrb[53].mxu1 }
0x2563   :  { %v4482_v56 = vadd.f32 %v9494_v30, %v4481_v54  ;;  %v10604_v30 = vpack.c.bf16 %v4622_v29, %v4621_v28  ;;  %v10864_v28 = vld [vmem:[%s12523_s19] sm:$0x7] }
0x2564   :  { %v4750_v29 = vrot.slane %v10864_v28, %v11822_v17 }
0x2565   :  { %v4484_v33 = vadd.f32 %v4482_v56, %v11487_v57  ;;  %v11749_v57 = vsub.s32 1, %v11444_v22  ;;  %10605 = vmatprep.subr.bf16.mxu1 %v10604_v30 }
0x2566   :  { %10607 = vmatpush3.bf16.msra.mxu1 %v10604_v30 }
0x2567   :  { %v4488_v60 = vsel %vm256_vm3, %v4484_v33, 0.0  ;;  %v4514_v8 = vrot.slane %v11452_v24, %v11749_v57  ;;  %v4520_v10 = vrot.slane %v11457_v25, %v11749_v57  ;;  %v4525_v24 = vld [vmem:[%s12518_s14 + $0x10] sm:$0xff]  ;;  %v4526_v25 = vld [vmem:[%s12518_s14 + $0x18] sm:$0xff]  ;;  %10609 = vmatprep.subr.bf16.mxu1 %v10608_v62 }
0x2568   :  { %4489 = vadd.xlane.f32.xlu1 %v4488_v60  ;;  %v10592_v14 = vpack.c.bf16 %v4526_v25, %v4525_v24 }
0x256a   :  { %10593 = vmatprep.subr.bf16.mxu0 %v10592_v14  ;;  %10611 = vmatpush3.bf16.msra.mxu1 %v10608_v62 }
0x256b   :  { %10595 = vmatpush3.bf16.msra.mxu0 %v10592_v14  ;;  %10250 = vmatprep.subr.mxu1 %v10970_v18 }
0x256c   :  { %4498 = vadd.xlane.f32.xlu1 %v4497_v37 }
0x25f5   :  { %v4490_v2 = vpop.xlane.xlu1 %4489 }
0x25f6   :  { %v4492_v0 = vmul.f32 0.03125, %v4490_v2 }
0x25f8   :  { %v4494_v39 = vsub.f32 %v4484_v33, %v4492_v0 }
0x25f9   :  { %v4499_v4 = vpop.xlane.xlu1 %4498 }
0x25fa   :  { %v4503_v15 = vmul.f32 0.03125, %v4499_v4  ;;  %v4496_v5 = vmul.f32 %v4494_v39, %v4494_v39 }
0x25fc   :  { %v4505_v6 = vadd.f32 1e-05, %v4503_v15  ;;  %v4500_v7 = vsel %vm256_vm3, %v4496_v5, 0.0 }
0x25fd   :  { %4501 = vadd.xlane.f32.xlu1 %v4500_v7 }
0x25fe   :  { %10779 = vrsqrt.f32 %v4505_v6 }
0x2608   :  { %v10780_v9 = vpop.eup %10779 }
0x2609   :  { %v4509_v32 = vmul.f32 %v10780_v9, %v4493_v59  ;;  %v9519_v9 = vld [vmem:[%s12566_s6 + $0x20] sm:$0xff] }
0x260b   :  { %v4515_v11 = vmul.f32 %v4514_v8, %v4509_v32  ;;  %v9520_v32 = vld [vmem:[%s12566_s6 + $0x28] sm:$0xff] }
0x260d   :  { %v4521_v12 = vadd.f32 %v4520_v10, %v4515_v11  ;;  %v9521_v11 = vld [vmem:[%s12566_s6 + $0x30] sm:$0xff] }
0x260f   :  { %10212 = vmatprep.mubr.msk.f32.mxu0 %vm256_vm3, %v4521_v12 }
0x268a   :  { %v4502_v31 = vpop.xlane.xlu1 %4501 }
0x268b   :  { %v4504_v36 = vmul.f32 0.03125, %v4502_v31 }
0x268d   :  { %v4506_v40 = vadd.f32 1e-05, %v4504_v36 }
0x268f   :  { %10781 = vrsqrt.f32 %v4506_v40 }
0x2699   :  { %v10782_v42 = vpop.eup %10781 }
0x269a   :  { %v4510_v61 = vmul.f32 %v10782_v42, %v4494_v39 }
0x269c   :  { %v4516_v16 = vmul.f32 %v4514_v8, %v4510_v61  ;;  %v9529_v61 = vld [vmem:[%s12568_s2 + $0x1] ss:$0 sm:$0xff]  ;;  %s12570_s2 = smov 56  }
0x269e   :  { %v4522_v44 = vadd.f32 %v4520_v10, %v4516_v16  ;;  %v10612_v10 = vpack.c.bf16 %v9520_v32, %v9519_v9 }
0x26a0   :  { %10213 = vmatmul.mubr.msk.f32.vlgmr.msra.gmra.mrb[50].mxu0 %vm256_vm3, %v4522_v44  ;;  %10613 = vmatprep.subr.bf16.mxu0 %v10612_v10 }
0x26a1   :  { %10615 = vmatpush3.bf16.msra.mxu0 %v10612_v10 }
0x2773   :  { %v10214_v47 = vpop.f32.mrb[50].mxu0 }
0x2774   :  { %v4612_v50 = vadd.f32 %v10214_v47, %v9511_v46  ;;  %v4606_v20 = vpop.f32.mrb[51].mxu0 }
0x2775   :  { %v4607_v51 = vadd.f32 %v9511_v46, %v4606_v20 }
0x2776   :  { %v4616_v35 = vmax.f32 %v4612_v50, 0.0 }
0x2777   :  { %v4615_v48 = vmax.f32 %v4607_v51, 0.0 }
0x2779   :  { %10231 = vmatprep.mubr.msk.f32.mxu1 %vm127_vm0, %v4615_v48 }
0x277a   :  { %10232 = vmatmul.mubr.msk.f32.vlgmr.msra.gmra.mrb[54].mxu1 %vm127_vm0, %v4616_v35 }
0x277b   :  { %10252 = vmatprep.mubr.msk.f32.mxu1 %vm10971_vm4, %v10970_v18 }
0x284d   :  { %v10233_v52 = vpop.f32.mrb[54].mxu1 }
0x284e   :  { %v4710_v54 = vadd.f32 %v10233_v52, %v9514_v49  ;;  %v4704_v58 = vpop.f32.mrb[55].mxu1 }
0x284f   :  { %v4705_v59 = vadd.f32 %v9514_v49, %v4704_v58 }
0x2850   :  { %v4714_v56 = vadd.f32 %v4710_v54, %v4522_v44 }
0x2851   :  { %v4713_v33 = vadd.f32 %v4705_v59, %v4521_v12  ;;  %v9522_v12 = vld [vmem:[%s12566_s6 + $0x38] sm:$0xff]  ;;  %s12574_s6 = smov 48  }
0x2852   :  { %v4718_v60 = vsel %vm256_vm3, %v4714_v56, 0.0  ;;  %v10616_v34 = vpack.c.bf16 %v9522_v12, %v9521_v11 }
0x2853   :  { %4719 = vadd.xlane.f32.xlu0 %v4718_v60  ;;  %v4715_v63 = vsel %vm256_vm3, %v4713_v33, 0.0 }
0x2854   :  { %4716 = vadd.xlane.f32.xlu1 %v4715_v63  ;;  %10617 = vmatprep.subr.bf16.mxu0 %v10616_v34 }
0x2855   :  { %10619 = vmatpush3.bf16.msra.mxu0 %v10616_v34 }
0x2856   :  { %10245 = vmatprep.subr.mxu0 %v10970_v18 }
0x28e0   :  { %v4720_v37 = vpop.xlane.xlu0 %4719 }
0x28e1   :  { %v4722_v2 = vmul.f32 0.03125, %v4720_v37  ;;  %v4717_v0 = vpop.xlane.xlu1 %4716 }
0x28e2   :  { %v4721_v39 = vmul.f32 0.03125, %v4717_v0 }
0x28e3   :  { %v4724_v4 = vsub.f32 %v4714_v56, %v4722_v2 }
0x28e4   :  { %v4723_v15 = vsub.f32 %v4713_v33, %v4721_v39 }
0x28e5   :  { %v4726_v7 = vmul.f32 %v4724_v4, %v4724_v4 }
0x28e6   :  { %v4725_v5 = vmul.f32 %v4723_v15, %v4723_v15 }
0x28e7   :  { %v4730_v8 = vsel %vm256_vm3, %v4726_v7, 0.0 }
0x28e8   :  { %v4727_v6 = vsel %vm256_vm3, %v4725_v5, 0.0  ;;  %v11885_v5 = vld [vmem:[%s12512_s8 + $0x28] sm:$0xff] }
0x28e9   :  { %4728 = vadd.xlane.f32.xlu1 %v4727_v6 }
0x28ed   :  { %4731 = vadd.xlane.f32.xlu1 %v4730_v8 }
0x2976   :  { %v4729_v13 = vpop.xlane.xlu1 %4728 }
0x2977   :  { %v4733_v1 = vmul.f32 0.03125, %v4729_v13 }
0x2979   :  { %v4735_v24 = vadd.f32 1e-05, %v4733_v1 }
0x297a   :  { %v4732_v25 = vpop.xlane.xlu1 %4731 }
0x297b   :  { %10783 = vrsqrt.f32 %v4735_v24  ;;  %v4734_v14 = vmul.f32 0.03125, %v4732_v25 }
0x297d   :  { %v4736_v53 = vadd.f32 1e-05, %v4734_v14 }
0x297f   :  { %10785 = vrsqrt.f32 %v4736_v53  ;;  %v11900_v53 = vld [vmem:[%s12512_s8 + $0x20] sm:$0xff] }
0x2985   :  { %v10784_v55 = vpop.eup %10783 }
0x2986   :  { %v4739_v27 = vmul.f32 %v10784_v55, %v4723_v15 }
0x2988   :  { %v4745_v30 = vmul.f32 %v4744_v19, %v4739_v27 }
0x2989   :  { %v10786_v31 = vpop.eup %10785 }
0x298a   :  { %v4740_v36 = vmul.f32 %v10786_v31, %v4724_v4  ;;  %v11832_v40 = vadd.f32 %v4750_v29, %v4745_v30 }
0x298c   :  { %v4746_v22 = vmul.f32 %v4744_v19, %v4740_v36  ;;  %10242 = vmatprep.mubr.msk.f32.mxu0 %vm256_vm3, %v11832_v40 }
0x298e   :  { %v11836_v42 = vadd.f32 %v4750_v29, %v4746_v22 }
0x2990   :  { %10243 = vmatmul.mubr.msk.f32.vlgmr.msra.gmra.mrb[52].mxu0 %vm256_vm3, %v11836_v42 }
0x2991   :  { %10247 = vmatprep.mubr.msk.f32.mxu0 %vm10971_vm4, %v10970_v18 }
0x2a63   :  { %v10244_v16 = vpop.f32.mrb[52].mxu0 }
0x2a64   :  { %v11845_v44 = vadd.f32 %v10244_v16, %v9529_v61  ;;  %v4849_v45 = vpop.f32.mrb[53].mxu0 }
0x2a65   :  { %v11847_v41 = vadd.f32 %v9529_v61, %v4849_v45 }
0x2a67   :  { %5027 = vrot.lane.b32.xlu0 %v11847_v41, %s10972_s24  ;;  %4859 = vrot.lane.b32.xlu1 %v11847_v41, %s10973_s26 }
0x2a6b   :  { %5029 = vrot.lane.b32.xlu1 %v11847_v41, %s10974_s27 }
0x2ad9   :  { %v4860_v62 = vpop.permute.xlu1 %4859  ;;  %v5028_v47 = vpop.permute.xlu0 %5027 }
0x2ada   :  { %10246 = vmatpush3.xpose.msk.msra.mxu0 %vm341_vm5, %v4860_v62 }
0x2adb   :  { %10255 = vmatprep.subr.mxu0 %v10970_v18 }
0x2add   :  { %10248 = vmatmul.mubr.msk.f32.vlgmr.msra.gmra.mrb[54].mxu0 %vm341_vm5, %v11847_v41  ;;  %v5030_v46 = vpop.permute.xlu1 %5029 }
0x2ade   :  { %10256 = vmatpush3.xpose.msk.msra.mxu0 %vm341_vm5, %v5030_v46  ;;  %10257 = vmatprep.mubr.msk.f32.mxu0 %vm10971_vm4, %v10970_v18 }
0x2adf   :  { %10265 = vmatprep.subr.mxu0 %v10970_v18 }
0x2ae1   :  { %10258 = vmatmul.mubr.msk.f32.vlgmr.msra.gmra.mrb[56].mxu0 %vm341_vm5, %v5028_v47 }
0x2ae2   :  { %10267 = vmatprep.mubr.msk.f32.mxu0 %vm10971_vm4, %v10970_v18  ;;  %10266 = vmatpush3.msra.mxu0 %v11885_v5 }
0x2ae3   :  { %10275 = vmatprep.subr.mxu0 %v10970_v18 }
0x2bb0   :  { %v4931_v50 = vpop.f32.mrb[54].mxu0 }
0x2bb1   :  { %v4935_v20 = vmul.f32 0.35355338, %v4931_v50  ;;  %v10249_v51 = vpop.f32.mrb[55].mxu0 }
0x2bb3   :  { %v4936_v48 = vsel %vm217_vm6, -1e+10, %v4935_v20 }
0x2bb4   :  { %v5101_v35 = vpop.f32.mrb[56].mxu0  ;;  %v4937_v49 = vsel %vm341_vm5, %v4936_v48, -inf }
0x2bb5   :  { %v5105_v52 = vmul.f32 0.35355338, %v5101_v35  ;;  %4938 = vmax.xlane.f32.xlu1 %v4937_v49  ;;  %v10259_v54 = vpop.f32.mrb[57].mxu0 }
0x2bb7   :  { %v5106_v58 = vsel %vm217_vm6, -1e+10, %v5105_v52 }
0x2bb8   :  { %v5107_v59 = vsel %vm341_vm5, %v5106_v58, -inf }
0x2bb9   :  { %5108 = vmax.xlane.f32.xlu0 %v5107_v59 }
0x2bcf   :  { %5121 = vrot.lane.b32.xlu0 %v11847_v41, %s12570_s2 }
0x2c42   :  { %v4939_v56 = vpop.xlane.xlu1 %4938 }
0x2c43   :  { %v4940_v33 = vsub.f32 %v4936_v48, %v4939_v56 }
0x2c45   :  { %v4941_v60 = vmul.f32 1.442695, %v4940_v33 }
0x2c46   :  { %v5109_v63 = vpop.xlane.xlu0 %5108 }
0x2c47   :  { %10787 = vpow2.f32 %v4941_v60  ;;  %v5110_v37 = vsub.f32 %v5106_v58, %v5109_v63 }
0x2c49   :  { %v5111_v2 = vmul.f32 1.442695, %v5110_v37  ;;  %v11937_v37 = vld [vmem:[%s12512_s8 + $0x30] sm:$0xff] }
0x2c4a   :  { %v5122_v24 = vpop.permute.xlu0 %5121 }
0x2c4b   :  { %10789 = vpow2.f32 %v5111_v2 }
0x2c51   :  { %v10788_v0 = vpop.eup %10787 }
0x2c52   :  { %v4943_v39 = vsel %vm341_vm5, %v10788_v0, 0.0 }
0x2c53   :  { %4944 = vadd.xlane.f32.xlu1 %v4943_v39 }
0x2c55   :  { %v10790_v4 = vpop.eup %10789 }
0x2c56   :  { %v5113_v15 = vsel %vm341_vm5, %v10790_v4, 0.0 }
0x2c57   :  { %5114 = vadd.xlane.f32.xlu1 %v5113_v15 }
0x2c68   :  { %4951 = vrot.lane.b32.xlu1 %v11847_v41, %s12571_s0 }
0x2c6c   :  { %5345 = vrot.lane.b32.xlu1 %v11847_v41, %s10977_s30 }
0x2c70   :  { %5343 = vrot.lane.b32.xlu1 %v11847_v41, %s10978_s5 }
0x2ce0   :  { %v4945_v6 = vpop.xlane.xlu1 %4944 }
0x2ce1   :  { %10791 = vrcp.f32 %v4945_v6 }
0x2ce4   :  { %v5115_v7 = vpop.xlane.xlu1 %5114 }
0x2ce5   :  { %10793 = vrcp.f32 %v5115_v7 }
0x2ce8   :  { %v4952_v8 = vpop.permute.xlu1 %4951 }
0x2ce9   :  { %10251 = vmatpush3.msra.mxu1 %v4952_v8 }
0x2cea   :  { %10260 = vmatprep.subr.mxu1 %v10970_v18 }
0x2ceb   :  { %v10792_v9 = vpop.eup %10791 }
0x2cec   :  { %v4947_v32 = vmul.f32 %v10792_v9, %v4945_v6  ;;  %v5346_v55 = vpop.permute.xlu1 %5345 }
0x2cee   :  { %v4948_v10 = vsub.f32 2.0, %v4947_v32 }
0x2cef   :  { %v10794_v11 = vpop.eup %10793 }
0x2cf0   :  { %v4949_v12 = vmul.f32 %v10792_v9, %v4948_v10  ;;  %v5117_v34 = vmul.f32 %v10794_v11, %v5115_v7  ;;  %v5344_v29 = vpop.permute.xlu1 %5343 }
0x2cf2   :  { %v4950_v13 = vmul.f32 %v10788_v0, %v4949_v12  ;;  %v5118_v1 = vsub.f32 2.0, %v5117_v34 }
0x2cf4   :  { %v5119_v25 = vmul.f32 %v10794_v11, %v5118_v1  ;;  %10253 = vmatmul.mubr.msk.f32.vlgmr.msra.gmra.mrb[56].mxu1 %vm341_vm5, %v4950_v13 }
0x2cf5   :  { %10261 = vmatpush3.msra.mxu1 %v5122_v24  ;;  %10262 = vmatprep.mubr.msk.f32.mxu1 %vm10971_vm4, %v10970_v18 }
0x2cf6   :  { %v5120_v14 = vmul.f32 %v10790_v4, %v5119_v25  ;;  %10270 = vmatprep.subr.mxu1 %v10970_v18 }
0x2cf8   :  { %10263 = vmatmul.mubr.msk.f32.vlgmr.msra.gmra.mrb[58].mxu1 %vm341_vm5, %v5120_v14 }
0x2cf9   :  { %10272 = vmatprep.mubr.msk.f32.mxu1 %vm10971_vm4, %v10970_v18  ;;  %10271 = vmatpush3.msra.mxu1 %v11900_v53 }
0x2cfa   :  { %10280 = vmatprep.subr.mxu1 %v10970_v18 }
0x2dc7   :  { %v5023_v26 = vpop.f32.mrb[56].mxu1 }
0x2dc8   :  { %v10254_v19 = vpop.f32.mrb[57].mxu1  ;;  %10273 = vmatmul.mubr.msk.f32.vlgmr.msra.gmra.mrb[60].mxu1 %vm341_vm5, %v5023_v26 }
0x2dc9   :  { %10282 = vmatprep.mubr.msk.f32.mxu1 %vm10971_vm4, %v10970_v18 }
0x2dcb   :  { %v5193_v27 = vpop.f32.mrb[58].mxu1 }
0x2dcc   :  { %v10264_v28 = vpop.f32.mrb[59].mxu1  ;;  %10268 = vmatmul.mubr.msk.f32.vlgmr.msra.gmra.mrb[58].mxu0 %vm341_vm5, %v5193_v27 }
0x2dcd   :  { %10276 = vmatpush3.xpose.msk.msra.mxu0 %vm341_vm5, %v5346_v55  ;;  %10277 = vmatprep.mubr.msk.f32.mxu0 %vm10971_vm4, %v10970_v18  ;;  %v11978_v28 = vld [vmem:[%s12512_s8 + $0x38] sm:$0xff] }
0x2dce   :  { %10285 = vmatprep.subr.mxu0 %v10970_v18 }
0x2dd0   :  { %10278 = vmatmul.mubr.msk.f32.vlgmr.msra.gmra.mrb[60].mxu0 %vm341_vm5, %v5344_v29 }
0x2dd1   :  { %10287 = vmatprep.mubr.msk.f32.mxu0 %vm10971_vm4, %v10970_v18  ;;  %10286 = vmatpush3.msra.mxu0 %v11937_v37 }
0x2dd2   :  { %10295 = vmatprep.subr.mxu0 %v10970_v18 }
0x2e9b   :  { %v5339_v30 = vpop.f32.mrb[60].mxu1 }
0x2e9c   :  { %v10274_v31 = vpop.f32.mrb[61].mxu1 }
0x2e9f   :  { %v5266_v36 = vpop.f32.mrb[58].mxu0 }
0x2ea0   :  { %v5340_v22 = vadd.f32 %v5339_v30, %v5266_v36  ;;  %v10269_v61 = vpop.f32.mrb[59].mxu0 }
0x2ea3   :  { %v5417_v16 = vpop.f32.mrb[60].mxu0 }
0x2ea4   :  { %v5421_v45 = vmul.f32 0.35355338, %v5417_v16  ;;  %v10279_v62 = vpop.f32.mrb[61].mxu0 }
0x2ea6   :  { %v5422_v46 = vsel %vm217_vm6, -1e+10, %v5421_v45 }
0x2ea7   :  { %v5423_v47 = vsel %vm341_vm5, %v5422_v46, -inf }
0x2ea8   :  { %5424 = vmax.xlane.f32.xlu1 %v5423_v47 }
0x2eb9   :  { %5589 = vrot.lane.b32.xlu1 %v11847_v41, %s12572_s28 }
0x2ebd   :  { %5587 = vrot.lane.b32.xlu1 %v11847_v41, %s12573_s7 }
0x2f35   :  { %v5425_v50 = vpop.xlane.xlu1 %5424 }
0x2f36   :  { %v5426_v20 = vsub.f32 %v5422_v46, %v5425_v50 }
0x2f38   :  { %v5427_v51 = vmul.f32 1.442695, %v5426_v20 }
0x2f39   :  { %v5590_v33 = vpop.permute.xlu1 %5589 }
0x2f3a   :  { %10795 = vpow2.f32 %v5427_v51 }
0x2f3d   :  { %v5588_v63 = vpop.permute.xlu1 %5587 }
0x2f44   :  { %v10796_v48 = vpop.eup %10795 }
0x2f45   :  { %v5429_v35 = vsel %vm341_vm5, %v10796_v48, 0.0 }
0x2f46   :  { %5430 = vadd.xlane.f32.xlu0 %v5429_v35 }
0x2f5c   :  { %5437 = vrot.lane.b32.xlu0 %v11847_v41, %s12574_s6 }
0x2fd3   :  { %v5431_v49 = vpop.xlane.xlu0 %5430 }
0x2fd4   :  { %10797 = vrcp.f32 %v5431_v49 }
0x2fd7   :  { %v5438_v52 = vpop.permute.xlu0 %5437 }
0x2fd8   :  { %10281 = vmatpush3.msra.mxu1 %v5438_v52 }
0x2fd9   :  { %10290 = vmatprep.subr.mxu1 %v10970_v18 }
0x2fde   :  { %v10798_v54 = vpop.eup %10797 }
0x2fdf   :  { %v5433_v58 = vmul.f32 %v10798_v54, %v5431_v49 }
0x2fe1   :  { %v5434_v59 = vsub.f32 2.0, %v5433_v58 }
0x2fe3   :  { %v5435_v56 = vmul.f32 %v10798_v54, %v5434_v59 }
0x2fe5   :  { %v5436_v60 = vmul.f32 %v10796_v48, %v5435_v56 }
0x2fe7   :  { %10283 = vmatmul.mubr.msk.f32.vlgmr.msra.gmra.mrb[62].mxu1 %vm341_vm5, %v5436_v60 }
0x2fe8   :  { %10291 = vmatpush3.xpose.msk.msra.mxu1 %vm341_vm5, %v5590_v33  ;;  %10292 = vmatprep.mubr.msk.f32.mxu1 %vm10971_vm4, %v10970_v18 }
0x2fe9   :  { %10300 = vmatprep.subr.mxu1 %v10970_v18 }
0x2feb   :  { %10293 = vmatmul.mubr.msk.f32.vlgmr.msra.gmra.mrb[64].mxu1 %vm341_vm5, %v5588_v63 }
0x2fec   :  { %10302 = vmatprep.mubr.msk.f32.mxu1 %vm10971_vm4, %v10970_v18  ;;  %10301 = vmatpush3.msra.mxu1 %v11978_v28 }
0x2fed   :  { %10310 = vmatprep.subr.mxu1 %v10970_v18 }
0x30ba   :  { %v5509_v2 = vpop.f32.mrb[62].mxu1 }
0x30bb   :  { %v10284_v0 = vpop.f32.mrb[63].mxu1  ;;  %10288 = vmatmul.mubr.msk.f32.vlgmr.msra.gmra.mrb[62].mxu0 %vm341_vm5, %v5509_v2 }
0x30bc   :  { %10297 = vmatprep.mubr.msk.f32.mxu0 %vm10971_vm4, %v10970_v18 }
0x30be   :  { %v5661_v39 = vpop.f32.mrb[64].mxu1 }
0x30bf   :  { %v5665_v4 = vmul.f32 0.35355338, %v5661_v39  ;;  %v10294_v15 = vpop.f32.mrb[65].mxu1 }
0x30c1   :  { %v5666_v6 = vsel %vm217_vm6, -1e+10, %v5665_v4 }
0x30c2   :  { %v5667_v7 = vsel %vm341_vm5, %v5666_v6, -inf }
0x30c3   :  { %5668 = vmax.xlane.f32.xlu1 %v5667_v7 }
0x30d4   :  { %5839 = vrot.lane.b32.xlu1 %v11845_v44, %s10973_s26 }
0x30d8   :  { %6009 = vrot.lane.b32.xlu1 %v11845_v44, %s10974_s27 }
0x3150   :  { %v5669_v8 = vpop.xlane.xlu1 %5668 }
0x3151   :  { %v5670_v9 = vsub.f32 %v5666_v6, %v5669_v8 }
0x3153   :  { %v5671_v32 = vmul.f32 1.442695, %v5670_v9 }
0x3154   :  { %v5840_v19 = vpop.permute.xlu1 %5839 }
0x3155   :  { %10799 = vpow2.f32 %v5671_v32 }
0x315f   :  { %v10800_v10 = vpop.eup %10799 }
0x3160   :  { %v5673_v11 = vsel %vm341_vm5, %v10800_v10, 0.0 }
0x3161   :  { %5674 = vadd.xlane.f32.xlu0 %v5673_v11 }
0x3177   :  { %5681 = vrot.lane.b32.xlu0 %v11847_v41, %s12575_s1  ;;  %v6010_v41 = vpop.permute.xlu1 %6009 }
0x317b   :  { %6007 = vrot.lane.b32.xlu0 %v11845_v44, %s10972_s24 }
0x318e   :  { %v5582_v43 = vpop.f32.mrb[62].mxu0 }
0x318f   :  { %v11956_v12 = vadd.f32 %v5582_v43, %v5340_v22  ;;  %v10289_v34 = vpop.f32.mrb[63].mxu0 }
0x31ee   :  { %v5675_v13 = vpop.xlane.xlu0 %5674 }
0x31ef   :  { %10801 = vrcp.f32 %v5675_v13 }
0x31f2   :  { %v5682_v1 = vpop.permute.xlu0 %5681 }
0x31f3   :  { %10296 = vmatpush3.msra.mxu0 %v5682_v1 }
0x31f4   :  { %10305 = vmatprep.subr.mxu0 %v10970_v18 }
0x31f6   :  { %v6008_v27 = vpop.permute.xlu0 %6007 }
0x31f9   :  { %v10802_v24 = vpop.eup %10801 }
0x31fa   :  { %v5677_v25 = vmul.f32 %v10802_v24, %v5675_v13 }
0x31fc   :  { %v5678_v14 = vsub.f32 2.0, %v5677_v25 }
0x31fe   :  { %v5679_v26 = vmul.f32 %v10802_v24, %v5678_v14 }
0x3200   :  { %v5680_v55 = vmul.f32 %v10800_v10, %v5679_v26 }
0x3202   :  { %10298 = vmatmul.mubr.msk.f32.vlgmr.msra.gmra.mrb[64].mxu0 %vm341_vm5, %v5680_v55 }
0x3203   :  { %10306 = vmatpush3.xpose.msk.msra.mxu0 %vm341_vm5, %v5840_v19  ;;  %10307 = vmatprep.mubr.msk.f32.mxu0 %vm10971_vm4, %v10970_v18 }
0x3204   :  { %10315 = vmatprep.subr.mxu0 %v10970_v18 }
0x3206   :  { %10308 = vmatmul.mubr.msk.f32.vlgmr.msra.gmra.mrb[66].mxu0 %vm341_vm5, %v11845_v44 }
0x3207   :  { %10316 = vmatpush3.xpose.msk.msra.mxu0 %vm341_vm5, %v6010_v41  ;;  %10317 = vmatprep.mubr.msk.f32.mxu0 %vm10971_vm4, %v10970_v18 }
0x3208   :  { %10325 = vmatprep.subr.mxu0 %v10970_v18 }
0x320a   :  { %10318 = vmatmul.mubr.msk.f32.vlgmr.msra.gmra.mrb[68].mxu0 %vm341_vm5, %v6008_v27 }
0x320b   :  { %10326 = vmatpush3.msra.mxu0 %v11885_v5  ;;  %10327 = vmatprep.mubr.msk.f32.mxu0 %vm10971_vm4, %v10970_v18 }
0x320c   :  { %10335 = vmatprep.subr.mxu0 %v10970_v18 }
0x32d5   :  { %v5753_v29 = vpop.f32.mrb[64].mxu0 }
0x32d6   :  { %v10299_v30 = vpop.f32.mrb[65].mxu0  ;;  %10303 = vmatmul.mubr.msk.f32.vlgmr.msra.gmra.mrb[66].mxu1 %vm341_vm5, %v5753_v29 }
0x32d7   :  { %10312 = vmatprep.mubr.msk.f32.mxu1 %vm10971_vm4, %v10970_v18 }
0x32d9   :  { %v5911_v5 = vpop.f32.mrb[66].mxu0 }
0x32da   :  { %v5915_v31 = vmul.f32 0.35355338, %v5911_v5  ;;  %v10309_v36 = vpop.f32.mrb[67].mxu0 }
0x32dc   :  { %v5916_v22 = vsel %vm220_vm7, -1e+10, %v5915_v31 }
0x32dd   :  { %v6081_v61 = vpop.f32.mrb[68].mxu0  ;;  %v5917_v16 = vsel %vm341_vm5, %v5916_v22, -inf }
0x32de   :  { %v6085_v45 = vmul.f32 0.35355338, %v6081_v61  ;;  %5918 = vmax.xlane.f32.xlu1 %v5917_v16  ;;  %v10319_v62 = vpop.f32.mrb[69].mxu0 }
0x32e0   :  { %v6086_v46 = vsel %vm220_vm7, -1e+10, %v6085_v45 }
0x32e1   :  { %v6087_v47 = vsel %vm341_vm5, %v6086_v46, -inf }
0x32e2   :  { %6088 = vmax.xlane.f32.xlu0 %v6087_v47 }
0x32ef   :  { %5931 = vrot.lane.b32.xlu1 %v11845_v44, %s12571_s0 }
0x32f3   :  { %6325 = vrot.lane.b32.xlu1 %v11845_v44, %s10977_s30 }
0x32f7   :  { %6323 = vrot.lane.b32.xlu1 %v11845_v44, %s10978_s5 }
0x336b   :  { %v5919_v50 = vpop.xlane.xlu1 %5918 }
0x336c   :  { %v5920_v20 = vsub.f32 %v5916_v22, %v5919_v50 }
0x336e   :  { %v5921_v51 = vmul.f32 1.442695, %v5920_v20 }
0x336f   :  { %v5932_v48 = vpop.permute.xlu1 %5931  ;;  %v6089_v35 = vpop.xlane.xlu0 %6088 }
0x3370   :  { %10803 = vpow2.f32 %v5921_v51  ;;  %v6090_v49 = vsub.f32 %v6086_v46, %v6089_v35  ;;  %10311 = vmatpush3.msra.mxu1 %v5932_v48 }
0x3371   :  { %10320 = vmatprep.subr.mxu1 %v10970_v18 }
0x3372   :  { %v6091_v52 = vmul.f32 1.442695, %v6090_v49 }
0x3373   :  { %v6326_v13 = vpop.permute.xlu1 %6325 }
0x3374   :  { %10805 = vpow2.f32 %v6091_v52 }
0x337a   :  { %v10804_v54 = vpop.eup %10803 }
0x337b   :  { %v5923_v58 = vsel %vm341_vm5, %v10804_v54, 0.0 }
0x337c   :  { %5924 = vadd.xlane.f32.xlu0 %v5923_v58 }
0x337e   :  { %v10806_v59 = vpop.eup %10805 }
0x337f   :  { %v6093_v56 = vsel %vm341_vm5, %v10806_v59, 0.0 }
0x3380   :  { %6094 = vadd.xlane.f32.xlu0 %v6093_v56 }
0x3396   :  { %6101 = vrot.lane.b32.xlu0 %v11845_v44, %s12570_s2 }
0x33a9   :  { %v5826_v33 = vpop.f32.mrb[66].mxu1 }
0x33aa   :  { %v12003_v60 = vadd.f32 %v5826_v33, %v11956_v12  ;;  %v10304_v63 = vpop.f32.mrb[67].mxu1 }
0x3409   :  { %v5925_v2 = vpop.xlane.xlu0 %5924 }
0x340a   :  { %10807 = vrcp.f32 %v5925_v2 }
0x340d   :  { %v6095_v0 = vpop.xlane.xlu0 %6094 }
0x340e   :  { %10809 = vrcp.f32 %v6095_v0 }
0x3411   :  { %v6102_v11 = vpop.permute.xlu0 %6101 }
0x3414   :  { %v10808_v39 = vpop.eup %10807 }
0x3415   :  { %v5927_v4 = vmul.f32 %v10808_v39, %v5925_v2 }
0x3417   :  { %v5928_v15 = vsub.f32 2.0, %v5927_v4 }
0x3418   :  { %v10810_v6 = vpop.eup %10809 }
0x3419   :  { %v5929_v7 = vmul.f32 %v10808_v39, %v5928_v15  ;;  %v6097_v8 = vmul.f32 %v10810_v6, %v6095_v0  ;;  %v9548_v0 = vld [vmem:[%s12513_s9 + $0x1] ss:$0 sm:$0xff] }
0x341a   :  { %v5837_v39 = vadd.f32 %v9548_v0, %v12003_v60 }
0x341b   :  { %v5930_v9 = vmul.f32 %v10804_v54, %v5929_v7  ;;  %v6098_v32 = vsub.f32 2.0, %v6097_v8 }
0x341c   :  { %v6812_v15 = vadd.f32 %v5837_v39, %v11832_v40  ;;  %v10865_v40 = vld [vmem:[#allocation2] sm:$0xff] }
0x341d   :  { %v6099_v10 = vmul.f32 %v10810_v6, %v6098_v32  ;;  %10313 = vmatmul.mubr.msk.f32.vlgmr.msra.gmra.mrb[68].mxu1 %vm341_vm5, %v5930_v9 }
0x341e   :  { %10321 = vmatpush3.msra.mxu1 %v6102_v11  ;;  %10322 = vmatprep.mubr.msk.f32.mxu1 %vm10971_vm4, %v10970_v18 }
0x341f   :  { %v6100_v43 = vmul.f32 %v10806_v59, %v6099_v10  ;;  %10330 = vmatprep.subr.mxu1 %v10970_v18 }
0x3421   :  { %10323 = vmatmul.mubr.msk.f32.vlgmr.msra.gmra.mrb[70].mxu1 %vm341_vm5, %v6100_v43 }
0x3422   :  { %10331 = vmatpush3.msra.mxu1 %v11900_v53  ;;  %10332 = vmatprep.mubr.msk.f32.mxu1 %vm10971_vm4, %v10970_v18  ;;  %v6324_v53 = vpop.permute.xlu1 %6323 }
0x3423   :  { %10340 = vmatprep.subr.mxu1 %v10970_v18 }
0x34f0   :  { %v6003_v12 = vpop.f32.mrb[68].mxu1 }
0x34f1   :  { %v10314_v34 = vpop.f32.mrb[69].mxu1  ;;  %10333 = vmatmul.mubr.msk.f32.vlgmr.msra.gmra.mrb[72].mxu1 %vm341_vm5, %v6003_v12 }
0x34f2   :  { %10342 = vmatprep.mubr.msk.f32.mxu1 %vm10971_vm4, %v10970_v18 }
0x34f4   :  { %v6173_v1 = vpop.f32.mrb[70].mxu1 }
0x34f5   :  { %v10324_v24 = vpop.f32.mrb[71].mxu1  ;;  %10328 = vmatmul.mubr.msk.f32.vlgmr.msra.gmra.mrb[70].mxu0 %vm341_vm5, %v6173_v1 }
0x34f6   :  { %10336 = vmatpush3.xpose.msk.msra.mxu0 %vm341_vm5, %v6326_v13  ;;  %10337 = vmatprep.mubr.msk.f32.mxu0 %vm10971_vm4, %v10970_v18 }
0x34f7   :  { %10345 = vmatprep.subr.mxu0 %v10970_v18 }
0x34f9   :  { %10338 = vmatmul.mubr.msk.f32.vlgmr.msra.gmra.mrb[72].mxu0 %vm341_vm5, %v6324_v53 }
0x34fa   :  { %10346 = vmatpush3.msra.mxu0 %v11937_v37  ;;  %10347 = vmatprep.mubr.msk.f32.mxu0 %vm10971_vm4, %v10970_v18 }
0x34fb   :  { %10355 = vmatprep.subr.mxu0 %v10970_v18 }
0x35c4   :  { %v6319_v25 = vpop.f32.mrb[72].mxu1 }
0x35c5   :  { %v10334_v14 = vpop.f32.mrb[73].mxu1 }
0x35c8   :  { %v6246_v26 = vpop.f32.mrb[70].mxu0 }
0x35c9   :  { %v12027_v19 = vadd.f32 %v6319_v25, %v6246_v26  ;;  %v10329_v55 = vpop.f32.mrb[71].mxu0 }
0x35cc   :  { %v6397_v41 = vpop.f32.mrb[72].mxu0 }
0x35cd   :  { %v6401_v27 = vmul.f32 0.35355338, %v6397_v41  ;;  %v10339_v29 = vpop.f32.mrb[73].mxu0 }
0x35ce   :  { %v9565_v29 = vld [vmem:[%s12514_s10 + $0x20] sm:$0xff] }
0x35cf   :  { %v6402_v30 = vsel %vm220_vm7, -1e+10, %v6401_v27 }
0x35d0   :  { %v6403_v5 = vsel %vm341_vm5, %v6402_v30, -inf }
0x35d1   :  { %6404 = vmax.xlane.f32.xlu1 %v6403_v5 }
0x35e2   :  { %6569 = vrot.lane.b32.xlu1 %v11845_v44, %s12572_s28 }
0x35e6   :  { %6567 = vrot.lane.b32.xlu1 %v11845_v44, %s12573_s7 }
0x365e   :  { %v6405_v37 = vpop.xlane.xlu1 %6404 }
0x365f   :  { %v6406_v31 = vsub.f32 %v6402_v30, %v6405_v37  ;;  %v9566_v30 = vld [vmem:[%s12514_s10 + $0x28] sm:$0xff] }
0x3660   :  { %v10701_v5 = vpack.i.bf16 %v9566_v30, %v9565_v29 }
0x3661   :  { %v6407_v36 = vmul.f32 1.442695, %v6406_v31 }
0x3662   :  { %v6570_v20 = vpop.permute.xlu1 %6569 }
0x3663   :  { %10811 = vpow2.f32 %v6407_v36 }
0x3666   :  { %v6568_v48 = vpop.permute.xlu1 %6567 }
0x366d   :  { %v10812_v22 = vpop.eup %10811 }
0x366e   :  { %v6409_v61 = vsel %vm341_vm5, %v10812_v22, 0.0 }
0x366f   :  { %6410 = vadd.xlane.f32.xlu0 %v6409_v61 }
0x3685   :  { %6417 = vrot.lane.b32.xlu0 %v11845_v44, %s12574_s6 }
0x36fc   :  { %v6411_v16 = vpop.xlane.xlu0 %6410 }
0x36fd   :  { %10813 = vrcp.f32 %v6411_v16 }
0x3700   :  { %v6418_v45 = vpop.permute.xlu0 %6417 }
0x3701   :  { %10341 = vmatpush3.msra.mxu1 %v6418_v45 }
0x3702   :  { %10350 = vmatprep.subr.mxu1 %v10970_v18 }
0x3707   :  { %v10814_v62 = vpop.eup %10813 }
0x3708   :  { %v6413_v46 = vmul.f32 %v10814_v62, %v6411_v16 }
0x370a   :  { %v6414_v47 = vsub.f32 2.0, %v6413_v46  ;;  %v12087_v46 = vld [vmem:[%s12523_s19 + $0x4] sm:$0x7] }
0x370c   :  { %v6415_v50 = vmul.f32 %v10814_v62, %v6414_v47  ;;  %v12082_v62 = vld [vmem:[%s12522_s18 + $0x4] sm:$0x7] }
0x370d   :  { %v6843_v47 = vrot.slane %v12082_v62, %v11447_v23 }
0x370e   :  { %v6416_v51 = vmul.f32 %v10812_v22, %v6415_v50  ;;  %v9567_v50 = vld [vmem:[%s12514_s10 + $0x30] sm:$0xff] }
0x3710   :  { %10343 = vmatmul.mubr.msk.f32.vlgmr.msra.gmra.mrb[74].mxu1 %vm341_vm5, %v6416_v51 }
0x3711   :  { %10351 = vmatpush3.xpose.msk.msra.mxu1 %vm341_vm5, %v6570_v20  ;;  %10352 = vmatprep.mubr.msk.f32.mxu1 %vm10971_vm4, %v10970_v18  ;;  %v9568_v20 = vld [vmem:[%s12514_s10 + $0x38] sm:$0xff] }
0x3712   :  { %10360 = vmatprep.subr.mxu1 %v10970_v18 }
0x3714   :  { %10353 = vmatmul.mubr.msk.f32.vlgmr.msra.gmra.mrb[76].mxu1 %vm341_vm5, %v6568_v48 }
0x3715   :  { %10361 = vmatpush3.msra.mxu1 %v11978_v28  ;;  %10362 = vmatprep.mubr.msk.f32.mxu1 %vm10971_vm4, %v10970_v18 }
0x37e3   :  { %v6489_v35 = vpop.f32.mrb[74].mxu1 }
0x37e4   :  { %v10344_v49 = vpop.f32.mrb[75].mxu1  ;;  %10348 = vmatmul.mubr.msk.f32.vlgmr.msra.gmra.mrb[74].mxu0 %vm341_vm5, %v6489_v35  ;;  %v6849_v35 = vrot.slane %v12087_v46, %v11447_v23  ;;  %v12108_v23 = vld [vmem:[%s12515_s11 + $0x1] ss:$0 sm:$0xff] }
0x37e5   :  { %10357 = vmatprep.mubr.msk.f32.mxu0 %vm10971_vm4, %v10970_v18  ;;  %v10706_v49 = vpack.i.bf16 %v9568_v20, %v9567_v50 }
0x37e7   :  { %v6641_v52 = vpop.f32.mrb[76].mxu1 }
0x37e8   :  { %v6645_v54 = vmul.f32 0.35355338, %v6641_v52  ;;  %v10354_v58 = vpop.f32.mrb[77].mxu1 }
0x37ea   :  { %v6646_v59 = vsel %vm220_vm7, -1e+10, %v6645_v54 }
0x37eb   :  { %v6647_v56 = vsel %vm341_vm5, %v6646_v59, -inf }
0x37ec   :  { %6648 = vmax.xlane.f32.xlu0 %v6647_v56 }
0x3802   :  { %6661 = vrot.lane.b32.xlu0 %v11845_v44, %s12575_s1  ;;  %v6814_v44 = vsel %vm256_vm3, %v6812_v15, 0.0 }
0x3806   :  { %10702 = vrot.lane.b32.xlu0 %v10701_v5, %s10973_s26 }
0x380a   :  { %6969 = vrot.lane.b32.xlu0 %v12108_v23, %s10973_s26 }
0x3879   :  { %v6649_v28 = vpop.xlane.xlu0 %6648 }
0x387a   :  { %v6650_v33 = vsub.f32 %v6646_v59, %v6649_v28 }
0x387c   :  { %v6651_v63 = vmul.f32 1.442695, %v6650_v33  ;;  %v10620_v33 = vpack.c.bf16 %v9566_v30, %v9565_v29 }
0x387d   :  { %v6662_v2 = vpop.permute.xlu0 %6661 }
0x387e   :  { %10815 = vpow2.f32 %v6651_v63  ;;  %10356 = vmatpush3.msra.mxu0 %v6662_v2  ;;  %v10624_v63 = vpack.c.bf16 %v9568_v20, %v9567_v50 }
0x387f   :  { %10621 = vmatprep.subr.bf16.mxu0 %v10620_v33 }
0x3881   :  { %v10703_v58 = vpop.permute.xlu0 %10702 }
0x3882   :  { %v10705_v59 = vunpack.i.h.bf16 %v10703_v58  ;;  %v10704_v56 = vunpack.i.l.bf16 %v10703_v58 }
0x3884   :  { %v10628_v28 = vpack.c.bf16 %v10705_v59, %v10704_v56 }
0x3886   :  { %10629 = vmatprep.subr.bf16.mxu1 %v10628_v28 }
0x3888   :  { %v10816_v21 = vpop.eup %10815 }
0x3889   :  { %v6653_v4 = vsel %vm341_vm5, %v10816_v21, 0.0 }
0x388a   :  { %6654 = vadd.xlane.f32.xlu1 %v6653_v4 }
0x388e   :  { %6815 = vadd.xlane.f32.xlu1 %v6814_v44 }
0x38b7   :  { %v6562_v6 = vpop.f32.mrb[74].mxu0 }
0x38b8   :  { %v6566_v7 = vadd.f32 %v6562_v6, %v12027_v19  ;;  %v10349_v8 = vpop.f32.mrb[75].mxu0  ;;  %v10866_v6 = vld [vmem:[#allocation2 + $0x8] sm:$0xff] }
0x3917   :  { %v6655_v9 = vpop.xlane.xlu1 %6654 }
0x3918   :  { %10817 = vrcp.f32 %v6655_v9 }
0x391b   :  { %v6816_v13 = vpop.xlane.xlu1 %6815 }
0x391c   :  { %v6820_v1 = vmul.f32 0.03125, %v6816_v13 }
0x391e   :  { %v6822_v14 = vsub.f32 %v6812_v15, %v6820_v1 }
0x3920   :  { %v6824_v41 = vmul.f32 %v6822_v14, %v6822_v14 }
0x3922   :  { %v10818_v32 = vpop.eup %10817  ;;  %v6826_v27 = vsel %vm256_vm3, %v6824_v41, 0.0 }
0x3923   :  { %v6657_v10 = vmul.f32 %v10818_v32, %v6655_v9 }
0x3925   :  { %v6658_v11 = vsub.f32 2.0, %v6657_v10  ;;  %v12122_v10 = vpop.permute.xlu0 %6969 }
0x3927   :  { %v6659_v43 = vmul.f32 %v10818_v32, %v6658_v11 }
0x3929   :  { %v6660_v60 = vmul.f32 %v10816_v21, %v6659_v43 }
0x392b   :  { %10358 = vmatmul.mubr.msk.f32.vlgmr.msra.gmra.mrb[76].mxu0 %vm341_vm5, %v6660_v60 }
0x392c   :  { %10623 = vmatpush3.bf16.msra.mxu0 %v10620_v33 }
0x392d   :  { %10625 = vmatprep.subr.bf16.mxu0 %v10624_v63 }
0x3930   :  { %10627 = vmatpush3.bf16.msra.mxu0 %v10624_v63 }
0x3931   :  { %10387 = vmatprep.subr.mxu0 %v10970_v18 }
0x39fe   :  { %v6733_v12 = vpop.f32.mrb[76].mxu0 }
0x39ff   :  { %v10359_v34 = vpop.f32.mrb[77].mxu0  ;;  %10363 = vmatmul.mubr.msk.f32.vlgmr.msra.gmra.mrb[78].mxu1 %vm341_vm5, %v6733_v12 }
0x3a00   :  { %10384 = vmatprep.mubr.msk.f32.mxu1 %vm256_vm3, %v10865_v40  ;;  %10631 = vmatpush3.bf16.msra.mxu1 %v10628_v28 }
0x3ad2   :  { %v6806_v24 = vpop.f32.mrb[78].mxu1 }
0x3ad3   :  { %v6810_v53 = vadd.f32 %v6806_v24, %v6566_v7  ;;  %v10364_v25 = vpop.f32.mrb[79].mxu1 }
0x3ad5   :  { %v6811_v26 = vadd.f32 %v9548_v0, %v6810_v53 }
0x3ad7   :  { %v6813_v19 = vadd.f32 %v6811_v26, %v11836_v42 }
0x3ad9   :  { %v6817_v55 = vsel %vm256_vm3, %v6813_v19, 0.0 }
0x3ada   :  { %6818 = vadd.xlane.f32.xlu1 %v6817_v55 }
0x3ade   :  { %6827 = vadd.xlane.f32.xlu1 %v6826_v27 }
0x3b67   :  { %v6819_v37 = vpop.xlane.xlu1 %6818 }
0x3b68   :  { %v6821_v42 = vmul.f32 0.03125, %v6819_v37 }
0x3b6a   :  { %v6823_v31 = vsub.f32 %v6813_v19, %v6821_v42 }
0x3b6b   :  { %v6828_v36 = vpop.xlane.xlu1 %6827 }
0x3b6c   :  { %v6832_v22 = vmul.f32 0.03125, %v6828_v36  ;;  %v6825_v61 = vmul.f32 %v6823_v31, %v6823_v31 }
0x3b6e   :  { %v6834_v16 = vadd.f32 1e-05, %v6832_v22  ;;  %v6829_v45 = vsel %vm256_vm3, %v6825_v61, 0.0 }
0x3b6f   :  { %6830 = vadd.xlane.f32.xlu1 %v6829_v45 }
0x3b70   :  { %10819 = vrsqrt.f32 %v6834_v16 }
0x3b7a   :  { %v10820_v51 = vpop.eup %10819 }
0x3b7b   :  { %v6838_v48 = vmul.f32 %v10820_v51, %v6822_v14 }
0x3b7d   :  { %v6844_v52 = vmul.f32 %v6843_v47, %v6838_v48 }
0x3b7f   :  { %v12099_v54 = vadd.f32 %v6849_v35, %v6844_v52 }
0x3b80   :  { %10707 = vrot.lane.b32.xlu1 %v10706_v49, %s10973_s26 }
0x3b81   :  { %10373 = vmatprep.mubr.msk.f32.mxu0 %vm256_vm3, %v12099_v54 }
0x3bfc   :  { %v6831_v2 = vpop.xlane.xlu1 %6830 }
0x3bfd   :  { %v6833_v0 = vmul.f32 0.03125, %v6831_v2  ;;  %v12181_v2 = vld [vmem:[%s12516_s12 + $0x20] sm:$0xff] }
0x3bff   :  { %v6835_v39 = vadd.f32 1e-05, %v6833_v0  ;;  %v12187_v0 = vld [vmem:[%s12516_s12 + $0x28] sm:$0xff] }
0x3c00   :  { %v10708_v21 = vpop.permute.xlu1 %10707 }
0x3c01   :  { %10821 = vrsqrt.f32 %v6835_v39  ;;  %v10710_v4 = vunpack.i.h.bf16 %v10708_v21  ;;  %v10709_v15 = vunpack.i.l.bf16 %v10708_v21 }
0x3c03   :  { %v10632_v44 = vpack.c.bf16 %v10710_v4, %v10709_v15 }
0x3c05   :  { %10633 = vmatprep.subr.bf16.mxu1 %v10632_v44 }
0x3c06   :  { %10635 = vmatpush3.bf16.msra.mxu1 %v10632_v44 }
0x3c07   :  { %10392 = vmatprep.subr.mxu1 %v10970_v18 }
0x3c09   :  { %10385 = vmatmul.mubr.msk.f32.vlgmr.msra.gmra.mrb[80].mxu1 %vm256_vm3, %v10866_v6 }
0x3c0a   :  { %10394 = vmatprep.mubr.msk.f32.mxu1 %vm10971_vm4, %v10970_v18 }
0x3c0b   :  { %v10822_v7 = vpop.eup %10821 }
0x3c0c   :  { %v6839_v8 = vmul.f32 %v10822_v7, %v6823_v31 }
0x3c0e   :  { %v6845_v9 = vmul.f32 %v6843_v47, %v6839_v8 }
0x3c10   :  { %v12116_v32 = vadd.f32 %v6849_v35, %v6845_v9 }
0x3c12   :  { %10374 = vmatmul.mubr.msk.f32.vlgmr.msra.gmra.mrb[78].mxu0 %vm256_vm3, %v12116_v32 }
0x3c13   :  { %10389 = vmatprep.mubr.msk.f32.mxu0 %vm10971_vm4, %v10970_v18 }
0x3cdc   :  { %v12124_v11 = vpop.f32.mrb[80].mxu1 }
0x3cdd   :  { %v7038_v43 = vpop.f32.mrb[81].mxu1 }
0x3cde   :  { %v12127_v60 = vadd.f32 %v7038_v43, %v12122_v10 }
0x3ce0   :  { %7218 = vrot.lane.b32.xlu0 %v12127_v60, %s10972_s24  ;;  %10388 = vmatpush3.xpose.msk.msra.mxu0 %vm341_vm5, %v12127_v60 }
0x3ce1   :  { %10397 = vmatprep.subr.mxu0 %v10970_v18 }
0x3ce5   :  { %v12134_v12 = vpop.f32.mrb[78].mxu0 }
0x3ce6   :  { %v6944_v34 = vpop.f32.mrb[79].mxu0 }
0x3ce7   :  { %v12137_v40 = vadd.f32 %v12108_v23, %v6944_v34 }
0x3ce9   :  { %7216 = vrot.lane.b32.xlu0 %v12137_v40, %s10972_s24  ;;  %10390 = vmatmul.mubr.msk.f32.vlgmr.msra.gmra.mrb[80].mxu0 %vm341_vm5, %v12137_v40 }
0x3cea   :  { %10399 = vmatprep.mubr.msk.f32.mxu0 %vm10971_vm4, %v10970_v18 }
0x3d52   :  { %v7219_v13 = vpop.permute.xlu0 %7218 }
0x3d53   :  { %10398 = vmatpush3.xpose.msk.msra.mxu0 %vm341_vm5, %v7219_v13 }
0x3d54   :  { %10407 = vmatprep.subr.mxu0 %v10970_v18 }
0x3d5b   :  { %v7217_v1 = vpop.permute.xlu0 %7216 }
0x3d5c   :  { %10400 = vmatmul.mubr.msk.f32.vlgmr.msra.gmra.mrb[82].mxu0 %vm341_vm5, %v7217_v1 }
0x3d5d   :  { %10409 = vmatprep.mubr.msk.f32.mxu0 %vm10971_vm4, %v10970_v18  ;;  %10408 = vmatpush3.msra.mxu0 %v12187_v0 }
0x3d5e   :  { %10417 = vmatprep.subr.mxu0 %v10970_v18 }
0x3dbc   :  { %v7119_v24 = vpop.f32.mrb[80].mxu0 }
0x3dbd   :  { %v7123_v53 = vmul.f32 0.35355338, %v7119_v24  ;;  %v10391_v25 = vpop.f32.mrb[81].mxu0 }
0x3dbf   :  { %v7124_v14 = vsel %vm228_vm8, -1e+10, %v7123_v53 }
0x3dc0   :  { %v7125_v26 = vsel %vm341_vm5, %v7124_v14, -inf }
0x3dc1   :  { %7126 = vmax.xlane.f32.xlu0 %v7125_v26 }
0x3e2f   :  { %v7290_v19 = vpop.f32.mrb[82].mxu0 }
0x3e30   :  { %v7294_v55 = vmul.f32 0.35355338, %v7290_v19  ;;  %v10401_v41 = vpop.f32.mrb[83].mxu0 }
0x3e32   :  { %v7295_v27 = vsel %vm228_vm8, -1e+10, %v7294_v55 }
0x3e33   :  { %v7296_v29 = vsel %vm341_vm5, %v7295_v27, -inf }
0x3e34   :  { %7297 = vmax.xlane.f32.xlu1 %v7296_v29 }
0x3e45   :  { %7310 = vrot.lane.b32.xlu1 %v12127_v60, %s10974_s27 }
0x3e49   :  { %7539 = vrot.lane.b32.xlu1 %v12127_v60, %s10978_s5 }
0x3e4d   :  { %7537 = vrot.lane.b32.xlu1 %v12137_v40, %s10978_s5 }
0x3e4e   :  { %v7127_v30 = vpop.xlane.xlu0 %7126 }
0x3e4f   :  { %v7128_v5 = vsub.f32 %v7124_v14, %v7127_v30 }
0x3e51   :  { %v7129_v37 = vmul.f32 1.442695, %v7128_v5 }
0x3e53   :  { %10823 = vpow2.f32 %v7129_v37 }
0x3e5d   :  { %v10824_v42 = vpop.eup %10823 }
0x3e5e   :  { %v7131_v31 = vsel %vm341_vm5, %v10824_v42, 0.0 }
0x3e5f   :  { %7132 = vadd.xlane.f32.xlu0 %v7131_v31 }
0x3ec1   :  { %v7298_v36 = vpop.xlane.xlu1 %7297 }
0x3ec2   :  { %v7299_v22 = vsub.f32 %v7295_v27, %v7298_v36 }
0x3ec4   :  { %v7300_v61 = vmul.f32 1.442695, %v7299_v22  ;;  %v12228_v22 = vld [vmem:[%s12516_s12 + $0x30] sm:$0xff] }
0x3ec5   :  { %v7311_v58 = vpop.permute.xlu1 %7310 }
0x3ec6   :  { %10825 = vpow2.f32 %v7300_v61 }
0x3ec9   :  { %v7540_v4 = vpop.permute.xlu1 %7539 }
0x3ecd   :  { %v7538_v6 = vpop.permute.xlu1 %7537 }
0x3ed0   :  { %v10826_v16 = vpop.eup %10825 }
0x3ed1   :  { %v7302_v45 = vsel %vm341_vm5, %v10826_v16, 0.0 }
0x3ed2   :  { %7303 = vadd.xlane.f32.xlu0 %v7302_v45 }
0x3ee8   :  { %7139 = vrot.lane.b32.xlu0 %v12127_v60, %s10973_s26 }
0x3eec   :  { %v7133_v47 = vpop.xlane.xlu0 %7132 }
0x3eed   :  { %10827 = vrcp.f32 %v7133_v47 }
0x3ef7   :  { %v10828_v50 = vpop.eup %10827 }
0x3ef8   :  { %v7135_v20 = vmul.f32 %v10828_v50, %v7133_v47 }
0x3efa   :  { %v7136_v51 = vsub.f32 2.0, %v7135_v20 }
0x3efc   :  { %v7137_v48 = vmul.f32 %v10828_v50, %v7136_v51 }
0x3efe   :  { %v7138_v35 = vmul.f32 %v10824_v42, %v7137_v48  ;;  %v12240_v48 = vadd.f32 %v12124_v11, %v12122_v10 }
0x3f00   :  { %7215 = vst.msk [vmem:[#allocation8] sm:$0xff] %vm341_vm5, %v7138_v35 }
0x3f5f   :  { %v7304_v49 = vpop.xlane.xlu0 %7303 }
0x3f60   :  { %10829 = vrcp.f32 %v7304_v49 }
0x3f63   :  { %v7140_v52 = vpop.permute.xlu0 %7139 }
0x3f64   :  { %10393 = vmatpush3.msra.mxu1 %v7140_v52 }
0x3f65   :  { %10395 = vmatmul.mubr.msk.f32.vlgmr.msra.gmra.mrb[82].mxu1 %vm341_vm5, %v7138_v35  ;;  %10402 = vmatprep.subr.mxu1 %v10970_v18  ;;  %v12246_v35 = vadd.f32 %v12134_v12, %v12108_v23 }
0x3f66   :  { %10403 = vmatpush3.msra.mxu1 %v7311_v58  ;;  %10404 = vmatprep.mubr.msk.f32.mxu1 %vm10971_vm4, %v10970_v18 }
0x3f67   :  { %10412 = vmatprep.subr.mxu1 %v10970_v18 }
0x3f6a   :  { %v10830_v59 = vpop.eup %10829 }
0x3f6b   :  { %v7306_v56 = vmul.f32 %v10830_v59, %v7304_v49 }
0x3f6d   :  { %v7307_v28 = vsub.f32 2.0, %v7306_v56 }
0x3f6f   :  { %v7308_v33 = vmul.f32 %v10830_v59, %v7307_v28 }
0x3f71   :  { %v12172_v63 = vmul.f32 %v10826_v16, %v7308_v33 }
0x3f73   :  { %10405 = vmatmul.mubr.msk.f32.vlgmr.msra.gmra.mrb[84].mxu1 %vm341_vm5, %v12172_v63 }
0x3f74   :  { %10414 = vmatprep.mubr.msk.f32.mxu1 %vm10971_vm4, %v10970_v18  ;;  %10413 = vmatpush3.msra.mxu1 %v12181_v2 }
0x3f75   :  { %10422 = vmatprep.subr.mxu1 %v10970_v18 }
0x4038   :  { %v7211_v39 = vpop.f32.mrb[82].mxu1 }
0x4039   :  { %v10396_v21 = vpop.f32.mrb[83].mxu1  ;;  %10415 = vmatmul.mubr.msk.f32.vlgmr.msra.gmra.mrb[86].mxu1 %vm341_vm5, %v7211_v39 }
0x403a   :  { %10424 = vmatprep.mubr.msk.f32.mxu1 %vm10971_vm4, %v10970_v18 }
0x4046   :  { %v7382_v15 = vpop.f32.mrb[84].mxu1 }
0x4047   :  { %v10406_v44 = vpop.f32.mrb[85].mxu1  ;;  %10410 = vmatmul.mubr.msk.f32.vlgmr.msra.gmra.mrb[84].mxu0 %vm341_vm5, %v7382_v15 }
0x4048   :  { %10418 = vmatpush3.xpose.msk.msra.mxu0 %vm341_vm5, %v7540_v4  ;;  %10419 = vmatprep.mubr.msk.f32.mxu0 %vm10971_vm4, %v10970_v18  ;;  %v12279_v44 = vld [vmem:[%s12516_s12 + $0x38] sm:$0xff] }
0x4049   :  { %10427 = vmatprep.subr.mxu0 %v10970_v18 }
0x404b   :  { %10420 = vmatmul.mubr.msk.f32.vlgmr.msra.gmra.mrb[86].mxu0 %vm341_vm5, %v7538_v6 }
0x404c   :  { %10429 = vmatprep.mubr.msk.f32.mxu0 %vm10971_vm4, %v10970_v18  ;;  %10428 = vmatpush3.msra.mxu0 %v12228_v22 }
0x404d   :  { %10437 = vmatprep.subr.mxu0 %v10970_v18 }
0x410c   :  { %v7528_v7 = vpop.f32.mrb[86].mxu1 }
0x410d   :  { %v10416_v8 = vpop.f32.mrb[87].mxu1 }
0x411a   :  { %v7455_v9 = vpop.f32.mrb[84].mxu0 }
0x411b   :  { %v7529_v43 = vadd.f32 %v7528_v7, %v7455_v9  ;;  %v10411_v34 = vpop.f32.mrb[85].mxu0 }
0x411e   :  { %v7611_v13 = vpop.f32.mrb[86].mxu0 }
0x411f   :  { %v7615_v1 = vmul.f32 0.35355338, %v7611_v13  ;;  %v10421_v24 = vpop.f32.mrb[87].mxu0 }
0x4121   :  { %v7616_v53 = vsel %vm228_vm8, -1e+10, %v7615_v1 }
0x4122   :  { %v7617_v25 = vsel %vm341_vm5, %v7616_v53, -inf }
0x4123   :  { %7618 = vmax.xlane.f32.xlu0 %v7617_v25 }
0x4139   :  { %7631 = vrot.lane.b32.xlu0 %v12127_v60, %s10977_s30 }
0x413d   :  { %7786 = vrot.lane.b32.xlu0 %v12137_v40, %s12573_s7 }
0x41b0   :  { %v7619_v14 = vpop.xlane.xlu0 %7618 }
0x41b1   :  { %v7620_v26 = vsub.f32 %v7616_v53, %v7619_v14 }
0x41b3   :  { %v7621_v19 = vmul.f32 1.442695, %v7620_v26 }
0x41b4   :  { %v7632_v55 = vpop.permute.xlu0 %7631 }
0x41b5   :  { %10831 = vpow2.f32 %v7621_v19  ;;  %10423 = vmatpush3.msra.mxu1 %v7632_v55 }
0x41b6   :  { %10432 = vmatprep.subr.mxu1 %v10970_v18 }
0x41b8   :  { %v7787_v36 = vpop.permute.xlu0 %7786 }
0x41bf   :  { %v10832_v41 = vpop.eup %10831 }
0x41c0   :  { %v7623_v27 = vsel %vm341_vm5, %v10832_v41, 0.0 }
0x41c1   :  { %7624 = vadd.xlane.f32.xlu1 %v7623_v27 }
0x41d2   :  { %7788 = vrot.lane.b32.xlu1 %v12127_v60, %s12573_s7 }
0x424e   :  { %v7625_v29 = vpop.xlane.xlu1 %7624 }
0x424f   :  { %10833 = vrcp.f32 %v7625_v29 }
0x4252   :  { %v7789_v31 = vpop.permute.xlu1 %7788 }
0x4259   :  { %v10834_v30 = vpop.eup %10833 }
0x425a   :  { %v7627_v5 = vmul.f32 %v10834_v30, %v7625_v29 }
0x425c   :  { %v7628_v40 = vsub.f32 2.0, %v7627_v5 }
0x425e   :  { %v7629_v37 = vmul.f32 %v10834_v30, %v7628_v40 }
0x4260   :  { %v12214_v42 = vmul.f32 %v10832_v41, %v7629_v37 }
0x4262   :  { %10425 = vmatmul.mubr.msk.f32.vlgmr.msra.gmra.mrb[88].mxu1 %vm341_vm5, %v12214_v42 }
0x4263   :  { %10433 = vmatpush3.xpose.msk.msra.mxu1 %vm341_vm5, %v7789_v31  ;;  %10434 = vmatprep.mubr.msk.f32.mxu1 %vm10971_vm4, %v10970_v18 }
0x4264   :  { %10442 = vmatprep.subr.mxu1 %v10970_v18 }
0x4266   :  { %10435 = vmatmul.mubr.msk.f32.vlgmr.msra.gmra.mrb[90].mxu1 %vm341_vm5, %v7787_v36 }
0x4267   :  { %10444 = vmatprep.mubr.msk.f32.mxu1 %vm10971_vm4, %v10970_v18  ;;  %10443 = vmatpush3.msra.mxu1 %v12279_v44 }
0x4268   :  { %10452 = vmatprep.subr.mxu1 %v10970_v18 }
0x4335   :  { %v7703_v61 = vpop.f32.mrb[88].mxu1 }
0x4336   :  { %v10426_v16 = vpop.f32.mrb[89].mxu1  ;;  %10430 = vmatmul.mubr.msk.f32.vlgmr.msra.gmra.mrb[88].mxu0 %vm341_vm5, %v7703_v61 }
0x4337   :  { %10439 = vmatprep.mubr.msk.f32.mxu0 %vm10971_vm4, %v10970_v18 }
0x4339   :  { %v7860_v45 = vpop.f32.mrb[90].mxu1 }
0x433a   :  { %v7864_v47 = vmul.f32 0.35355338, %v7860_v45  ;;  %v10436_v50 = vpop.f32.mrb[91].mxu1 }
0x433c   :  { %v7865_v20 = vsel %vm228_vm8, -1e+10, %v7864_v47 }
0x433d   :  { %v7866_v51 = vsel %vm341_vm5, %v7865_v20, -inf }
0x433e   :  { %7867 = vmax.xlane.f32.xlu1 %v7866_v51 }
0x434f   :  { %8213 = vrot.lane.b32.xlu1 %v12240_v48, %s10972_s24 }
0x4353   :  { %8211 = vrot.lane.b32.xlu1 %v12246_v35, %s10972_s24 }
0x43cb   :  { %v7868_v49 = vpop.xlane.xlu1 %7867 }
0x43cc   :  { %v7869_v3 = vsub.f32 %v7865_v20, %v7868_v49 }
0x43ce   :  { %v7870_v52 = vmul.f32 1.442695, %v7869_v3 }
0x43d0   :  { %10835 = vpow2.f32 %v7870_v52 }
0x43da   :  { %v10836_v58 = vpop.eup %10835 }
0x43db   :  { %v7872_v59 = vsel %vm341_vm5, %v10836_v58, 0.0 }
0x43dc   :  { %7873 = vadd.xlane.f32.xlu0 %v7872_v59 }
0x43f2   :  { %7880 = vrot.lane.b32.xlu0 %v12127_v60, %s12572_s28  ;;  %v8214_v60 = vpop.permute.xlu1 %8213 }
0x43f6   :  { %v8212_v15 = vpop.permute.xlu1 %8211 }
0x4409   :  { %v7776_v10 = vpop.f32.mrb[88].mxu0 }
0x440a   :  { %v12253_v11 = vadd.f32 %v7776_v10, %v7529_v43  ;;  %v10431_v56 = vpop.f32.mrb[89].mxu0 }
0x4469   :  { %v7874_v23 = vpop.xlane.xlu0 %7873 }
0x446a   :  { %10837 = vrcp.f32 %v7874_v23 }
0x446d   :  { %v7881_v12 = vpop.permute.xlu0 %7880 }
0x446e   :  { %10438 = vmatpush3.msra.mxu0 %v7881_v12 }
0x446f   :  { %10447 = vmatprep.subr.mxu0 %v10970_v18 }
0x4474   :  { %v10838_v28 = vpop.eup %10837 }
0x4475   :  { %v7876_v33 = vmul.f32 %v10838_v28, %v7874_v23 }
0x4477   :  { %v7877_v39 = vsub.f32 2.0, %v7876_v33 }
0x4479   :  { %v7878_v21 = vmul.f32 %v10838_v28, %v7877_v39 }
0x447b   :  { %v12256_v4 = vmul.f32 %v10836_v58, %v7878_v21 }
0x447d   :  { %10440 = vmatmul.mubr.msk.f32.vlgmr.msra.gmra.mrb[90].mxu0 %vm341_vm5, %v12256_v4 }
0x447e   :  { %10448 = vmatpush3.xpose.msk.msra.mxu0 %vm341_vm5, %v12240_v48  ;;  %10449 = vmatprep.mubr.msk.f32.mxu0 %vm10971_vm4, %v10970_v18 }
0x447f   :  { %10457 = vmatprep.subr.mxu0 %v10970_v18 }
0x4481   :  { %10450 = vmatmul.mubr.msk.f32.vlgmr.msra.gmra.mrb[92].mxu0 %vm341_vm5, %v12246_v35 }
0x4482   :  { %10458 = vmatpush3.xpose.msk.msra.mxu0 %vm341_vm5, %v8214_v60  ;;  %10459 = vmatprep.mubr.msk.f32.mxu0 %vm10971_vm4, %v10970_v18 }
0x4483   :  { %10467 = vmatprep.subr.mxu0 %v10970_v18 }
0x4485   :  { %10460 = vmatmul.mubr.msk.f32.vlgmr.msra.gmra.mrb[94].mxu0 %vm341_vm5, %v8212_v15 }
0x4486   :  { %10468 = vmatpush3.msra.mxu0 %v12187_v0  ;;  %10469 = vmatprep.mubr.msk.f32.mxu0 %vm10971_vm4, %v10970_v18 }
0x4487   :  { %10477 = vmatprep.subr.mxu0 %v10970_v18 }
0x4550   :  { %v7952_v6 = vpop.f32.mrb[90].mxu0 }
0x4551   :  { %v10441_v7 = vpop.f32.mrb[91].mxu0  ;;  %10445 = vmatmul.mubr.msk.f32.vlgmr.msra.gmra.mrb[92].mxu1 %vm341_vm5, %v7952_v6 }
0x4552   :  { %10454 = vmatprep.mubr.msk.f32.mxu1 %vm10971_vm4, %v10970_v18 }
0x4554   :  { %v8114_v0 = vpop.f32.mrb[92].mxu0 }
0x4555   :  { %v8118_v8 = vmul.f32 0.35355338, %v8114_v0  ;;  %v10451_v9 = vpop.f32.mrb[93].mxu0 }
0x4557   :  { %v8119_v43 = vsel %vm237_vm9, -1e+10, %v8118_v8 }
0x4558   :  { %v8285_v34 = vpop.f32.mrb[94].mxu0  ;;  %v8120_v13 = vsel %vm341_vm5, %v8119_v43, -inf }
0x4559   :  { %v8289_v1 = vmul.f32 0.35355338, %v8285_v34  ;;  %8121 = vmax.xlane.f32.xlu0 %v8120_v13  ;;  %v10461_v24 = vpop.f32.mrb[95].mxu0 }
0x455b   :  { %v8290_v53 = vsel %vm237_vm9, -1e+10, %v8289_v1 }
0x455c   :  { %v8291_v25 = vsel %vm341_vm5, %v8290_v53, -inf }
0x455d   :  { %8292 = vmax.xlane.f32.xlu1 %v8291_v25 }
0x456e   :  { %8305 = vrot.lane.b32.xlu1 %v12240_v48, %s10974_s27 }
0x4572   :  { %8533 = vrot.lane.b32.xlu1 %v12240_v48, %s10978_s5 }
0x4576   :  { %8531 = vrot.lane.b32.xlu1 %v12246_v35, %s10978_s5 }
0x45e6   :  { %v8122_v14 = vpop.xlane.xlu0 %8121 }
0x45e7   :  { %v8123_v26 = vsub.f32 %v8119_v43, %v8122_v14 }
0x45e9   :  { %v8124_v19 = vmul.f32 1.442695, %v8123_v26 }
0x45ea   :  { %v8293_v55 = vpop.xlane.xlu1 %8292 }
0x45eb   :  { %10839 = vpow2.f32 %v8124_v19  ;;  %v8294_v41 = vsub.f32 %v8290_v53, %v8293_v55 }
0x45ed   :  { %v8295_v27 = vmul.f32 1.442695, %v8294_v41 }
0x45ee   :  { %v8306_v59 = vpop.permute.xlu1 %8305 }
0x45ef   :  { %10841 = vpow2.f32 %v8295_v27 }
0x45f2   :  { %v8534_v12 = vpop.permute.xlu1 %8533 }
0x45f5   :  { %v10840_v29 = vpop.eup %10839 }
0x45f6   :  { %v8126_v30 = vsel %vm341_vm5, %v10840_v29, 0.0 }
0x45f7   :  { %8127 = vadd.xlane.f32.xlu0 %v8126_v30  ;;  %v9596_v30 = vld [vmem:[%s12517_s13 + $0x1] ss:$0 sm:$0xff] }
0x45f9   :  { %v10842_v5 = vpop.eup %10841 }
0x45fa   :  { %v8297_v40 = vsel %vm341_vm5, %v10842_v5, 0.0 }
0x45fb   :  { %8298 = vadd.xlane.f32.xlu0 %v8297_v40 }
0x4611   :  { %8134 = vrot.lane.b32.xlu0 %v12240_v48, %s10973_s26 }
0x4624   :  { %v8025_v37 = vpop.f32.mrb[92].mxu1 }
0x4625   :  { %v12303_v31 = vadd.f32 %v8025_v37, %v12253_v11  ;;  %v10446_v36 = vpop.f32.mrb[93].mxu1 }
0x4627   :  { %v8041_v40 = vadd.f32 %v9596_v30, %v12303_v31 }
0x4684   :  { %v8128_v61 = vpop.xlane.xlu0 %8127 }
0x4685   :  { %10843 = vrcp.f32 %v8128_v61 }
0x4688   :  { %v8299_v16 = vpop.xlane.xlu0 %8298 }
0x4689   :  { %10845 = vrcp.f32 %v8299_v16 }
0x468c   :  { %v8135_v45 = vpop.permute.xlu0 %8134 }
0x468d   :  { %10453 = vmatpush3.msra.mxu1 %v8135_v45  ;;  %v9028_v45 = vadd.f32 %v8041_v40, %v12099_v54  ;;  %v9623_v40 = vld [vmem:[%s12520_s16 + $0x50] sm:$0xff] }
0x468e   :  { %10462 = vmatprep.subr.mxu1 %v10970_v18 }
0x468f   :  { %v10844_v47 = vpop.eup %10843 }
0x4690   :  { %v8130_v50 = vmul.f32 %v10844_v47, %v8128_v61 }
0x4692   :  { %v8131_v20 = vsub.f32 2.0, %v8130_v50 }
0x4693   :  { %v10846_v51 = vpop.eup %10845 }
0x4694   :  { %v8132_v49 = vmul.f32 %v10844_v47, %v8131_v20  ;;  %v8301_v3 = vmul.f32 %v10846_v51, %v8299_v16  ;;  %v9030_v47 = vsel %vm256_vm3, %v9028_v45, 0.0 }
0x4696   :  { %v8133_v52 = vmul.f32 %v10840_v29, %v8132_v49  ;;  %v8302_v58 = vsub.f32 2.0, %v8301_v3 }
0x4698   :  { %8210 = vst.msk [vmem:[#allocation8 + $0x8] sm:$0xff] %vm341_vm5, %v8133_v52  ;;  %v8303_v10 = vmul.f32 %v10846_v51, %v8302_v58  ;;  %10455 = vmatmul.mubr.msk.f32.vlgmr.msra.gmra.mrb[94].mxu1 %vm341_vm5, %v8133_v52 }
0x4699   :  { %10463 = vmatpush3.msra.mxu1 %v8306_v59  ;;  %10464 = vmatprep.mubr.msk.f32.mxu1 %vm10971_vm4, %v10970_v18 }
0x469a   :  { %v12310_v11 = vmul.f32 %v10842_v5, %v8303_v10  ;;  %10472 = vmatprep.subr.mxu1 %v10970_v18 }
0x469c   :  { %10465 = vmatmul.mubr.msk.f32.vlgmr.msra.gmra.mrb[96].mxu1 %vm341_vm5, %v12310_v11 }
0x469d   :  { %10473 = vmatpush3.msra.mxu1 %v12181_v2  ;;  %10474 = vmatprep.mubr.msk.f32.mxu1 %vm10971_vm4, %v10970_v18  ;;  %v8532_v2 = vpop.permute.xlu1 %8531 }
0x469e   :  { %10482 = vmatprep.subr.mxu1 %v10970_v18 }
0x476b   :  { %v8206_v56 = vpop.f32.mrb[94].mxu1 }
0x476c   :  { %v10456_v23 = vpop.f32.mrb[95].mxu1  ;;  %10475 = vmatmul.mubr.msk.f32.vlgmr.msra.gmra.mrb[98].mxu1 %vm341_vm5, %v8206_v56 }
0x476d   :  { %10484 = vmatprep.mubr.msk.f32.mxu1 %vm10971_vm4, %v10970_v18 }
0x476f   :  { %v8377_v28 = vpop.f32.mrb[96].mxu1 }
0x4770   :  { %v10466_v33 = vpop.f32.mrb[97].mxu1  ;;  %10470 = vmatmul.mubr.msk.f32.vlgmr.msra.gmra.mrb[96].mxu0 %vm341_vm5, %v8377_v28 }
0x4771   :  { %10478 = vmatpush3.xpose.msk.msra.mxu0 %vm341_vm5, %v8534_v12  ;;  %10479 = vmatprep.mubr.msk.f32.mxu0 %vm10971_vm4, %v10970_v18 }
0x4772   :  { %10487 = vmatprep.subr.mxu0 %v10970_v18 }
0x4774   :  { %10480 = vmatmul.mubr.msk.f32.vlgmr.msra.gmra.mrb[98].mxu0 %vm341_vm5, %v8532_v2 }
0x4775   :  { %10488 = vmatpush3.msra.mxu0 %v12228_v22  ;;  %10489 = vmatprep.mubr.msk.f32.mxu0 %vm10971_vm4, %v10970_v18 }
0x4776   :  { %10497 = vmatprep.subr.mxu0 %v10970_v18 }
0x483f   :  { %v8523_v39 = vpop.f32.mrb[98].mxu1 }
0x4840   :  { %v10476_v21 = vpop.f32.mrb[99].mxu1 }
0x4843   :  { %v8450_v60 = vpop.f32.mrb[96].mxu0 }
0x4844   :  { %v8524_v15 = vadd.f32 %v8523_v39, %v8450_v60  ;;  %v10471_v6 = vpop.f32.mrb[97].mxu0 }
0x4847   :  { %v8605_v7 = vpop.f32.mrb[98].mxu0 }
0x4848   :  { %v8609_v0 = vmul.f32 0.35355338, %v8605_v7  ;;  %v10481_v8 = vpop.f32.mrb[99].mxu0 }
0x484a   :  { %v8610_v9 = vsel %vm237_vm9, -1e+10, %v8609_v0 }
0x484b   :  { %v8611_v43 = vsel %vm341_vm5, %v8610_v9, -inf }
0x484c   :  { %8612 = vmax.xlane.f32.xlu0 %v8611_v43 }
0x4862   :  { %8625 = vrot.lane.b32.xlu0 %v12240_v48, %s10977_s30 }
0x4866   :  { %8779 = vrot.lane.b32.xlu0 %v12246_v35, %s12573_s7 }
0x48d9   :  { %v8613_v22 = vpop.xlane.xlu0 %8612 }
0x48da   :  { %v8614_v34 = vsub.f32 %v8610_v9, %v8613_v22 }
0x48dc   :  { %v8615_v13 = vmul.f32 1.442695, %v8614_v34 }
0x48dd   :  { %v8626_v1 = vpop.permute.xlu0 %8625 }
0x48de   :  { %10847 = vpow2.f32 %v8615_v13  ;;  %10483 = vmatpush3.msra.mxu1 %v8626_v1 }
0x48df   :  { %10492 = vmatprep.subr.mxu1 %v10970_v18 }
0x48e1   :  { %v8780_v27 = vpop.permute.xlu0 %8779 }
0x48e8   :  { %v10848_v24 = vpop.eup %10847 }
0x48e9   :  { %v8617_v53 = vsel %vm341_vm5, %v10848_v24, 0.0 }
0x48ea   :  { %8618 = vadd.xlane.f32.xlu1 %v8617_v53 }
0x48fb   :  { %8781 = vrot.lane.b32.xlu1 %v12240_v48, %s12573_s7 }
0x4977   :  { %v8619_v25 = vpop.xlane.xlu1 %8618 }
0x4978   :  { %10849 = vrcp.f32 %v8619_v25 }
0x497b   :  { %v8782_v41 = vpop.permute.xlu1 %8781 }
0x4982   :  { %v10850_v14 = vpop.eup %10849 }
0x4983   :  { %v8621_v26 = vmul.f32 %v10850_v14, %v8619_v25 }
0x4985   :  { %v8622_v35 = vsub.f32 2.0, %v8621_v26  ;;  %v9065_v26 = vrot.slane %v12087_v46, %v11749_v57 }
0x4987   :  { %v8623_v19 = vmul.f32 %v10850_v14, %v8622_v35 }
0x4989   :  { %v12343_v55 = vmul.f32 %v10848_v24, %v8623_v19 }
0x498b   :  { %10485 = vmatmul.mubr.msk.f32.vlgmr.msra.gmra.mrb[100].mxu1 %vm341_vm5, %v12343_v55 }
0x498c   :  { %10493 = vmatpush3.xpose.msk.msra.mxu1 %vm341_vm5, %v8782_v41  ;;  %10494 = vmatprep.mubr.msk.f32.mxu1 %vm10971_vm4, %v10970_v18  ;;  %v9613_v41 = vld [vmem:[%s12518_s14 + $0x20] sm:$0xff] }
0x498d   :  { %10502 = vmatprep.subr.mxu1 %v10970_v18 }
0x498f   :  { %10495 = vmatmul.mubr.msk.f32.vlgmr.msra.gmra.mrb[102].mxu1 %vm341_vm5, %v8780_v27  ;;  %v9614_v27 = vld [vmem:[%s12518_s14 + $0x28] sm:$0xff] }
0x4990   :  { %10503 = vmatpush3.msra.mxu1 %v12279_v44  ;;  %10504 = vmatprep.mubr.msk.f32.mxu1 %vm10971_vm4, %v10970_v18 }
0x4a5e   :  { %v8697_v29 = vpop.f32.mrb[100].mxu1 }
0x4a5f   :  { %v10486_v5 = vpop.f32.mrb[101].mxu1  ;;  %10490 = vmatmul.mubr.msk.f32.vlgmr.msra.gmra.mrb[100].mxu0 %vm341_vm5, %v8697_v29  ;;  %v10636_v29 = vpack.c.bf16 %v9614_v27, %v9613_v41 }
0x4a60   :  { %10499 = vmatprep.mubr.msk.f32.mxu0 %vm10971_vm4, %v10970_v18  ;;  %v9622_v5 = vld [vmem:[%s12520_s16 + $0x48] sm:$0xff] }
0x4a62   :  { %v8853_v37 = vpop.f32.mrb[102].mxu1 }
0x4a63   :  { %v8857_v36 = vmul.f32 0.35355338, %v8853_v37  ;;  %v10496_v61 = vpop.f32.mrb[103].mxu1 }
0x4a65   :  { %v8858_v44 = vsel %vm237_vm9, -1e+10, %v8857_v36  ;;  %v9624_v36 = vld [vmem:[%s12520_s16 + $0x58] sm:$0xff] }
0x4a66   :  { %v8859_v16 = vsel %vm341_vm5, %v8858_v44, -inf  ;;  %v10648_v61 = vpack.c.bf16 %v9624_v36, %v9623_v40  ;;  %v10868_v40 = vld [vmem:[%s12523_s19 + $0x4] sm:$0x7] }
0x4a67   :  { %8860 = vmax.xlane.f32.xlu1 %v8859_v16  ;;  %v9626_v16 = vld [vmem:[%s12520_s16 + $0x68] sm:$0xff] }
0x4a6b   :  { %9031 = vadd.xlane.f32.xlu1 %v9030_v47 }
0x4af4   :  { %v8861_v50 = vpop.xlane.xlu1 %8860 }
0x4af5   :  { %v8862_v20 = vsub.f32 %v8858_v44, %v8861_v50  ;;  %v9625_v44 = vld [vmem:[%s12520_s16 + $0x60] sm:$0xff] }
0x4af7   :  { %v8863_v51 = vmul.f32 1.442695, %v8862_v20 }
0x4af9   :  { %10851 = vpow2.f32 %v8863_v51 }
0x4b03   :  { %v10852_v18 = vpop.eup %10851 }
0x4b04   :  { %v8865_v31 = vsel %vm341_vm5, %v10852_v18, 0.0 }
0x4b05   :  { %8866 = vadd.xlane.f32.xlu0 %v8865_v31 }
0x4b1b   :  { %8873 = vrot.lane.b32.xlu0 %v12240_v48, %s12572_s28  ;;  %v9032_v48 = vpop.xlane.xlu1 %9031 }
0x4b1c   :  { %v9036_v33 = vmul.f32 0.03125, %v9032_v48  ;;  %v9630_v48 = vld [vmem:[%s12521_s17 + $0x1] ss:$0 sm:$0xff]  ;;  %s10984_s17 = smov 16  }
0x4b1e   :  { %v9038_v60 = vsub.f32 %v9028_v45, %v9036_v33  ;;  %v10652_v45 = vpack.c.bf16 %v9626_v16, %v9625_v44 }
0x4b20   :  { %v9040_v0 = vmul.f32 %v9038_v60, %v9038_v60 }
0x4b22   :  { %v9042_v8 = vsel %vm256_vm3, %v9040_v0, 0.0 }
0x4b32   :  { %v8770_v38 = vpop.f32.mrb[100].mxu0 }
0x4b33   :  { %v8774_v49 = vadd.f32 %v8770_v38, %v8524_v15  ;;  %v10491_v3 = vpop.f32.mrb[101].mxu0 }
0x4b34   :  { %v9628_v3 = vld [vmem:[%s12520_s16 + $0x78] sm:$0xff] }
0x4b92   :  { %v8867_v52 = vpop.xlane.xlu0 %8866 }
0x4b93   :  { %10853 = vrcp.f32 %v8867_v52 }
0x4b96   :  { %v8874_v54 = vpop.permute.xlu0 %8873 }
0x4b97   :  { %10498 = vmatpush3.msra.mxu0 %v8874_v54  ;;  %v9618_v54 = vld [vmem:[%s12519_s15 + $0x1] ss:$0 sm:$0xff]  ;;  %s10983_s15 = smov 24  }
0x4b98   :  { %10637 = vmatprep.subr.bf16.mxu0 %v10636_v29 }
0x4b9d   :  { %v10854_v58 = vpop.eup %10853 }
0x4b9e   :  { %v8869_v59 = vmul.f32 %v10854_v58, %v8867_v52 }
0x4ba0   :  { %v8870_v10 = vsub.f32 2.0, %v8869_v59 }
0x4ba2   :  { %v8871_v56 = vmul.f32 %v10854_v58, %v8870_v10 }
0x4ba4   :  { %v12370_v23 = vmul.f32 %v10852_v18, %v8871_v56 }
0x4ba6   :  { %10500 = vmatmul.mubr.msk.f32.vlgmr.msra.gmra.mrb[102].mxu0 %vm341_vm5, %v12370_v23 }
0x4ba7   :  { %10639 = vmatpush3.bf16.msra.mxu0 %v10636_v29 }
0x4c79   :  { %v8945_v12 = vpop.f32.mrb[102].mxu0 }
0x4c7a   :  { %v10501_v28 = vpop.f32.mrb[103].mxu0  ;;  %10505 = vmatmul.mubr.msk.f32.vlgmr.msra.gmra.mrb[104].mxu1 %vm341_vm5, %v8945_v12 }
0x4d4d   :  { %v9018_v2 = vpop.f32.mrb[104].mxu1 }
0x4d4e   :  { %v9022_v39 = vadd.f32 %v9018_v2, %v8774_v49  ;;  %v10506_v21 = vpop.f32.mrb[105].mxu1  ;;  %v9627_v49 = vld [vmem:[%s12520_s16 + $0x70] sm:$0xff] }
0x4d4f   :  { %v10656_v52 = vpack.c.bf16 %v9628_v3, %v9627_v49 }
0x4d50   :  { %v9027_v15 = vadd.f32 %v9596_v30, %v9022_v39  ;;  %v9621_v30 = vld [vmem:[%s12520_s16 + $0x40] sm:$0xff]  ;;  %s12576_s16 = smov 8  }
0x4d51   :  { %v10644_v37 = vpack.c.bf16 %v9622_v5, %v9621_v30 }
0x4d52   :  { %v9029_v6 = vadd.f32 %v9027_v15, %v12116_v32  ;;  %v9059_v32 = vrot.slane %v12082_v62, %v11749_v57  ;;  %v9615_v62 = vld [vmem:[%s12518_s14 + $0x30] sm:$0xff]  ;;  %v9616_v57 = vld [vmem:[%s12518_s14 + $0x38] sm:$0xff] }
0x4d53   :  { %v10640_v46 = vpack.c.bf16 %v9616_v57, %v9615_v62  ;;  %10645 = vmatprep.subr.bf16.mxu1 %v10644_v37 }
0x4d54   :  { %v9033_v7 = vsel %vm256_vm3, %v9029_v6, 0.0  ;;  %10647 = vmatpush3.bf16.msra.mxu1 %v10644_v37  ;;  %v9299_v37 = vrot.slane %v10868_v40, %v11822_v17 }
0x4d55   :  { %9034 = vadd.xlane.f32.xlu1 %v9033_v7  ;;  %10641 = vmatprep.subr.bf16.mxu0 %v10640_v46 }
0x4d56   :  { %10643 = vmatpush3.bf16.msra.mxu0 %v10640_v46  ;;  %10649 = vmatprep.subr.bf16.mxu1 %v10648_v61 }
0x4d58   :  { %10651 = vmatpush3.bf16.msra.mxu1 %v10648_v61 }
0x4d59   :  { %9043 = vadd.xlane.f32.xlu1 %v9042_v8  ;;  %10653 = vmatprep.subr.bf16.mxu1 %v10652_v45 }
0x4d5c   :  { %10655 = vmatpush3.bf16.msra.mxu1 %v10652_v45 }
0x4d5d   :  { %10657 = vmatprep.subr.bf16.mxu1 %v10656_v52 }
0x4d60   :  { %10659 = vmatpush3.bf16.msra.mxu1 %v10656_v52 }
0x4de2   :  { %v9035_v9 = vpop.xlane.xlu1 %9034 }
0x4de3   :  { %v9037_v43 = vmul.f32 0.03125, %v9035_v9 }
0x4de5   :  { %v9039_v22 = vsub.f32 %v9029_v6, %v9037_v43 }
0x4de6   :  { %v9044_v34 = vpop.xlane.xlu1 %9043 }
0x4de7   :  { %v9048_v13 = vmul.f32 0.03125, %v9044_v34  ;;  %v9041_v1 = vmul.f32 %v9039_v22, %v9039_v22 }
0x4de9   :  { %v9050_v24 = vadd.f32 1e-05, %v9048_v13  ;;  %v9045_v53 = vsel %vm256_vm3, %v9041_v1, 0.0 }
0x4dea   :  { %9046 = vadd.xlane.f32.xlu1 %v9045_v53 }
0x4deb   :  { %10855 = vrsqrt.f32 %v9050_v24 }
0x4df5   :  { %v10856_v25 = vpop.eup %10855 }
0x4df6   :  { %v9054_v14 = vmul.f32 %v10856_v25, %v9038_v60 }
0x4df8   :  { %v9060_v35 = vmul.f32 %v9059_v32, %v9054_v14 }
0x4dfa   :  { %v9066_v19 = vadd.f32 %v9065_v26, %v9060_v35 }
0x4dfc   :  { %10515 = vmatprep.mubr.msk.f32.mxu0 %vm256_vm3, %v9066_v19 }
0x4e77   :  { %v9047_v47 = vpop.xlane.xlu1 %9046 }
0x4e78   :  { %v9049_v50 = vmul.f32 0.03125, %v9047_v47 }
0x4e7a   :  { %v9051_v20 = vadd.f32 1e-05, %v9049_v50 }
0x4e7c   :  { %10857 = vrsqrt.f32 %v9051_v20 }
0x4e86   :  { %v10858_v51 = vpop.eup %10857 }
0x4e87   :  { %v9055_v18 = vmul.f32 %v10858_v51, %v9039_v22 }
0x4e89   :  { %v9061_v31 = vmul.f32 %v9059_v32, %v9055_v18  ;;  %v9303_v32 = vld [vmem:[%s12524_s20 + $0x8] sm:$0xff] }
0x4e8b   :  { %v9067_v38 = vadd.f32 %v9065_v26, %v9061_v31 }
0x4e8d   :  { %10516 = vmatmul.mubr.msk.f32.vlgmr.msra.gmra.mrb[104].mxu0 %vm256_vm3, %v9067_v38 }
0x4f60   :  { %v10517_v58 = vpop.f32.mrb[104].mxu0 }
0x4f61   :  { %v9159_v59 = vadd.f32 %v10517_v58, %v9618_v54  ;;  %v9153_v10 = vpop.f32.mrb[105].mxu0 }
0x4f62   :  { %v9154_v56 = vadd.f32 %v9618_v54, %v9153_v10 }
0x4f63   :  { %v9163_v28 = vmax.f32 %v9159_v59, 0.0 }
0x4f64   :  { %v9162_v12 = vmax.f32 %v9154_v56, 0.0 }
0x4f66   :  { %10534 = vmatprep.mubr.msk.f32.mxu1 %vm127_vm0, %v9162_v12 }
0x4f67   :  { %10535 = vmatmul.mubr.msk.f32.vlgmr.msra.gmra.mrb[106].mxu1 %vm127_vm0, %v9163_v28 }
0x503a   :  { %v10536_v33 = vpop.f32.mrb[106].mxu1 }
0x503b   :  { %v9259_v2 = vadd.f32 %v10536_v33, %v9630_v48  ;;  %v9253_v39 = vpop.f32.mrb[107].mxu1 }
0x503c   :  { %v9254_v21 = vadd.f32 %v9630_v48, %v9253_v39 }
0x503d   :  { %v9263_v60 = vadd.f32 %v9259_v2, %v9067_v38 }
0x503e   :  { %v9262_v15 = vadd.f32 %v9254_v21, %v9066_v19 }
0x503f   :  { %v9267_v6 = vsel %vm256_vm3, %v9263_v60, 0.0 }
0x5040   :  { %9268 = vadd.xlane.f32.xlu0 %v9267_v6  ;;  %v9264_v7 = vsel %vm256_vm3, %v9262_v15, 0.0 }
0x5041   :  { %9265 = vadd.xlane.f32.xlu1 %v9264_v7 }
0x5056   :  { %8030 = vrot.lane.b32.xlu0 %v12256_v4, %s10983_s15  ;;  %v9302_v4 = vld [vmem:[%s12524_s20] sm:$0xff] }
0x5057   :  { %v10660_v25 = vpack.c.bf16 %v9303_v32, %v9302_v4 }
0x5059   :  { %10661 = vmatprep.subr.bf16.mxu0 %v10660_v25 }
0x505a   :  { %10663 = vmatpush3.bf16.msra.mxu0 %v10660_v25 }
0x50cd   :  { %v9269_v0 = vpop.xlane.xlu0 %9268 }
0x50ce   :  { %v9271_v8 = vmul.f32 0.03125, %v9269_v0  ;;  %v9266_v9 = vpop.xlane.xlu1 %9265 }
0x50cf   :  { %v9270_v43 = vmul.f32 0.03125, %v9266_v9 }
0x50d0   :  { %v9273_v22 = vsub.f32 %v9263_v60, %v9271_v8 }
0x50d1   :  { %v9272_v34 = vsub.f32 %v9262_v15, %v9270_v43  ;;  %v8031_v62 = vpop.permute.xlu0 %8030 }
0x50d2   :  { %v9275_v24 = vmul.f32 %v9273_v22, %v9273_v22 }
0x50d3   :  { %v9274_v13 = vmul.f32 %v9272_v34, %v9272_v34 }
0x50d4   :  { %v9279_v53 = vsel %vm256_vm3, %v9275_v24, 0.0 }
0x50d5   :  { %v9276_v1 = vsel %vm256_vm3, %v9274_v13, 0.0 }
0x50d6   :  { %9277 = vadd.xlane.f32.xlu1 %v9276_v1 }
0x50da   :  { %9280 = vadd.xlane.f32.xlu1 %v9279_v53 }
0x50eb   :  { %7532 = vrot.lane.b32.xlu1 %v12172_v63, %s12576_s16  ;;  %v9304_v63 = vld [vmem:[%s12524_s20 + $0x10] sm:$0xff] }
0x50ef   :  { %7781 = vrot.lane.b32.xlu1 %v12214_v42, %s10984_s17  ;;  %v9305_v42 = vld [vmem:[%s12524_s20 + $0x18] sm:$0xff] }
0x50f3   :  { %8527 = vrot.lane.b32.xlu1 %v12310_v11, %s12576_s16  ;;  %v10664_v11 = vpack.c.bf16 %v9305_v42, %v9304_v63 }
0x50f5   :  { %10665 = vmatprep.subr.bf16.mxu0 %v10664_v11 }
0x50f6   :  { %10667 = vmatpush3.bf16.msra.mxu0 %v10664_v11 }
0x50f7   :  { %8775 = vrot.lane.b32.xlu1 %v12343_v55, %s10984_s17 }
0x50fb   :  { %9023 = vrot.lane.b32.xlu1 %v12370_v23, %s10983_s15  ;;  %v10867_v23 = vld [vmem:[%s12522_s18 + $0x4] sm:$0x7]  ;;  %s10985_s18 = smov [#allocation8]  }
0x50fc   :  { %v9293_v57 = vrot.slane %v10867_v23, %v11822_v17  ;;  %s9413_s19 = sshll.u32 %s10985_s18, 4  ;;  %s9414_s19 = int_to_ptr.vmem [resolvable:$true] %s9413_s19 }
0x50fd   :  { %s10913_s3 = scalar_lea.vmem %s9414_s19, 256  ;;  %p10918_p3 = scmp.lt.s32.totalorder %s9414_s19, %s9414_s19 }
0x50fe   :  { %p10914_p2 = scmp.ne.s32.totalorder %s9414_s19, %s10913_s3  ;;  %p10919_p4 = scmp.lt.s32.totalorder %s10913_s3, %s10913_s3 }
0x5100   :  { %p10920_p5 = por %p10919_p4, %p10918_p3 }
0x5102   :  { %p10921_p6 = pnand %p10920_p5, %p10914_p2 }
0x5163   :  { %v9278_v14 = vpop.xlane.xlu1 %9277 }
0x5164   :  { %v9282_v26 = vmul.f32 0.03125, %v9278_v14 }
0x5166   :  { %v9284_v35 = vadd.f32 1e-05, %v9282_v26 }
0x5167   :  { %v9281_v19 = vpop.xlane.xlu1 %9280 }
0x5168   :  { %10859 = vrsqrt.f32 %v9284_v35  ;;  %v9283_v55 = vmul.f32 0.03125, %v9281_v19 }
0x516a   :  { %v9285_v41 = vadd.f32 1e-05, %v9283_v55 }
0x516b   :  { %v7533_v27 = vpop.permute.xlu1 %7532 }
0x516c   :  { %10861 = vrsqrt.f32 %v9285_v41  ;;  %7536 = vst.msk [vmem:[#allocation8] sm:$0xff] %vm7535_vm10, %v7533_v27 }
0x516f   :  { %v7782_v29 = vpop.permute.xlu1 %7781 }
0x5170   :  { %7785 = vst.msk [vmem:[#allocation8] sm:$0xff] %vm7784_vm11, %v7782_v29 }
0x5171   :  { %8034 = vst.msk [vmem:[#allocation8] sm:$0xff] %vm8033_vm12, %v8031_v62 }
0x5172   :  { %v10860_v46 = vpop.eup %10859 }
0x5173   :  { %v8528_v30 = vpop.permute.xlu1 %8527  ;;  %v9288_v5 = vmul.f32 %v10860_v46, %v9272_v34 }
0x5174   :  { %8530 = vst.msk [vmem:[#allocation8 + $0x8] sm:$0xff] %vm7535_vm10, %v8528_v30 }
0x5175   :  { %v9294_v36 = vmul.f32 %v9293_v57, %v9288_v5 }
0x5176   :  { %v10862_v61 = vpop.eup %10861 }
0x5177   :  { %v9289_v44 = vmul.f32 %v10862_v61, %v9273_v22  ;;  %v8776_v16 = vpop.permute.xlu1 %8775  ;;  %v9300_v45 = vadd.f32 %v9299_v37, %v9294_v36 }
0x5178   :  { %8778 = vst.msk [vmem:[#allocation8 + $0x8] sm:$0xff] %vm7784_vm11, %v8776_v16 }
0x5179   :  { %v9295_v47 = vmul.f32 %v9293_v57, %v9289_v44  ;;  %10545 = vmatprep.mubr.msk.f32.mxu0 %vm256_vm3, %v9300_v45 }
0x517b   :  { %v9301_v50 = vadd.f32 %v9299_v37, %v9295_v47  ;;  %v9024_v20 = vpop.permute.xlu1 %9023 }
0x517c   :  { %9026 = vst.msk [vmem:[#allocation8 + $0x8] sm:$0xff] %vm8033_vm12, %v9024_v20 }
0x517d   :  { %10546 = vmatmul.mubr.msk.f32.vlgmr.msra.gmra.mrb[106].mxu0 %vm256_vm3, %v9301_v50 }
0x517e   :  { %10924 = shalt.err (!%p10921_p6)
}
0x517f   :  { %s10925_s6 = scalar_lea.hbm %s12527_s23, 256 }
0x5180   :  { %p10926_p7 = scmp.ne.s32.totalorder %s12527_s23, %s10925_s6  ;;  %p10929_p8 = scmp.lt.u32.totalorder %s10925_s6, %s12527_s23 }
0x5182   :  { %p10931_p9 = pnand %p10929_p8, %p10926_p7 }
0x5184   :  { %10934 = shalt.err (!%p10931_p9)
}
0x5185   :  { %s12577_s26 = smov 128   ;;  %s12578_s15 = sld [smem:[#allocation22_spill]] }
0x5186   :  { %9419 = dma.vmem_to_hbm [thread:$0]  %s9414_s19, 256, %s12527_s23, [#allocation9], %s12577_s26, %s12577_s26, %s12576_s16  }
0x5187   :  { %s10986_s17 = smov [#allocation7]  }
0x5188   :  { %s9401_s28 = sshll.u32 %s10986_s17, 4  ;;  %s9402_s28 = int_to_ptr.vmem [resolvable:$true] %s9401_s28 }
0x5189   :  { %s10935_s7 = scalar_lea.vmem %s9402_s28, 256  ;;  %p10940_p11 = scmp.lt.s32.totalorder %s9402_s28, %s9402_s28 }
0x518a   :  { %p10936_p10 = scmp.ne.s32.totalorder %s9402_s28, %s10935_s7  ;;  %p10941_p12 = scmp.lt.s32.totalorder %s10935_s7, %s10935_s7 }
0x518b   :  { %v9633_v17 = vld [vmem:[%s12578_s15] ss:$0 sm:$0xff] }
0x518c   :  { %p10942_p13 = por %p10941_p12, %p10940_p11 }
0x518e   :  { %p10943_p0 = pnand %p10942_p13, %p10936_p10 }
0x5250   :  { %v10547_v51 = vpop.f32.mrb[106].mxu0 }
0x5251   :  { %v9391_v18 = vadd.f32 %v10547_v51, %v9633_v17  ;;  %v9385_v31 = vpop.f32.mrb[107].mxu0 }
0x5252   :  { %v9386_v38 = vadd.f32 %v9633_v17, %v9385_v31 }
0x5253   :  { %9395 = vst.msk [vmem:[#allocation7 + $0x8] sm:$0xff] %vm127_vm0, %v9391_v18 }
0x5254   :  { %9394 = vst.msk [vmem:[#allocation7] sm:$0xff] %vm127_vm0, %v9386_v38 }
0x5255   :  { %10946 = shalt.err (!%p10943_p0)
}
0x5256   :  { %s12579_s4 = sld [smem:[#allocation23_spill]] }
0x525c   :  { %s10947_s29 = scalar_lea.hbm %s12579_s4, 256 }
0x525d   :  { %p10948_p1 = scmp.ne.s32.totalorder %s12579_s4, %s10947_s29  ;;  %p10951_p2 = scmp.lt.u32.totalorder %s10947_s29, %s12579_s4 }
0x525f   :  { %p10953_p3 = pnand %p10951_p2, %p10948_p1 }
0x5261   :  { %10956 = shalt.err (!%p10953_p3)
}
0x5262   :  { %9407 = dma.vmem_to_hbm [thread:$0]  %s9402_s28, 256, %s12579_s4, [#allocation4], %s12577_s26, %s12577_s26, %s12576_s16  }
0x5263   :  { %10961 = dma.done.wait [#allocation4], 256  }
0x5264   :  { %10962 = vsyncadd [#allocation4], 4294967040 }
0x5265   :  { %10963 = dma.done.wait [#allocation9], 256  }
0x5266   :  { %10964 = vsyncadd [#allocation9], 4294967040 }
0x5267   :  { %9426 = vsyncpa [#allocation3], 1 }
0x5268   :  { %9427 = vsyncpa [#allocation6], 1 }
0x5269   :  { %9428 = vsyncpa [#allocation4], 1 }
0x526a   :  { %9429 = vsyncpa [#allocation9], 1 }

</bundles_post_ra>
